<compile_context>
chip_gen: v6e
topology: v6e:2x2x1
jax: 0.10.0
libtpu: 0.0.40
codegen_flags: <defaults>
</compile_context>

<pallas_src>
import functools
import math

import jax
import jax.numpy as jnp
from jax.experimental import pallas as pl
from jax.experimental.pallas import tpu as pltpu

BN_EPS = 1e-5
LANE = 128
VMEM_LIMIT = 64 * 1024 * 1024  # budget against v7x's 64 MiB physical VMEM


def rup(n, m=LANE):
    return ((n + m - 1) // m) * m


# ----------------------------------------------------------------------------
# Fused 3x3 conv kernel: in-VMEM im2col + MXU matmul + f32 epilogue.
# ----------------------------------------------------------------------------
def _conv3x3_kernel(*refs, Ho, Wo, relu, has_res):
    """refs: xp (1,Ho+2,Wo+2,Cinp) bf16, w (9*Cinp,Coutp) bf16, b (1,Coutp) f32,
             [res (1,Ho,Wo,Coutp) bf16], out (1,Ho,Wo,Coutp) bf16."""
    if has_res:
        xp_ref, w_ref, b_ref, res_ref, o_ref = refs
    else:
        xp_ref, w_ref, b_ref, o_ref = refs
        res_ref = None
    bias = b_ref[...]  # (1, Coutp) f32
    for i in range(Ho):  # unrolled: static trip count, LLO-visible
        rows = [xp_ref[0, i + dy, :, :].astype(jnp.float32) for dy in range(3)]
        taps = []
        for dy in range(3):
            for dx in range(3):
                taps.append(rows[dy][dx:dx + Wo, :])          # (Wo, Cinp)
        patch = jnp.concatenate(taps, axis=-1)                # in-VMEM im2col row
        acc = jnp.dot(patch.astype(jnp.bfloat16), w_ref[...],
                      preferred_element_type=jnp.float32)     # MXU, f32 accumulate
        acc = acc + bias                                      # f32 epilogue
        if has_res:
            acc = acc + res_ref[0, i, :, :].astype(jnp.float32)
        if relu:
            acc = jnp.maximum(acc, 0.0)
        o_ref[0, i, :, :] = acc.astype(o_ref.dtype)


@functools.lru_cache(maxsize=None)
def _conv3x3_call(B, H, W, cinp, coutp, relu, has_res):
    kernel = functools.partial(_conv3x3_kernel, Ho=H, Wo=W, relu=relu,
                               has_res=has_res)
    in_specs = [
        pl.BlockSpec((1, H + 2, W + 2, cinp), lambda b: (b, 0, 0, 0)),
        pl.BlockSpec((9 * cinp, coutp), lambda b: (0, 0)),  # resident weights
        pl.BlockSpec((1, coutp), lambda b: (0, 0)),
    ]
    if has_res:
        in_specs.append(pl.BlockSpec((1, H, W, coutp), lambda b: (b, 0, 0, 0)))
    call = pl.pallas_call(
        kernel,
        out_shape=jax.ShapeDtypeStruct((B, H, W, coutp), jnp.bfloat16),
        grid=(B,),
        in_specs=in_specs,
        out_specs=pl.BlockSpec((1, H, W, coutp), lambda b: (b, 0, 0, 0)),
        compiler_params=pltpu.CompilerParams(
            dimension_semantics=("parallel",),  # megacore sharding over batch
            vmem_limit_bytes=VMEM_LIMIT),
    )
    return jax.jit(call)


def conv3x3_bn(x, w, b, *, relu=True, residual=None, stride=1):
    """x: (B,H,W,Cinp) bf16, w: (9*Cinp,Coutp) bf16 (BN folded), b: (1,Coutp) f32."""
    B, H, W, cinp = x.shape
    coutp = w.shape[-1]
    xp = jnp.pad(x, ((0, 0), (1, 1), (1, 1), (0, 0)))
    call = _conv3x3_call(B, H, W, cinp, coutp, relu, residual is not None)
    args = (xp, w, b) if residual is None else (xp, w, b, residual)
    out = call(*args)
    if stride > 1:
        # TODO(synk): strided conv is computed at full resolution then subsampled
        # (mathematically exact); an in-kernel strided store would save the 4x FLOPs.
        out = out[:, ::stride, ::stride, :]
    return out


# ----------------------------------------------------------------------------
# Fused matmul kernel (1x1 shortcut conv and classifier head), M-tiled grid.
# ----------------------------------------------------------------------------
def _matmul_bias_kernel(x_ref, w_ref, b_ref, o_ref, *, relu):
    y = jnp.dot(x_ref[...], w_ref[...], preferred_element_type=jnp.float32)
    y = y + b_ref[...]
    if relu:
        y = jnp.maximum(y, 0.0)
    o_ref[...] = y.astype(o_ref.dtype)


@functools.lru_cache(maxsize=None)
def _matmul_call(Mp, TM, K, N, relu, out_dtype_name):
    call = pl.pallas_call(
        functools.partial(_matmul_bias_kernel, relu=relu),
        out_shape=jax.ShapeDtypeStruct((Mp, N), jnp.dtype(out_dtype_name)),
        grid=(Mp // TM,),
        in_specs=[pl.BlockSpec((TM, K), lambda i: (i, 0)),
                  pl.BlockSpec((K, N), lambda i: (0, 0)),
                  pl.BlockSpec((1, N), lambda i: (0, 0))],
        out_specs=pl.BlockSpec((TM, N), lambda i: (i, 0)),
        compiler_params=pltpu.CompilerParams(
            dimension_semantics=("parallel",),
            vmem_limit_bytes=VMEM_LIMIT),
    )
    return jax.jit(call)


def matmul_bias(x, w, b, *, relu=False, out_dtype=jnp.bfloat16, tile_m=512):
    M, K = x.shape
    N = w.shape[-1]
    TM = min(tile_m, rup(M, 8))
    Mp = rup(M, TM)
    if Mp != M:
        x = jnp.pad(x, ((0, Mp - M), (0, 0)))
    call = _matmul_call(Mp, TM, K, N, relu, jnp.dtype(out_dtype).name)
    return call(x, w, b)[:M]


def conv1x1_bn(x, w, b, stride):
    B = x.shape[0]
    xs = x[:, ::stride, ::stride, :]
    _, Ho, Wo, cinp = xs.shape
    y = matmul_bias(xs.reshape(B * Ho * Wo, cinp), w, b, relu=False)
    return y.reshape(B, Ho, Wo, w.shape[-1])


# ----------------------------------------------------------------------------
# XLA glue (tiny tensors): pooling, channel padding / repacking.
# TODO(synk): maxpool / channel-concat / global avg-pool are left to XLA; fusing
# them into the conv epilogue would remove a few small HBM round trips.
# ----------------------------------------------------------------------------
def maxpool2x2_ceil(x):
    B, H, W, C = x.shape
    ph, pw = (-H) % 2, (-W) % 2
    if ph or pw:
        neg = jnp.finfo(x.dtype).min
        x = jnp.pad(x, ((0, 0), (0, ph), (0, pw), (0, 0)), constant_values=neg)
        H, W = H + ph, W + pw
    return x.reshape(B, H // 2, 2, W // 2, 2, C).max(axis=(2, 4))


def pad_channels(x, cp):
    c = x.shape[-1]
    if c == cp:
        return x
    return jnp.pad(x, ((0, 0),) * (x.ndim - 1) + ((0, cp - c),))


def concat_real(a, ca, b, cb):
    """Concat the real (unpadded) channels of two channel-padded tensors, re-pad."""
    y = jnp.concatenate([a[..., :ca], b[..., :cb]], axis=-1)
    return pad_channels(y, rup(ca + cb))


# ----------------------------------------------------------------------------
# ISNet blocks and forward
# ----------------------------------------------------------------------------
def basic_block(x, blk):
    s = blk["stride"]
    out = conv3x3_bn(x, blk["w1"], blk["b1"], relu=True, stride=s)
    if "ws" in blk:
        sc = conv1x1_bn(x, blk["ws"], blk["bs"], s)
    else:
        sc = x
    return conv3x3_bn(out, blk["w2"], blk["b2"], relu=True, residual=sc, stride=1)


def isnet_forward(params, x_nchw):
    nf = params["nf"]
    num_classes = params["num_classes"]
    x = jnp.transpose(x_nchw, (0, 2, 3, 1)).astype(jnp.float32)  # NCHW -> NHWC
    xpad = pad_channels(x, rup(x.shape[-1])).astype(jnp.bfloat16)

    # slow learner (ResNet trunk)
    h = conv3x3_bn(xpad, params["stem_w"], params["stem_b"], relu=True)
    hs = []
    for layer in params["s_layers"]:
        for blk in layer:
            h = basic_block(h, blk)
        hs.append(h)
    h1, h2, h3, h4 = hs

    # fast learner
    m1_ = conv3x3_bn(xpad, params["conv1_w"], params["conv1_b"], relu=True)
    m1 = concat_real(m1_, nf, h1, nf)
    m2_ = maxpool2x2_ceil(conv3x3_bn(m1, params["conv2_w"], params["conv2_b"], relu=True))
    m2 = concat_real(m2_, 2 * nf, h2, 2 * nf)
    m3_ = maxpool2x2_ceil(conv3x3_bn(m2, params["conv3_w"], params["conv3_b"], relu=True))
    m3 = concat_real(m3_, 4 * nf, h3, 4 * nf)
    m4_ = maxpool2x2_ceil(conv3x3_bn(m3, params["conv4_w"], params["conv4_b"], relu=True))
    m4 = jnp.concatenate([m4_[..., :8 * nf], h4[..., :8 * nf]], axis=-1)  # real chans

    # AdaptiveAvgPool2d((1,1)) + flatten, then the classifier in the matmul kernel.
    f_feat = jnp.mean(m4.astype(jnp.float32), axis=(1, 2))       # (B, 16*nf)
    f_feat = pad_channels(f_feat, rup(16 * nf)).astype(jnp.bfloat16)
    logits = matmul_bias(f_feat, params["lin_w"], params["lin_b"],
                         relu=False, out_dtype=jnp.float32)
    return logits[:, :num_classes]


# ----------------------------------------------------------------------------
# Deterministic parameter init (PyTorch shapes respected, BN folded + padded)
# ----------------------------------------------------------------------------
def _init_conv(key, kh, kw, cin, cout):
    std = math.sqrt(2.0 / (kh * kw * cin))
    return jax.random.normal(key, (kh, kw, cin, cout), jnp.float32) * std


def fold_conv3x3_params(w_hwio, conv_bias, gamma, beta):
    kh, kw, cin, cout = w_hwio.shape
    cinp, coutp = rup(cin), rup(cout)
    scale = gamma / jnp.sqrt(1.0 + BN_EPS)     # eval-mode BN (mean=0, var=1)
    wf = w_hwio * scale
    bf = beta + scale * conv_bias
    wpad = jnp.zeros((kh, kw, cinp, coutp), jnp.float32).at[:, :, :cin, :cout].set(wf)
    bpad = jnp.zeros((coutp,), jnp.float32).at[:cout].set(bf)
    return wpad.reshape(kh * kw * cinp, coutp).astype(jnp.bfloat16), bpad.reshape(1, coutp)


def fold_conv1x1_params(w, gamma, beta):
    cin, cout = w.shape
    cinp, coutp = rup(cin), rup(cout)
    scale = gamma / jnp.sqrt(1.0 + BN_EPS)
    wpad = jnp.zeros((cinp, coutp), jnp.float32).at[:cin, :cout].set(w * scale)
    bpad = jnp.zeros((coutp,), jnp.float32).at[:cout].set(beta)
    return wpad.astype(jnp.bfloat16), bpad.reshape(1, coutp)


def init_params(key, nf=4, num_blocks=(1, 1, 1, 1), num_classes=10):
    keys = iter(jax.random.split(key, 64))
    ones = lambda c: jnp.ones((c,), jnp.float32)
    zeros = lambda c: jnp.zeros((c,), jnp.float32)
    p = {"nf": nf, "num_classes": num_classes}

    # stem: conv3x3(bias=False) + BN
    p["stem_w"], p["stem_b"] = fold_conv3x3_params(
        _init_conv(next(keys), 3, 3, 3, nf), zeros(nf), ones(nf), zeros(nf))

    in_planes = nf
    s_layers = []
    for mult, nb, stride0 in zip((1, 2, 4, 8), num_blocks, (1, 2, 2, 2)):
        planes = nf * mult
        strides = [stride0] + [1] * (nb - 1)
        layer = []
        for s in strides:
            blk = {"stride": s}
            blk["w1"], blk["b1"] = fold_conv3x3_params(
                _init_conv(next(keys), 3, 3, in_planes, planes),
                zeros(planes), ones(planes), zeros(planes))
            blk["w2"], blk["b2"] = fold_conv3x3_params(
                _init_conv(next(keys), 3, 3, planes, planes),
                zeros(planes), ones(planes), zeros(planes))
            if s != 1 or in_planes != planes:
                ws = _init_conv(next(keys), 1, 1, in_planes, planes).reshape(in_planes, planes)
                blk["ws"], blk["bs"] = fold_conv1x1_params(ws, ones(planes), zeros(planes))
            layer.append(blk)
            in_planes = planes
        s_layers.append(layer)
    p["s_layers"] = s_layers

    def fast_conv(k, cin, cout):
        kw_, kb_ = jax.random.split(k)
        bound = 1.0 / math.sqrt(3 * 3 * cin)
        w = _init_conv(kw_, 3, 3, cin, cout)
        b = jax.random.uniform(kb_, (cout,), jnp.float32, -bound, bound)
        return fold_conv3x3_params(w, b, ones(cout), zeros(cout))

    p["conv1_w"], p["conv1_b"] = fast_conv(next(keys), 3, nf)
    p["conv2_w"], p["conv2_b"] = fast_conv(next(keys), nf * 2, nf * 2)
    p["conv3_w"], p["conv3_b"] = fast_conv(next(keys), nf * 4, nf * 4)
    p["conv4_w"], p["conv4_b"] = fast_conv(next(keys), nf * 8, nf * 8)

    fan_in, ncp = nf * 16, rup(num_classes)
    lw = jax.random.normal(next(keys), (fan_in, num_classes), jnp.float32) / math.sqrt(fan_in)
    p["lin_w"] = jnp.zeros((rup(fan_in), ncp), jnp.float32).at[
        :fan_in, :num_classes].set(lw).astype(jnp.bfloat16)
    p["lin_b"] = jnp.zeros((1, ncp), jnp.float32)
    # s_simclr / f_simclr heads are not on the default forward path (return y).
    return p


if __name__ == "__main__":
    nf = 4
    num_classes = 10
    num_blocks = (1, 1, 1, 1)

    key = jax.random.PRNGKey(0)
    kx, kp = jax.random.split(key)
    x = jax.random.normal(kx, (2, 3, 16, 16), jnp.float32)  # NCHW, like PyTorch
    params = init_params(kp, nf=nf, num_blocks=num_blocks, num_classes=num_classes)

    y = isnet_forward(params, x)
    y = jax.block_until_ready(y)
    assert y.shape == (2, num_classes), y.shape
    assert bool(jnp.all(jnp.isfinite(y)))
    print("KERNEL_OK")
</pallas_src>

<mosaic_0001>
module attributes {stable_mosaic.version = 11 : i64} {
  func.func @_conv3x3_kernel(%arg0: i32, %arg1: memref<1x18x18x128xbf16, #tpu.memory_space<vmem>>, %arg2: memref<1152x128xbf16, #tpu.memory_space<vmem>>, %arg3: memref<1x128xf32, #tpu.memory_space<vmem>>, %arg4: memref<1x16x16x128xbf16, #tpu.memory_space<vmem>>) attributes {dimension_semantics = [#tpu.dimension_semantics<parallel>], iteration_bounds = array<i64: 2>, scalar_prefetch = 0 : i64, scratch_operands = 0 : i64, tpu.core_type = #tpu.core_type<tc>, window_params = [{transform_indices = @transform_0, window_bounds = array<i64: 1, 18, 18, 128>}, {pipeline_mode = #tpu.pipeline_mode<synchronous>, transform_indices = @transform_1, window_bounds = array<i64: 1152, 128>}, {pipeline_mode = #tpu.pipeline_mode<synchronous>, transform_indices = @transform_2, window_bounds = array<i64: 1, 128>}, {transform_indices = @transform_3, window_bounds = array<i64: 1, 16, 16, 128>}]} {
    %c0 = arith.constant 0 : index
    %c0_0 = arith.constant 0 : index
    %0 = vector.load %arg3[%c0, %c0_0] : memref<1x128xf32, #tpu.memory_space<vmem>>, vector<1x128xf32>
    %c0_1 = arith.constant 0 : index
    %c0_2 = arith.constant 0 : index
    %c0_3 = arith.constant 0 : index
    %c0_4 = arith.constant 0 : index
    %1 = vector.load %arg1[%c0_1, %c0_2, %c0_3, %c0_4] : memref<1x18x18x128xbf16, #tpu.memory_space<vmem>>, vector<1x1x18x128xbf16>
    %2 = vector.shape_cast %1 : vector<1x1x18x128xbf16> to vector<18x128xbf16>
    %3 = arith.extf %2 : vector<18x128xbf16> to vector<18x128xf32>
    %c0_5 = arith.constant 0 : index
    %c1 = arith.constant 1 : index
    %c0_6 = arith.constant 0 : index
    %c0_7 = arith.constant 0 : index
    %4 = vector.load %arg1[%c0_5, %c1, %c0_6, %c0_7] : memref<1x18x18x128xbf16, #tpu.memory_space<vmem>>, vector<1x1x18x128xbf16>
    %5 = vector.shape_cast %4 : vector<1x1x18x128xbf16> to vector<18x128xbf16>
    %6 = arith.extf %5 : vector<18x128xbf16> to vector<18x128xf32>
    %c0_8 = arith.constant 0 : index
    %c2 = arith.constant 2 : index
    %c0_9 = arith.constant 0 : index
    %c0_10 = arith.constant 0 : index
    %7 = vector.load %arg1[%c0_8, %c2, %c0_9, %c0_10] : memref<1x18x18x128xbf16, #tpu.memory_space<vmem>>, vector<1x1x18x128xbf16>
    %8 = vector.shape_cast %7 : vector<1x1x18x128xbf16> to vector<18x128xbf16>
    %9 = arith.extf %8 : vector<18x128xbf16> to vector<18x128xf32>
    %10 = vector.extract_strided_slice %3 {offsets = [0, 0], sizes = [16, 128], strides = [1, 1]} : vector<18x128xf32> to vector<16x128xf32>
    %11 = vector.extract_strided_slice %3 {offsets = [1, 0], sizes = [16, 128], strides = [1, 1]} : vector<18x128xf32> to vector<16x128xf32>
    %12 = vector.extract_strided_slice %3 {offsets = [2, 0], sizes = [16, 128], strides = [1, 1]} : vector<18x128xf32> to vector<16x128xf32>
    %13 = vector.extract_strided_slice %6 {offsets = [0, 0], sizes = [16, 128], strides = [1, 1]} : vector<18x128xf32> to vector<16x128xf32>
    %14 = vector.extract_strided_slice %6 {offsets = [1, 0], sizes = [16, 128], strides = [1, 1]} : vector<18x128xf32> to vector<16x128xf32>
    %15 = vector.extract_strided_slice %6 {offsets = [2, 0], sizes = [16, 128], strides = [1, 1]} : vector<18x128xf32> to vector<16x128xf32>
    %16 = vector.extract_strided_slice %9 {offsets = [0, 0], sizes = [16, 128], strides = [1, 1]} : vector<18x128xf32> to vector<16x128xf32>
    %17 = vector.extract_strided_slice %9 {offsets = [1, 0], sizes = [16, 128], strides = [1, 1]} : vector<18x128xf32> to vector<16x128xf32>
    %18 = vector.extract_strided_slice %9 {offsets = [2, 0], sizes = [16, 128], strides = [1, 1]} : vector<18x128xf32> to vector<16x128xf32>
    %19 = tpu.concatenate %10, %11, %12, %13, %14, %15, %16, %17, %18 in 1 : vector<16x128xf32>, vector<16x128xf32>, vector<16x128xf32>, vector<16x128xf32>, vector<16x128xf32>, vector<16x128xf32>, vector<16x128xf32>, vector<16x128xf32>, vector<16x128xf32> -> vector<16x1152xf32>
    %20 = arith.truncf %19 : vector<16x1152xf32> to vector<16x1152xbf16>
    %c0_11 = arith.constant 0 : index
    %c0_12 = arith.constant 0 : index
    %21 = vector.load %arg2[%c0_11, %c0_12] : memref<1152x128xbf16, #tpu.memory_space<vmem>>, vector<1152x128xbf16>
    %cst = arith.constant dense<0.000000e+00> : vector<16x128xf32>
    %22 = tpu.matmul %20, %21, %cst {dimension_numbers = #tpu.dot_dimension_numbers<[1], [0], [0], [1], [0, 0, 1, 1], [], []>} : vector<16x1152xbf16>, vector<1152x128xbf16>, vector<16x128xf32> -> vector<16x128xf32>
    %23 = vector.broadcast %0 : vector<1x128xf32> to vector<16x128xf32>
    %24 = arith.addf %22, %23 : vector<16x128xf32>
    %cst_13 = arith.constant 0.000000e+00 : f32
    %25 = vector.broadcast %cst_13 : f32 to vector<16x128xf32>
    %26 = arith.maximumf %24, %25 : vector<16x128xf32>
    %27 = arith.truncf %26 : vector<16x128xf32> to vector<16x128xbf16>
    %c0_14 = arith.constant 0 : index
    %c0_15 = arith.constant 0 : index
    %c0_16 = arith.constant 0 : index
    %c0_17 = arith.constant 0 : index
    %28 = vector.load %arg4[%c0_14, %c0_15, %c0_16, %c0_17] : memref<1x16x16x128xbf16, #tpu.memory_space<vmem>>, vector<1x1x16x128xbf16>
    %29 = vector.shape_cast %28 : vector<1x1x16x128xbf16> to vector<16x128xbf16>
    %30 = vector.shape_cast %27 : vector<16x128xbf16> to vector<1x1x16x128xbf16>
    tpu.vector_store %arg4[%c0_14, %c0_15, %c0_16, %c0_17], %30 {strides = array<i32>} : memref<1x16x16x128xbf16, #tpu.memory_space<vmem>>, vector<1x1x16x128xbf16>,
    %c0_18 = arith.constant 0 : index
    %c1_19 = arith.constant 1 : index
    %c0_20 = arith.constant 0 : index
    %c0_21 = arith.constant 0 : index
    %31 = vector.load %arg1[%c0_18, %c1_19, %c0_20, %c0_21] : memref<1x18x18x128xbf16, #tpu.memory_space<vmem>>, vector<1x1x18x128xbf16>
    %32 = vector.shape_cast %31 : vector<1x1x18x128xbf16> to vector<18x128xbf16>
    %33 = arith.extf %32 : vector<18x128xbf16> to vector<18x128xf32>
    %c0_22 = arith.constant 0 : index
    %c2_23 = arith.constant 2 : index
    %c0_24 = arith.constant 0 : index
    %c0_25 = arith.constant 0 : index
    %34 = vector.load %arg1[%c0_22, %c2_23, %c0_24, %c0_25] : memref<1x18x18x128xbf16, #tpu.memory_space<vmem>>, vector<1x1x18x128xbf16>
    %35 = vector.shape_cast %34 : vector<1x1x18x128xbf16> to vector<18x128xbf16>
    %36 = arith.extf %35 : vector<18x128xbf16> to vector<18x128xf32>
    %c0_26 = arith.constant 0 : index
    %c3 = arith.constant 3 : index
    %c0_27 = arith.constant 0 : index
    %c0_28 = arith.constant 0 : index
    %37 = vector.load %arg1[%c0_26, %c3, %c0_27, %c0_28] : memref<1x18x18x128xbf16, #tpu.memory_space<vmem>>, vector<1x1x18x128xbf16>
    %38 = vector.shape_cast %37 : vector<1x1x18x128xbf16> to vector<18x128xbf16>
    %39 = arith.extf %38 : vector<18x128xbf16> to vector<18x128xf32>
    %40 = vector.extract_strided_slice %33 {offsets = [0, 0], sizes = [16, 128], strides = [1, 1]} : vector<18x128xf32> to vector<16x128xf32>
    %41 = vector.extract_strided_slice %33 {offsets = [1, 0], sizes = [16, 128], strides = [1, 1]} : vector<18x128xf32> to vector<16x128xf32>
    %42 = vector.extract_strided_slice %33 {offsets = [2, 0], sizes = [16, 128], strides = [1, 1]} : vector<18x128xf32> to vector<16x128xf32>
    %43 = vector.extract_strided_slice %36 {offsets = [0, 0], sizes = [16, 128], strides = [1, 1]} : vector<18x128xf32> to vector<16x128xf32>
    %44 = vector.extract_strided_slice %36 {offsets = [1, 0], sizes = [16, 128], strides = [1, 1]} : vector<18x128xf32> to vector<16x128xf32>
    %45 = vector.extract_strided_slice %36 {offsets = [2, 0], sizes = [16, 128], strides = [1, 1]} : vector<18x128xf32> to vector<16x128xf32>
    %46 = vector.extract_strided_slice %39 {offsets = [0, 0], sizes = [16, 128], strides = [1, 1]} : vector<18x128xf32> to vector<16x128xf32>
    %47 = vector.extract_strided_slice %39 {offsets = [1, 0], sizes = [16, 128], strides = [1, 1]} : vector<18x128xf32> to vector<16x128xf32>
    %48 = vector.extract_strided_slice %39 {offsets = [2, 0], sizes = [16, 128], strides = [1, 1]} : vector<18x128xf32> to vector<16x128xf32>
    %49 = tpu.concatenate %40, %41, %42, %43, %44, %45, %46, %47, %48 in 1 : vector<16x128xf32>, vector<16x128xf32>, vector<16x128xf32>, vector<16x128xf32>, vector<16x128xf32>, vector<16x128xf32>, vector<16x128xf32>, vector<16x128xf32>, vector<16x128xf32> -> vector<16x1152xf32>
    %50 = arith.truncf %49 : vector<16x1152xf32> to vector<16x1152xbf16>
    %c0_29 = arith.constant 0 : index
    %c0_30 = arith.constant 0 : index
    %51 = vector.load %arg2[%c0_29, %c0_30] : memref<1152x128xbf16, #tpu.memory_space<vmem>>, vector<1152x128xbf16>
    %cst_31 = arith.constant dense<0.000000e+00> : vector<16x128xf32>
    %52 = tpu.matmul %50, %51, %cst_31 {dimension_numbers = #tpu.dot_dimension_numbers<[1], [0], [0], [1], [0, 0, 1, 1], [], []>} : vector<16x1152xbf16>, vector<1152x128xbf16>, vector<16x128xf32> -> vector<16x128xf32>
    %53 = vector.broadcast %0 : vector<1x128xf32> to vector<16x128xf32>
    %54 = arith.addf %52, %53 : vector<16x128xf32>
    %cst_32 = arith.constant 0.000000e+00 : f32
    %55 = vector.broadcast %cst_32 : f32 to vector<16x128xf32>
    %56 = arith.maximumf %54, %55 : vector<16x128xf32>
    %57 = arith.truncf %56 : vector<16x128xf32> to vector<16x128xbf16>
    %c0_33 = arith.constant 0 : index
    %c1_34 = arith.constant 1 : index
    %c0_35 = arith.constant 0 : index
    %c0_36 = arith.constant 0 : index
    %58 = vector.load %arg4[%c0_33, %c1_34, %c0_35, %c0_36] : memref<1x16x16x128xbf16, #tpu.memory_space<vmem>>, vector<1x1x16x128xbf16>
    %59 = vector.shape_cast %58 : vector<1x1x16x128xbf16> to vector<16x128xbf16>
    %60 = vector.shape_cast %57 : vector<16x128xbf16> to vector<1x1x16x128xbf16>
    tpu.vector_store %arg4[%c0_33, %c1_34, %c0_35, %c0_36], %60 {strides = array<i32>} : memref<1x16x16x128xbf16, #tpu.memory_space<vmem>>, vector<1x1x16x128xbf16>,
    %c0_37 = arith.constant 0 : index
    %c2_38 = arith.constant 2 : index
    %c0_39 = arith.constant 0 : index
    %c0_40 = arith.constant 0 : index
    %61 = vector.load %arg1[%c0_37, %c2_38, %c0_39, %c0_40] : memref<1x18x18x128xbf16, #tpu.memory_space<vmem>>, vector<1x1x18x128xbf16>
    %62 = vector.shape_cast %61 : vector<1x1x18x128xbf16> to vector<18x128xbf16>
    %63 = arith.extf %62 : vector<18x128xbf16> to vector<18x128xf32>
    %c0_41 = arith.constant 0 : index
    %c3_42 = arith.constant 3 : index
    %c0_43 = arith.constant 0 : index
    %c0_44 = arith.constant 0 : index
    %64 = vector.load %arg1[%c0_41, %c3_42, %c0_43, %c0_44] : memref<1x18x18x128xbf16, #tpu.memory_space<vmem>>, vector<1x1x18x128xbf16>
    %65 = vector.shape_cast %64 : vector<1x1x18x128xbf16> to vector<18x128xbf16>
    %66 = arith.extf %65 : vector<18x128xbf16> to vector<18x128xf32>
    %c0_45 = arith.constant 0 : index
    %c4 = arith.constant 4 : index
    %c0_46 = arith.constant 0 : index
    %c0_47 = arith.constant 0 : index
    %67 = vector.load %arg1[%c0_45, %c4, %c0_46, %c0_47] : memref<1x18x18x128xbf16, #tpu.memory_space<vmem>>, vector<1x1x18x128xbf16>
    %68 = vector.shape_cast %67 : vector<1x1x18x128xbf16> to vector<18x128xbf16>
    %69 = arith.extf %68 : vector<18x128xbf16> to vector<18x128xf32>
    %70 = vector.extract_strided_slice %63 {offsets = [0, 0], sizes = [16, 128], strides = [1, 1]} : vector<18x128xf32> to vector<16x128xf32>
    %71 = vector.extract_strided_slice %63 {offsets = [1, 0], sizes = [16, 128], strides = [1, 1]} : vector<18x128xf32> to vector<16x128xf32>
    %72 = vector.extract_strided_slice %63 {offsets = [2, 0], sizes = [16, 128], strides = [1, 1]} : vector<18x128xf32> to vector<16x128xf32>
    %73 = vector.extract_strided_slice %66 {offsets = [0, 0], sizes = [16, 128], strides = [1, 1]} : vector<18x128xf32> to vector<16x128xf32>
    %74 = vector.extract_strided_slice %66 {offsets = [1, 0], sizes = [16, 128], strides = [1, 1]} : vector<18x128xf32> to vector<16x128xf32>
    %75 = vector.extract_strided_slice %66 {offsets = [2, 0], sizes = [16, 128], strides = [1, 1]} : vector<18x128xf32> to vector<16x128xf32>
    %76 = vector.extract_strided_slice %69 {offsets = [0, 0], sizes = [16, 128], strides = [1, 1]} : vector<18x128xf32> to vector<16x128xf32>
    %77 = vector.extract_strided_slice %69 {offsets = [1, 0], sizes = [16, 128], strides = [1, 1]} : vector<18x128xf32> to vector<16x128xf32>
    %78 = vector.extract_strided_slice %69 {offsets = [2, 0], sizes = [16, 128], strides = [1, 1]} : vector<18x128xf32> to vector<16x128xf32>
    %79 = tpu.concatenate %70, %71, %72, %73, %74, %75, %76, %77, %78 in 1 : vector<16x128xf32>, vector<16x128xf32>, vector<16x128xf32>, vector<16x128xf32>, vector<16x128xf32>, vector<16x128xf32>, vector<16x128xf32>, vector<16x128xf32>, vector<16x128xf32> -> vector<16x1152xf32>
    %80 = arith.truncf %79 : vector<16x1152xf32> to vector<16x1152xbf16>
    %c0_48 = arith.constant 0 : index
    %c0_49 = arith.constant 0 : index
    %81 = vector.load %arg2[%c0_48, %c0_49] : memref<1152x128xbf16, #tpu.memory_space<vmem>>, vector<1152x128xbf16>
    %cst_50 = arith.constant dense<0.000000e+00> : vector<16x128xf32>
    %82 = tpu.matmul %80, %81, %cst_50 {dimension_numbers = #tpu.dot_dimension_numbers<[1], [0], [0], [1], [0, 0, 1, 1], [], []>} : vector<16x1152xbf16>, vector<1152x128xbf16>, vector<16x128xf32> -> vector<16x128xf32>
    %83 = vector.broadcast %0 : vector<1x128xf32> to vector<16x128xf32>
    %84 = arith.addf %82, %83 : vector<16x128xf32>
    %cst_51 = arith.constant 0.000000e+00 : f32
    %85 = vector.broadcast %cst_51 : f32 to vector<16x128xf32>
    %86 = arith.maximumf %84, %85 : vector<16x128xf32>
    %87 = arith.truncf %86 : vector<16x128xf32> to vector<16x128xbf16>
    %c0_52 = arith.constant 0 : index
    %c2_53 = arith.constant 2 : index
    %c0_54 = arith.constant 0 : index
    %c0_55 = arith.constant 0 : index
    %88 = vector.load %arg4[%c0_52, %c2_53, %c0_54, %c0_55] : memref<1x16x16x128xbf16, #tpu.memory_space<vmem>>, vector<1x1x16x128xbf16>
    %89 = vector.shape_cast %88 : vector<1x1x16x128xbf16> to vector<16x128xbf16>
    %90 = vector.shape_cast %87 : vector<16x128xbf16> to vector<1x1x16x128xbf16>
    tpu.vector_store %arg4[%c0_52, %c2_53, %c0_54, %c0_55], %90 {strides = array<i32>} : memref<1x16x16x128xbf16, #tpu.memory_space<vmem>>, vector<1x1x16x128xbf16>,
    %c0_56 = arith.constant 0 : index
    %c3_57 = arith.constant 3 : index
    %c0_58 = arith.constant 0 : index
    %c0_59 = arith.constant 0 : index
    %91 = vector.load %arg1[%c0_56, %c3_57, %c0_58, %c0_59] : memref<1x18x18x128xbf16, #tpu.memory_space<vmem>>, vector<1x1x18x128xbf16>
    %92 = vector.shape_cast %91 : vector<1x1x18x128xbf16> to vector<18x128xbf16>
    %93 = arith.extf %92 : vector<18x128xbf16> to vector<18x128xf32>
    %c0_60 = arith.constant 0 : index
    %c4_61 = arith.constant 4 : index
    %c0_62 = arith.constant 0 : index
    %c0_63 = arith.constant 0 : index
    %94 = vector.load %arg1[%c0_60, %c4_61, %c0_62, %c0_63] : memref<1x18x18x128xbf16, #tpu.memory_space<vmem>>, vector<1x1x18x128xbf16>
    %95 = vector.shape_cast %94 : vector<1x1x18x128xbf16> to vector<18x128xbf16>
    %96 = arith.extf %95 : vector<18x128xbf16> to vector<18x128xf32>
    %c0_64 = arith.constant 0 : index
    %c5 = arith.constant 5 : index
    %c0_65 = arith.constant 0 : index
    %c0_66 = arith.constant 0 : index
    %97 = vector.load %arg1[%c0_64, %c5, %c0_65, %c0_66] : memref<1x18x18x128xbf16, #tpu.memory_space<vmem>>, vector<1x1x18x128xbf16>
    %98 = vector.shape_cast %97 : vector<1x1x18x128xbf16> to vector<18x128xbf16>
    %99 = arith.extf %98 : vector<18x128xbf16> to vector<18x128xf32>
    %100 = vector.extract_strided_slice %93 {offsets = [0, 0], sizes = [16, 128], strides = [1, 1]} : vector<18x128xf32> to vector<16x128xf32>
    %101 = vector.extract_strided_slice %93 {offsets = [1, 0], sizes = [16, 128], strides = [1, 1]} : vector<18x128xf32> to vector<16x128xf32>
    %102 = vector.extract_strided_slice %93 {offsets = [2, 0], sizes = [16, 128], strides = [1, 1]} : vector<18x128xf32> to vector<16x128xf32>
    %103 = vector.extract_strided_slice %96 {offsets = [0, 0], sizes = [16, 128], strides = [1, 1]} : vector<18x128xf32> to vector<16x128xf32>
    %104 = vector.extract_strided_slice %96 {offsets = [1, 0], sizes = [16, 128], strides = [1, 1]} : vector<18x128xf32> to vector<16x128xf32>
    %105 = vector.extract_strided_slice %96 {offsets = [2, 0], sizes = [16, 128], strides = [1, 1]} : vector<18x128xf32> to vector<16x128xf32>
    %106 = vector.extract_strided_slice %99 {offsets = [0, 0], sizes = [16, 128], strides = [1, 1]} : vector<18x128xf32> to vector<16x128xf32>
    %107 = vector.extract_strided_slice %99 {offsets = [1, 0], sizes = [16, 128], strides = [1, 1]} : vector<18x128xf32> to vector<16x128xf32>
    %108 = vector.extract_strided_slice %99 {offsets = [2, 0], sizes = [16, 128], strides = [1, 1]} : vector<18x128xf32> to vector<16x128xf32>
    %109 = tpu.concatenate %100, %101, %102, %103, %104, %105, %106, %107, %108 in 1 : vector<16x128xf32>, vector<16x128xf32>, vector<16x128xf32>, vector<16x128xf32>, vector<16x128xf32>, vector<16x128xf32>, vector<16x128xf32>, vector<16x128xf32>, vector<16x128xf32> -> vector<16x1152xf32>
    %110 = arith.truncf %109 : vector<16x1152xf32> to vector<16x1152xbf16>
    %c0_67 = arith.constant 0 : index
    %c0_68 = arith.constant 0 : index
    %111 = vector.load %arg2[%c0_67, %c0_68] : memref<1152x128xbf16, #tpu.memory_space<vmem>>, vector<1152x128xbf16>
    %cst_69 = arith.constant dense<0.000000e+00> : vector<16x128xf32>
    %112 = tpu.matmul %110, %111, %cst_69 {dimension_numbers = #tpu.dot_dimension_numbers<[1], [0], [0], [1], [0, 0, 1, 1], [], []>} : vector<16x1152xbf16>, vector<1152x128xbf16>, vector<16x128xf32> -> vector<16x128xf32>
    %113 = vector.broadcast %0 : vector<1x128xf32> to vector<16x128xf32>
    %114 = arith.addf %112, %113 : vector<16x128xf32>
    %cst_70 = arith.constant 0.000000e+00 : f32
    %115 = vector.broadcast %cst_70 : f32 to vector<16x128xf32>
    %116 = arith.maximumf %114, %115 : vector<16x128xf32>
    %117 = arith.truncf %116 : vector<16x128xf32> to vector<16x128xbf16>
    %c0_71 = arith.constant 0 : index
    %c3_72 = arith.constant 3 : index
    %c0_73 = arith.constant 0 : index
    %c0_74 = arith.constant 0 : index
    %118 = vector.load %arg4[%c0_71, %c3_72, %c0_73, %c0_74] : memref<1x16x16x128xbf16, #tpu.memory_space<vmem>>, vector<1x1x16x128xbf16>
    %119 = vector.shape_cast %118 : vector<1x1x16x128xbf16> to vector<16x128xbf16>
    %120 = vector.shape_cast %117 : vector<16x128xbf16> to vector<1x1x16x128xbf16>
    tpu.vector_store %arg4[%c0_71, %c3_72, %c0_73, %c0_74], %120 {strides = array<i32>} : memref<1x16x16x128xbf16, #tpu.memory_space<vmem>>, vector<1x1x16x128xbf16>,
    %c0_75 = arith.constant 0 : index
    %c4_76 = arith.constant 4 : index
    %c0_77 = arith.constant 0 : index
    %c0_78 = arith.constant 0 : index
    %121 = vector.load %arg1[%c0_75, %c4_76, %c0_77, %c0_78] : memref<1x18x18x128xbf16, #tpu.memory_space<vmem>>, vector<1x1x18x128xbf16>
    %122 = vector.shape_cast %121 : vector<1x1x18x128xbf16> to vector<18x128xbf16>
    %123 = arith.extf %122 : vector<18x128xbf16> to vector<18x128xf32>
    %c0_79 = arith.constant 0 : index
    %c5_80 = arith.constant 5 : index
    %c0_81 = arith.constant 0 : index
    %c0_82 = arith.constant 0 : index
    %124 = vector.load %arg1[%c0_79, %c5_80, %c0_81, %c0_82] : memref<1x18x18x128xbf16, #tpu.memory_space<vmem>>, vector<1x1x18x128xbf16>
    %125 = vector.shape_cast %124 : vector<1x1x18x128xbf16> to vector<18x128xbf16>
    %126 = arith.extf %125 : vector<18x128xbf16> to vector<18x128xf32>
    %c0_83 = arith.constant 0 : index
    %c6 = arith.constant 6 : index
    %c0_84 = arith.constant 0 : index
    %c0_85 = arith.constant 0 : index
    %127 = vector.load %arg1[%c0_83, %c6, %c0_84, %c0_85] : memref<1x18x18x128xbf16, #tpu.memory_space<vmem>>, vector<1x1x18x128xbf16>
    %128 = vector.shape_cast %127 : vector<1x1x18x128xbf16> to vector<18x128xbf16>
    %129 = arith.extf %128 : vector<18x128xbf16> to vector<18x128xf32>
    %130 = vector.extract_strided_slice %123 {offsets = [0, 0], sizes = [16, 128], strides = [1, 1]} : vector<18x128xf32> to vector<16x128xf32>
    %131 = vector.extract_strided_slice %123 {offsets = [1, 0], sizes = [16, 128], strides = [1, 1]} : vector<18x128xf32> to vector<16x128xf32>
    %132 = vector.extract_strided_slice %123 {offsets = [2, 0], sizes = [16, 128], strides = [1, 1]} : vector<18x128xf32> to vector<16x128xf32>
    %133 = vector.extract_strided_slice %126 {offsets = [0, 0], sizes = [16, 128], strides = [1, 1]} : vector<18x128xf32> to vector<16x128xf32>
    %134 = vector.extract_strided_slice %126 {offsets = [1, 0], sizes = [16, 128], strides = [1, 1]} : vector<18x128xf32> to vector<16x128xf32>
    %135 = vector.extract_strided_slice %126 {offsets = [2, 0], sizes = [16, 128], strides = [1, 1]} : vector<18x128xf32> to vector<16x128xf32>
    %136 = vector.extract_strided_slice %129 {offsets = [0, 0], sizes = [16, 128], strides = [1, 1]} : vector<18x128xf32> to vector<16x128xf32>
    %137 = vector.extract_strided_slice %129 {offsets = [1, 0], sizes = [16, 128], strides = [1, 1]} : vector<18x128xf32> to vector<16x128xf32>
    %138 = vector.extract_strided_slice %129 {offsets = [2, 0], sizes = [16, 128], strides = [1, 1]} : vector<18x128xf32> to vector<16x128xf32>
    %139 = tpu.concatenate %130, %131, %132, %133, %134, %135, %136, %137, %138 in 1 : vector<16x128xf32>, vector<16x128xf32>, vector<16x128xf32>, vector<16x128xf32>, vector<16x128xf32>, vector<16x128xf32>, vector<16x128xf32>, vector<16x128xf32>, vector<16x128xf32> -> vector<16x1152xf32>
    %140 = arith.truncf %139 : vector<16x1152xf32> to vector<16x1152xbf16>
    %c0_86 = arith.constant 0 : index
    %c0_87 = arith.constant 0 : index
    %141 = vector.load %arg2[%c0_86, %c0_87] : memref<1152x128xbf16, #tpu.memory_space<vmem>>, vector<1152x128xbf16>
    %cst_88 = arith.constant dense<0.000000e+00> : vector<16x128xf32>
    %142 = tpu.matmul %140, %141, %cst_88 {dimension_numbers = #tpu.dot_dimension_numbers<[1], [0], [0], [1], [0, 0, 1, 1], [], []>} : vector<16x1152xbf16>, vector<1152x128xbf16>, vector<16x128xf32> -> vector<16x128xf32>
    %143 = vector.broadcast %0 : vector<1x128xf32> to vector<16x128xf32>
    %144 = arith.addf %142, %143 : vector<16x128xf32>
    %cst_89 = arith.constant 0.000000e+00 : f32
    %145 = vector.broadcast %cst_89 : f32 to vector<16x128xf32>
    %146 = arith.maximumf %144, %145 : vector<16x128xf32>
    %147 = arith.truncf %146 : vector<16x128xf32> to vector<16x128xbf16>
    %c0_90 = arith.constant 0 : index
    %c4_91 = arith.constant 4 : index
    %c0_92 = arith.constant 0 : index
    %c0_93 = arith.constant 0 : index
    %148 = vector.load %arg4[%c0_90, %c4_91, %c0_92, %c0_93] : memref<1x16x16x128xbf16, #tpu.memory_space<vmem>>, vector<1x1x16x128xbf16>
    %149 = vector.shape_cast %148 : vector<1x1x16x128xbf16> to vector<16x128xbf16>
    %150 = vector.shape_cast %147 : vector<16x128xbf16> to vector<1x1x16x128xbf16>
    tpu.vector_store %arg4[%c0_90, %c4_91, %c0_92, %c0_93], %150 {strides = array<i32>} : memref<1x16x16x128xbf16, #tpu.memory_space<vmem>>, vector<1x1x16x128xbf16>,
    %c0_94 = arith.constant 0 : index
    %c5_95 = arith.constant 5 : index
    %c0_96 = arith.constant 0 : index
    %c0_97 = arith.constant 0 : index
    %151 = vector.load %arg1[%c0_94, %c5_95, %c0_96, %c0_97] : memref<1x18x18x128xbf16, #tpu.memory_space<vmem>>, vector<1x1x18x128xbf16>
    %152 = vector.shape_cast %151 : vector<1x1x18x128xbf16> to vector<18x128xbf16>
    %153 = arith.extf %152 : vector<18x128xbf16> to vector<18x128xf32>
    %c0_98 = arith.constant 0 : index
    %c6_99 = arith.constant 6 : index
    %c0_100 = arith.constant 0 : index
    %c0_101 = arith.constant 0 : index
    %154 = vector.load %arg1[%c0_98, %c6_99, %c0_100, %c0_101] : memref<1x18x18x128xbf16, #tpu.memory_space<vmem>>, vector<1x1x18x128xbf16>
    %155 = vector.shape_cast %154 : vector<1x1x18x128xbf16> to vector<18x128xbf16>
    %156 = arith.extf %155 : vector<18x128xbf16> to vector<18x128xf32>
    %c0_102 = arith.constant 0 : index
    %c7 = arith.constant 7 : index
    %c0_103 = arith.constant 0 : index
    %c0_104 = arith.constant 0 : index
    %157 = vector.load %arg1[%c0_102, %c7, %c0_103, %c0_104] : memref<1x18x18x128xbf16, #tpu.memory_space<vmem>>, vector<1x1x18x128xbf16>
    %158 = vector.shape_cast %157 : vector<1x1x18x128xbf16> to vector<18x128xbf16>
    %159 = arith.extf %158 : vector<18x128xbf16> to vector<18x128xf32>
    %160 = vector.extract_strided_slice %153 {offsets = [0, 0], sizes = [16, 128], strides = [1, 1]} : vector<18x128xf32> to vector<16x128xf32>
    %161 = vector.extract_strided_slice %153 {offsets = [1, 0], sizes = [16, 128], strides = [1, 1]} : vector<18x128xf32> to vector<16x128xf32>
    %162 = vector.extract_strided_slice %153 {offsets = [2, 0], sizes = [16, 128], strides = [1, 1]} : vector<18x128xf32> to vector<16x128xf32>
    %163 = vector.extract_strided_slice %156 {offsets = [0, 0], sizes = [16, 128], strides = [1, 1]} : vector<18x128xf32> to vector<16x128xf32>
    %164 = vector.extract_strided_slice %156 {offsets = [1, 0], sizes = [16, 128], strides = [1, 1]} : vector<18x128xf32> to vector<16x128xf32>
    %165 = vector.extract_strided_slice %156 {offsets = [2, 0], sizes = [16, 128], strides = [1, 1]} : vector<18x128xf32> to vector<16x128xf32>
    %166 = vector.extract_strided_slice %159 {offsets = [0, 0], sizes = [16, 128], strides = [1, 1]} : vector<18x128xf32> to vector<16x128xf32>
    %167 = vector.extract_strided_slice %159 {offsets = [1, 0], sizes = [16, 128], strides = [1, 1]} : vector<18x128xf32> to vector<16x128xf32>
    %168 = vector.extract_strided_slice %159 {offsets = [2, 0], sizes = [16, 128], strides = [1, 1]} : vector<18x128xf32> to vector<16x128xf32>
    %169 = tpu.concatenate %160, %161, %162, %163, %164, %165, %166, %167, %168 in 1 : vector<16x128xf32>, vector<16x128xf32>, vector<16x128xf32>, vector<16x128xf32>, vector<16x128xf32>, vector<16x128xf32>, vector<16x128xf32>, vector<16x128xf32>, vector<16x128xf32> -> vector<16x1152xf32>
    %170 = arith.truncf %169 : vector<16x1152xf32> to vector<16x1152xbf16>
    %c0_105 = arith.constant 0 : index
    %c0_106 = arith.constant 0 : index
    %171 = vector.load %arg2[%c0_105, %c0_106] : memref<1152x128xbf16, #tpu.memory_space<vmem>>, vector<1152x128xbf16>
    %cst_107 = arith.constant dense<0.000000e+00> : vector<16x128xf32>
    %172 = tpu.matmul %170, %171, %cst_107 {dimension_numbers = #tpu.dot_dimension_numbers<[1], [0], [0], [1], [0, 0, 1, 1], [], []>} : vector<16x1152xbf16>, vector<1152x128xbf16>, vector<16x128xf32> -> vector<16x128xf32>
    %173 = vector.broadcast %0 : vector<1x128xf32> to vector<16x128xf32>
    %174 = arith.addf %172, %173 : vector<16x128xf32>
    %cst_108 = arith.constant 0.000000e+00 : f32
    %175 = vector.broadcast %cst_108 : f32 to vector<16x128xf32>
    %176 = arith.maximumf %174, %175 : vector<16x128xf32>
    %177 = arith.truncf %176 : vector<16x128xf32> to vector<16x128xbf16>
    %c0_109 = arith.constant 0 : index
    %c5_110 = arith.constant 5 : index
    %c0_111 = arith.constant 0 : index
    %c0_112 = arith.constant 0 : index
    %178 = vector.load %arg4[%c0_109, %c5_110, %c0_111, %c0_112] : memref<1x16x16x128xbf16, #tpu.memory_space<vmem>>, vector<1x1x16x128xbf16>
    %179 = vector.shape_cast %178 : vector<1x1x16x128xbf16> to vector<16x128xbf16>
    %180 = vector.shape_cast %177 : vector<16x128xbf16> to vector<1x1x16x128xbf16>
    tpu.vector_store %arg4[%c0_109, %c5_110, %c0_111, %c0_112], %180 {strides = array<i32>} : memref<1x16x16x128xbf16, #tpu.memory_space<vmem>>, vector<1x1x16x128xbf16>,
    %c0_113 = arith.constant 0 : index
    %c6_114 = arith.constant 6 : index
    %c0_115 = arith.constant 0 : index
    %c0_116 = arith.constant 0 : index
    %181 = vector.load %arg1[%c0_113, %c6_114, %c0_115, %c0_116] : memref<1x18x18x128xbf16, #tpu.memory_space<vmem>>, vector<1x1x18x128xbf16>
    %182 = vector.shape_cast %181 : vector<1x1x18x128xbf16> to vector<18x128xbf16>
    %183 = arith.extf %182 : vector<18x128xbf16> to vector<18x128xf32>
    %c0_117 = arith.constant 0 : index
    %c7_118 = arith.constant 7 : index
    %c0_119 = arith.constant 0 : index
    %c0_120 = arith.constant 0 : index
    %184 = vector.load %arg1[%c0_117, %c7_118, %c0_119, %c0_120] : memref<1x18x18x128xbf16, #tpu.memory_space<vmem>>, vector<1x1x18x128xbf16>
    %185 = vector.shape_cast %184 : vector<1x1x18x128xbf16> to vector<18x128xbf16>
    %186 = arith.extf %185 : vector<18x128xbf16> to vector<18x128xf32>
    %c0_121 = arith.constant 0 : index
    %c8 = arith.constant 8 : index
    %c0_122 = arith.constant 0 : index
    %c0_123 = arith.constant 0 : index
    %187 = vector.load %arg1[%c0_121, %c8, %c0_122, %c0_123] : memref<1x18x18x128xbf16, #tpu.memory_space<vmem>>, vector<1x1x18x128xbf16>
    %188 = vector.shape_cast %187 : vector<1x1x18x128xbf16> to vector<18x128xbf16>
    %189 = arith.extf %188 : vector<18x128xbf16> to vector<18x128xf32>
    %190 = vector.extract_strided_slice %183 {offsets = [0, 0], sizes = [16, 128], strides = [1, 1]} : vector<18x128xf32> to vector<16x128xf32>
    %191 = vector.extract_strided_slice %183 {offsets = [1, 0], sizes = [16, 128], strides = [1, 1]} : vector<18x128xf32> to vector<16x128xf32>
    %192 = vector.extract_strided_slice %183 {offsets = [2, 0], sizes = [16, 128], strides = [1, 1]} : vector<18x128xf32> to vector<16x128xf32>
    %193 = vector.extract_strided_slice %186 {offsets = [0, 0], sizes = [16, 128], strides = [1, 1]} : vector<18x128xf32> to vector<16x128xf32>
    %194 = vector.extract_strided_slice %186 {offsets = [1, 0], sizes = [16, 128], strides = [1, 1]} : vector<18x128xf32> to vector<16x128xf32>
    %195 = vector.extract_strided_slice %186 {offsets = [2, 0], sizes = [16, 128], strides = [1, 1]} : vector<18x128xf32> to vector<16x128xf32>
    %196 = vector.extract_strided_slice %189 {offsets = [0, 0], sizes = [16, 128], strides = [1, 1]} : vector<18x128xf32> to vector<16x128xf32>
    %197 = vector.extract_strided_slice %189 {offsets = [1, 0], sizes = [16, 128], strides = [1, 1]} : vector<18x128xf32> to vector<16x128xf32>
    %198 = vector.extract_strided_slice %189 {offsets = [2, 0], sizes = [16, 128], strides = [1, 1]} : vector<18x128xf32> to vector<16x128xf32>
    %199 = tpu.concatenate %190, %191, %192, %193, %194, %195, %196, %197, %198 in 1 : vector<16x128xf32>, vector<16x128xf32>, vector<16x128xf32>, vector<16x128xf32>, vector<16x128xf32>, vector<16x128xf32>, vector<16x128xf32>, vector<16x128xf32>, vector<16x128xf32> -> vector<16x1152xf32>
    %200 = arith.truncf %199 : vector<16x1152xf32> to vector<16x1152xbf16>
    %c0_124 = arith.constant 0 : index
    %c0_125 = arith.constant 0 : index
    %201 = vector.load %arg2[%c0_124, %c0_125] : memref<1152x128xbf16, #tpu.memory_space<vmem>>, vector<1152x128xbf16>
    %cst_126 = arith.constant dense<0.000000e+00> : vector<16x128xf32>
    %202 = tpu.matmul %200, %201, %cst_126 {dimension_numbers = #tpu.dot_dimension_numbers<[1], [0], [0], [1], [0, 0, 1, 1], [], []>} : vector<16x1152xbf16>, vector<1152x128xbf16>, vector<16x128xf32> -> vector<16x128xf32>
    %203 = vector.broadcast %0 : vector<1x128xf32> to vector<16x128xf32>
    %204 = arith.addf %202, %203 : vector<16x128xf32>
    %cst_127 = arith.constant 0.000000e+00 : f32
    %205 = vector.broadcast %cst_127 : f32 to vector<16x128xf32>
    %206 = arith.maximumf %204, %205 : vector<16x128xf32>
    %207 = arith.truncf %206 : vector<16x128xf32> to vector<16x128xbf16>
    %c0_128 = arith.constant 0 : index
    %c6_129 = arith.constant 6 : index
    %c0_130 = arith.constant 0 : index
    %c0_131 = arith.constant 0 : index
    %208 = vector.load %arg4[%c0_128, %c6_129, %c0_130, %c0_131] : memref<1x16x16x128xbf16, #tpu.memory_space<vmem>>, vector<1x1x16x128xbf16>
    %209 = vector.shape_cast %208 : vector<1x1x16x128xbf16> to vector<16x128xbf16>
    %210 = vector.shape_cast %207 : vector<16x128xbf16> to vector<1x1x16x128xbf16>
    tpu.vector_store %arg4[%c0_128, %c6_129, %c0_130, %c0_131], %210 {strides = array<i32>} : memref<1x16x16x128xbf16, #tpu.memory_space<vmem>>, vector<1x1x16x128xbf16>,
    %c0_132 = arith.constant 0 : index
    %c7_133 = arith.constant 7 : index
    %c0_134 = arith.constant 0 : index
    %c0_135 = arith.constant 0 : index
    %211 = vector.load %arg1[%c0_132, %c7_133, %c0_134, %c0_135] : memref<1x18x18x128xbf16, #tpu.memory_space<vmem>>, vector<1x1x18x128xbf16>
    %212 = vector.shape_cast %211 : vector<1x1x18x128xbf16> to vector<18x128xbf16>
    %213 = arith.extf %212 : vector<18x128xbf16> to vector<18x128xf32>
    %c0_136 = arith.constant 0 : index
    %c8_137 = arith.constant 8 : index
    %c0_138 = arith.constant 0 : index
    %c0_139 = arith.constant 0 : index
    %214 = vector.load %arg1[%c0_136, %c8_137, %c0_138, %c0_139] : memref<1x18x18x128xbf16, #tpu.memory_space<vmem>>, vector<1x1x18x128xbf16>
    %215 = vector.shape_cast %214 : vector<1x1x18x128xbf16> to vector<18x128xbf16>
    %216 = arith.extf %215 : vector<18x128xbf16> to vector<18x128xf32>
    %c0_140 = arith.constant 0 : index
    %c9 = arith.constant 9 : index
    %c0_141 = arith.constant 0 : index
    %c0_142 = arith.constant 0 : index
    %217 = vector.load %arg1[%c0_140, %c9, %c0_141, %c0_142] : memref<1x18x18x128xbf16, #tpu.memory_space<vmem>>, vector<1x1x18x128xbf16>
    %218 = vector.shape_cast %217 : vector<1x1x18x128xbf16> to vector<18x128xbf16>
    %219 = arith.extf %218 : vector<18x128xbf16> to vector<18x128xf32>
    %220 = vector.extract_strided_slice %213 {offsets = [0, 0], sizes = [16, 128], strides = [1, 1]} : vector<18x128xf32> to vector<16x128xf32>
    %221 = vector.extract_strided_slice %213 {offsets = [1, 0], sizes = [16, 128], strides = [1, 1]} : vector<18x128xf32> to vector<16x128xf32>
    %222 = vector.extract_strided_slice %213 {offsets = [2, 0], sizes = [16, 128], strides = [1, 1]} : vector<18x128xf32> to vector<16x128xf32>
    %223 = vector.extract_strided_slice %216 {offsets = [0, 0], sizes = [16, 128], strides = [1, 1]} : vector<18x128xf32> to vector<16x128xf32>
    %224 = vector.extract_strided_slice %216 {offsets = [1, 0], sizes = [16, 128], strides = [1, 1]} : vector<18x128xf32> to vector<16x128xf32>
    %225 = vector.extract_strided_slice %216 {offsets = [2, 0], sizes = [16, 128], strides = [1, 1]} : vector<18x128xf32> to vector<16x128xf32>
    %226 = vector.extract_strided_slice %219 {offsets = [0, 0], sizes = [16, 128], strides = [1, 1]} : vector<18x128xf32> to vector<16x128xf32>
    %227 = vector.extract_strided_slice %219 {offsets = [1, 0], sizes = [16, 128], strides = [1, 1]} : vector<18x128xf32> to vector<16x128xf32>
    %228 = vector.extract_strided_slice %219 {offsets = [2, 0], sizes = [16, 128], strides = [1, 1]} : vector<18x128xf32> to vector<16x128xf32>
    %229 = tpu.concatenate %220, %221, %222, %223, %224, %225, %226, %227, %228 in 1 : vector<16x128xf32>, vector<16x128xf32>, vector<16x128xf32>, vector<16x128xf32>, vector<16x128xf32>, vector<16x128xf32>, vector<16x128xf32>, vector<16x128xf32>, vector<16x128xf32> -> vector<16x1152xf32>
    %230 = arith.truncf %229 : vector<16x1152xf32> to vector<16x1152xbf16>
    %c0_143 = arith.constant 0 : index
    %c0_144 = arith.constant 0 : index
    %231 = vector.load %arg2[%c0_143, %c0_144] : memref<1152x128xbf16, #tpu.memory_space<vmem>>, vector<1152x128xbf16>
    %cst_145 = arith.constant dense<0.000000e+00> : vector<16x128xf32>
    %232 = tpu.matmul %230, %231, %cst_145 {dimension_numbers = #tpu.dot_dimension_numbers<[1], [0], [0], [1], [0, 0, 1, 1], [], []>} : vector<16x1152xbf16>, vector<1152x128xbf16>, vector<16x128xf32> -> vector<16x128xf32>
    %233 = vector.broadcast %0 : vector<1x128xf32> to vector<16x128xf32>
    %234 = arith.addf %232, %233 : vector<16x128xf32>
    %cst_146 = arith.constant 0.000000e+00 : f32
    %235 = vector.broadcast %cst_146 : f32 to vector<16x128xf32>
    %236 = arith.maximumf %234, %235 : vector<16x128xf32>
    %237 = arith.truncf %236 : vector<16x128xf32> to vector<16x128xbf16>
    %c0_147 = arith.constant 0 : index
    %c7_148 = arith.constant 7 : index
    %c0_149 = arith.constant 0 : index
    %c0_150 = arith.constant 0 : index
    %238 = vector.load %arg4[%c0_147, %c7_148, %c0_149, %c0_150] : memref<1x16x16x128xbf16, #tpu.memory_space<vmem>>, vector<1x1x16x128xbf16>
    %239 = vector.shape_cast %238 : vector<1x1x16x128xbf16> to vector<16x128xbf16>
    %240 = vector.shape_cast %237 : vector<16x128xbf16> to vector<1x1x16x128xbf16>
    tpu.vector_store %arg4[%c0_147, %c7_148, %c0_149, %c0_150], %240 {strides = array<i32>} : memref<1x16x16x128xbf16, #tpu.memory_space<vmem>>, vector<1x1x16x128xbf16>,
    %c0_151 = arith.constant 0 : index
    %c8_152 = arith.constant 8 : index
    %c0_153 = arith.constant 0 : index
    %c0_154 = arith.constant 0 : index
    %241 = vector.load %arg1[%c0_151, %c8_152, %c0_153, %c0_154] : memref<1x18x18x128xbf16, #tpu.memory_space<vmem>>, vector<1x1x18x128xbf16>
    %242 = vector.shape_cast %241 : vector<1x1x18x128xbf16> to vector<18x128xbf16>
    %243 = arith.extf %242 : vector<18x128xbf16> to vector<18x128xf32>
    %c0_155 = arith.constant 0 : index
    %c9_156 = arith.constant 9 : index
    %c0_157 = arith.constant 0 : index
    %c0_158 = arith.constant 0 : index
    %244 = vector.load %arg1[%c0_155, %c9_156, %c0_157, %c0_158] : memref<1x18x18x128xbf16, #tpu.memory_space<vmem>>, vector<1x1x18x128xbf16>
    %245 = vector.shape_cast %244 : vector<1x1x18x128xbf16> to vector<18x128xbf16>
    %246 = arith.extf %245 : vector<18x128xbf16> to vector<18x128xf32>
    %c0_159 = arith.constant 0 : index
    %c10 = arith.constant 10 : index
    %c0_160 = arith.constant 0 : index
    %c0_161 = arith.constant 0 : index
    %247 = vector.load %arg1[%c0_159, %c10, %c0_160, %c0_161] : memref<1x18x18x128xbf16, #tpu.memory_space<vmem>>, vector<1x1x18x128xbf16>
    %248 = vector.shape_cast %247 : vector<1x1x18x128xbf16> to vector<18x128xbf16>
    %249 = arith.extf %248 : vector<18x128xbf16> to vector<18x128xf32>
    %250 = vector.extract_strided_slice %243 {offsets = [0, 0], sizes = [16, 128], strides = [1, 1]} : vector<18x128xf32> to vector<16x128xf32>
    %251 = vector.extract_strided_slice %243 {offsets = [1, 0], sizes = [16, 128], strides = [1, 1]} : vector<18x128xf32> to vector<16x128xf32>
    %252 = vector.extract_strided_slice %243 {offsets = [2, 0], sizes = [16, 128], strides = [1, 1]} : vector<18x128xf32> to vector<16x128xf32>
    %253 = vector.extract_strided_slice %246 {offsets = [0, 0], sizes = [16, 128], strides = [1, 1]} : vector<18x128xf32> to vector<16x128xf32>
    %254 = vector.extract_strided_slice %246 {offsets = [1, 0], sizes = [16, 128], strides = [1, 1]} : vector<18x128xf32> to vector<16x128xf32>
    %255 = vector.extract_strided_slice %246 {offsets = [2, 0], sizes = [16, 128], strides = [1, 1]} : vector<18x128xf32> to vector<16x128xf32>
    %256 = vector.extract_strided_slice %249 {offsets = [0, 0], sizes = [16, 128], strides = [1, 1]} : vector<18x128xf32> to vector<16x128xf32>
    %257 = vector.extract_strided_slice %249 {offsets = [1, 0], sizes = [16, 128], strides = [1, 1]} : vector<18x128xf32> to vector<16x128xf32>
    %258 = vector.extract_strided_slice %249 {offsets = [2, 0], sizes = [16, 128], strides = [1, 1]} : vector<18x128xf32> to vector<16x128xf32>
    %259 = tpu.concatenate %250, %251, %252, %253, %254, %255, %256, %257, %258 in 1 : vector<16x128xf32>, vector<16x128xf32>, vector<16x128xf32>, vector<16x128xf32>, vector<16x128xf32>, vector<16x128xf32>, vector<16x128xf32>, vector<16x128xf32>, vector<16x128xf32> -> vector<16x1152xf32>
    %260 = arith.truncf %259 : vector<16x1152xf32> to vector<16x1152xbf16>
    %c0_162 = arith.constant 0 : index
    %c0_163 = arith.constant 0 : index
    %261 = vector.load %arg2[%c0_162, %c0_163] : memref<1152x128xbf16, #tpu.memory_space<vmem>>, vector<1152x128xbf16>
    %cst_164 = arith.constant dense<0.000000e+00> : vector<16x128xf32>
    %262 = tpu.matmul %260, %261, %cst_164 {dimension_numbers = #tpu.dot_dimension_numbers<[1], [0], [0], [1], [0, 0, 1, 1], [], []>} : vector<16x1152xbf16>, vector<1152x128xbf16>, vector<16x128xf32> -> vector<16x128xf32>
    %263 = vector.broadcast %0 : vector<1x128xf32> to vector<16x128xf32>
    %264 = arith.addf %262, %263 : vector<16x128xf32>
    %cst_165 = arith.constant 0.000000e+00 : f32
    %265 = vector.broadcast %cst_165 : f32 to vector<16x128xf32>
    %266 = arith.maximumf %264, %265 : vector<16x128xf32>
    %267 = arith.truncf %266 : vector<16x128xf32> to vector<16x128xbf16>
    %c0_166 = arith.constant 0 : index
    %c8_167 = arith.constant 8 : index
    %c0_168 = arith.constant 0 : index
    %c0_169 = arith.constant 0 : index
    %268 = vector.load %arg4[%c0_166, %c8_167, %c0_168, %c0_169] : memref<1x16x16x128xbf16, #tpu.memory_space<vmem>>, vector<1x1x16x128xbf16>
    %269 = vector.shape_cast %268 : vector<1x1x16x128xbf16> to vector<16x128xbf16>
    %270 = vector.shape_cast %267 : vector<16x128xbf16> to vector<1x1x16x128xbf16>
    tpu.vector_store %arg4[%c0_166, %c8_167, %c0_168, %c0_169], %270 {strides = array<i32>} : memref<1x16x16x128xbf16, #tpu.memory_space<vmem>>, vector<1x1x16x128xbf16>,
    %c0_170 = arith.constant 0 : index
    %c9_171 = arith.constant 9 : index
    %c0_172 = arith.constant 0 : index
    %c0_173 = arith.constant 0 : index
    %271 = vector.load %arg1[%c0_170, %c9_171, %c0_172, %c0_173] : memref<1x18x18x128xbf16, #tpu.memory_space<vmem>>, vector<1x1x18x128xbf16>
    %272 = vector.shape_cast %271 : vector<1x1x18x128xbf16> to vector<18x128xbf16>
    %273 = arith.extf %272 : vector<18x128xbf16> to vector<18x128xf32>
    %c0_174 = arith.constant 0 : index
    %c10_175 = arith.constant 10 : index
    %c0_176 = arith.constant 0 : index
    %c0_177 = arith.constant 0 : index
    %274 = vector.load %arg1[%c0_174, %c10_175, %c0_176, %c0_177] : memref<1x18x18x128xbf16, #tpu.memory_space<vmem>>, vector<1x1x18x128xbf16>
    %275 = vector.shape_cast %274 : vector<1x1x18x128xbf16> to vector<18x128xbf16>
    %276 = arith.extf %275 : vector<18x128xbf16> to vector<18x128xf32>
    %c0_178 = arith.constant 0 : index
    %c11 = arith.constant 11 : index
    %c0_179 = arith.constant 0 : index
    %c0_180 = arith.constant 0 : index
    %277 = vector.load %arg1[%c0_178, %c11, %c0_179, %c0_180] : memref<1x18x18x128xbf16, #tpu.memory_space<vmem>>, vector<1x1x18x128xbf16>
    %278 = vector.shape_cast %277 : vector<1x1x18x128xbf16> to vector<18x128xbf16>
    %279 = arith.extf %278 : vector<18x128xbf16> to vector<18x128xf32>
    %280 = vector.extract_strided_slice %273 {offsets = [0, 0], sizes = [16, 128], strides = [1, 1]} : vector<18x128xf32> to vector<16x128xf32>
    %281 = vector.extract_strided_slice %273 {offsets = [1, 0], sizes = [16, 128], strides = [1, 1]} : vector<18x128xf32> to vector<16x128xf32>
    %282 = vector.extract_strided_slice %273 {offsets = [2, 0], sizes = [16, 128], strides = [1, 1]} : vector<18x128xf32> to vector<16x128xf32>
    %283 = vector.extract_strided_slice %276 {offsets = [0, 0], sizes = [16, 128], strides = [1, 1]} : vector<18x128xf32> to vector<16x128xf32>
    %284 = vector.extract_strided_slice %276 {offsets = [1, 0], sizes = [16, 128], strides = [1, 1]} : vector<18x128xf32> to vector<16x128xf32>
    %285 = vector.extract_strided_slice %276 {offsets = [2, 0], sizes = [16, 128], strides = [1, 1]} : vector<18x128xf32> to vector<16x128xf32>
    %286 = vector.extract_strided_slice %279 {offsets = [0, 0], sizes = [16, 128], strides = [1, 1]} : vector<18x128xf32> to vector<16x128xf32>
    %287 = vector.extract_strided_slice %279 {offsets = [1, 0], sizes = [16, 128], strides = [1, 1]} : vector<18x128xf32> to vector<16x128xf32>
    %288 = vector.extract_strided_slice %279 {offsets = [2, 0], sizes = [16, 128], strides = [1, 1]} : vector<18x128xf32> to vector<16x128xf32>
    %289 = tpu.concatenate %280, %281, %282, %283, %284, %285, %286, %287, %288 in 1 : vector<16x128xf32>, vector<16x128xf32>, vector<16x128xf32>, vector<16x128xf32>, vector<16x128xf32>, vector<16x128xf32>, vector<16x128xf32>, vector<16x128xf32>, vector<16x128xf32> -> vector<16x1152xf32>
    %290 = arith.truncf %289 : vector<16x1152xf32> to vector<16x1152xbf16>
    %c0_181 = arith.constant 0 : index
    %c0_182 = arith.constant 0 : index
    %291 = vector.load %arg2[%c0_181, %c0_182] : memref<1152x128xbf16, #tpu.memory_space<vmem>>, vector<1152x128xbf16>
    %cst_183 = arith.constant dense<0.000000e+00> : vector<16x128xf32>
    %292 = tpu.matmul %290, %291, %cst_183 {dimension_numbers = #tpu.dot_dimension_numbers<[1], [0], [0], [1], [0, 0, 1, 1], [], []>} : vector<16x1152xbf16>, vector<1152x128xbf16>, vector<16x128xf32> -> vector<16x128xf32>
    %293 = vector.broadcast %0 : vector<1x128xf32> to vector<16x128xf32>
    %294 = arith.addf %292, %293 : vector<16x128xf32>
    %cst_184 = arith.constant 0.000000e+00 : f32
    %295 = vector.broadcast %cst_184 : f32 to vector<16x128xf32>
    %296 = arith.maximumf %294, %295 : vector<16x128xf32>
    %297 = arith.truncf %296 : vector<16x128xf32> to vector<16x128xbf16>
    %c0_185 = arith.constant 0 : index
    %c9_186 = arith.constant 9 : index
    %c0_187 = arith.constant 0 : index
    %c0_188 = arith.constant 0 : index
    %298 = vector.load %arg4[%c0_185, %c9_186, %c0_187, %c0_188] : memref<1x16x16x128xbf16, #tpu.memory_space<vmem>>, vector<1x1x16x128xbf16>
    %299 = vector.shape_cast %298 : vector<1x1x16x128xbf16> to vector<16x128xbf16>
    %300 = vector.shape_cast %297 : vector<16x128xbf16> to vector<1x1x16x128xbf16>
    tpu.vector_store %arg4[%c0_185, %c9_186, %c0_187, %c0_188], %300 {strides = array<i32>} : memref<1x16x16x128xbf16, #tpu.memory_space<vmem>>, vector<1x1x16x128xbf16>,
    %c0_189 = arith.constant 0 : index
    %c10_190 = arith.constant 10 : index
    %c0_191 = arith.constant 0 : index
    %c0_192 = arith.constant 0 : index
    %301 = vector.load %arg1[%c0_189, %c10_190, %c0_191, %c0_192] : memref<1x18x18x128xbf16, #tpu.memory_space<vmem>>, vector<1x1x18x128xbf16>
    %302 = vector.shape_cast %301 : vector<1x1x18x128xbf16> to vector<18x128xbf16>
    %303 = arith.extf %302 : vector<18x128xbf16> to vector<18x128xf32>
    %c0_193 = arith.constant 0 : index
    %c11_194 = arith.constant 11 : index
    %c0_195 = arith.constant 0 : index
    %c0_196 = arith.constant 0 : index
    %304 = vector.load %arg1[%c0_193, %c11_194, %c0_195, %c0_196] : memref<1x18x18x128xbf16, #tpu.memory_space<vmem>>, vector<1x1x18x128xbf16>
    %305 = vector.shape_cast %304 : vector<1x1x18x128xbf16> to vector<18x128xbf16>
    %306 = arith.extf %305 : vector<18x128xbf16> to vector<18x128xf32>
    %c0_197 = arith.constant 0 : index
    %c12 = arith.constant 12 : index
    %c0_198 = arith.constant 0 : index
    %c0_199 = arith.constant 0 : index
    %307 = vector.load %arg1[%c0_197, %c12, %c0_198, %c0_199] : memref<1x18x18x128xbf16, #tpu.memory_space<vmem>>, vector<1x1x18x128xbf16>
    %308 = vector.shape_cast %307 : vector<1x1x18x128xbf16> to vector<18x128xbf16>
    %309 = arith.extf %308 : vector<18x128xbf16> to vector<18x128xf32>
    %310 = vector.extract_strided_slice %303 {offsets = [0, 0], sizes = [16, 128], strides = [1, 1]} : vector<18x128xf32> to vector<16x128xf32>
    %311 = vector.extract_strided_slice %303 {offsets = [1, 0], sizes = [16, 128], strides = [1, 1]} : vector<18x128xf32> to vector<16x128xf32>
    %312 = vector.extract_strided_slice %303 {offsets = [2, 0], sizes = [16, 128], strides = [1, 1]} : vector<18x128xf32> to vector<16x128xf32>
    %313 = vector.extract_strided_slice %306 {offsets = [0, 0], sizes = [16, 128], strides = [1, 1]} : vector<18x128xf32> to vector<16x128xf32>
    %314 = vector.extract_strided_slice %306 {offsets = [1, 0], sizes = [16, 128], strides = [1, 1]} : vector<18x128xf32> to vector<16x128xf32>
    %315 = vector.extract_strided_slice %306 {offsets = [2, 0], sizes = [16, 128], strides = [1, 1]} : vector<18x128xf32> to vector<16x128xf32>
    %316 = vector.extract_strided_slice %309 {offsets = [0, 0], sizes = [16, 128], strides = [1, 1]} : vector<18x128xf32> to vector<16x128xf32>
    %317 = vector.extract_strided_slice %309 {offsets = [1, 0], sizes = [16, 128], strides = [1, 1]} : vector<18x128xf32> to vector<16x128xf32>
    %318 = vector.extract_strided_slice %309 {offsets = [2, 0], sizes = [16, 128], strides = [1, 1]} : vector<18x128xf32> to vector<16x128xf32>
    %319 = tpu.concatenate %310, %311, %312, %313, %314, %315, %316, %317, %318 in 1 : vector<16x128xf32>, vector<16x128xf32>, vector<16x128xf32>, vector<16x128xf32>, vector<16x128xf32>, vector<16x128xf32>, vector<16x128xf32>, vector<16x128xf32>, vector<16x128xf32> -> vector<16x1152xf32>
    %320 = arith.truncf %319 : vector<16x1152xf32> to vector<16x1152xbf16>
    %c0_200 = arith.constant 0 : index
    %c0_201 = arith.constant 0 : index
    %321 = vector.load %arg2[%c0_200, %c0_201] : memref<1152x128xbf16, #tpu.memory_space<vmem>>, vector<1152x128xbf16>
    %cst_202 = arith.constant dense<0.000000e+00> : vector<16x128xf32>
    %322 = tpu.matmul %320, %321, %cst_202 {dimension_numbers = #tpu.dot_dimension_numbers<[1], [0], [0], [1], [0, 0, 1, 1], [], []>} : vector<16x1152xbf16>, vector<1152x128xbf16>, vector<16x128xf32> -> vector<16x128xf32>
    %323 = vector.broadcast %0 : vector<1x128xf32> to vector<16x128xf32>
    %324 = arith.addf %322, %323 : vector<16x128xf32>
    %cst_203 = arith.constant 0.000000e+00 : f32
    %325 = vector.broadcast %cst_203 : f32 to vector<16x128xf32>
    %326 = arith.maximumf %324, %325 : vector<16x128xf32>
    %327 = arith.truncf %326 : vector<16x128xf32> to vector<16x128xbf16>
    %c0_204 = arith.constant 0 : index
    %c10_205 = arith.constant 10 : index
    %c0_206 = arith.constant 0 : index
    %c0_207 = arith.constant 0 : index
    %328 = vector.load %arg4[%c0_204, %c10_205, %c0_206, %c0_207] : memref<1x16x16x128xbf16, #tpu.memory_space<vmem>>, vector<1x1x16x128xbf16>
    %329 = vector.shape_cast %328 : vector<1x1x16x128xbf16> to vector<16x128xbf16>
    %330 = vector.shape_cast %327 : vector<16x128xbf16> to vector<1x1x16x128xbf16>
    tpu.vector_store %arg4[%c0_204, %c10_205, %c0_206, %c0_207], %330 {strides = array<i32>} : memref<1x16x16x128xbf16, #tpu.memory_space<vmem>>, vector<1x1x16x128xbf16>,
    %c0_208 = arith.constant 0 : index
    %c11_209 = arith.constant 11 : index
    %c0_210 = arith.constant 0 : index
    %c0_211 = arith.constant 0 : index
    %331 = vector.load %arg1[%c0_208, %c11_209, %c0_210, %c0_211] : memref<1x18x18x128xbf16, #tpu.memory_space<vmem>>, vector<1x1x18x128xbf16>
    %332 = vector.shape_cast %331 : vector<1x1x18x128xbf16> to vector<18x128xbf16>
    %333 = arith.extf %332 : vector<18x128xbf16> to vector<18x128xf32>
    %c0_212 = arith.constant 0 : index
    %c12_213 = arith.constant 12 : index
    %c0_214 = arith.constant 0 : index
    %c0_215 = arith.constant 0 : index
    %334 = vector.load %arg1[%c0_212, %c12_213, %c0_214, %c0_215] : memref<1x18x18x128xbf16, #tpu.memory_space<vmem>>, vector<1x1x18x128xbf16>
    %335 = vector.shape_cast %334 : vector<1x1x18x128xbf16> to vector<18x128xbf16>
    %336 = arith.extf %335 : vector<18x128xbf16> to vector<18x128xf32>
    %c0_216 = arith.constant 0 : index
    %c13 = arith.constant 13 : index
    %c0_217 = arith.constant 0 : index
    %c0_218 = arith.constant 0 : index
    %337 = vector.load %arg1[%c0_216, %c13, %c0_217, %c0_218] : memref<1x18x18x128xbf16, #tpu.memory_space<vmem>>, vector<1x1x18x128xbf16>
    %338 = vector.shape_cast %337 : vector<1x1x18x128xbf16> to vector<18x128xbf16>
    %339 = arith.extf %338 : vector<18x128xbf16> to vector<18x128xf32>
    %340 = vector.extract_strided_slice %333 {offsets = [0, 0], sizes = [16, 128], strides = [1, 1]} : vector<18x128xf32> to vector<16x128xf32>
    %341 = vector.extract_strided_slice %333 {offsets = [1, 0], sizes = [16, 128], strides = [1, 1]} : vector<18x128xf32> to vector<16x128xf32>
    %342 = vector.extract_strided_slice %333 {offsets = [2, 0], sizes = [16, 128], strides = [1, 1]} : vector<18x128xf32> to vector<16x128xf32>
    %343 = vector.extract_strided_slice %336 {offsets = [0, 0], sizes = [16, 128], strides = [1, 1]} : vector<18x128xf32> to vector<16x128xf32>
    %344 = vector.extract_strided_slice %336 {offsets = [1, 0], sizes = [16, 128], strides = [1, 1]} : vector<18x128xf32> to vector<16x128xf32>
    %345 = vector.extract_strided_slice %336 {offsets = [2, 0], sizes = [16, 128], strides = [1, 1]} : vector<18x128xf32> to vector<16x128xf32>
    %346 = vector.extract_strided_slice %339 {offsets = [0, 0], sizes = [16, 128], strides = [1, 1]} : vector<18x128xf32> to vector<16x128xf32>
    %347 = vector.extract_strided_slice %339 {offsets = [1, 0], sizes = [16, 128], strides = [1, 1]} : vector<18x128xf32> to vector<16x128xf32>
    %348 = vector.extract_strided_slice %339 {offsets = [2, 0], sizes = [16, 128], strides = [1, 1]} : vector<18x128xf32> to vector<16x128xf32>
    %349 = tpu.concatenate %340, %341, %342, %343, %344, %345, %346, %347, %348 in 1 : vector<16x128xf32>, vector<16x128xf32>, vector<16x128xf32>, vector<16x128xf32>, vector<16x128xf32>, vector<16x128xf32>, vector<16x128xf32>, vector<16x128xf32>, vector<16x128xf32> -> vector<16x1152xf32>
    %350 = arith.truncf %349 : vector<16x1152xf32> to vector<16x1152xbf16>
    %c0_219 = arith.constant 0 : index
    %c0_220 = arith.constant 0 : index
    %351 = vector.load %arg2[%c0_219, %c0_220] : memref<1152x128xbf16, #tpu.memory_space<vmem>>, vector<1152x128xbf16>
    %cst_221 = arith.constant dense<0.000000e+00> : vector<16x128xf32>
    %352 = tpu.matmul %350, %351, %cst_221 {dimension_numbers = #tpu.dot_dimension_numbers<[1], [0], [0], [1], [0, 0, 1, 1], [], []>} : vector<16x1152xbf16>, vector<1152x128xbf16>, vector<16x128xf32> -> vector<16x128xf32>
    %353 = vector.broadcast %0 : vector<1x128xf32> to vector<16x128xf32>
    %354 = arith.addf %352, %353 : vector<16x128xf32>
    %cst_222 = arith.constant 0.000000e+00 : f32
    %355 = vector.broadcast %cst_222 : f32 to vector<16x128xf32>
    %356 = arith.maximumf %354, %355 : vector<16x128xf32>
    %357 = arith.truncf %356 : vector<16x128xf32> to vector<16x128xbf16>
    %c0_223 = arith.constant 0 : index
    %c11_224 = arith.constant 11 : index
    %c0_225 = arith.constant 0 : index
    %c0_226 = arith.constant 0 : index
    %358 = vector.load %arg4[%c0_223, %c11_224, %c0_225, %c0_226] : memref<1x16x16x128xbf16, #tpu.memory_space<vmem>>, vector<1x1x16x128xbf16>
    %359 = vector.shape_cast %358 : vector<1x1x16x128xbf16> to vector<16x128xbf16>
    %360 = vector.shape_cast %357 : vector<16x128xbf16> to vector<1x1x16x128xbf16>
    tpu.vector_store %arg4[%c0_223, %c11_224, %c0_225, %c0_226], %360 {strides = array<i32>} : memref<1x16x16x128xbf16, #tpu.memory_space<vmem>>, vector<1x1x16x128xbf16>,
    %c0_227 = arith.constant 0 : index
    %c12_228 = arith.constant 12 : index
    %c0_229 = arith.constant 0 : index
    %c0_230 = arith.constant 0 : index
    %361 = vector.load %arg1[%c0_227, %c12_228, %c0_229, %c0_230] : memref<1x18x18x128xbf16, #tpu.memory_space<vmem>>, vector<1x1x18x128xbf16>
    %362 = vector.shape_cast %361 : vector<1x1x18x128xbf16> to vector<18x128xbf16>
    %363 = arith.extf %362 : vector<18x128xbf16> to vector<18x128xf32>
    %c0_231 = arith.constant 0 : index
    %c13_232 = arith.constant 13 : index
    %c0_233 = arith.constant 0 : index
    %c0_234 = arith.constant 0 : index
    %364 = vector.load %arg1[%c0_231, %c13_232, %c0_233, %c0_234] : memref<1x18x18x128xbf16, #tpu.memory_space<vmem>>, vector<1x1x18x128xbf16>
    %365 = vector.shape_cast %364 : vector<1x1x18x128xbf16> to vector<18x128xbf16>
    %366 = arith.extf %365 : vector<18x128xbf16> to vector<18x128xf32>
    %c0_235 = arith.constant 0 : index
    %c14 = arith.constant 14 : index
    %c0_236 = arith.constant 0 : index
    %c0_237 = arith.constant 0 : index
    %367 = vector.load %arg1[%c0_235, %c14, %c0_236, %c0_237] : memref<1x18x18x128xbf16, #tpu.memory_space<vmem>>, vector<1x1x18x128xbf16>
    %368 = vector.shape_cast %367 : vector<1x1x18x128xbf16> to vector<18x128xbf16>
    %369 = arith.extf %368 : vector<18x128xbf16> to vector<18x128xf32>
    %370 = vector.extract_strided_slice %363 {offsets = [0, 0], sizes = [16, 128], strides = [1, 1]} : vector<18x128xf32> to vector<16x128xf32>
    %371 = vector.extract_strided_slice %363 {offsets = [1, 0], sizes = [16, 128], strides = [1, 1]} : vector<18x128xf32> to vector<16x128xf32>
    %372 = vector.extract_strided_slice %363 {offsets = [2, 0], sizes = [16, 128], strides = [1, 1]} : vector<18x128xf32> to vector<16x128xf32>
    %373 = vector.extract_strided_slice %366 {offsets = [0, 0], sizes = [16, 128], strides = [1, 1]} : vector<18x128xf32> to vector<16x128xf32>
    %374 = vector.extract_strided_slice %366 {offsets = [1, 0], sizes = [16, 128], strides = [1, 1]} : vector<18x128xf32> to vector<16x128xf32>
    %375 = vector.extract_strided_slice %366 {offsets = [2, 0], sizes = [16, 128], strides = [1, 1]} : vector<18x128xf32> to vector<16x128xf32>
    %376 = vector.extract_strided_slice %369 {offsets = [0, 0], sizes = [16, 128], strides = [1, 1]} : vector<18x128xf32> to vector<16x128xf32>
    %377 = vector.extract_strided_slice %369 {offsets = [1, 0], sizes = [16, 128], strides = [1, 1]} : vector<18x128xf32> to vector<16x128xf32>
    %378 = vector.extract_strided_slice %369 {offsets = [2, 0], sizes = [16, 128], strides = [1, 1]} : vector<18x128xf32> to vector<16x128xf32>
    %379 = tpu.concatenate %370, %371, %372, %373, %374, %375, %376, %377, %378 in 1 : vector<16x128xf32>, vector<16x128xf32>, vector<16x128xf32>, vector<16x128xf32>, vector<16x128xf32>, vector<16x128xf32>, vector<16x128xf32>, vector<16x128xf32>, vector<16x128xf32> -> vector<16x1152xf32>
    %380 = arith.truncf %379 : vector<16x1152xf32> to vector<16x1152xbf16>
    %c0_238 = arith.constant 0 : index
    %c0_239 = arith.constant 0 : index
    %381 = vector.load %arg2[%c0_238, %c0_239] : memref<1152x128xbf16, #tpu.memory_space<vmem>>, vector<1152x128xbf16>
    %cst_240 = arith.constant dense<0.000000e+00> : vector<16x128xf32>
    %382 = tpu.matmul %380, %381, %cst_240 {dimension_numbers = #tpu.dot_dimension_numbers<[1], [0], [0], [1], [0, 0, 1, 1], [], []>} : vector<16x1152xbf16>, vector<1152x128xbf16>, vector<16x128xf32> -> vector<16x128xf32>
    %383 = vector.broadcast %0 : vector<1x128xf32> to vector<16x128xf32>
    %384 = arith.addf %382, %383 : vector<16x128xf32>
    %cst_241 = arith.constant 0.000000e+00 : f32
    %385 = vector.broadcast %cst_241 : f32 to vector<16x128xf32>
    %386 = arith.maximumf %384, %385 : vector<16x128xf32>
    %387 = arith.truncf %386 : vector<16x128xf32> to vector<16x128xbf16>
    %c0_242 = arith.constant 0 : index
    %c12_243 = arith.constant 12 : index
    %c0_244 = arith.constant 0 : index
    %c0_245 = arith.constant 0 : index
    %388 = vector.load %arg4[%c0_242, %c12_243, %c0_244, %c0_245] : memref<1x16x16x128xbf16, #tpu.memory_space<vmem>>, vector<1x1x16x128xbf16>
    %389 = vector.shape_cast %388 : vector<1x1x16x128xbf16> to vector<16x128xbf16>
    %390 = vector.shape_cast %387 : vector<16x128xbf16> to vector<1x1x16x128xbf16>
    tpu.vector_store %arg4[%c0_242, %c12_243, %c0_244, %c0_245], %390 {strides = array<i32>} : memref<1x16x16x128xbf16, #tpu.memory_space<vmem>>, vector<1x1x16x128xbf16>,
    %c0_246 = arith.constant 0 : index
    %c13_247 = arith.constant 13 : index
    %c0_248 = arith.constant 0 : index
    %c0_249 = arith.constant 0 : index
    %391 = vector.load %arg1[%c0_246, %c13_247, %c0_248, %c0_249] : memref<1x18x18x128xbf16, #tpu.memory_space<vmem>>, vector<1x1x18x128xbf16>
    %392 = vector.shape_cast %391 : vector<1x1x18x128xbf16> to vector<18x128xbf16>
    %393 = arith.extf %392 : vector<18x128xbf16> to vector<18x128xf32>
    %c0_250 = arith.constant 0 : index
    %c14_251 = arith.constant 14 : index
    %c0_252 = arith.constant 0 : index
    %c0_253 = arith.constant 0 : index
    %394 = vector.load %arg1[%c0_250, %c14_251, %c0_252, %c0_253] : memref<1x18x18x128xbf16, #tpu.memory_space<vmem>>, vector<1x1x18x128xbf16>
    %395 = vector.shape_cast %394 : vector<1x1x18x128xbf16> to vector<18x128xbf16>
    %396 = arith.extf %395 : vector<18x128xbf16> to vector<18x128xf32>
    %c0_254 = arith.constant 0 : index
    %c15 = arith.constant 15 : index
    %c0_255 = arith.constant 0 : index
    %c0_256 = arith.constant 0 : index
    %397 = vector.load %arg1[%c0_254, %c15, %c0_255, %c0_256] : memref<1x18x18x128xbf16, #tpu.memory_space<vmem>>, vector<1x1x18x128xbf16>
    %398 = vector.shape_cast %397 : vector<1x1x18x128xbf16> to vector<18x128xbf16>
    %399 = arith.extf %398 : vector<18x128xbf16> to vector<18x128xf32>
    %400 = vector.extract_strided_slice %393 {offsets = [0, 0], sizes = [16, 128], strides = [1, 1]} : vector<18x128xf32> to vector<16x128xf32>
    %401 = vector.extract_strided_slice %393 {offsets = [1, 0], sizes = [16, 128], strides = [1, 1]} : vector<18x128xf32> to vector<16x128xf32>
    %402 = vector.extract_strided_slice %393 {offsets = [2, 0], sizes = [16, 128], strides = [1, 1]} : vector<18x128xf32> to vector<16x128xf32>
    %403 = vector.extract_strided_slice %396 {offsets = [0, 0], sizes = [16, 128], strides = [1, 1]} : vector<18x128xf32> to vector<16x128xf32>
    %404 = vector.extract_strided_slice %396 {offsets = [1, 0], sizes = [16, 128], strides = [1, 1]} : vector<18x128xf32> to vector<16x128xf32>
    %405 = vector.extract_strided_slice %396 {offsets = [2, 0], sizes = [16, 128], strides = [1, 1]} : vector<18x128xf32> to vector<16x128xf32>
    %406 = vector.extract_strided_slice %399 {offsets = [0, 0], sizes = [16, 128], strides = [1, 1]} : vector<18x128xf32> to vector<16x128xf32>
    %407 = vector.extract_strided_slice %399 {offsets = [1, 0], sizes = [16, 128], strides = [1, 1]} : vector<18x128xf32> to vector<16x128xf32>
    %408 = vector.extract_strided_slice %399 {offsets = [2, 0], sizes = [16, 128], strides = [1, 1]} : vector<18x128xf32> to vector<16x128xf32>
    %409 = tpu.concatenate %400, %401, %402, %403, %404, %405, %406, %407, %408 in 1 : vector<16x128xf32>, vector<16x128xf32>, vector<16x128xf32>, vector<16x128xf32>, vector<16x128xf32>, vector<16x128xf32>, vector<16x128xf32>, vector<16x128xf32>, vector<16x128xf32> -> vector<16x1152xf32>
    %410 = arith.truncf %409 : vector<16x1152xf32> to vector<16x1152xbf16>
    %c0_257 = arith.constant 0 : index
    %c0_258 = arith.constant 0 : index
    %411 = vector.load %arg2[%c0_257, %c0_258] : memref<1152x128xbf16, #tpu.memory_space<vmem>>, vector<1152x128xbf16>
    %cst_259 = arith.constant dense<0.000000e+00> : vector<16x128xf32>
    %412 = tpu.matmul %410, %411, %cst_259 {dimension_numbers = #tpu.dot_dimension_numbers<[1], [0], [0], [1], [0, 0, 1, 1], [], []>} : vector<16x1152xbf16>, vector<1152x128xbf16>, vector<16x128xf32> -> vector<16x128xf32>
    %413 = vector.broadcast %0 : vector<1x128xf32> to vector<16x128xf32>
    %414 = arith.addf %412, %413 : vector<16x128xf32>
    %cst_260 = arith.constant 0.000000e+00 : f32
    %415 = vector.broadcast %cst_260 : f32 to vector<16x128xf32>
    %416 = arith.maximumf %414, %415 : vector<16x128xf32>
    %417 = arith.truncf %416 : vector<16x128xf32> to vector<16x128xbf16>
    %c0_261 = arith.constant 0 : index
    %c13_262 = arith.constant 13 : index
    %c0_263 = arith.constant 0 : index
    %c0_264 = arith.constant 0 : index
    %418 = vector.load %arg4[%c0_261, %c13_262, %c0_263, %c0_264] : memref<1x16x16x128xbf16, #tpu.memory_space<vmem>>, vector<1x1x16x128xbf16>
    %419 = vector.shape_cast %418 : vector<1x1x16x128xbf16> to vector<16x128xbf16>
    %420 = vector.shape_cast %417 : vector<16x128xbf16> to vector<1x1x16x128xbf16>
    tpu.vector_store %arg4[%c0_261, %c13_262, %c0_263, %c0_264], %420 {strides = array<i32>} : memref<1x16x16x128xbf16, #tpu.memory_space<vmem>>, vector<1x1x16x128xbf16>,
    %c0_265 = arith.constant 0 : index
    %c14_266 = arith.constant 14 : index
    %c0_267 = arith.constant 0 : index
    %c0_268 = arith.constant 0 : index
    %421 = vector.load %arg1[%c0_265, %c14_266, %c0_267, %c0_268] : memref<1x18x18x128xbf16, #tpu.memory_space<vmem>>, vector<1x1x18x128xbf16>
    %422 = vector.shape_cast %421 : vector<1x1x18x128xbf16> to vector<18x128xbf16>
    %423 = arith.extf %422 : vector<18x128xbf16> to vector<18x128xf32>
    %c0_269 = arith.constant 0 : index
    %c15_270 = arith.constant 15 : index
    %c0_271 = arith.constant 0 : index
    %c0_272 = arith.constant 0 : index
    %424 = vector.load %arg1[%c0_269, %c15_270, %c0_271, %c0_272] : memref<1x18x18x128xbf16, #tpu.memory_space<vmem>>, vector<1x1x18x128xbf16>
    %425 = vector.shape_cast %424 : vector<1x1x18x128xbf16> to vector<18x128xbf16>
    %426 = arith.extf %425 : vector<18x128xbf16> to vector<18x128xf32>
    %c0_273 = arith.constant 0 : index
    %c16 = arith.constant 16 : index
    %c0_274 = arith.constant 0 : index
    %c0_275 = arith.constant 0 : index
    %427 = vector.load %arg1[%c0_273, %c16, %c0_274, %c0_275] : memref<1x18x18x128xbf16, #tpu.memory_space<vmem>>, vector<1x1x18x128xbf16>
    %428 = vector.shape_cast %427 : vector<1x1x18x128xbf16> to vector<18x128xbf16>
    %429 = arith.extf %428 : vector<18x128xbf16> to vector<18x128xf32>
    %430 = vector.extract_strided_slice %423 {offsets = [0, 0], sizes = [16, 128], strides = [1, 1]} : vector<18x128xf32> to vector<16x128xf32>
    %431 = vector.extract_strided_slice %423 {offsets = [1, 0], sizes = [16, 128], strides = [1, 1]} : vector<18x128xf32> to vector<16x128xf32>
    %432 = vector.extract_strided_slice %423 {offsets = [2, 0], sizes = [16, 128], strides = [1, 1]} : vector<18x128xf32> to vector<16x128xf32>
    %433 = vector.extract_strided_slice %426 {offsets = [0, 0], sizes = [16, 128], strides = [1, 1]} : vector<18x128xf32> to vector<16x128xf32>
    %434 = vector.extract_strided_slice %426 {offsets = [1, 0], sizes = [16, 128], strides = [1, 1]} : vector<18x128xf32> to vector<16x128xf32>
    %435 = vector.extract_strided_slice %426 {offsets = [2, 0], sizes = [16, 128], strides = [1, 1]} : vector<18x128xf32> to vector<16x128xf32>
    %436 = vector.extract_strided_slice %429 {offsets = [0, 0], sizes = [16, 128], strides = [1, 1]} : vector<18x128xf32> to vector<16x128xf32>
    %437 = vector.extract_strided_slice %429 {offsets = [1, 0], sizes = [16, 128], strides = [1, 1]} : vector<18x128xf32> to vector<16x128xf32>
    %438 = vector.extract_strided_slice %429 {offsets = [2, 0], sizes = [16, 128], strides = [1, 1]} : vector<18x128xf32> to vector<16x128xf32>
    %439 = tpu.concatenate %430, %431, %432, %433, %434, %435, %436, %437, %438 in 1 : vector<16x128xf32>, vector<16x128xf32>, vector<16x128xf32>, vector<16x128xf32>, vector<16x128xf32>, vector<16x128xf32>, vector<16x128xf32>, vector<16x128xf32>, vector<16x128xf32> -> vector<16x1152xf32>
    %440 = arith.truncf %439 : vector<16x1152xf32> to vector<16x1152xbf16>
    %c0_276 = arith.constant 0 : index
    %c0_277 = arith.constant 0 : index
    %441 = vector.load %arg2[%c0_276, %c0_277] : memref<1152x128xbf16, #tpu.memory_space<vmem>>, vector<1152x128xbf16>
    %cst_278 = arith.constant dense<0.000000e+00> : vector<16x128xf32>
    %442 = tpu.matmul %440, %441, %cst_278 {dimension_numbers = #tpu.dot_dimension_numbers<[1], [0], [0], [1], [0, 0, 1, 1], [], []>} : vector<16x1152xbf16>, vector<1152x128xbf16>, vector<16x128xf32> -> vector<16x128xf32>
    %443 = vector.broadcast %0 : vector<1x128xf32> to vector<16x128xf32>
    %444 = arith.addf %442, %443 : vector<16x128xf32>
    %cst_279 = arith.constant 0.000000e+00 : f32
    %445 = vector.broadcast %cst_279 : f32 to vector<16x128xf32>
    %446 = arith.maximumf %444, %445 : vector<16x128xf32>
    %447 = arith.truncf %446 : vector<16x128xf32> to vector<16x128xbf16>
    %c0_280 = arith.constant 0 : index
    %c14_281 = arith.constant 14 : index
    %c0_282 = arith.constant 0 : index
    %c0_283 = arith.constant 0 : index
    %448 = vector.load %arg4[%c0_280, %c14_281, %c0_282, %c0_283] : memref<1x16x16x128xbf16, #tpu.memory_space<vmem>>, vector<1x1x16x128xbf16>
    %449 = vector.shape_cast %448 : vector<1x1x16x128xbf16> to vector<16x128xbf16>
    %450 = vector.shape_cast %447 : vector<16x128xbf16> to vector<1x1x16x128xbf16>
    tpu.vector_store %arg4[%c0_280, %c14_281, %c0_282, %c0_283], %450 {strides = array<i32>} : memref<1x16x16x128xbf16, #tpu.memory_space<vmem>>, vector<1x1x16x128xbf16>,
    %c0_284 = arith.constant 0 : index
    %c15_285 = arith.constant 15 : index
    %c0_286 = arith.constant 0 : index
    %c0_287 = arith.constant 0 : index
    %451 = vector.load %arg1[%c0_284, %c15_285, %c0_286, %c0_287] : memref<1x18x18x128xbf16, #tpu.memory_space<vmem>>, vector<1x1x18x128xbf16>
    %452 = vector.shape_cast %451 : vector<1x1x18x128xbf16> to vector<18x128xbf16>
    %453 = arith.extf %452 : vector<18x128xbf16> to vector<18x128xf32>
    %c0_288 = arith.constant 0 : index
    %c16_289 = arith.constant 16 : index
    %c0_290 = arith.constant 0 : index
    %c0_291 = arith.constant 0 : index
    %454 = vector.load %arg1[%c0_288, %c16_289, %c0_290, %c0_291] : memref<1x18x18x128xbf16, #tpu.memory_space<vmem>>, vector<1x1x18x128xbf16>
    %455 = vector.shape_cast %454 : vector<1x1x18x128xbf16> to vector<18x128xbf16>
    %456 = arith.extf %455 : vector<18x128xbf16> to vector<18x128xf32>
    %c0_292 = arith.constant 0 : index
    %c17 = arith.constant 17 : index
    %c0_293 = arith.constant 0 : index
    %c0_294 = arith.constant 0 : index
    %457 = vector.load %arg1[%c0_292, %c17, %c0_293, %c0_294] : memref<1x18x18x128xbf16, #tpu.memory_space<vmem>>, vector<1x1x18x128xbf16>
    %458 = vector.shape_cast %457 : vector<1x1x18x128xbf16> to vector<18x128xbf16>
    %459 = arith.extf %458 : vector<18x128xbf16> to vector<18x128xf32>
    %460 = vector.extract_strided_slice %453 {offsets = [0, 0], sizes = [16, 128], strides = [1, 1]} : vector<18x128xf32> to vector<16x128xf32>
    %461 = vector.extract_strided_slice %453 {offsets = [1, 0], sizes = [16, 128], strides = [1, 1]} : vector<18x128xf32> to vector<16x128xf32>
    %462 = vector.extract_strided_slice %453 {offsets = [2, 0], sizes = [16, 128], strides = [1, 1]} : vector<18x128xf32> to vector<16x128xf32>
    %463 = vector.extract_strided_slice %456 {offsets = [0, 0], sizes = [16, 128], strides = [1, 1]} : vector<18x128xf32> to vector<16x128xf32>
    %464 = vector.extract_strided_slice %456 {offsets = [1, 0], sizes = [16, 128], strides = [1, 1]} : vector<18x128xf32> to vector<16x128xf32>
    %465 = vector.extract_strided_slice %456 {offsets = [2, 0], sizes = [16, 128], strides = [1, 1]} : vector<18x128xf32> to vector<16x128xf32>
    %466 = vector.extract_strided_slice %459 {offsets = [0, 0], sizes = [16, 128], strides = [1, 1]} : vector<18x128xf32> to vector<16x128xf32>
    %467 = vector.extract_strided_slice %459 {offsets = [1, 0], sizes = [16, 128], strides = [1, 1]} : vector<18x128xf32> to vector<16x128xf32>
    %468 = vector.extract_strided_slice %459 {offsets = [2, 0], sizes = [16, 128], strides = [1, 1]} : vector<18x128xf32> to vector<16x128xf32>
    %469 = tpu.concatenate %460, %461, %462, %463, %464, %465, %466, %467, %468 in 1 : vector<16x128xf32>, vector<16x128xf32>, vector<16x128xf32>, vector<16x128xf32>, vector<16x128xf32>, vector<16x128xf32>, vector<16x128xf32>, vector<16x128xf32>, vector<16x128xf32> -> vector<16x1152xf32>
    %470 = arith.truncf %469 : vector<16x1152xf32> to vector<16x1152xbf16>
    %c0_295 = arith.constant 0 : index
    %c0_296 = arith.constant 0 : index
    %471 = vector.load %arg2[%c0_295, %c0_296] : memref<1152x128xbf16, #tpu.memory_space<vmem>>, vector<1152x128xbf16>
    %cst_297 = arith.constant dense<0.000000e+00> : vector<16x128xf32>
    %472 = tpu.matmul %470, %471, %cst_297 {dimension_numbers = #tpu.dot_dimension_numbers<[1], [0], [0], [1], [0, 0, 1, 1], [], []>} : vector<16x1152xbf16>, vector<1152x128xbf16>, vector<16x128xf32> -> vector<16x128xf32>
    %473 = vector.broadcast %0 : vector<1x128xf32> to vector<16x128xf32>
    %474 = arith.addf %472, %473 : vector<16x128xf32>
    %cst_298 = arith.constant 0.000000e+00 : f32
    %475 = vector.broadcast %cst_298 : f32 to vector<16x128xf32>
    %476 = arith.maximumf %474, %475 : vector<16x128xf32>
    %477 = arith.truncf %476 : vector<16x128xf32> to vector<16x128xbf16>
    %c0_299 = arith.constant 0 : index
    %c15_300 = arith.constant 15 : index
    %c0_301 = arith.constant 0 : index
    %c0_302 = arith.constant 0 : index
    %478 = vector.load %arg4[%c0_299, %c15_300, %c0_301, %c0_302] : memref<1x16x16x128xbf16, #tpu.memory_space<vmem>>, vector<1x1x16x128xbf16>
    %479 = vector.shape_cast %478 : vector<1x1x16x128xbf16> to vector<16x128xbf16>
    %480 = vector.shape_cast %477 : vector<16x128xbf16> to vector<1x1x16x128xbf16>
    tpu.vector_store %arg4[%c0_299, %c15_300, %c0_301, %c0_302], %480 {strides = array<i32>} : memref<1x16x16x128xbf16, #tpu.memory_space<vmem>>, vector<1x1x16x128xbf16>,
    return
  }
  func.func @transform_0(%arg0: i32) -> (i32, i32, i32, i32) {
    %c0_i32 = arith.constant 0 : i32
    %c0_i32_0 = arith.constant 0 : i32
    %c0_i32_1 = arith.constant 0 : i32
    %c0_i32_2 = arith.constant 0 : i32
    return %arg0, %c0_i32, %c0_i32_0, %c0_i32_1 : i32, i32, i32, i32
  }
  func.func @transform_1(%arg0: i32) -> (i32, i32) {
    %c0_i32 = arith.constant 0 : i32
    %c0_i32_0 = arith.constant 0 : i32
    %c0_i32_1 = arith.constant 0 : i32
    return %c0_i32, %c0_i32_0 : i32, i32
  }
  func.func @transform_2(%arg0: i32) -> (i32, i32) {
    %c0_i32 = arith.constant 0 : i32
    %c0_i32_0 = arith.constant 0 : i32
    %c0_i32_1 = arith.constant 0 : i32
    return %c0_i32, %c0_i32_0 : i32, i32
  }
  func.func @transform_3(%arg0: i32) -> (i32, i32, i32, i32) {
    %c0_i32 = arith.constant 0 : i32
    %c0_i32_0 = arith.constant 0 : i32
    %c0_i32_1 = arith.constant 0 : i32
    %c0_i32_2 = arith.constant 0 : i32
    return %arg0, %c0_i32, %c0_i32_0, %c0_i32_1 : i32, i32, i32, i32
  }
}

</mosaic_0001>

<bundles_post_ra>
// kernel: tpu_custom_call.1
= control target key start
LH: loop header
LB: loop body
LE: loop exit
PB: predicated region body
PF: predicated region fallthrough
CT: control target
= control target key end

     0   :  { %8 = vsyncpa [#allocation3], 0  ;;  %s23984_s0 = inlined_call_operand.vmem [shape: bf16[2,18,18,128], index: 0, kind: input, shape index: {}]   ;;  %s23985_s1 = inlined_call_operand.vmem [shape: bf16[1152,128], index: 1, kind: input, shape index: {}]   ;;  %s23986_s2 = inlined_call_operand.vmem [shape: f32[1,128], index: 2, kind: input, shape index: {}]   ;;  %s23987_s3 = inlined_call_operand.hbm [shape: bf16[2,16,16,128], index: 3, kind: output, shape index: {}]  }
   0x1   :  { %10 = vsyncpa [#allocation3 + $0x1], 0  ;;  %s19023_s12 = smov 0   ;;  %s19025_s13 = smov 0  }
   0x2   :  { %s19027_s14 = smov 0   ;;  %s19029_s15 = smov 0  }
   0x3 LB: > { %s19044_s16 = sadd.s32 4294967295, %s18996_s15   ;;  %s14223_s17 = sadd.s32 4294967294, %s18996_s15   ;;  %s18996_s15 = sphi %s19029_s15, %s23993_s15   ;;  %s18992_s14 = sphi %s19027_s14, %s23992_s14   ;;  %s18988_s13 = sphi %s19025_s13, %s23991_s13   ;;  %s18984_s12 = sphi %s19023_s12, %s23990_s12  }
   0x4   : > { %s19048_s18 = sadd.s32 1, %s18996_s15   ;;  %s91_s19 = sadd.s32 1, %s18992_s14 }
   0x5   : > { %s88_s20 = ssub.s32 %s18996_s15, %s19048_s18  ;;  %p101_p0 = scmp.ne.s32.totalorder %s18992_s14, %s18988_s13 }
   0x6   : > { %p89_p1 = scmp.eq.s32.totalorder %s88_s20, 0  ;;  %p102_p2 = scmp.eq.s32.totalorder %s19044_s16, 1 }
   0x7   : > { %p107_p3 = scmp.ne.s32.totalorder %s18988_s13, %s18984_s12  ;;  %p108_p4 = scmp.eq.s32.totalorder %s14223_s17, 1 }
   0x8   : > { %s19059_s21 = scalar_select %p89_p1, %s18992_s14, %s91_s19  }
   0x9   : > { %p19061_p5 = por %p102_p2, %p101_p0  ;;  %p19065_p6 = por %p108_p4, %p107_p3 }
   0xa   : > { %p14226_p7 = scmp.ge.s32.totalorder %s18996_s15, 1  ;;  %p140_p8 = scmp.lt.s32.totalorder %s18996_s15, 3 }
   0xc   : > { %p141_p9 = pnand %p14226_p7, %p140_p8 }
   0xd   : > { %p164_p10 = scmp.lt.s32.totalorder (!%p141_p9), %s19044_s16, 1  ;;  %s161_s10 = sand.u32 (!%p141_p9), 1, %s18988_s13  }
   0xe   : > { %144 = sbr.rel (%p141_p9) target bundleno = 1524 (0x5f4), region = 32  ;;  %s20096_s26 = sshll.u32 (!%p141_p9), %s161_s10, 7 }
   0xf   : > { %s15670_s28 = sshll.u32 (!%p141_p9), %s19044_s16, 11  ;;  %s23944_s4 = scalar_lea.sflag (!%p141_p9), [#allocation3], %s161_s10 }
  0x13   : > { %v17682_v0 = vld [vmem:[%s23985_s1 + $0x78] sm:$0xff]   ;;  %v17686_v4 = vld [vmem:[%s23985_s1 + $0x70] sm:$0xff]   ;;  %v17690_v8 = vld [vmem:[%s23985_s1 + $0x68] sm:$0xff]   ;;  %s165_s5 = scalar_select %p164_p10, %s19044_s16, 1  ;;  %vm194_vm0 = vcmask 1046528   ;;  %vm202_vm1 = vcmask 1045504  }
  0x14   : > { %v17683_v1 = vld [vmem:[%s23985_s1 + $0xf8] sm:$0xff]   ;;  %15766 = vmatprep.subr.bf16.mxu0 %v17682_v0  ;;  %v17687_v5 = vld [vmem:[%s23985_s1 + $0xf0] sm:$0xff]   ;;  %v17691_v9 = vld [vmem:[%s23985_s1 + $0xe8] sm:$0xff]   ;;  %vm18999_vm2 = vmmov 0   ;;  %s19000_s16 = smov [#allocation2]  }
  0x15   : > { %v17684_v2 = vld [vmem:[%s23985_s1 + $0x38] sm:$0xff]   ;;  %15788 = vmatprep.subr.bf16.mxu1 %v17683_v1  ;;  %v17688_v6 = vld [vmem:[%s23985_s1 + $0x30] sm:$0xff]   ;;  %v17692_v10 = vld [vmem:[%s23985_s1 + $0x28] sm:$0xff]   ;;  %s17638_s20 = smul.u32 216, %s165_s5  ;;  %s18940_s6 = sshll.u32 %s19000_s16, 4  ;;  %s18941_s6 = int_to_ptr.vmem [resolvable:$false] %s18940_s6 }
  0x16   : > { %v17685_v3 = vld [vmem:[%s23985_s1 + $0xb8] sm:$0xff]   ;;  %15767 = vmatpush3.bf16.msra.mxu0 %v17684_v2  ;;  %v17689_v7 = vld [vmem:[%s23985_s1 + $0xb0] sm:$0xff]   ;;  %v17693_v11 = vld [vmem:[%s23985_s1 + $0xa8] sm:$0xff]   ;;  %s18942_s8 = scalar_lea.vmem %s18941_s6, 4096 }
  0x17   : > { %15789 = vmatpush3.bf16.msra.mxu1 %v17685_v3  ;;  %15768 = vmatprep.subr.bf16.mxu0 %v17686_v4  ;;  %v17694_v12 = vld [vmem:[%s23985_s1 + $0x60] sm:$0xff]   ;;  %v17698_v16 = vld [vmem:[%s23985_s1 + $0x58] sm:$0xff]   ;;  %v17702_v20 = vld [vmem:[%s23985_s1 + $0x50] sm:$0xff]   ;;  %s19166_s7 = scalar_lea.vmem %s23984_s0, %s17638_s20  ;;  %s20125_s20 = scalar_lea.vmem [#allocation2], %s20096_s26 }
  0x18   : > { %15790 = vmatprep.subr.bf16.mxu1 %v17687_v5  ;;  %v17695_v13 = vld [vmem:[%s23985_s1 + $0xe0] sm:$0xff]   ;;  %v17699_v17 = vld [vmem:[%s23985_s1 + $0xd8] sm:$0xff]   ;;  %v17703_v21 = vld [vmem:[%s23985_s1 + $0xd0] sm:$0xff]   ;;  %s14161_s29 = sshll.u32 %s20125_s20, 4  ;;  %s23937_s26 = scalar_lea.hbm %s23987_s3, %s15670_s28  ;;  %s23939_s29 = int_to_ptr.vmem [resolvable:$true] %s14161_s29 }
  0x19   : > { %v17696_v14 = vld [vmem:[%s23985_s1 + $0x20] sm:$0xff]   ;;  %v17700_v18 = vld [vmem:[%s23985_s1 + $0x18] sm:$0xff]   ;;  %v17704_v22 = vld [vmem:[%s23985_s1 + $0x10] sm:$0xff]   ;;  %s18936_s5 = scalar_lea.vmem %s23939_s29, 2048  ;;  %p18943_p0 = scmp.lt.s32.totalorder %s23939_s29, %s18941_s6 }
  0x1a   : > { %15769 = vmatpush3.bf16.msra.mxu0 %v17688_v6  ;;  %v17697_v15 = vld [vmem:[%s23985_s1 + $0xa0] sm:$0xff]   ;;  %v17701_v19 = vld [vmem:[%s23985_s1 + $0x98] sm:$0xff]   ;;  %v17705_v23 = vld [vmem:[%s23985_s1 + $0x90] sm:$0xff]   ;;  %p18937_p11 = scmp.ne.s32.totalorder %s23939_s29, %s18936_s5  ;;  %p18944_p1 = scmp.lt.s32.totalorder %s18942_s8, %s18936_s5 }
  0x1b   : > { %15791 = vmatpush3.bf16.msra.mxu1 %v17689_v7  ;;  %15770 = vmatprep.subr.bf16.mxu0 %v17690_v8  ;;  %v17706_v24 = vld [vmem:[%s23985_s1 + $0x48] sm:$0xff]   ;;  %v17710_v28 = vld [vmem:[%s23985_s1 + $0x40] sm:$0xff]   ;;  %v17716_v38 = vld [vmem:[%s23985_s1 + $0x178] sm:$0xff]  }
  0x1c   : > { %15792 = vmatprep.subr.bf16.mxu1 %v17691_v9  ;;  %v17707_v25 = vld [vmem:[%s23985_s1 + $0xc8] sm:$0xff]   ;;  %v17711_v29 = vld [vmem:[%s23985_s1 + $0xc0] sm:$0xff]   ;;  %v17717_v39 = vld [vmem:[%s23985_s1 + $0x1f8] sm:$0xff]   ;;  %p18938_p12 = pnand %p18937_p11, %p19061_p5  ;;  %p18945_p2 = por %p18944_p1, %p18943_p0 }
  0x1d   : > { %v17708_v26 = vld [vmem:[%s23985_s1 + $0x8] sm:$0xff]   ;;  %v17712_v30 = vld [vmem:[%s23985_s1] sm:$0xff]   ;;  %v17718_v48 = vld [vmem:[%s23985_s1 + $0x138] sm:$0xff]  }
  0x1e   : > { %15771 = vmatpush3.bf16.msra.mxu0 %v17692_v10  ;;  %v17709_v27 = vld [vmem:[%s23985_s1 + $0x88] sm:$0xff]   ;;  %v17713_v31 = vld [vmem:[%s23985_s1 + $0x80] sm:$0xff]   ;;  %v17719_v49 = vld [vmem:[%s23985_s1 + $0x1b8] sm:$0xff]   ;;  %p18939_p13 = pneg %p18938_p12 }
  0x1f   : > { %15793 = vmatpush3.bf16.msra.mxu1 %v17693_v11  ;;  %15772 = vmatprep.subr.bf16.mxu0 %v17694_v12  ;;  %v171_v32 = vld [vmem:[%s19166_s7] sm:$0xff]   ;;  %v173_v33 = vld [vmem:[%s19166_s7 + $0x8] sm:$0x1]  ;;  %v19177_v34 = vld [vmem:[%s19166_s7 + $0xc] sm:$0xff]  }
  0x20   : > { %15794 = vmatprep.subr.bf16.mxu1 %v17695_v13  ;;  %v174_v35 = vunpack.c.l.bf16 %v171_v32  ;;  %v175_v36 = vunpack.c.h.bf16 %v171_v32  ;;  %v176_v37 = vunpack.c.l.bf16 %v173_v33  ;;  %908 = vmatprep.mubr.bf16.mxu1 %v19177_v34  ;;  %v17720_v53 = vld [vmem:[%s23985_s1 + $0x170] sm:$0xff]   ;;  %v17724_v58 = vld [vmem:[%s23985_s1 + $0x168] sm:$0xff]   ;;  %v17728_v62 = vld [vmem:[%s23985_s1 + $0x160] sm:$0xff]   ;;  %v181_v8 = vunpack.c.l.bf16 %v19177_v34  ;;  %p18946_p3 = pnand %p18945_p2, %p18939_p13 }
  0x21   : > { %v17721_v55 = vld [vmem:[%s23985_s1 + $0x1f0] sm:$0xff]   ;;  %v17725_v59 = vld [vmem:[%s23985_s1 + $0x1e8] sm:$0xff]   ;;  %v17729_v63 = vld [vmem:[%s23985_s1 + $0x1e0] sm:$0xff]   ;;  %v182_v10 = vunpack.c.h.bf16 %v19177_v34 }
  0x22   : > { %15773 = vmatpush3.bf16.msra.mxu0 %v17696_v14  ;;  %v195_v40 = vrot.slane %v174_v35, 1  ;;  %v196_v41 = vrot.slane %v175_v36, 1  ;;  %v198_v42 = vrot.slane %v176_v37, 1  ;;  %v203_v43 = vrot.slane %v174_v35, 2  ;;  %v17722_v56 = vld [vmem:[%s23985_s1 + $0x130] sm:$0xff]   ;;  %v17726_v60 = vld [vmem:[%s23985_s1 + $0x128] sm:$0xff]  }
  0x23   : > { %15795 = vmatpush3.bf16.msra.mxu1 %v17697_v15  ;;  %15774 = vmatprep.subr.bf16.mxu0 %v17698_v16  ;;  %v204_v46 = vrot.slane %v175_v36, 2  ;;  %v206_v47 = vrot.slane %v176_v37, 2  ;;  %v17723_v57 = vld [vmem:[%s23985_s1 + $0x1b0] sm:$0xff]   ;;  %v17727_v61 = vld [vmem:[%s23985_s1 + $0x1a8] sm:$0xff]   ;;  %v17730_v0 = vld [vmem:[%s23985_s1 + $0x120] sm:$0xff]   ;;  %v213_v14 = vrot.slane %v181_v8, 1 }
  0x24   : > { %15796 = vmatprep.subr.bf16.mxu1 %v17699_v17  ;;  %v197_v44 = vsel %vm194_vm0, %v195_v40, %v196_v41  ;;  %v199_v45 = vsel %vm194_vm0, %v196_v41, %v198_v42  ;;  %v17731_v1 = vld [vmem:[%s23985_s1 + $0x1a0] sm:$0xff]   ;;  %v17732_v2 = vld [vmem:[%s23985_s1 + $0x158] sm:$0xff]   ;;  %v17736_v6 = vld [vmem:[%s23985_s1 + $0x150] sm:$0xff]   ;;  %v214_v16 = vrot.slane %v182_v10, 1  ;;  %v18998_v42 = vmov 0.0  }
  0x25   : > { %v245_v50 = vpack.c.bf16 %v199_v45, %v197_v44  ;;  %v205_v51 = vsel %vm202_vm1, %v203_v43, %v204_v46  ;;  %v207_v52 = vsel %vm202_vm1, %v204_v46, %v206_v47  ;;  %v17733_v3 = vld [vmem:[%s23985_s1 + $0x1d8] sm:$0xff]   ;;  %v17737_v7 = vld [vmem:[%s23985_s1 + $0x1d0] sm:$0xff]   ;;  %v17740_v12 = vld [vmem:[%s23985_s1 + $0x148] sm:$0xff]  }
  0x26   : > { %15775 = vmatpush3.bf16.msra.mxu0 %v17700_v18  ;;  %v246_v54 = vpack.c.bf16 %v207_v52, %v205_v51  ;;  %v17734_v4 = vld [vmem:[%s23985_s1 + $0x118] sm:$0xff]   ;;  %v17738_v9 = vld [vmem:[%s23985_s1 + $0x110] sm:$0xff]   ;;  %v17741_v13 = vld [vmem:[%s23985_s1 + $0x1c8] sm:$0xff]   ;;  %v220_v18 = vrot.slane %v181_v8, 2 }
  0x27   : > { %15797 = vmatpush3.bf16.msra.mxu1 %v17701_v19  ;;  %15776 = vmatprep.subr.bf16.mxu0 %v17702_v20  ;;  %v17735_v5 = vld [vmem:[%s23985_s1 + $0x198] sm:$0xff]   ;;  %v17739_v11 = vld [vmem:[%s23985_s1 + $0x190] sm:$0xff]   ;;  %v17742_v15 = vld [vmem:[%s23985_s1 + $0x108] sm:$0xff]   ;;  %v221_v20 = vrot.slane %v182_v10, 2 }
  0x28   : > { %15798 = vmatprep.subr.bf16.mxu1 %v17703_v21  ;;  %867 = vmatprep.mubr.bf16.mxu0 %v245_v50  ;;  %v17743_v17 = vld [vmem:[%s23985_s1 + $0x188] sm:$0xff]   ;;  %v17744_v19 = vld [vmem:[%s23985_s1 + $0x140] sm:$0xff]   ;;  %v17748_v33 = vld [vmem:[%s23985_s1 + $0x78] sm:$0xff]  }
  0x29   : > { %v17745_v21 = vld [vmem:[%s23985_s1 + $0x1c0] sm:$0xff]   ;;  %v17750_v46 = vld [vmem:[%s23985_s1 + $0x238] sm:$0xff]   ;;  %v17753_v50 = vld [vmem:[%s23985_s1 + $0x230] sm:$0xff]  }
  0x2a   : > { %15777 = vmatpush3.bf16.msra.mxu0 %v17704_v22  ;;  %v17746_v22 = vld [vmem:[%s23985_s1 + $0x100] sm:$0xff]   ;;  %v17754_v51 = vld [vmem:[%s23985_s1 + $0x30] sm:$0xff]   ;;  %v17755_v52 = vld [vmem:[%s23985_s1 + $0x68] sm:$0xff]  }
  0x2b   : > { %15799 = vmatpush3.bf16.msra.mxu1 %v17705_v23  ;;  %15778 = vmatprep.subr.bf16.mxu0 %v17706_v24  ;;  %v17747_v23 = vld [vmem:[%s23985_s1 + $0x180] sm:$0xff]   ;;  %v14231_v24 = vld [vmem:[%s19166_s7 + $0x14] sm:$0x1]  ;;  %v17767_v8 = vld [vmem:[%s23985_s1 + $0x48] sm:$0xff]  }
  0x2c   : > { %15800 = vmatprep.subr.bf16.mxu1 %v17707_v25  ;;  %v19284_v25 = vld [vmem:[%s19166_s7 + $0x18] sm:$0xff]  }
  0x2e   : > { %15779 = vmatpush3.bf16.msra.mxu0 %v17708_v26  ;;  %v183_v26 = vunpack.c.l.bf16 %v14231_v24  ;;  %v17776_v24 = vld [vmem:[%s23985_s1 + $0xb8] sm:$0xff]  }
  0x2f   : > { %15801 = vmatpush3.bf16.msra.mxu1 %v17709_v27  ;;  %15780 = vmatprep.subr.bf16.mxu0 %v17710_v28  ;;  %v19287_v27 = vld [vmem:[%s19166_s7 + $0x20] sm:$0x1]  ;;  %v188_v28 = vunpack.c.l.bf16 %v19284_v25 }
  0x30   : > { %15802 = vmatprep.subr.bf16.mxu1 %v17711_v29  ;;  %v189_v29 = vunpack.c.h.bf16 %v19284_v25  ;;  %v223_v34 = vrot.slane %v183_v26, 2  ;;  %v216_v35 = vrot.slane %v183_v26, 1  ;;  %v17777_v26 = vld [vmem:[%s23985_s1 + $0x138] sm:$0xff]  }
  0x31   : > { %v230_v36 = vrot.slane %v188_v28, 1 }
  0x32   : > { %15781 = vmatpush3.bf16.msra.mxu0 %v17712_v30  ;;  %v222_v30 = vsel %vm202_vm1, %v220_v18, %v221_v20  ;;  %v231_v37 = vrot.slane %v189_v29, 1  ;;  %v217_v40 = vsel %vm194_vm0, %v214_v16, %v216_v35  ;;  %v17786_v35 = vld [vmem:[%s23985_s1 + $0xe0] sm:$0xff]  }
  0x33   : > { %15803 = vmatpush3.bf16.msra.mxu1 %v17713_v31  ;;  %15810 = vmatprep.subr.bf16.mxu0 %v17716_v38  ;;  %v215_v31 = vsel %vm194_vm0, %v213_v14, %v214_v16 }
  0x34   : > { %15832 = vmatprep.subr.bf16.mxu1 %v17717_v39  ;;  %v224_v39 = vsel %vm202_vm1, %v221_v20, %v223_v34  ;;  %v232_v41 = vsel %vm194_vm0, %v230_v36, %v231_v37  ;;  %v248_v44 = vpack.c.bf16 %v217_v40, %v215_v31  ;;  %v17782_v31 = vld [vmem:[%s23985_s1 + $0xe8] sm:$0xff]   ;;  %v17787_v36 = vld [vmem:[%s23985_s1 + $0x160] sm:$0xff]   ;;  %v17791_v40 = vld [vmem:[%s23985_s1 + $0x158] sm:$0xff]  }
  0x35   : > { %868 = vmatmul.mubr.bf16.vlgmr.msra.gmra.mxu0 %v171_v32  ;;  %v190_v32 = vunpack.c.l.bf16 %v19287_v27  ;;  %v249_v43 = vpack.c.bf16 %v224_v39, %v222_v30  ;;  %v17778_v27 = vld [vmem:[%s23985_s1 + $0xf0] sm:$0xff]   ;;  %v17785_v34 = vld [vmem:[%s23985_s1 + $0x128] sm:$0xff]   ;;  %v17790_v39 = vld [vmem:[%s23985_s1 + $0xd8] sm:$0xff]  }
  0x36   : > { %909 = vmatmul.mubr.bf16.vlgmr.msra.gmra.mxu1 %v246_v54  ;;  %15811 = vmatpush3.bf16.msra.mxu0 %v17718_v48  ;;  %v17751_v48 = vld [vmem:[%s23985_s1 + $0x38] sm:$0xff]   ;;  %v17757_v54 = vld [vmem:[%s23985_s1 + $0x28] sm:$0xff]   ;;  %v17781_v30 = vld [vmem:[%s23985_s1 + $0x130] sm:$0xff]  }
  0x37   : > { %15833 = vmatpush3.bf16.msra.mxu1 %v17719_v49  ;;  %15812 = vmatprep.subr.bf16.mxu0 %v17720_v53  ;;  %v233_v38 = vrot.slane %v190_v32, 1  ;;  %v17752_v49 = vld [vmem:[%s23985_s1 + $0x70] sm:$0xff]   ;;  %v17756_v53 = vld [vmem:[%s23985_s1 + $0x228] sm:$0xff]  }
  0x38   : > { %15834 = vmatprep.subr.bf16.mxu1 %v17721_v55  ;;  %949 = vmatprep.mubr.bf16.mxu0 %v249_v43  ;;  %v17758_v55 = vld [vmem:[%s23985_s1 + $0x60] sm:$0xff]   ;;  %v17793_v43 = vld [vmem:[%s23985_s1 + $0x118] sm:$0xff]  }
  0x39   : > { %v234_v45 = vsel %vm194_vm0, %v231_v37, %v233_v38  ;;  %v17788_v37 = vld [vmem:[%s23985_s1 + $0xa0] sm:$0xff]  }
  0x3a   : > { %15813 = vmatpush3.bf16.msra.mxu0 %v17722_v56  ;;  %v251_v47 = vpack.c.bf16 %v234_v45, %v232_v41  ;;  %v17759_v56 = vld [vmem:[%s23985_s1 + $0x220] sm:$0xff]   ;;  %v17792_v41 = vld [vmem:[%s23985_s1 + $0x98] sm:$0xff]   ;;  %v17795_v45 = vld [vmem:[%s23985_s1 + $0x150] sm:$0xff]  }
  0x3b   : > { %15835 = vmatpush3.bf16.msra.mxu1 %v17723_v57  ;;  %15814 = vmatprep.subr.bf16.mxu0 %v17724_v58  ;;  %v17760_v57 = vld [vmem:[%s23985_s1 + $0x20] sm:$0xff]   ;;  %v17761_v58 = vld [vmem:[%s23985_s1 + $0x58] sm:$0xff]  }
  0x3c   : > { %15836 = vmatprep.subr.bf16.mxu1 %v17725_v59  ;;  %990 = vmatprep.mubr.bf16.mxu1 %v251_v47  ;;  %v17762_v59 = vld [vmem:[%s23985_s1 + $0x218] sm:$0xff]   ;;  %v17789_v38 = vld [vmem:[%s23985_s1 + $0x120] sm:$0xff]   ;;  %v17797_v47 = vld [vmem:[%s23985_s1 + $0x110] sm:$0xff]  }
  0x3e   : > { %15815 = vmatpush3.bf16.msra.mxu0 %v17726_v60  ;;  %v17763_v60 = vld [vmem:[%s23985_s1 + $0x18] sm:$0xff]  }
  0x3f   : > { %15837 = vmatpush3.bf16.msra.mxu1 %v17727_v61  ;;  %15816 = vmatprep.subr.bf16.mxu0 %v17728_v62  ;;  %v17764_v61 = vld [vmem:[%s23985_s1 + $0x50] sm:$0xff]  }
  0x40   : > { %15838 = vmatprep.subr.bf16.mxu1 %v17729_v63  ;;  %v17765_v62 = vld [vmem:[%s23985_s1 + $0x210] sm:$0xff]   ;;  %v237_v63 = vrot.slane %v188_v28, 2 }
  0x41   : > { %v17779_v28 = vld [vmem:[%s23985_s1 + $0x170] sm:$0xff]  }
  0x42   : > { %15817 = vmatpush3.bf16.msra.mxu0 %v17730_v0  ;;  %v238_v0 = vrot.slane %v189_v29, 2  ;;  %v17780_v29 = vld [vmem:[%s23985_s1 + $0xb0] sm:$0xff]  }
  0x43   : > { %15839 = vmatpush3.bf16.msra.mxu1 %v17731_v1  ;;  %15818 = vmatprep.subr.bf16.mxu0 %v17732_v2  ;;  %v19360_v1 = vld [vmem:[%s19166_s7 + $0xc] sm:$0xff]   ;;  %v19363_v2 = vld [vmem:[%s19166_s7 + $0x14] sm:$0x1] }
  0x44   : > { %15840 = vmatprep.subr.bf16.mxu1 %v17733_v3  ;;  %v1055_v3 = vunpack.c.l.bf16 %v19360_v1  ;;  %v239_v20 = vsel %vm202_vm1, %v237_v63, %v238_v0 }
  0x46   : > { %15819 = vmatpush3.bf16.msra.mxu0 %v17734_v4  ;;  %v1056_v4 = vunpack.c.h.bf16 %v19360_v1  ;;  %v1074_v10 = vrot.slane %v1055_v3, 1 }
  0x47   : > { %15841 = vmatpush3.bf16.msra.mxu1 %v17735_v5  ;;  %15820 = vmatprep.subr.bf16.mxu0 %v17736_v6  ;;  %v17766_v5 = vld [vmem:[%s23985_s1 + $0x10] sm:$0xff]   ;;  %v240_v6 = vrot.slane %v190_v32, 2  ;;  %v17783_v32 = vld [vmem:[%s23985_s1 + $0x168] sm:$0xff]  }
  0x48   : > { %15842 = vmatprep.subr.bf16.mxu1 %v17737_v7  ;;  %v1057_v7 = vunpack.c.l.bf16 %v19363_v2 }
  0x4a   : > { %15821 = vmatpush3.bf16.msra.mxu0 %v17738_v9  ;;  %v17768_v9 = vld [vmem:[%s23985_s1 + $0x208] sm:$0xff]  }
  0x4b   : > { %15843 = vmatpush3.bf16.msra.mxu1 %v17739_v11  ;;  %15822 = vmatprep.subr.bf16.mxu0 %v17740_v12  ;;  %v1075_v11 = vrot.slane %v1056_v4, 1  ;;  %v17769_v12 = vld [vmem:[%s23985_s1 + $0x8] sm:$0xff]  }
  0x4c   : > { %15844 = vmatprep.subr.bf16.mxu1 %v17741_v13  ;;  %v1077_v13 = vrot.slane %v1057_v7, 1 }
  0x4d   : > { %v1076_v14 = vsel %vm194_vm0, %v1074_v10, %v1075_v11 }
  0x4e   : > { %15823 = vmatpush3.bf16.msra.mxu0 %v17742_v15  ;;  %v17770_v15 = vld [vmem:[%s23985_s1 + $0x40] sm:$0xff]   ;;  %v1078_v16 = vsel %vm194_vm0, %v1075_v11, %v1077_v13  ;;  %v17807_v11 = vld [vmem:[%s23985_s1 + $0x1f8] sm:$0xff]  }
  0x4f   : > { %15845 = vmatpush3.bf16.msra.mxu1 %v17743_v17  ;;  %15824 = vmatprep.subr.bf16.mxu0 %v17744_v19  ;;  %v17771_v17 = vld [vmem:[%s23985_s1 + $0x200] sm:$0xff]   ;;  %v1123_v18 = vpack.c.bf16 %v1078_v16, %v1076_v14 }
  0x50   : > { %15846 = vmatprep.subr.bf16.mxu1 %v17745_v21  ;;  %v17772_v19 = vld [vmem:[%s23985_s1] sm:$0xff]   ;;  %v241_v21 = vsel %vm202_vm1, %v238_v0, %v240_v6 }
  0x51   : > { %v17804_v6 = vld [vmem:[%s23985_s1 + $0x80] sm:$0xff]  }
  0x52   : > { %15825 = vmatpush3.bf16.msra.mxu0 %v17746_v22  ;;  %v17773_v22 = vld [vmem:[%s23985_s1 + $0xf8] sm:$0xff]  }
  0x53   : > { %15847 = vmatpush3.bf16.msra.mxu1 %v17747_v23  ;;  %17318 = vmatprep.subr.bf16.mxu0 %v18998_v42  ;;  %v17774_v23 = vld [vmem:[%s23985_s1 + $0x178] sm:$0xff]  }
  0x54   : > { %15863 = vmatprep.subr.bf16.mxu1 %v17748_v33  ;;  %v17784_v33 = vld [vmem:[%s23985_s1 + $0xa8] sm:$0xff]  }
  0x55   : > { %950 = vmatmul.mubr.bf16.vlgmr.msra.gmra.mxu0 %v248_v44  ;;  %v17794_v44 = vld [vmem:[%s23985_s1 + $0xd0] sm:$0xff]  }
  0x56   : > { %991 = vmatmul.mubr.bf16.vlgmr.msra.gmra.mxu1 %v19284_v25  ;;  %17319 = vmatpush3.bf16.msra.mxu0 %v17750_v46  ;;  %v252_v25 = vpack.c.bf16 %v241_v21, %v239_v20  ;;  %v17796_v46 = vld [vmem:[%s23985_s1 + $0x90] sm:$0xff]   ;;  %v17813_v21 = vld [vmem:[%s23985_s1 + $0x1e8] sm:$0xff]  }
  0x57   : > { %15864 = vmatpush3.bf16.msra.mxu1 %v17751_v48  ;;  %17320 = vmatprep.subr.bf16.mxu0 %v18998_v42  ;;  %v17798_v48 = vld [vmem:[%s23985_s1 + $0xc8] sm:$0xff]   ;;  %v17812_v20 = vld [vmem:[%s23985_s1 + $0x230] sm:$0xff]  }
  0x58   : > { %15865 = vmatprep.subr.bf16.mxu1 %v17752_v49  ;;  %17334 = vmatprep.mubr.msk.bf16.mxu0 %vm18999_vm2, %v18998_v42  ;;  %v14316_v49 = vld [vmem:[%s19166_s7 + $0x18] sm:$0xff]  }
  0x59   : > { %1739 = vmatprep.mubr.bf16.mxu1 %v1123_v18  ;;  %v17810_v18 = vld [vmem:[%s23985_s1 + $0x1f0] sm:$0xff]  }
  0x5a   : > { %17321 = vmatpush3.bf16.msra.mxu0 %v17753_v50  ;;  %v1081_v50 = vrot.slane %v1055_v3, 2 }
  0x5b   : > { %15866 = vmatpush3.bf16.msra.mxu1 %v17754_v51  ;;  %17322 = vmatprep.subr.bf16.mxu0 %v18998_v42  ;;  %v1082_v51 = vrot.slane %v1056_v4, 2  ;;  %v17803_v4 = vld [vmem:[%s23985_s1 + $0x140] sm:$0xff]  }
  0x5c   : > { %15867 = vmatprep.subr.bf16.mxu1 %v17755_v52  ;;  %v14318_v52 = vld [vmem:[%s19166_s7 + $0x20] sm:$0x1] }
  0x5e   : > { %17323 = vmatpush3.bf16.msra.mxu0 %v17756_v53  ;;  %v17799_v53 = vld [vmem:[%s23985_s1 + $0x148] sm:$0xff]  }
  0x5f   : > { %15868 = vmatpush3.bf16.msra.mxu1 %v17757_v54  ;;  %17324 = vmatprep.subr.bf16.mxu0 %v18998_v42  ;;  %v1061_v54 = vunpack.c.l.bf16 %v14316_v49 }
  0x60   : > { %15869 = vmatprep.subr.bf16.mxu1 %v17758_v55  ;;  %v1062_v55 = vunpack.c.h.bf16 %v14316_v49 }
  0x61   : > { %v1091_v63 = vrot.slane %v1061_v54, 1 }
  0x62   : > { %17325 = vmatpush3.bf16.msra.mxu0 %v17759_v56  ;;  %v1063_v56 = vunpack.c.l.bf16 %v14318_v52  ;;  %v1092_v0 = vrot.slane %v1062_v55, 1  ;;  %v17829_v52 = vld [vmem:[%s23985_s1 + $0x180] sm:$0xff]  }
  0x63   : > { %15870 = vmatpush3.bf16.msra.mxu1 %v17760_v57  ;;  %17326 = vmatprep.subr.bf16.mxu0 %v18998_v42  ;;  %v17800_v57 = vld [vmem:[%s23985_s1 + $0x88] sm:$0xff]  }
  0x64   : > { %15871 = vmatprep.subr.bf16.mxu1 %v17761_v58  ;;  %v1084_v58 = vrot.slane %v1057_v7, 2  ;;  %v1094_v3 = vrot.slane %v1063_v56, 1 }
  0x66   : > { %17327 = vmatpush3.bf16.msra.mxu0 %v17762_v59  ;;  %v17801_v59 = vld [vmem:[%s23985_s1 + $0x108] sm:$0xff]   ;;  %v1085_v10 = vsel %vm202_vm1, %v1082_v51, %v1084_v58  ;;  %v1095_v13 = vsel %vm194_vm0, %v1092_v0, %v1094_v3  ;;  %v17834_v58 = vld [vmem:[%s23985_s1 + $0x38] sm:$0xff]  }
  0x67   : > { %15872 = vmatpush3.bf16.msra.mxu1 %v17763_v60  ;;  %17328 = vmatprep.subr.bf16.mxu0 %v18998_v42  ;;  %v17802_v60 = vld [vmem:[%s23985_s1 + $0xc0] sm:$0xff]   ;;  %v17841_v3 = vld [vmem:[%s23985_s1 + $0xe8] sm:$0xff]  }
  0x68   : > { %15873 = vmatprep.subr.bf16.mxu1 %v17764_v61  ;;  %v1098_v61 = vrot.slane %v1061_v54, 2  ;;  %v17832_v54 = vld [vmem:[%s23985_s1 + $0x78] sm:$0xff]  }
  0x6a   : > { %17329 = vmatpush3.bf16.msra.mxu0 %v17765_v62  ;;  %v1099_v62 = vrot.slane %v1062_v55, 2  ;;  %v17833_v55 = vld [vmem:[%s23985_s1 + $0xf8] sm:$0xff]  }
  0x6b   : > { %15874 = vmatpush3.bf16.msra.mxu1 %v17766_v5  ;;  %17330 = vmatprep.subr.bf16.mxu0 %v18998_v42 }
  0x6c   : > { %15875 = vmatprep.subr.bf16.mxu1 %v17767_v8  ;;  %v1100_v2 = vsel %vm202_vm1, %v1098_v61, %v1099_v62  ;;  %v17805_v8 = vld [vmem:[%s23985_s1 + $0x100] sm:$0xff]   ;;  %v17836_v61 = vld [vmem:[%s23985_s1 + $0x70] sm:$0xff]  }
  0x6e   : > { %17331 = vmatpush3.bf16.msra.mxu0 %v17768_v9  ;;  %v1083_v9 = vsel %vm202_vm1, %v1081_v50, %v1082_v51 }
  0x6f   : > { %15876 = vmatpush3.bf16.msra.mxu1 %v17769_v12  ;;  %17332 = vmatprep.subr.bf16.mxu0 %v18998_v42  ;;  %v1093_v12 = vsel %vm194_vm0, %v1091_v63, %v1092_v0  ;;  %v1124_v14 = vpack.c.bf16 %v1085_v10, %v1083_v9  ;;  %v17838_v63 = vld [vmem:[%s23985_s1 + $0x30] sm:$0xff]   ;;  %v17848_v9 = vld [vmem:[%s23985_s1 + $0x58] sm:$0xff]  }
  0x70   : > { %15877 = vmatprep.subr.bf16.mxu1 %v17770_v15  ;;  %v17808_v15 = vld [vmem:[%s23985_s1 + $0x1b8] sm:$0xff]   ;;  %v1126_v16 = vpack.c.bf16 %v1095_v13, %v1093_v12  ;;  %v17839_v0 = vld [vmem:[%s23985_s1 + $0xb0] sm:$0xff]   ;;  %v14403_v13 = vld [vmem:[%s19166_s7 + $0x20] sm:$0x1] }
  0x71   : > { %v17849_v10 = vld [vmem:[%s23985_s1 + $0xd8] sm:$0xff]  }
  0x72   : > { %17333 = vmatpush3.bf16.msra.mxu0 %v17771_v17  ;;  %v17809_v17 = vld [vmem:[%s23985_s1 + $0x238] sm:$0xff]  }
  0x73   : > { %15878 = vmatpush3.bf16.msra.mxu1 %v17772_v19  ;;  %15885 = vmatprep.subr.bf16.mxu0 %v17773_v22  ;;  %v17811_v19 = vld [vmem:[%s23985_s1 + $0x1b0] sm:$0xff]   ;;  %v17814_v22 = vld [vmem:[%s23985_s1 + $0x1a8] sm:$0xff]   ;;  %v14401_v12 = vld [vmem:[%s19166_s7 + $0x18] sm:$0xff]  }
  0x74   : > { %15907 = vmatprep.subr.bf16.mxu1 %v17774_v23  ;;  %v17815_v23 = vld [vmem:[%s23985_s1 + $0x228] sm:$0xff]  }
  0x75   : > { %17335 = vmatmul.mubr.bf16.vlgmr.msra.gmra.mxu0 %v252_v25  ;;  %v17817_v25 = vld [vmem:[%s23985_s1 + $0x1a0] sm:$0xff]  }
  0x76   : > { %1740 = vmatmul.mubr.bf16.vlgmr.msra.gmra.mxu1 %v19360_v1  ;;  %15886 = vmatpush3.bf16.msra.mxu0 %v17776_v24  ;;  %v1101_v1 = vrot.slane %v1063_v56, 2  ;;  %v17816_v24 = vld [vmem:[%s23985_s1 + $0x1e0] sm:$0xff]  }
  0x77   : > { %15908 = vmatpush3.bf16.msra.mxu1 %v17777_v26  ;;  %15887 = vmatprep.subr.bf16.mxu0 %v17778_v27  ;;  %v17818_v26 = vld [vmem:[%s23985_s1 + $0x220] sm:$0xff]   ;;  %v17819_v27 = vld [vmem:[%s23985_s1 + $0x1d8] sm:$0xff]  }
  0x78   : > { %15909 = vmatprep.subr.bf16.mxu1 %v17779_v28  ;;  %1780 = vmatprep.mubr.bf16.mxu0 %v14316_v49  ;;  %v1102_v5 = vsel %vm202_vm1, %v1099_v62, %v1101_v1  ;;  %v14319_v28 = vld [vmem:[%s19166_s7 + $0x24] sm:$0xff]   ;;  %v17837_v62 = vld [vmem:[%s23985_s1 + $0xf0] sm:$0xff]  }
  0x79   : > { %v1127_v7 = vpack.c.bf16 %v1102_v5, %v1100_v2  ;;  %v17840_v1 = vld [vmem:[%s23985_s1 + $0x68] sm:$0xff]   ;;  %v17844_v5 = vld [vmem:[%s23985_s1 + $0x60] sm:$0xff]  }
  0x7a   : > { %15888 = vmatpush3.bf16.msra.mxu0 %v17780_v29  ;;  %v14321_v29 = vld [vmem:[%s19166_s7 + $0x2c] sm:$0x1] }
  0x7b   : > { %15910 = vmatpush3.bf16.msra.mxu1 %v17781_v30  ;;  %15889 = vmatprep.subr.bf16.mxu0 %v17782_v31  ;;  %v1068_v30 = vunpack.c.l.bf16 %v14319_v28  ;;  %v1069_v31 = vunpack.c.h.bf16 %v14319_v28  ;;  %v17842_v2 = vld [vmem:[%s23985_s1 + $0x28] sm:$0xff]  }
  0x7c   : > { %15911 = vmatprep.subr.bf16.mxu1 %v17783_v32  ;;  %1821 = vmatprep.mubr.bf16.mxu1 %v1127_v7  ;;  %v1070_v32 = vunpack.c.l.bf16 %v14321_v29  ;;  %v17846_v7 = vld [vmem:[%s23985_s1 + $0x20] sm:$0xff]  }
  0x7d   : > { %v1115_v49 = vrot.slane %v1068_v30, 2  ;;  %v1116_v50 = vrot.slane %v1069_v31, 2 }
  0x7e   : > { %15890 = vmatpush3.bf16.msra.mxu0 %v17784_v33  ;;  %v17820_v33 = vld [vmem:[%s23985_s1 + $0x198] sm:$0xff]   ;;  %v1118_v51 = vrot.slane %v1070_v32, 2 }
  0x7f   : > { %15912 = vmatpush3.bf16.msra.mxu1 %v17785_v34  ;;  %15891 = vmatprep.subr.bf16.mxu0 %v17786_v35  ;;  %v17821_v34 = vld [vmem:[%s23985_s1 + $0x218] sm:$0xff]   ;;  %v1108_v35 = vrot.slane %v1068_v30, 1  ;;  %v1117_v56 = vsel %vm202_vm1, %v1115_v49, %v1116_v50  ;;  %v17871_v49 = vld [vmem:[%s23985_s1 + $0x1f0] sm:$0xff]  }
  0x80   : > { %15913 = vmatprep.subr.bf16.mxu1 %v17787_v36  ;;  %v1109_v36 = vrot.slane %v1069_v31, 1  ;;  %v17858_v31 = vld [vmem:[%s23985_s1 + $0x8] sm:$0xff]  }
  0x82   : > { %15892 = vmatpush3.bf16.msra.mxu0 %v17788_v37  ;;  %v17822_v37 = vld [vmem:[%s23985_s1 + $0x1d0] sm:$0xff]  }
  0x83   : > { %15914 = vmatpush3.bf16.msra.mxu1 %v17789_v38  ;;  %15893 = vmatprep.subr.bf16.mxu0 %v17790_v39  ;;  %v1111_v38 = vrot.slane %v1070_v32, 1  ;;  %v1110_v39 = vsel %vm194_vm0, %v1108_v35, %v1109_v36  ;;  %v17859_v32 = vld [vmem:[%s23985_s1 + $0x88] sm:$0xff]  }
  0x84   : > { %15915 = vmatprep.subr.bf16.mxu1 %v17791_v40  ;;  %v17823_v40 = vld [vmem:[%s23985_s1 + $0x190] sm:$0xff]  }
  0x86   : > { %15894 = vmatpush3.bf16.msra.mxu0 %v17792_v41  ;;  %v1112_v41 = vsel %vm194_vm0, %v1109_v36, %v1111_v38  ;;  %v17862_v38 = vld [vmem:[%s23985_s1] sm:$0xff]  }
  0x87   : > { %15916 = vmatpush3.bf16.msra.mxu1 %v17793_v43  ;;  %15895 = vmatprep.subr.bf16.mxu0 %v17794_v44  ;;  %v17824_v43 = vld [vmem:[%s23985_s1 + $0x210] sm:$0xff]   ;;  %v1129_v44 = vpack.c.bf16 %v1112_v41, %v1110_v39  ;;  %v17863_v39 = vld [vmem:[%s23985_s1 + $0x80] sm:$0xff]   ;;  %v17867_v41 = vld [vmem:[%s23985_s1 + $0x1f8] sm:$0xff]  }
  0x88   : > { %15917 = vmatprep.subr.bf16.mxu1 %v17795_v45  ;;  %v17825_v45 = vld [vmem:[%s23985_s1 + $0x1c8] sm:$0xff]  }
  0x8a   : > { %15896 = vmatpush3.bf16.msra.mxu0 %v17796_v46  ;;  %v17826_v46 = vld [vmem:[%s23985_s1 + $0x188] sm:$0xff]  }
  0x8b   : > { %15918 = vmatpush3.bf16.msra.mxu1 %v17797_v47  ;;  %15897 = vmatprep.subr.bf16.mxu0 %v17798_v48  ;;  %v17827_v47 = vld [vmem:[%s23985_s1 + $0x208] sm:$0xff]   ;;  %v17828_v48 = vld [vmem:[%s23985_s1 + $0x1c0] sm:$0xff]  }
  0x8c   : > { %15919 = vmatprep.subr.bf16.mxu1 %v17799_v53  ;;  %v17830_v53 = vld [vmem:[%s23985_s1 + $0x200] sm:$0xff]  }
  0x8e   : > { %15898 = vmatpush3.bf16.msra.mxu0 %v17800_v57  ;;  %v1119_v57 = vsel %vm202_vm1, %v1116_v50, %v1118_v51  ;;  %v17872_v50 = vld [vmem:[%s23985_s1 + $0x130] sm:$0xff]  }
  0x8f   : > { %15920 = vmatpush3.bf16.msra.mxu1 %v17801_v59  ;;  %15899 = vmatprep.subr.bf16.mxu0 %v17802_v60  ;;  %v17835_v59 = vld [vmem:[%s23985_s1 + $0xb8] sm:$0xff]   ;;  %v1130_v60 = vpack.c.bf16 %v1119_v57, %v1117_v56  ;;  %v17873_v51 = vld [vmem:[%s23985_s1 + $0x1b0] sm:$0xff]   ;;  %v17878_v56 = vld [vmem:[%s23985_s1 + $0x160] sm:$0xff]  }
  0x90   : > { %15921 = vmatprep.subr.bf16.mxu1 %v17803_v4  ;;  %v17843_v4 = vld [vmem:[%s23985_s1 + $0xa8] sm:$0xff]   ;;  %v17879_v57 = vld [vmem:[%s23985_s1 + $0x1e0] sm:$0xff]  }
  0x92   : > { %15900 = vmatpush3.bf16.msra.mxu0 %v17804_v6  ;;  %v17845_v6 = vld [vmem:[%s23985_s1 + $0xe0] sm:$0xff]  }
  0x93   : > { %15922 = vmatpush3.bf16.msra.mxu1 %v17805_v8  ;;  %15929 = vmatprep.subr.bf16.mxu0 %v17807_v11  ;;  %v17847_v8 = vld [vmem:[%s23985_s1 + $0xa0] sm:$0xff]   ;;  %v17850_v11 = vld [vmem:[%s23985_s1 + $0x18] sm:$0xff]  }
  0x94   : > { %17338 = vmatprep.subr.bf16.mxu1 %v18998_v42 }
  0x95   : > { %1781 = vmatmul.mubr.bf16.vlgmr.msra.gmra.mxu0 %v1124_v14  ;;  %v19663_v14 = vld [vmem:[%s19166_s7 + $0x24] sm:$0xff]  }
  0x96   : > { %1822 = vmatmul.mubr.bf16.vlgmr.msra.gmra.mxu1 %v1126_v16  ;;  %15930 = vmatpush3.bf16.msra.mxu0 %v17808_v15  ;;  %v17851_v15 = vld [vmem:[%s23985_s1 + $0x98] sm:$0xff]   ;;  %v1928_v16 = vunpack.c.l.bf16 %v14401_v12 }
  0x97   : > { %17339 = vmatpush3.bf16.msra.mxu1 %v17809_v17  ;;  %15931 = vmatprep.subr.bf16.mxu0 %v17810_v18  ;;  %v1929_v17 = vunpack.c.h.bf16 %v14401_v12  ;;  %v1930_v18 = vunpack.c.l.bf16 %v14403_v13  ;;  %v17888_v13 = vld [vmem:[%s23985_s1 + $0x110] sm:$0xff]  }
  0x98   : > { %17340 = vmatprep.subr.bf16.mxu1 %v18998_v42  ;;  %17354 = vmatprep.mubr.msk.bf16.mxu1 %vm18999_vm2, %v18998_v42  ;;  %v1954_v35 = vrot.slane %v1928_v16, 2 }
  0x99   : > { %1862 = vmatprep.mubr.bf16.mxu0 %v1129_v44  ;;  %v1955_v36 = vrot.slane %v1929_v17, 2 }
  0x9a   : > { %15932 = vmatpush3.bf16.msra.mxu0 %v17811_v19  ;;  %v17852_v19 = vld [vmem:[%s23985_s1 + $0x50] sm:$0xff]  }
  0x9b   : > { %17341 = vmatpush3.bf16.msra.mxu1 %v17812_v20  ;;  %15933 = vmatprep.subr.bf16.mxu0 %v17813_v21  ;;  %v17853_v20 = vld [vmem:[%s23985_s1 + $0xd0] sm:$0xff]   ;;  %v1947_v21 = vrot.slane %v1928_v16, 1 }
  0x9c   : > { %17342 = vmatprep.subr.bf16.mxu1 %v18998_v42 }
  0x9e   : > { %15934 = vmatpush3.bf16.msra.mxu0 %v17814_v22  ;;  %v1948_v22 = vrot.slane %v1929_v17, 1 }
  0x9f   : > { %17343 = vmatpush3.bf16.msra.mxu1 %v17815_v23  ;;  %15935 = vmatprep.subr.bf16.mxu0 %v17816_v24  ;;  %v1950_v23 = vrot.slane %v1930_v18, 1  ;;  %v17854_v24 = vld [vmem:[%s23985_s1 + $0x10] sm:$0xff]  }
  0xa0   : > { %17344 = vmatprep.subr.bf16.mxu1 %v18998_v42 }
  0xa1   : > { %v1951_v29 = vsel %vm194_vm0, %v1948_v22, %v1950_v23 }
  0xa2   : > { %15936 = vmatpush3.bf16.msra.mxu0 %v17817_v25  ;;  %v17855_v25 = vld [vmem:[%s23985_s1 + $0x90] sm:$0xff]  }
  0xa3   : > { %17345 = vmatpush3.bf16.msra.mxu1 %v17818_v26  ;;  %15937 = vmatprep.subr.bf16.mxu0 %v17819_v27  ;;  %v17856_v26 = vld [vmem:[%s23985_s1 + $0x48] sm:$0xff]  }
  0xa4   : > { %17346 = vmatprep.subr.bf16.mxu1 %v18998_v42  ;;  %v17857_v27 = vld [vmem:[%s23985_s1 + $0xc8] sm:$0xff]  }
  0xa6   : > { %15938 = vmatpush3.bf16.msra.mxu0 %v17820_v33  ;;  %v17860_v33 = vld [vmem:[%s23985_s1 + $0x40] sm:$0xff]  }
  0xa7   : > { %17347 = vmatpush3.bf16.msra.mxu1 %v17821_v34  ;;  %15939 = vmatprep.subr.bf16.mxu0 %v17822_v37  ;;  %v17861_v34 = vld [vmem:[%s23985_s1 + $0xc0] sm:$0xff]   ;;  %v1957_v37 = vrot.slane %v1930_v18, 2 }
  0xa8   : > { %17348 = vmatprep.subr.bf16.mxu1 %v18998_v42 }
  0xa9   : > { %v1958_v44 = vsel %vm202_vm1, %v1955_v36, %v1957_v37  ;;  %v17897_v37 = vld [vmem:[%s23985_s1 + $0x180] sm:$0xff]  }
  0xaa   : > { %15940 = vmatpush3.bf16.msra.mxu0 %v17823_v40  ;;  %v17866_v40 = vld [vmem:[%s23985_s1 + $0x178] sm:$0xff]  }
  0xab   : > { %17349 = vmatpush3.bf16.msra.mxu1 %v17824_v43  ;;  %15941 = vmatprep.subr.bf16.mxu0 %v17825_v45  ;;  %v1956_v43 = vsel %vm202_vm1, %v1954_v35, %v1955_v36  ;;  %v17868_v45 = vld [vmem:[%s23985_s1 + $0x138] sm:$0xff]  }
  0xac   : > { %17350 = vmatprep.subr.bf16.mxu1 %v18998_v42 }
  0xae   : > { %15942 = vmatpush3.bf16.msra.mxu0 %v17826_v46  ;;  %v17869_v46 = vld [vmem:[%s23985_s1 + $0x1b8] sm:$0xff]  }
  0xaf   : > { %17351 = vmatpush3.bf16.msra.mxu1 %v17827_v47  ;;  %15943 = vmatprep.subr.bf16.mxu0 %v17828_v48  ;;  %v1997_v47 = vpack.c.bf16 %v1958_v44, %v1956_v43  ;;  %v17870_v48 = vld [vmem:[%s23985_s1 + $0x170] sm:$0xff]  }
  0xb0   : > { %17352 = vmatprep.subr.bf16.mxu1 %v18998_v42  ;;  %v17902_v43 = vld [vmem:[%s23985_s1 + $0x70] sm:$0xff]  }
  0xb1   : > { %v17903_v44 = vld [vmem:[%s23985_s1 + $0x230] sm:$0xff]  }
  0xb2   : > { %15944 = vmatpush3.bf16.msra.mxu0 %v17829_v52  ;;  %v17874_v52 = vld [vmem:[%s23985_s1 + $0x168] sm:$0xff]  }
  0xb3   : > { %17353 = vmatpush3.bf16.msra.mxu1 %v17830_v53  ;;  %15960 = vmatprep.subr.bf16.mxu0 %v17832_v54  ;;  %v17875_v53 = vld [vmem:[%s23985_s1 + $0x1e8] sm:$0xff]  }
  0xb4   : > { %15982 = vmatprep.subr.bf16.mxu1 %v17833_v55  ;;  %v17876_v54 = vld [vmem:[%s23985_s1 + $0x128] sm:$0xff]  }
  0xb5   : > { %1863 = vmatmul.mubr.bf16.vlgmr.msra.gmra.mxu0 %v14319_v28  ;;  %v1949_v28 = vsel %vm194_vm0, %v1947_v21, %v1948_v22  ;;  %v17877_v55 = vld [vmem:[%s23985_s1 + $0x1a8] sm:$0xff]  }
  0xb6   : > { %17355 = vmatmul.mubr.bf16.vlgmr.msra.gmra.mxu1 %v1130_v60  ;;  %15961 = vmatpush3.bf16.msra.mxu0 %v17834_v58  ;;  %v1996_v30 = vpack.c.bf16 %v1951_v29, %v1949_v28  ;;  %v17880_v58 = vld [vmem:[%s23985_s1 + $0x120] sm:$0xff]   ;;  %v17891_v22 = vld [vmem:[%s23985_s1 + $0x1c8] sm:$0xff]  }
  0xb7   : > { %15983 = vmatpush3.bf16.msra.mxu1 %v17835_v59  ;;  %15962 = vmatprep.subr.bf16.mxu0 %v17836_v61  ;;  %v1934_v59 = vunpack.c.l.bf16 %v19663_v14  ;;  %v17881_v60 = vld [vmem:[%s23985_s1 + $0x1a0] sm:$0xff]   ;;  %v1935_v61 = vunpack.c.h.bf16 %v19663_v14  ;;  %v17893_v29 = vld [vmem:[%s23985_s1 + $0x188] sm:$0xff]  }
  0xb8   : > { %15984 = vmatprep.subr.bf16.mxu1 %v17837_v62  ;;  %2653 = vmatprep.mubr.bf16.mxu1 %v19663_v14  ;;  %v17882_v62 = vld [vmem:[%s23985_s1 + $0x158] sm:$0xff]   ;;  %v17889_v14 = vld [vmem:[%s23985_s1 + $0x190] sm:$0xff]  }
  0xb9   : > { %2612 = vmatprep.mubr.bf16.mxu0 %v1996_v30  ;;  %v1964_v21 = vrot.slane %v1934_v59, 1 }
  0xba   : > { %15963 = vmatpush3.bf16.msra.mxu0 %v17838_v63  ;;  %v17883_v63 = vld [vmem:[%s23985_s1 + $0x1d8] sm:$0xff]  }
  0xbb   : > { %15985 = vmatpush3.bf16.msra.mxu1 %v17839_v0  ;;  %15964 = vmatprep.subr.bf16.mxu0 %v17840_v1  ;;  %v17884_v0 = vld [vmem:[%s23985_s1 + $0x118] sm:$0xff]   ;;  %v1971_v1 = vrot.slane %v1934_v59, 2 }
  0xbc   : > { %15986 = vmatprep.subr.bf16.mxu1 %v17841_v3  ;;  %v17885_v3 = vld [vmem:[%s23985_s1 + $0x198] sm:$0xff]  }
  0xbe   : > { %15965 = vmatpush3.bf16.msra.mxu0 %v17842_v2  ;;  %v1972_v2 = vrot.slane %v1935_v61, 2 }
  0xbf   : > { %15987 = vmatpush3.bf16.msra.mxu1 %v17843_v4  ;;  %15966 = vmatprep.subr.bf16.mxu0 %v17844_v5  ;;  %v17886_v4 = vld [vmem:[%s23985_s1 + $0x150] sm:$0xff]  }
  0xc0   : > { %15988 = vmatprep.subr.bf16.mxu1 %v17845_v6  ;;  %v17887_v5 = vld [vmem:[%s23985_s1 + $0x1d0] sm:$0xff]   ;;  %v14406_v6 = vld [vmem:[%s19166_s7 + $0x2c] sm:$0x1] }
  0xc2   : > { %15967 = vmatpush3.bf16.msra.mxu0 %v17846_v7  ;;  %v19779_v7 = vld [vmem:[%s19166_s7 + $0x30] sm:$0xff]  }
  0xc3   : > { %15989 = vmatpush3.bf16.msra.mxu1 %v17847_v8  ;;  %15968 = vmatprep.subr.bf16.mxu0 %v17848_v9  ;;  %v1936_v8 = vunpack.c.l.bf16 %v14406_v6  ;;  %v19782_v9 = vld [vmem:[%s19166_s7 + $0x38] sm:$0x1] }
  0xc4   : > { %15990 = vmatprep.subr.bf16.mxu1 %v17849_v10  ;;  %v1941_v10 = vunpack.c.l.bf16 %v19779_v7 }
  0xc5   : > { %v1974_v16 = vrot.slane %v1936_v8, 2  ;;  %v1967_v30 = vrot.slane %v1936_v8, 1  ;;  %v17918_v8 = vld [vmem:[%s23985_s1 + $0x208] sm:$0xff]  }
  0xc6   : > { %15969 = vmatpush3.bf16.msra.mxu0 %v17850_v11  ;;  %v1942_v11 = vunpack.c.h.bf16 %v19779_v7  ;;  %v1981_v17 = vrot.slane %v1941_v10, 1  ;;  %v1988_v6 = vrot.slane %v1941_v10, 2  ;;  %v17920_v10 = vld [vmem:[%s23985_s1 + $0x40] sm:$0xff]  }
  0xc7   : > { %15991 = vmatpush3.bf16.msra.mxu1 %v17851_v15  ;;  %15970 = vmatprep.subr.bf16.mxu0 %v17852_v19  ;;  %v1973_v15 = vsel %vm202_vm1, %v1971_v1, %v1972_v2  ;;  %v17890_v19 = vld [vmem:[%s23985_s1 + $0x148] sm:$0xff]   ;;  %v1975_v23 = vsel %vm202_vm1, %v1972_v2, %v1974_v16  ;;  %v17915_v2 = vld [vmem:[%s23985_s1 + $0x210] sm:$0xff]   ;;  %v17923_v16 = vld [vmem:[%s23985_s1 + $0xf8] sm:$0xff]  }
  0xc8   : > { %15992 = vmatprep.subr.bf16.mxu1 %v17853_v20  ;;  %v1982_v18 = vrot.slane %v1942_v11, 1 }
  0xca   : > { %15971 = vmatpush3.bf16.msra.mxu0 %v17854_v24  ;;  %v1983_v24 = vsel %vm194_vm0, %v1981_v17, %v1982_v18  ;;  %v17924_v17 = vld [vmem:[%s23985_s1 + $0x178] sm:$0xff]  }
  0xcb   : > { %15993 = vmatpush3.bf16.msra.mxu1 %v17855_v25  ;;  %15972 = vmatprep.subr.bf16.mxu0 %v17856_v26  ;;  %v1965_v25 = vrot.slane %v1935_v61, 1  ;;  %v17892_v26 = vld [vmem:[%s23985_s1 + $0x108] sm:$0xff]   ;;  %v17912_v61 = vld [vmem:[%s23985_s1 + $0x218] sm:$0xff]  }
  0xcc   : > { %15994 = vmatprep.subr.bf16.mxu1 %v17857_v27  ;;  %v2000_v27 = vpack.c.bf16 %v1975_v23, %v1973_v15  ;;  %v17929_v23 = vld [vmem:[%s23985_s1 + $0x170] sm:$0xff]  }
  0xcd   : > { %v1966_v35 = vsel %vm194_vm0, %v1964_v21, %v1965_v25  ;;  %v1968_v36 = vsel %vm194_vm0, %v1965_v25, %v1967_v30  ;;  %v17931_v25 = vld [vmem:[%s23985_s1 + $0x130] sm:$0xff]   ;;  %v17934_v30 = vld [vmem:[%s23985_s1 + $0xa8] sm:$0xff]  }
  0xce   : > { %15973 = vmatpush3.bf16.msra.mxu0 %v17858_v31 }
  0xcf   : > { %15995 = vmatpush3.bf16.msra.mxu1 %v17859_v32  ;;  %15974 = vmatprep.subr.bf16.mxu0 %v17860_v33  ;;  %v17894_v32 = vld [vmem:[%s23985_s1 + $0x140] sm:$0xff]  }
  0xd0   : > { %15996 = vmatprep.subr.bf16.mxu1 %v17861_v34  ;;  %v17895_v33 = vld [vmem:[%s23985_s1 + $0x1c0] sm:$0xff]  }
  0xd1   : > { %v17896_v34 = vld [vmem:[%s23985_s1 + $0x100] sm:$0xff]  }
  0xd2   : > { %15975 = vmatpush3.bf16.msra.mxu0 %v17862_v38  ;;  %v17898_v38 = vld [vmem:[%s23985_s1 + $0x78] sm:$0xff]  }
  0xd3   : > { %15997 = vmatpush3.bf16.msra.mxu1 %v17863_v39  ;;  %16004 = vmatprep.subr.bf16.mxu0 %v17866_v40  ;;  %v1999_v39 = vpack.c.bf16 %v1968_v36, %v1966_v35  ;;  %v17900_v40 = vld [vmem:[%s23985_s1 + $0x238] sm:$0xff]   ;;  %v17937_v35 = vld [vmem:[%s23985_s1 + $0x160] sm:$0xff]  }
  0xd4   : > { %16026 = vmatprep.subr.bf16.mxu1 %v17867_v41  ;;  %v17901_v41 = vld [vmem:[%s23985_s1 + $0x38] sm:$0xff]   ;;  %v17938_v36 = vld [vmem:[%s23985_s1 + $0xa0] sm:$0xff]  }
  0xd5   : > { %2613 = vmatmul.mubr.bf16.vlgmr.msra.gmra.mxu0 %v14401_v12  ;;  %v1943_v12 = vunpack.c.l.bf16 %v19782_v9 }
  0xd6   : > { %2654 = vmatmul.mubr.bf16.vlgmr.msra.gmra.mxu1 %v1997_v47  ;;  %16005 = vmatpush3.bf16.msra.mxu0 %v17868_v45  ;;  %v17904_v45 = vld [vmem:[%s23985_s1 + $0x30] sm:$0xff]   ;;  %v17906_v47 = vld [vmem:[%s23985_s1 + $0x228] sm:$0xff]  }
  0xd7   : > { %16027 = vmatpush3.bf16.msra.mxu1 %v17869_v46  ;;  %16006 = vmatprep.subr.bf16.mxu0 %v17870_v48  ;;  %v1984_v20 = vrot.slane %v1943_v12, 1  ;;  %v17905_v46 = vld [vmem:[%s23985_s1 + $0x68] sm:$0xff]   ;;  %v1991_v15 = vrot.slane %v1943_v12, 2 }
  0xd8   : > { %16028 = vmatprep.subr.bf16.mxu1 %v17871_v49  ;;  %2694 = vmatprep.mubr.bf16.mxu0 %v2000_v27  ;;  %v17907_v48 = vld [vmem:[%s23985_s1 + $0x28] sm:$0xff]   ;;  %v17908_v49 = vld [vmem:[%s23985_s1 + $0x60] sm:$0xff]  }
  0xd9   : > { %v1985_v28 = vsel %vm194_vm0, %v1982_v18, %v1984_v20  ;;  %v17926_v18 = vld [vmem:[%s23985_s1 + $0xb8] sm:$0xff]  }
  0xda   : > { %16007 = vmatpush3.bf16.msra.mxu0 %v17872_v50  ;;  %v2002_v31 = vpack.c.bf16 %v1985_v28, %v1983_v24  ;;  %v19866_v50 = vld [vmem:[%s19166_s7 + $0x24] sm:$0xff]   ;;  %v17927_v20 = vld [vmem:[%s23985_s1 + $0x138] sm:$0xff]   ;;  %v17930_v24 = vld [vmem:[%s23985_s1 + $0xb0] sm:$0xff]  }
  0xdb   : > { %16029 = vmatpush3.bf16.msra.mxu1 %v17873_v51  ;;  %16008 = vmatprep.subr.bf16.mxu0 %v17874_v52  ;;  %v19869_v51 = vld [vmem:[%s19166_s7 + $0x2c] sm:$0x1]  ;;  %v17909_v52 = vld [vmem:[%s23985_s1 + $0x220] sm:$0xff]  }
  0xdc   : > { %16030 = vmatprep.subr.bf16.mxu1 %v17875_v53  ;;  %2735 = vmatprep.mubr.bf16.mxu1 %v2002_v31  ;;  %v2801_v53 = vunpack.c.l.bf16 %v19866_v50  ;;  %v17932_v28 = vld [vmem:[%s23985_s1 + $0xe8] sm:$0xff]  }
  0xdd   : > { %v17935_v31 = vld [vmem:[%s23985_s1 + $0x128] sm:$0xff]  }
  0xde   : > { %16009 = vmatpush3.bf16.msra.mxu0 %v17876_v54  ;;  %v2802_v54 = vunpack.c.h.bf16 %v19866_v50 }
  0xdf   : > { %16031 = vmatpush3.bf16.msra.mxu1 %v17877_v55  ;;  %16010 = vmatprep.subr.bf16.mxu0 %v17878_v56  ;;  %v2803_v55 = vunpack.c.l.bf16 %v19869_v51  ;;  %v17910_v56 = vld [vmem:[%s23985_s1 + $0x20] sm:$0xff]  }
  0xe0   : > { %16032 = vmatprep.subr.bf16.mxu1 %v17879_v57  ;;  %v17911_v57 = vld [vmem:[%s23985_s1 + $0x58] sm:$0xff]   ;;  %v2821_v59 = vrot.slane %v2802_v54, 1  ;;  %v17953_v51 = vld [vmem:[%s23985_s1 + $0x140] sm:$0xff]  }
  0xe2   : > { %16011 = vmatpush3.bf16.msra.mxu0 %v17880_v58  ;;  %v2820_v58 = vrot.slane %v2801_v53, 1 }
  0xe3   : > { %16033 = vmatpush3.bf16.msra.mxu1 %v17881_v60  ;;  %16012 = vmatprep.subr.bf16.mxu0 %v17882_v62  ;;  %v2823_v60 = vrot.slane %v2803_v55, 1 }
  0xe4   : > { %16034 = vmatprep.subr.bf16.mxu1 %v17883_v63  ;;  %v2822_v62 = vsel %vm194_vm0, %v2820_v58, %v2821_v59 }
  0xe5   : > { %v2824_v63 = vsel %vm194_vm0, %v2821_v59, %v2823_v60  ;;  %v17944_v59 = vld [vmem:[%s23985_s1 + $0xd0] sm:$0xff]  }
  0xe6   : > { %16013 = vmatpush3.bf16.msra.mxu0 %v17884_v0  ;;  %v17913_v0 = vld [vmem:[%s23985_s1 + $0x18] sm:$0xff]   ;;  %v2869_v1 = vpack.c.bf16 %v2824_v63, %v2822_v62  ;;  %v17945_v60 = vld [vmem:[%s23985_s1 + $0x150] sm:$0xff]  }
  0xe7   : > { %16035 = vmatpush3.bf16.msra.mxu1 %v17885_v3  ;;  %16014 = vmatprep.subr.bf16.mxu0 %v17886_v4  ;;  %v17914_v3 = vld [vmem:[%s23985_s1 + $0x50] sm:$0xff]  }
  0xe8   : > { %16036 = vmatprep.subr.bf16.mxu1 %v17887_v5  ;;  %v17916_v4 = vld [vmem:[%s23985_s1 + $0x10] sm:$0xff]   ;;  %v17917_v5 = vld [vmem:[%s23985_s1 + $0x48] sm:$0xff]  }
  0xea   : > { %16015 = vmatpush3.bf16.msra.mxu0 %v17888_v13  ;;  %v1989_v13 = vrot.slane %v1942_v11, 2  ;;  %v17922_v11 = vld [vmem:[%s23985_s1] sm:$0xff]  }
  0xeb   : > { %16037 = vmatpush3.bf16.msra.mxu1 %v17889_v14  ;;  %16016 = vmatprep.subr.bf16.mxu0 %v17890_v19  ;;  %v17919_v14 = vld [vmem:[%s23985_s1 + $0x8] sm:$0xff]  }
  0xec   : > { %16038 = vmatprep.subr.bf16.mxu1 %v17891_v22  ;;  %v1990_v9 = vsel %vm202_vm1, %v1988_v6, %v1989_v13  ;;  %v1992_v12 = vsel %vm202_vm1, %v1989_v13, %v1991_v15  ;;  %v17928_v22 = vld [vmem:[%s23985_s1 + $0xf0] sm:$0xff]   ;;  %v20028_v6 = vld [vmem:[%s23986_s2] ss:$0 sm:$0xff]  ;;  %v2827_v13 = vrot.slane %v2801_v53, 2  ;;  %v2830_v53 = vrot.slane %v2803_v55, 2 }
  0xed   : > { %v2003_v19 = vpack.c.bf16 %v1992_v12, %v1990_v9  ;;  %v17951_v12 = vld [vmem:[%s23985_s1 + $0x108] sm:$0xff]  }
  0xee   : > { %16017 = vmatpush3.bf16.msra.mxu0 %v17892_v26 }
  0xef   : > { %16039 = vmatpush3.bf16.msra.mxu1 %v17893_v29  ;;  %16018 = vmatprep.subr.bf16.mxu0 %v17894_v32  ;;  %v17933_v29 = vld [vmem:[%s23985_s1 + $0x168] sm:$0xff]  }
  0xf0   : > { %16040 = vmatprep.subr.bf16.mxu1 %v17895_v33 }
  0xf2   : > { %16019 = vmatpush3.bf16.msra.mxu0 %v17896_v34  ;;  %v17936_v34 = vld [vmem:[%s23985_s1 + $0xe0] sm:$0xff]  }
  0xf3   : > { %16041 = vmatpush3.bf16.msra.mxu1 %v17897_v37  ;;  %17358 = vmatprep.subr.bf16.mxu0 %v18998_v42  ;;  %v17939_v37 = vld [vmem:[%s23985_s1 + $0x120] sm:$0xff]  }
  0xf4   : > { %16057 = vmatprep.subr.bf16.mxu1 %v17898_v38 }
  0xf5   : > { %2695 = vmatmul.mubr.bf16.vlgmr.msra.gmra.mxu0 %v1999_v39  ;;  %v19949_v21 = vpop.f32.mrf.mxu0 }
  0xf6   : > { %2736 = vmatmul.mubr.bf16.vlgmr.msra.gmra.mxu1 %v19779_v7  ;;  %17359 = vmatpush3.bf16.msra.mxu0 %v17900_v40  ;;  %v17921_v7 = vld [vmem:[%s23985_s1 + $0x200] sm:$0xff]   ;;  %v19963_v26 = vpop.f32.mrf.mxu1  ;;  %v14492_v40 = vld [vmem:[%s19166_s7 + $0x30] sm:$0xff]  }
  0xf7   : > { %16058 = vmatpush3.bf16.msra.mxu1 %v17901_v41  ;;  %17360 = vmatprep.subr.bf16.mxu0 %v18998_v42  ;;  %v15783_v27 = vpop.f32.mrf.mxu0  ;;  %v14494_v41 = vld [vmem:[%s19166_s7 + $0x38] sm:$0x1] }
  0xf8   : > { %16059 = vmatprep.subr.bf16.mxu1 %v17902_v43  ;;  %17374 = vmatprep.mubr.msk.bf16.mxu0 %vm18999_vm2, %v18998_v42  ;;  %v19978_v32 = vpop.f32.mrf.mxu1  ;;  %v17940_v43 = vld [vmem:[%s23985_s1 + $0xd8] sm:$0xff]  }
  0xf9   : > { %3485 = vmatprep.mubr.bf16.mxu1 %v2869_v1  ;;  %v15785_v33 = vpop.f32.mrf.mxu0  ;;  %v17946_v1 = vld [vmem:[%s23985_s1 + $0x90] sm:$0xff]  }
  0xfa   : > { %17361 = vmatpush3.bf16.msra.mxu0 %v17903_v44  ;;  %v19992_v38 = vpop.f32.mrf.mxu1  ;;  %v2807_v44 = vunpack.c.l.bf16 %v14492_v40 }
  0xfb   : > { %16060 = vmatpush3.bf16.msra.mxu1 %v17904_v45  ;;  %17362 = vmatprep.subr.bf16.mxu0 %v18998_v42  ;;  %v15786_v39 = vpop.f32.mrf.mxu0  ;;  %v2808_v45 = vunpack.c.h.bf16 %v14492_v40 }
  0xfc   : > { %16061 = vmatprep.subr.bf16.mxu1 %v17905_v46  ;;  %v2809_v46 = vunpack.c.l.bf16 %v14494_v41  ;;  %v15808_v58 = vpop.f32.mrf.mxu1  ;;  %v15787_v9 = vadd.f32 %v15786_v39, %v15785_v33 }
  0xfe   : > { %17363 = vmatpush3.bf16.msra.mxu0 %v17906_v47  ;;  %v873_v55 = vadd.f32 %v15787_v9, %v20028_v6 }
  0xff   : > { %16062 = vmatpush3.bf16.msra.mxu1 %v17907_v48  ;;  %17364 = vmatprep.subr.bf16.mxu0 %v18998_v42  ;;  %v17941_v48 = vld [vmem:[%s23985_s1 + $0x158] sm:$0xff]  }
 0x100   : > { %16063 = vmatprep.subr.bf16.mxu1 %v17908_v49  ;;  %v17942_v49 = vld [vmem:[%s23985_s1 + $0x98] sm:$0xff]  }
 0x102   : > { %17365 = vmatpush3.bf16.msra.mxu0 %v17909_v52  ;;  %v17943_v52 = vld [vmem:[%s23985_s1 + $0x118] sm:$0xff]  }
 0x103   : > { %16064 = vmatpush3.bf16.msra.mxu1 %v17910_v56  ;;  %17366 = vmatprep.subr.bf16.mxu0 %v18998_v42  ;;  %v2844_v56 = vrot.slane %v2807_v44, 2 }
 0x104   : > { %16065 = vmatprep.subr.bf16.mxu1 %v17911_v57  ;;  %v2845_v57 = vrot.slane %v2808_v45, 2 }
 0x106   : > { %17367 = vmatpush3.bf16.msra.mxu0 %v17912_v61  ;;  %v2847_v61 = vrot.slane %v2809_v46, 2  ;;  %v2846_v62 = vsel %vm202_vm1, %v2844_v56, %v2845_v57  ;;  %v17963_v56 = vld [vmem:[%s23985_s1 + $0x1e8] sm:$0xff]  }
 0x107   : > { %16066 = vmatpush3.bf16.msra.mxu1 %v17913_v0  ;;  %17368 = vmatprep.subr.bf16.mxu0 %v18998_v42 }
 0x108   : > { %16067 = vmatprep.subr.bf16.mxu1 %v17914_v3  ;;  %v2848_v3 = vsel %vm202_vm1, %v2845_v57, %v2847_v61  ;;  %v20091_v57 = vld [vmem:[%s19166_s7 + $0x3c] sm:$0xff]  }
 0x109   : > { %v2815_v61 = vunpack.c.h.bf16 %v20091_v57 }
 0x10a   : > { %17369 = vmatpush3.bf16.msra.mxu0 %v17915_v2  ;;  %v17947_v2 = vld [vmem:[%s23985_s1 + $0x110] sm:$0xff]  }
 0x10b   : > { %16068 = vmatpush3.bf16.msra.mxu1 %v17916_v4  ;;  %17370 = vmatprep.subr.bf16.mxu0 %v18998_v42  ;;  %v2873_v4 = vpack.c.bf16 %v2848_v3, %v2846_v62 }
 0x10c   : > { %16069 = vmatprep.subr.bf16.mxu1 %v17917_v5  ;;  %v17948_v5 = vld [vmem:[%s23985_s1 + $0xc8] sm:$0xff]  }
 0x10e   : > { %17371 = vmatpush3.bf16.msra.mxu0 %v17918_v8  ;;  %v17949_v8 = vld [vmem:[%s23985_s1 + $0x148] sm:$0xff]  }
 0x10f   : > { %16070 = vmatpush3.bf16.msra.mxu1 %v17919_v14  ;;  %17372 = vmatprep.subr.bf16.mxu0 %v18998_v42  ;;  %v15784_v14 = vadd.f32 %v15783_v27, %v19949_v21 }
 0x110   : > { %16071 = vmatprep.subr.bf16.mxu1 %v17920_v10 }
 0x112   : > { %17373 = vmatpush3.bf16.msra.mxu0 %v17921_v7  ;;  %v17950_v7 = vld [vmem:[%s23985_s1 + $0x88] sm:$0xff]  }
 0x113   : > { %16072 = vmatpush3.bf16.msra.mxu1 %v17922_v11  ;;  %16079 = vmatprep.subr.bf16.mxu0 %v17923_v16  ;;  %v2828_v11 = vrot.slane %v2802_v54, 2  ;;  %v17952_v16 = vld [vmem:[%s23985_s1 + $0xc0] sm:$0xff]   ;;  %v870_v54 = vadd.f32 %v15784_v14, %v20028_v6 }
 0x114   : > { %16101 = vmatprep.subr.bf16.mxu1 %v17924_v17  ;;  %v2837_v17 = vrot.slane %v2807_v44, 1  ;;  %v17960_v44 = vld [vmem:[%s23985_s1 + $0x1f0] sm:$0xff]  }
 0x115   : > { %17375 = vmatmul.mubr.bf16.vlgmr.msra.gmra.mxu0 %v2003_v19  ;;  %v15826_v47 = vpop.f32.mrf.mxu0  ;;  %v15806_v19 = vadd.f32 %v19978_v32, %v19963_v26  ;;  %v2829_v26 = vsel %vm202_vm1, %v2827_v13, %v2828_v11  ;;  %v2831_v27 = vsel %vm202_vm1, %v2828_v11, %v2830_v53  ;;  %v17966_v13 = vld [vmem:[%s23985_s1 + $0x1e0] sm:$0xff]  }
 0x116   : > { %3486 = vmatmul.mubr.bf16.vlgmr.msra.gmra.mxu1 %v19866_v50  ;;  %16080 = vmatpush3.bf16.msra.mxu0 %v17926_v18  ;;  %v15848_v63 = vpop.f32.mrf.mxu1  ;;  %v2838_v18 = vrot.slane %v2808_v45, 1  ;;  %v2840_v50 = vrot.slane %v2809_v46, 1  ;;  %v17961_v46 = vld [vmem:[%s23985_s1 + $0x1b0] sm:$0xff]   ;;  %v17968_v53 = vld [vmem:[%s23985_s1 + $0x220] sm:$0xff]  }
 0x117   : > { %16102 = vmatpush3.bf16.msra.mxu1 %v17927_v20  ;;  %16081 = vmatprep.subr.bf16.mxu0 %v17928_v22  ;;  %v15827_v0 = vpop.f32.mrf.mxu0  ;;  %v15809_v22 = vadd.f32 %v15808_v58, %v19992_v38  ;;  %v911_v32 = vadd.f32 %v15806_v19, %v870_v54  ;;  %v14497_v58 = vld [vmem:[%s19166_s7 + $0x44] sm:$0x1]  ;;  %v17973_v54 = vld [vmem:[%s23985_s1 + $0x190] sm:$0xff]  }
 0x118   : > { %16103 = vmatprep.subr.bf16.mxu1 %v17929_v23  ;;  %3526 = vmatprep.mubr.bf16.mxu0 %v14492_v40  ;;  %v15849_v15 = vpop.f32.mrf.mxu1  ;;  %v17954_v23 = vld [vmem:[%s23985_s1 + $0x80] sm:$0xff]   ;;  %v17959_v40 = vld [vmem:[%s23985_s1 + $0x238] sm:$0xff]   ;;  %v2816_v62 = vunpack.c.l.bf16 %v14497_v58  ;;  %v17974_v19 = vld [vmem:[%s23985_s1 + $0x210] sm:$0xff]  }
 0x119   : > { %v15829_v10 = vpop.f32.mrf.mxu0  ;;  %3567 = vmatprep.mubr.bf16.mxu1 %v2873_v4  ;;  %v15850_v38 = vadd.f32 %v15849_v15, %v15848_v63  ;;  %v17995_v58 = vld [vmem:[%s23985_s1 + $0xe0] sm:$0xff]  }
 0x11a   : > { %16082 = vmatpush3.bf16.msra.mxu0 %v17930_v24  ;;  %v15851_v20 = vpop.f32.mrf.mxu1  ;;  %v15828_v24 = vadd.f32 %v15827_v0, %v15826_v47  ;;  %v2857_v4 = vrot.slane %v2816_v62, 1 }
 0x11b   : > { %16104 = vmatpush3.bf16.msra.mxu1 %v17931_v25  ;;  %16083 = vmatprep.subr.bf16.mxu0 %v17932_v28  ;;  %v15830_v21 = vpop.f32.mrf.mxu0  ;;  %v17955_v25 = vld [vmem:[%s23985_s1 + $0x100] sm:$0xff]  }
 0x11c   : > { %16105 = vmatprep.subr.bf16.mxu1 %v17933_v29  ;;  %v15831_v28 = vadd.f32 %v15830_v21, %v15829_v10  ;;  %v17957_v29 = vld [vmem:[%s23985_s1 + $0x1f8] sm:$0xff]   ;;  %v15852_v33 = vpop.f32.mrf.mxu1  ;;  %v17967_v10 = vld [vmem:[%s23985_s1 + $0x1a0] sm:$0xff]   ;;  %v17976_v21 = vld [vmem:[%s23985_s1 + $0x188] sm:$0xff]  }
 0x11e   : > { %16084 = vmatpush3.bf16.msra.mxu0 %v17934_v30  ;;  %v2839_v30 = vsel %vm194_vm0, %v2837_v17, %v2838_v18  ;;  %v17970_v17 = vld [vmem:[%s23985_s1 + $0x198] sm:$0xff]  }
 0x11f   : > { %16106 = vmatpush3.bf16.msra.mxu1 %v17935_v31  ;;  %16085 = vmatprep.subr.bf16.mxu0 %v17936_v34  ;;  %v2841_v31 = vsel %vm194_vm0, %v2838_v18, %v2840_v50  ;;  %v914_v34 = vadd.f32 %v15809_v22, %v873_v55  ;;  %v17971_v18 = vld [vmem:[%s23985_s1 + $0x218] sm:$0xff]   ;;  %v17972_v50 = vld [vmem:[%s23985_s1 + $0x1d0] sm:$0xff]   ;;  %v17978_v55 = vld [vmem:[%s23985_s1 + $0x1c0] sm:$0xff]  }
 0x120   : > { %16107 = vmatprep.subr.bf16.mxu1 %v17937_v35  ;;  %v2870_v35 = vpack.c.bf16 %v2831_v27, %v2829_v26  ;;  %v2872_v39 = vpack.c.bf16 %v2841_v31, %v2839_v30  ;;  %v17980_v26 = vld [vmem:[%s23985_s1 + $0x200] sm:$0xff]   ;;  %v17982_v27 = vld [vmem:[%s23985_s1 + $0x78] sm:$0xff]  }
 0x121   : > { %v955_v41 = vadd.f32 %v15831_v28, %v914_v34  ;;  %v17983_v30 = vld [vmem:[%s23985_s1 + $0xf8] sm:$0xff]   ;;  %v17986_v34 = vld [vmem:[%s23985_s1 + $0x70] sm:$0xff]  }
 0x122   : > { %16086 = vmatpush3.bf16.msra.mxu0 %v17938_v36  ;;  %v17958_v36 = vld [vmem:[%s23985_s1 + $0x1b8] sm:$0xff]  }
 0x123   : > { %16108 = vmatpush3.bf16.msra.mxu1 %v17939_v37  ;;  %16087 = vmatprep.subr.bf16.mxu0 %v17940_v43  ;;  %v952_v37 = vadd.f32 %v15828_v24, %v911_v32  ;;  %v15853_v43 = vadd.f32 %v15852_v33, %v15851_v20  ;;  %v17975_v20 = vld [vmem:[%s23985_s1 + $0x1c8] sm:$0xff]   ;;  %v2864_v24 = vrot.slane %v2816_v62, 2  ;;  %v17984_v31 = vld [vmem:[%s23985_s1 + $0x38] sm:$0xff]  }
 0x124   : > { %16109 = vmatprep.subr.bf16.mxu1 %v17941_v48  ;;  %v17962_v48 = vld [vmem:[%s23985_s1 + $0x230] sm:$0xff]   ;;  %v17985_v33 = vld [vmem:[%s23985_s1 + $0xb8] sm:$0xff]  }
 0x125   : > { %v993_v47 = vadd.f32 %v15850_v38, %v952_v37  ;;  %v17989_v37 = vld [vmem:[%s23985_s1 + $0xb0] sm:$0xff]   ;;  %v17990_v38 = vld [vmem:[%s23985_s1 + $0x68] sm:$0xff]  }
 0x126   : > { %16088 = vmatpush3.bf16.msra.mxu0 %v17942_v49 }
 0x127   : > { %16110 = vmatpush3.bf16.msra.mxu1 %v17943_v52  ;;  %16089 = vmatprep.subr.bf16.mxu0 %v17944_v59  ;;  %v996_v52 = vadd.f32 %v15853_v43, %v955_v41  ;;  %v14579_v41 = vld [vmem:[%s19166_s7 + $0x38] sm:$0x1] }
 0x128   : > { %16111 = vmatprep.subr.bf16.mxu1 %v17945_v60  ;;  %v2814_v60 = vunpack.c.l.bf16 %v20091_v57 }
 0x12a   : > { %16090 = vmatpush3.bf16.msra.mxu0 %v17946_v1  ;;  %v17964_v1 = vld [vmem:[%s23985_s1 + $0x1a8] sm:$0xff]   ;;  %v2854_v3 = vrot.slane %v2814_v60, 1  ;;  %v2861_v22 = vrot.slane %v2814_v60, 2  ;;  %v17996_v60 = vld [vmem:[%s23985_s1 + $0x20] sm:$0xff]  }
 0x12b   : > { %16112 = vmatpush3.bf16.msra.mxu1 %v17947_v2  ;;  %16091 = vmatprep.subr.bf16.mxu0 %v17948_v5  ;;  %v2855_v2 = vrot.slane %v2815_v61, 1 }
 0x12c   : > { %16113 = vmatprep.subr.bf16.mxu1 %v17949_v8  ;;  %v17965_v8 = vld [vmem:[%s23985_s1 + $0x228] sm:$0xff]  }
 0x12d   : > { %v2858_v11 = vsel %vm194_vm0, %v2855_v2, %v2857_v4  ;;  %v18000_v4 = vld [vmem:[%s23985_s1 + $0x18] sm:$0xff]  }
 0x12e   : > { %16092 = vmatpush3.bf16.msra.mxu0 %v17950_v7  ;;  %v2856_v7 = vsel %vm194_vm0, %v2854_v3, %v2855_v2  ;;  %v17999_v3 = vld [vmem:[%s23985_s1 + $0xd8] sm:$0xff]  }
 0x12f   : > { %16114 = vmatpush3.bf16.msra.mxu1 %v17951_v12  ;;  %16093 = vmatprep.subr.bf16.mxu0 %v17952_v16  ;;  %v2875_v9 = vpack.c.bf16 %v2858_v11, %v2856_v7  ;;  %v17969_v16 = vld [vmem:[%s23985_s1 + $0x1d8] sm:$0xff]   ;;  %v18005_v7 = vld [vmem:[%s23985_s1 + $0x90] sm:$0xff]  }
 0x130   : > { %16115 = vmatprep.subr.bf16.mxu1 %v17953_v51  ;;  %v17977_v51 = vld [vmem:[%s23985_s1 + $0x208] sm:$0xff]  }
 0x132   : > { %16094 = vmatpush3.bf16.msra.mxu0 %v17954_v23  ;;  %v2862_v23 = vrot.slane %v2815_v61, 2  ;;  %v17997_v61 = vld [vmem:[%s23985_s1 + $0xa0] sm:$0xff]  }
 0x133   : > { %16116 = vmatpush3.bf16.msra.mxu1 %v17955_v25  ;;  %16123 = vmatprep.subr.bf16.mxu0 %v17957_v29  ;;  %v17979_v25 = vld [vmem:[%s23985_s1 + $0x180] sm:$0xff]  }
 0x134   : > { %17378 = vmatprep.subr.bf16.mxu1 %v18998_v42  ;;  %v2863_v28 = vsel %vm202_vm1, %v2861_v22, %v2862_v23  ;;  %v2865_v29 = vsel %vm202_vm1, %v2862_v23, %v2864_v24  ;;  %v18013_v24 = vld [vmem:[%s23985_s1 + $0x80] sm:$0xff]  }
 0x135   : > { %v1033_v45 = vpop.f32.mrf.mxu0  ;;  %3527 = vmatmul.mubr.bf16.vlgmr.msra.gmra.mxu0 %v2870_v35  ;;  %v2876_v32 = vpack.c.bf16 %v2865_v29, %v2863_v28  ;;  %v17987_v35 = vld [vmem:[%s23985_s1 + $0xf0] sm:$0xff]  }
 0x136   : > { %3568 = vmatmul.mubr.bf16.vlgmr.msra.gmra.mxu1 %v2872_v39  ;;  %16124 = vmatpush3.bf16.msra.mxu0 %v17958_v36  ;;  %v1034_v59 = vadd.f32 %v1033_v45, %v993_v47  ;;  %v17988_v36 = vld [vmem:[%s23985_s1 + $0x30] sm:$0xff]   ;;  %v17991_v39 = vld [vmem:[%s23985_s1 + $0xe8] sm:$0xff]   ;;  %v20206_v45 = vld [vmem:[%s19166_s7 + $0x3c] sm:$0xff]  }
 0x137   : > { %17379 = vmatpush3.bf16.msra.mxu1 %v17959_v40  ;;  %v17336_v49 = vpop.f32.mrf.mxu0  ;;  %16125 = vmatprep.subr.bf16.mxu0 %v17960_v44  ;;  %v20200_v40 = vld [vmem:[%s19166_s7 + $0x30] sm:$0xff]   ;;  %v17992_v47 = vld [vmem:[%s23985_s1 + $0x28] sm:$0xff]  }
 0x138   : > { %17380 = vmatprep.subr.bf16.mxu1 %v18998_v42  ;;  %17394 = vmatprep.mubr.msk.bf16.mxu1 %vm18999_vm2, %v18998_v42  ;;  %v1040_v14 = vmax.f32 %v1034_v59, 0.0  ;;  %v3674_v43 = vunpack.c.l.bf16 %v20200_v40  ;;  %v3675_v44 = vunpack.c.h.bf16 %v20200_v40  ;;  %v17993_v49 = vld [vmem:[%s23985_s1 + $0xa8] sm:$0xff]  }
 0x139   : > { %v1036_v63 = vpop.f32.mrf.mxu0  ;;  %3608 = vmatprep.mubr.bf16.mxu0 %v2875_v9  ;;  %v18006_v9 = vld [vmem:[%s23985_s1 + $0x48] sm:$0xff]  }
 0x13a   : > { %v1037_v0 = vadd.f32 %v1036_v63, %v996_v52  ;;  %16126 = vmatpush3.bf16.msra.mxu0 %v17961_v46  ;;  %v15879_v46 = vpop.f32.mrf.mxu1  ;;  %v17994_v52 = vld [vmem:[%s23985_s1 + $0x60] sm:$0xff]  }
 0x13b   : > { %17381 = vmatpush3.bf16.msra.mxu1 %v17962_v48  ;;  %v17337_v5 = vpop.f32.mrf.mxu0  ;;  %16127 = vmatprep.subr.bf16.mxu0 %v17963_v56  ;;  %v3676_v48 = vunpack.c.l.bf16 %v14579_v41  ;;  %v3693_v56 = vrot.slane %v3674_v43, 1  ;;  %v18021_v41 = vld [vmem:[%s23985_s1 + $0x1f0] sm:$0xff]  }
 0x13c   : > { %v1041_v15 = vmax.f32 %v1037_v0, 0.0  ;;  %17382 = vmatprep.subr.bf16.mxu1 %v18998_v42  ;;  %v15880_v63 = vpop.f32.mrf.mxu1  ;;  %v17998_v0 = vld [vmem:[%s23985_s1 + $0x58] sm:$0xff]  }
 0x13d   : > { %v3696_v59 = vrot.slane %v3676_v48, 1  ;;  %v18001_v5 = vld [vmem:[%s23985_s1 + $0x98] sm:$0xff]   ;;  %v15881_v22 = vadd.f32 %v15880_v63, %v15879_v46  ;;  %v3680_v46 = vunpack.c.l.bf16 %v20206_v45 }
 0x13e   : > { %v15674_v12 = vpack.c.bf16 %v1041_v15, %v1040_v14  ;;  %16128 = vmatpush3.bf16.msra.mxu0 %v17964_v1  ;;  %v18003_v14 = vld [vmem:[%s23985_s1 + $0xd0] sm:$0xff]  }
 0x13f   : > { %17383 = vmatpush3.bf16.msra.mxu1 %v17965_v8  ;;  %16129 = vmatprep.subr.bf16.mxu0 %v17966_v13  ;;  %v15882_v8 = vpop.f32.mrf.mxu1  ;;  %v18002_v13 = vld [vmem:[%s23985_s1 + $0x50] sm:$0xff]  }
 0x140   : > { %15675 = vst [vmem:[%s20125_s20] sm:$0xff] %v15674_v12   ;;  %17384 = vmatprep.subr.bf16.mxu1 %v18998_v42  ;;  %v18004_v15 = vld [vmem:[%s23985_s1 + $0x10] sm:$0xff]   ;;  %v18007_v12 = vld [vmem:[%s23985_s1 + $0xc8] sm:$0xff]  }
 0x141   : > { %v15883_v11 = vpop.f32.mrf.mxu1 }
 0x142   : > { %16130 = vmatpush3.bf16.msra.mxu0 %v17967_v10 }
 0x143   : > { %17385 = vmatpush3.bf16.msra.mxu1 %v17968_v53  ;;  %16131 = vmatprep.subr.bf16.mxu0 %v17969_v16  ;;  %v18008_v16 = vld [vmem:[%s23985_s1 + $0x8] sm:$0xff]  }
 0x144   : > { %17386 = vmatprep.subr.bf16.mxu1 %v18998_v42 }
 0x146   : > { %16132 = vmatpush3.bf16.msra.mxu0 %v17970_v17 }
 0x147   : > { %17387 = vmatpush3.bf16.msra.mxu1 %v17971_v18  ;;  %16133 = vmatprep.subr.bf16.mxu0 %v17972_v50  ;;  %v18009_v18 = vld [vmem:[%s23985_s1 + $0x88] sm:$0xff]   ;;  %v18010_v50 = vld [vmem:[%s23985_s1 + $0x40] sm:$0xff]  }
 0x148   : > { %17388 = vmatprep.subr.bf16.mxu1 %v18998_v42 }
 0x14a   : > { %16134 = vmatpush3.bf16.msra.mxu0 %v17973_v54  ;;  %v18011_v54 = vld [vmem:[%s23985_s1 + $0xc0] sm:$0xff]  }
 0x14b   : > { %17389 = vmatpush3.bf16.msra.mxu1 %v17974_v19  ;;  %16135 = vmatprep.subr.bf16.mxu0 %v17975_v20  ;;  %v3700_v19 = vrot.slane %v3674_v43, 2  ;;  %v3701_v20 = vrot.slane %v3675_v44, 2 }
 0x14c   : > { %17390 = vmatprep.subr.bf16.mxu1 %v18998_v42 }
 0x14d   : > { %v3702_v28 = vsel %vm202_vm1, %v3700_v19, %v3701_v20 }
 0x14e   : > { %16136 = vmatpush3.bf16.msra.mxu0 %v17976_v21  ;;  %v3703_v21 = vrot.slane %v3676_v48, 2 }
 0x14f   : > { %17391 = vmatpush3.bf16.msra.mxu1 %v17977_v51  ;;  %16137 = vmatprep.subr.bf16.mxu0 %v17978_v55  ;;  %v18012_v55 = vld [vmem:[%s23985_s1] sm:$0xff]  }
 0x150   : > { %17392 = vmatprep.subr.bf16.mxu1 %v18998_v42  ;;  %v3704_v29 = vsel %vm202_vm1, %v3701_v20, %v3703_v21 }
 0x152   : > { %16138 = vmatpush3.bf16.msra.mxu0 %v17979_v25  ;;  %v18016_v25 = vld [vmem:[%s23985_s1 + $0x178] sm:$0xff]  }
 0x153   : > { %17393 = vmatpush3.bf16.msra.mxu1 %v17980_v26  ;;  %16154 = vmatprep.subr.bf16.mxu0 %v17982_v27  ;;  %v18017_v27 = vld [vmem:[%s23985_s1 + $0x1f8] sm:$0xff]  }
 0x154   : > { %16176 = vmatprep.subr.bf16.mxu1 %v17983_v30 }
 0x155   : > { %3609 = vmatmul.mubr.bf16.vlgmr.msra.gmra.mxu0 %v20091_v57  ;;  %v3694_v57 = vrot.slane %v3675_v44, 1  ;;  %v15901_v10 = vpop.f32.mrf.mxu0 }
 0x156   : > { %17395 = vmatmul.mubr.bf16.vlgmr.msra.gmra.mxu1 %v2876_v32  ;;  %16155 = vmatpush3.bf16.msra.mxu0 %v17984_v31  ;;  %v15923_v53 = vpop.f32.mrf.mxu1  ;;  %v18018_v31 = vld [vmem:[%s23985_s1 + $0x138] sm:$0xff]   ;;  %v1742_v32 = vadd.f32 %v15881_v22, %v20028_v6 }
 0x157   : > { %16177 = vmatpush3.bf16.msra.mxu1 %v17985_v33  ;;  %16156 = vmatprep.subr.bf16.mxu0 %v17986_v34  ;;  %v3695_v62 = vsel %vm194_vm0, %v3693_v56, %v3694_v57  ;;  %v3697_v1 = vsel %vm194_vm0, %v3694_v57, %v3696_v59  ;;  %v15902_v17 = vpop.f32.mrf.mxu0  ;;  %v18019_v34 = vld [vmem:[%s23985_s1 + $0x1b8] sm:$0xff]  }
 0x158   : > { %16178 = vmatprep.subr.bf16.mxu1 %v17987_v35  ;;  %4399 = vmatprep.mubr.bf16.mxu1 %v20206_v45  ;;  %v3742_v2 = vpack.c.bf16 %v3697_v1, %v3695_v62  ;;  %v15924_v51 = vpop.f32.mrf.mxu1  ;;  %v15903_v26 = vadd.f32 %v15902_v17, %v15901_v10  ;;  %v15884_v35 = vadd.f32 %v15883_v11, %v15882_v8  ;;  %v18026_v1 = vld [vmem:[%s23985_s1 + $0x128] sm:$0xff]   ;;  %v20335_v11 = vld [vmem:[%s19166_s7 + $0x50] sm:$0x1]  ;;  %v18032_v22 = vld [vmem:[%s23985_s1 + $0x158] sm:$0xff]  }
 0x159   : > { %v15904_v23 = vpop.f32.mrf.mxu0  ;;  %v3689_v20 = vunpack.c.l.bf16 %v20335_v11 }
 0x15a   : > { %16157 = vmatpush3.bf16.msra.mxu0 %v17988_v36  ;;  %4358 = vmatprep.mubr.bf16.mxu0 %v3742_v2  ;;  %v15926_v30 = vpop.f32.mrf.mxu1  ;;  %v3743_v36 = vpack.c.bf16 %v3704_v29, %v3702_v28  ;;  %v1745_v56 = vadd.f32 %v15884_v35, %v20028_v6  ;;  %v3717_v6 = vrot.slane %v3680_v46, 2  ;;  %v18034_v29 = vld [vmem:[%s23985_s1 + $0x118] sm:$0xff]  }
 0x15b   : > { %16179 = vmatpush3.bf16.msra.mxu1 %v17989_v37  ;;  %16158 = vmatprep.subr.bf16.mxu0 %v17990_v38  ;;  %v15905_v33 = vpop.f32.mrf.mxu0  ;;  %v18020_v37 = vld [vmem:[%s23985_s1 + $0x170] sm:$0xff]   ;;  %v1783_v38 = vadd.f32 %v15903_v26, %v1742_v32  ;;  %v18035_v32 = vld [vmem:[%s23985_s1 + $0x198] sm:$0xff]  }
 0x15c   : > { %16180 = vmatprep.subr.bf16.mxu1 %v17991_v39  ;;  %v15925_v39 = vadd.f32 %v15924_v51, %v15923_v53  ;;  %v15906_v43 = vadd.f32 %v15905_v33, %v15904_v23  ;;  %v15927_v44 = vpop.f32.mrf.mxu1 }
 0x15d   : > { %v15928_v62 = vadd.f32 %v15927_v44, %v15926_v30  ;;  %v18040_v44 = vld [vmem:[%s23985_s1 + $0x148] sm:$0xff]  }
 0x15e   : > { %16159 = vmatpush3.bf16.msra.mxu0 %v17992_v47  ;;  %v18022_v47 = vld [vmem:[%s23985_s1 + $0x130] sm:$0xff]   ;;  %v1824_v59 = vadd.f32 %v15925_v39, %v1783_v38 }
 0x15f   : > { %16181 = vmatpush3.bf16.msra.mxu1 %v17993_v49  ;;  %16160 = vmatprep.subr.bf16.mxu0 %v17994_v52  ;;  %v3681_v49 = vunpack.c.h.bf16 %v20206_v45  ;;  %v18023_v52 = vld [vmem:[%s23985_s1 + $0x1b0] sm:$0xff]   ;;  %v18045_v45 = vld [vmem:[%s23985_s1 + $0x1c0] sm:$0xff]  }
 0x160   : > { %16182 = vmatprep.subr.bf16.mxu1 %v17995_v58  ;;  %v18024_v58 = vld [vmem:[%s23985_s1 + $0x168] sm:$0xff]   ;;  %v18037_v39 = vld [vmem:[%s23985_s1 + $0x1d0] sm:$0xff]  }
 0x162   : > { %16161 = vmatpush3.bf16.msra.mxu0 %v17996_v60 }
 0x163   : > { %16183 = vmatpush3.bf16.msra.mxu1 %v17997_v61  ;;  %16162 = vmatprep.subr.bf16.mxu0 %v17998_v0  ;;  %v1786_v61 = vadd.f32 %v15906_v43, %v1745_v56  ;;  %v18039_v43 = vld [vmem:[%s23985_s1 + $0x190] sm:$0xff]   ;;  %v18042_v56 = vld [vmem:[%s23985_s1 + $0x108] sm:$0xff]  }
 0x164   : > { %16184 = vmatprep.subr.bf16.mxu1 %v17999_v3  ;;  %v3718_v3 = vrot.slane %v3681_v49, 2 }
 0x166   : > { %16163 = vmatpush3.bf16.msra.mxu0 %v18000_v4  ;;  %v18027_v4 = vld [vmem:[%s23985_s1 + $0x1a8] sm:$0xff]  }
 0x167   : > { %16185 = vmatpush3.bf16.msra.mxu1 %v18001_v5  ;;  %16164 = vmatprep.subr.bf16.mxu0 %v18002_v13  ;;  %v18028_v13 = vld [vmem:[%s23985_s1 + $0x160] sm:$0xff]  }
 0x168   : > { %16186 = vmatprep.subr.bf16.mxu1 %v18003_v14  ;;  %v20328_v14 = vld [vmem:[%s19166_s7 + $0x44] sm:$0x1] }
 0x169   : > { %v3682_v10 = vunpack.c.l.bf16 %v20328_v14 }
 0x16a   : > { %16165 = vmatpush3.bf16.msra.mxu0 %v18004_v15 }
 0x16b   : > { %16187 = vmatpush3.bf16.msra.mxu1 %v18005_v7  ;;  %16166 = vmatprep.subr.bf16.mxu0 %v18006_v9  ;;  %v20332_v7 = vld [vmem:[%s19166_s7 + $0x48] sm:$0xff]   ;;  %v1827_v9 = vadd.f32 %v15928_v62, %v1786_v61  ;;  %v3720_v19 = vrot.slane %v3682_v10, 2  ;;  %v18048_v61 = vld [vmem:[%s23985_s1 + $0x78] sm:$0xff]  }
 0x16c   : > { %16188 = vmatprep.subr.bf16.mxu1 %v18007_v12  ;;  %v3687_v17 = vunpack.c.l.bf16 %v20332_v7 }
 0x16d   : > { %v3721_v26 = vsel %vm202_vm1, %v3718_v3, %v3720_v19  ;;  %v18058_v19 = vld [vmem:[%s23985_s1 + $0x60] sm:$0xff]  }
 0x16e   : > { %16167 = vmatpush3.bf16.msra.mxu0 %v18008_v16  ;;  %v18029_v16 = vld [vmem:[%s23985_s1 + $0x1e0] sm:$0xff]   ;;  %v3727_v23 = vrot.slane %v3687_v17, 1 }
 0x16f   : > { %16189 = vmatpush3.bf16.msra.mxu1 %v18009_v18  ;;  %16168 = vmatprep.subr.bf16.mxu0 %v18010_v50  ;;  %v3688_v18 = vunpack.c.h.bf16 %v20332_v7  ;;  %v18030_v50 = vld [vmem:[%s23985_s1 + $0x120] sm:$0xff]  }
 0x170   : > { %16190 = vmatprep.subr.bf16.mxu1 %v18011_v54  ;;  %v3719_v54 = vsel %vm202_vm1, %v3717_v6, %v3718_v3  ;;  %v18050_v6 = vld [vmem:[%s23985_s1 + $0x238] sm:$0xff]   ;;  %v20431_v3 = vld [vmem:[%s19166_s7 + $0x44] sm:$0x1] }
 0x171   : > { %v3746_v30 = vpack.c.bf16 %v3721_v26, %v3719_v54  ;;  %v18057_v54 = vld [vmem:[%s23985_s1 + $0x28] sm:$0xff]   ;;  %v18066_v26 = vld [vmem:[%s23985_s1 + $0x10] sm:$0xff]  }
 0x172   : > { %16169 = vmatpush3.bf16.msra.mxu0 %v18012_v55  ;;  %v18031_v55 = vld [vmem:[%s23985_s1 + $0x1a0] sm:$0xff]  }
 0x173   : > { %16191 = vmatpush3.bf16.msra.mxu1 %v18013_v24  ;;  %16198 = vmatprep.subr.bf16.mxu0 %v18016_v25  ;;  %v3728_v24 = vrot.slane %v3688_v18, 1  ;;  %v18033_v25 = vld [vmem:[%s23985_s1 + $0x1d8] sm:$0xff]  }
 0x174   : > { %16220 = vmatprep.subr.bf16.mxu1 %v18017_v27  ;;  %v3730_v27 = vrot.slane %v3689_v20, 1 }
 0x175   : > { %v15945_v48 = vpop.f32.mrf.mxu0  ;;  %4359 = vmatmul.mubr.bf16.vlgmr.msra.gmra.mxu0 %v20200_v40  ;;  %v18025_v40 = vld [vmem:[%s23985_s1 + $0x1e8] sm:$0xff]  }
 0x176   : > { %v1905_v57 = vpop.f32.mrf.mxu1  ;;  %4400 = vmatmul.mubr.bf16.vlgmr.msra.gmra.mxu1 %v3743_v36  ;;  %16199 = vmatpush3.bf16.msra.mxu0 %v18018_v31  ;;  %v3729_v31 = vsel %vm194_vm0, %v3727_v23, %v3728_v24  ;;  %v3731_v33 = vsel %vm194_vm0, %v3728_v24, %v3730_v27  ;;  %v18063_v23 = vld [vmem:[%s23985_s1 + $0x18] sm:$0xff]   ;;  %v18064_v24 = vld [vmem:[%s23985_s1 + $0x50] sm:$0xff]   ;;  %v18067_v27 = vld [vmem:[%s23985_s1 + $0x48] sm:$0xff]  }
 0x177   : > { %16221 = vmatpush3.bf16.msra.mxu1 %v18019_v34  ;;  %v15946_v60 = vpop.f32.mrf.mxu0  ;;  %16200 = vmatprep.subr.bf16.mxu0 %v18020_v37  ;;  %v3748_v36 = vpack.c.bf16 %v3731_v33, %v3729_v31  ;;  %v18036_v37 = vld [vmem:[%s23985_s1 + $0x150] sm:$0xff]   ;;  %v18069_v31 = vld [vmem:[%s23985_s1 + $0x8] sm:$0xff]   ;;  %v18073_v33 = vld [vmem:[%s23985_s1 + $0xf8] sm:$0xff]  }
 0x178   : > { %v15947_v63 = vadd.f32 %v15946_v60, %v15945_v48  ;;  %v17356_v0 = vpop.f32.mrf.mxu1  ;;  %16222 = vmatprep.subr.bf16.mxu1 %v18021_v41  ;;  %4440 = vmatprep.mubr.bf16.mxu0 %v3746_v30  ;;  %v18038_v41 = vld [vmem:[%s23985_s1 + $0x110] sm:$0xff]   ;;  %v18041_v48 = vld [vmem:[%s23985_s1 + $0x1c8] sm:$0xff]   ;;  %v3735_v30 = vrot.slane %v3688_v18, 2  ;;  %v18072_v18 = vld [vmem:[%s23985_s1] sm:$0xff]  }
 0x179   : > { %v15948_v2 = vpop.f32.mrf.mxu0  ;;  %4481 = vmatprep.mubr.bf16.mxu1 %v3748_v36  ;;  %v18052_v0 = vld [vmem:[%s23985_s1 + $0x70] sm:$0xff]  }
 0x17a   : > { %v1865_v5 = vadd.f32 %v15947_v63, %v1824_v59  ;;  %v1908_v8 = vpop.f32.mrf.mxu1  ;;  %16201 = vmatpush3.bf16.msra.mxu0 %v18022_v47  ;;  %v3710_v47 = vrot.slane %v3680_v46, 1  ;;  %v18044_v46 = vld [vmem:[%s23985_s1 + $0x140] sm:$0xff]   ;;  %v18051_v63 = vld [vmem:[%s23985_s1 + $0x38] sm:$0xff]  }
 0x17b   : > { %16223 = vmatpush3.bf16.msra.mxu1 %v18023_v52  ;;  %v15949_v15 = vpop.f32.mrf.mxu0  ;;  %16202 = vmatprep.subr.bf16.mxu0 %v18024_v58  ;;  %v3711_v52 = vrot.slane %v3681_v49, 1  ;;  %v3713_v58 = vrot.slane %v3682_v10, 1  ;;  %v18046_v49 = vld [vmem:[%s23985_s1 + $0x100] sm:$0xff]  }
 0x17c   : > { %v15950_v12 = vadd.f32 %v15949_v15, %v15948_v2  ;;  %v17357_v53 = vpop.f32.mrf.mxu1  ;;  %16224 = vmatprep.subr.bf16.mxu1 %v18025_v40  ;;  %v1906_v21 = vadd.f32 %v1905_v57, %v1865_v5  ;;  %v18043_v57 = vld [vmem:[%s23985_s1 + $0x188] sm:$0xff]   ;;  %v18047_v40 = vld [vmem:[%s23985_s1 + $0x180] sm:$0xff]   ;;  %v4549_v5 = vunpack.c.l.bf16 %v20431_v3 }
 0x17d   : > { %v3712_v59 = vsel %vm194_vm0, %v3710_v47, %v3711_v52  ;;  %v3714_v60 = vsel %vm194_vm0, %v3711_v52, %v3713_v58  ;;  %v20549_v47 = vld [vmem:[%s19166_s7 + $0x50] sm:$0x1]  ;;  %v20648_v3 = vld [vmem:[%s23986_s2] ss:$0 sm:$0xff] }
 0x17e   : > { %v1868_v51 = vadd.f32 %v15950_v12, %v1827_v9  ;;  %16203 = vmatpush3.bf16.msra.mxu0 %v18026_v1  ;;  %v1912_v34 = vmax.f32 %v1906_v21, 0.0  ;;  %v3745_v62 = vpack.c.bf16 %v3714_v60, %v3712_v59  ;;  %v20428_v1 = vld [vmem:[%s19166_s7 + $0x3c] sm:$0xff]   ;;  %v4569_v10 = vrot.slane %v4549_v5, 1  ;;  %v18055_v9 = vld [vmem:[%s23985_s1 + $0x68] sm:$0xff]  }
 0x17f   : > { %16225 = vmatpush3.bf16.msra.mxu1 %v18027_v4  ;;  %16204 = vmatprep.subr.bf16.mxu0 %v18028_v13  ;;  %v4547_v2 = vunpack.c.l.bf16 %v20428_v1  ;;  %v4548_v4 = vunpack.c.h.bf16 %v20428_v1  ;;  %v18054_v13 = vld [vmem:[%s23985_s1 + $0x30] sm:$0xff]   ;;  %v18059_v21 = vld [vmem:[%s23985_s1 + $0x220] sm:$0xff]   ;;  %v18084_v59 = vld [vmem:[%s23985_s1 + $0xa8] sm:$0xff]  }
 0x180   : > { %v1909_v28 = vadd.f32 %v1908_v8, %v1868_v51  ;;  %16226 = vmatprep.subr.bf16.mxu1 %v18029_v16  ;;  %v18053_v8 = vld [vmem:[%s23985_s1 + $0x230] sm:$0xff]   ;;  %v18056_v16 = vld [vmem:[%s23985_s1 + $0x228] sm:$0xff]   ;;  %v18060_v51 = vld [vmem:[%s23985_s1 + $0x20] sm:$0xff]  }
 0x181   : > { %v4566_v14 = vrot.slane %v4547_v2, 1  ;;  %v4567_v15 = vrot.slane %v4548_v4, 1 }
 0x182   : > { %v1913_v35 = vmax.f32 %v1909_v28, 0.0  ;;  %16205 = vmatpush3.bf16.msra.mxu0 %v18030_v50  ;;  %v3734_v28 = vrot.slane %v3687_v17, 2  ;;  %v18070_v17 = vld [vmem:[%s23985_s1 + $0x40] sm:$0xff]  }
 0x183   : > { %16227 = vmatpush3.bf16.msra.mxu1 %v18031_v55  ;;  %16206 = vmatprep.subr.bf16.mxu0 %v18032_v22  ;;  %v4568_v12 = vsel %vm194_vm0, %v4566_v14, %v4567_v15  ;;  %v4570_v53 = vsel %vm194_vm0, %v4567_v15, %v4569_v10  ;;  %v18061_v55 = vld [vmem:[%s23985_s1 + $0x58] sm:$0xff]   ;;  %v18088_v15 = vld [vmem:[%s23985_s1 + $0xa0] sm:$0xff]  }
 0x184   : > { %v15679_v38 = vpack.c.bf16 %v1913_v35, %v1912_v34  ;;  %16228 = vmatprep.subr.bf16.mxu1 %v18033_v25  ;;  %v4615_v50 = vpack.c.bf16 %v4570_v53, %v4568_v12  ;;  %v18062_v22 = vld [vmem:[%s23985_s1 + $0x218] sm:$0xff]   ;;  %v18065_v25 = vld [vmem:[%s23985_s1 + $0x210] sm:$0xff]   ;;  %v3736_v11 = vsel %vm202_vm1, %v3734_v28, %v3735_v30  ;;  %v18099_v28 = vld [vmem:[%s23985_s1 + $0x148] sm:$0xff]  }
 0x185   : > { %v18074_v34 = vld [vmem:[%s23985_s1 + $0x178] sm:$0xff]  }
 0x186   : > { %15751 = vst [vmem:[%s20125_s20 + $0x8] sm:$0xff] %v15679_v38   ;;  %16207 = vmatpush3.bf16.msra.mxu0 %v18034_v29  ;;  %v18068_v29 = vld [vmem:[%s23985_s1 + $0x208] sm:$0xff]   ;;  %v18076_v35 = vld [vmem:[%s23985_s1 + $0xb8] sm:$0xff]   ;;  %v18078_v38 = vld [vmem:[%s23985_s1 + $0xf0] sm:$0xff]  }
 0x187   : > { %16229 = vmatpush3.bf16.msra.mxu1 %v18035_v32  ;;  %16208 = vmatprep.subr.bf16.mxu0 %v18036_v37  ;;  %v3737_v32 = vrot.slane %v3689_v20, 2  ;;  %v18077_v37 = vld [vmem:[%s23985_s1 + $0x138] sm:$0xff]  }
 0x188   : > { %16230 = vmatprep.subr.bf16.mxu1 %v18037_v39  ;;  %v18090_v12 = vld [vmem:[%s23985_s1 + $0xd8] sm:$0xff]  }
 0x189   : > { %v3738_v20 = vsel %vm202_vm1, %v3735_v30, %v3737_v32  ;;  %v4574_v32 = vrot.slane %v4548_v4, 2 }
 0x18a   : > { %16209 = vmatpush3.bf16.msra.mxu0 %v18038_v41  ;;  %v3749_v36 = vpack.c.bf16 %v3738_v20, %v3736_v11  ;;  %v18079_v41 = vld [vmem:[%s23985_s1 + $0x170] sm:$0xff]   ;;  %v4576_v11 = vrot.slane %v4549_v5, 2 }
 0x18b   : > { %16231 = vmatpush3.bf16.msra.mxu1 %v18039_v43  ;;  %16210 = vmatprep.subr.bf16.mxu0 %v18040_v44  ;;  %v18080_v43 = vld [vmem:[%s23985_s1 + $0xb0] sm:$0xff]   ;;  %v20546_v44 = vld [vmem:[%s19166_s7 + $0x48] sm:$0xff]  }
 0x18c   : > { %16232 = vmatprep.subr.bf16.mxu1 %v18041_v48  ;;  %v18081_v48 = vld [vmem:[%s23985_s1 + $0x130] sm:$0xff]   ;;  %v4553_v52 = vunpack.c.l.bf16 %v20546_v44 }
 0x18e   : > { %16211 = vmatpush3.bf16.msra.mxu0 %v18042_v56  ;;  %v4554_v56 = vunpack.c.h.bf16 %v20546_v44  ;;  %v4590_v60 = vrot.slane %v4553_v52, 2  ;;  %v4583_v20 = vrot.slane %v4553_v52, 1 }
 0x18f   : > { %16233 = vmatpush3.bf16.msra.mxu1 %v18043_v57  ;;  %16212 = vmatprep.subr.bf16.mxu0 %v18044_v46  ;;  %v4555_v57 = vunpack.c.l.bf16 %v20549_v47 }
 0x190   : > { %16234 = vmatprep.subr.bf16.mxu1 %v18045_v45  ;;  %v18082_v45 = vld [vmem:[%s23985_s1 + $0xe8] sm:$0xff]  }
 0x191   : > { %v4586_v4 = vrot.slane %v4555_v57, 1 }
 0x192   : > { %16213 = vmatpush3.bf16.msra.mxu0 %v18046_v49  ;;  %v18083_v49 = vld [vmem:[%s23985_s1 + $0x168] sm:$0xff]  }
 0x193   : > { %16235 = vmatpush3.bf16.msra.mxu1 %v18047_v40  ;;  %17398 = vmatprep.subr.bf16.mxu0 %v18998_v42  ;;  %v18085_v40 = vld [vmem:[%s23985_s1 + $0x128] sm:$0xff]  }
 0x194   : > { %16251 = vmatprep.subr.bf16.mxu1 %v18048_v61  ;;  %v18086_v61 = vld [vmem:[%s23985_s1 + $0xe0] sm:$0xff]  }
 0x195   : > { %4441 = vmatmul.mubr.bf16.vlgmr.msra.gmra.mxu0 %v3745_v62  ;;  %v20537_v39 = vpop.f32.mrf.mxu0  ;;  %v4591_v62 = vrot.slane %v4554_v56, 2 }
 0x196   : > { %4482 = vmatmul.mubr.bf16.vlgmr.msra.gmra.mxu1 %v20332_v7  ;;  %17399 = vmatpush3.bf16.msra.mxu0 %v18050_v6  ;;  %v18071_v7 = vld [vmem:[%s23985_s1 + $0x200] sm:$0xff]   ;;  %v20558_v58 = vpop.f32.mrf.mxu1  ;;  %v4593_v6 = vrot.slane %v4555_v57, 2  ;;  %v20669_v57 = vld [vmem:[%s19166_s7 + $0x5c] sm:$0x1] }
 0x197   : > { %16252 = vmatpush3.bf16.msra.mxu1 %v18051_v63  ;;  %17400 = vmatprep.subr.bf16.mxu0 %v18998_v42  ;;  %v15977_v46 = vpop.f32.mrf.mxu0 }
 0x198   : > { %16253 = vmatprep.subr.bf16.mxu1 %v18052_v0  ;;  %17414 = vmatprep.mubr.msk.bf16.mxu0 %vm18999_vm2, %v18998_v42  ;;  %v15999_v63 = vpop.f32.mrf.mxu1  ;;  %v4594_v14 = vsel %vm202_vm1, %v4591_v62, %v4593_v6  ;;  %v15978_v30 = vadd.f32 %v15977_v46, %v20537_v39  ;;  %v18108_v6 = vld [vmem:[%s23985_s1 + $0x1b8] sm:$0xff]  }
 0x199   : > { %5231 = vmatprep.mubr.bf16.mxu1 %v4615_v50  ;;  %v15979_v0 = vpop.f32.mrf.mxu0  ;;  %v18091_v50 = vld [vmem:[%s23985_s1 + $0x158] sm:$0xff]  }
 0x19a   : > { %17401 = vmatpush3.bf16.msra.mxu0 %v18053_v8  ;;  %v18087_v8 = vld [vmem:[%s23985_s1 + $0x160] sm:$0xff]   ;;  %v16001_v53 = vpop.f32.mrf.mxu1  ;;  %v2615_v5 = vadd.f32 %v20648_v3, %v15978_v30  ;;  %v18115_v30 = vld [vmem:[%s23985_s1 + $0x228] sm:$0xff]  }
 0x19b   : > { %16254 = vmatpush3.bf16.msra.mxu1 %v18054_v13  ;;  %17402 = vmatprep.subr.bf16.mxu0 %v18998_v42  ;;  %v4592_v13 = vsel %vm202_vm1, %v4590_v60, %v4591_v62 }
 0x19c   : > { %16255 = vmatprep.subr.bf16.mxu1 %v18055_v9  ;;  %v4619_v10 = vpack.c.bf16 %v4594_v14, %v4592_v13  ;;  %v18089_v9 = vld [vmem:[%s23985_s1 + $0x120] sm:$0xff]  }
 0x19e   : > { %17403 = vmatpush3.bf16.msra.mxu0 %v18056_v16  ;;  %v15980_v16 = vpop.f32.mrf.mxu0 }
 0x19f   : > { %16256 = vmatpush3.bf16.msra.mxu1 %v18057_v54  ;;  %17404 = vmatprep.subr.bf16.mxu0 %v18998_v42  ;;  %v18092_v54 = vld [vmem:[%s23985_s1 + $0x98] sm:$0xff]  }
 0x1a0   : > { %16257 = vmatprep.subr.bf16.mxu1 %v18058_v19 }
 0x1a2   : > { %17405 = vmatpush3.bf16.msra.mxu0 %v18059_v21  ;;  %v18093_v21 = vld [vmem:[%s23985_s1 + $0x118] sm:$0xff]  }
 0x1a3   : > { %16258 = vmatpush3.bf16.msra.mxu1 %v18060_v51  ;;  %17406 = vmatprep.subr.bf16.mxu0 %v18998_v42  ;;  %v18094_v51 = vld [vmem:[%s23985_s1 + $0xd0] sm:$0xff]  }
 0x1a4   : > { %16259 = vmatprep.subr.bf16.mxu1 %v18061_v55  ;;  %v16002_v55 = vpop.f32.mrf.mxu1 }
 0x1a6   : > { %17407 = vmatpush3.bf16.msra.mxu0 %v18062_v22  ;;  %v18095_v22 = vld [vmem:[%s23985_s1 + $0x150] sm:$0xff]  }
 0x1a7   : > { %16260 = vmatpush3.bf16.msra.mxu1 %v18063_v23  ;;  %17408 = vmatprep.subr.bf16.mxu0 %v18998_v42  ;;  %v18096_v23 = vld [vmem:[%s23985_s1 + $0x90] sm:$0xff]  }
 0x1a8   : > { %16261 = vmatprep.subr.bf16.mxu1 %v18064_v24 }
 0x1aa   : > { %17409 = vmatpush3.bf16.msra.mxu0 %v18065_v25 }
 0x1ab   : > { %16262 = vmatpush3.bf16.msra.mxu1 %v18066_v26  ;;  %17410 = vmatprep.subr.bf16.mxu0 %v18998_v42  ;;  %v18097_v26 = vld [vmem:[%s23985_s1 + $0x110] sm:$0xff]  }
 0x1ac   : > { %16263 = vmatprep.subr.bf16.mxu1 %v18067_v27  ;;  %v18098_v27 = vld [vmem:[%s23985_s1 + $0xc8] sm:$0xff]  }
 0x1ae   : > { %17411 = vmatpush3.bf16.msra.mxu0 %v18068_v29  ;;  %v4573_v29 = vrot.slane %v4547_v2, 2  ;;  %v15981_v2 = vadd.f32 %v15980_v16, %v15979_v0 }
 0x1af   : > { %16264 = vmatpush3.bf16.msra.mxu1 %v18069_v31  ;;  %17412 = vmatprep.subr.bf16.mxu0 %v18998_v42  ;;  %v18100_v31 = vld [vmem:[%s23985_s1 + $0x88] sm:$0xff]  }
 0x1b0   : > { %16265 = vmatprep.subr.bf16.mxu1 %v18070_v17  ;;  %v4575_v39 = vsel %vm202_vm1, %v4573_v29, %v4574_v32 }
 0x1b2   : > { %17413 = vmatpush3.bf16.msra.mxu0 %v18071_v7 }
 0x1b3   : > { %16266 = vmatpush3.bf16.msra.mxu1 %v18072_v18  ;;  %16273 = vmatprep.subr.bf16.mxu0 %v18073_v33  ;;  %v18101_v18 = vld [vmem:[%s23985_s1 + $0x108] sm:$0xff]   ;;  %v4584_v33 = vrot.slane %v4554_v56, 1  ;;  %v20666_v56 = vld [vmem:[%s19166_s7 + $0x54] sm:$0xff]  }
 0x1b4   : > { %16295 = vmatprep.subr.bf16.mxu1 %v18074_v34  ;;  %v16000_v34 = vadd.f32 %v15999_v63, %v20558_v58  ;;  %v18107_v58 = vld [vmem:[%s23985_s1 + $0x1f8] sm:$0xff]  }
 0x1b5   : > { %17415 = vmatmul.mubr.bf16.vlgmr.msra.gmra.mxu0 %v3749_v36  ;;  %v16020_v19 = vpop.f32.mrf.mxu0  ;;  %v4585_v52 = vsel %vm194_vm0, %v4583_v20, %v4584_v33  ;;  %v4587_v46 = vsel %vm194_vm0, %v4584_v33, %v4586_v4  ;;  %v18119_v20 = vld [vmem:[%s23985_s1 + $0x1d8] sm:$0xff]   ;;  %v18122_v4 = vld [vmem:[%s23985_s1 + $0x1d0] sm:$0xff]  }
 0x1b6   : > { %5232 = vmatmul.mubr.bf16.vlgmr.msra.gmra.mxu1 %v20428_v1  ;;  %16274 = vmatpush3.bf16.msra.mxu0 %v18076_v35  ;;  %v16042_v24 = vpop.f32.mrf.mxu1  ;;  %v18102_v1 = vld [vmem:[%s23985_s1 + $0xc0] sm:$0xff]   ;;  %v2656_v60 = vadd.f32 %v16000_v34, %v2615_v5  ;;  %v18120_v33 = vld [vmem:[%s23985_s1 + $0x198] sm:$0xff]   ;;  %v18123_v5 = vld [vmem:[%s23985_s1 + $0x190] sm:$0xff]  }
 0x1b7   : > { %16296 = vmatpush3.bf16.msra.mxu1 %v18077_v37  ;;  %16275 = vmatprep.subr.bf16.mxu0 %v18078_v38  ;;  %v16021_v25 = vpop.f32.mrf.mxu0  ;;  %v18103_v35 = vld [vmem:[%s23985_s1 + $0x140] sm:$0xff]   ;;  %v18124_v34 = vld [vmem:[%s23985_s1 + $0x210] sm:$0xff]  }
 0x1b8   : > { %16297 = vmatprep.subr.bf16.mxu1 %v18079_v41  ;;  %5272 = vmatprep.mubr.bf16.mxu0 %v20546_v44  ;;  %v16043_v17 = vpop.f32.mrf.mxu1  ;;  %v18104_v38 = vld [vmem:[%s23985_s1 + $0x80] sm:$0xff]   ;;  %v4577_v41 = vsel %vm202_vm1, %v4574_v32, %v4576_v11  ;;  %v16003_v44 = vadd.f32 %v16002_v55, %v16001_v53  ;;  %v16022_v47 = vadd.f32 %v16021_v25, %v16020_v19 }
 0x1b9   : > { %5313 = vmatprep.mubr.bf16.mxu1 %v4619_v10  ;;  %v16023_v7 = vpop.f32.mrf.mxu0  ;;  %v4616_v62 = vpack.c.bf16 %v4577_v41, %v4575_v39  ;;  %v4618_v10 = vpack.c.bf16 %v4587_v46, %v4585_v52  ;;  %v18116_v32 = vld [vmem:[%s23985_s1 + $0x1e0] sm:$0xff]   ;;  %v18133_v46 = vld [vmem:[%s23985_s1 + $0xf8] sm:$0xff]  }
 0x1ba   : > { %16276 = vmatpush3.bf16.msra.mxu0 %v18080_v43  ;;  %v16045_v36 = vpop.f32.mrf.mxu1  ;;  %v2618_v43 = vadd.f32 %v20648_v3, %v15981_v2  ;;  %v2697_v14 = vadd.f32 %v16022_v47, %v2656_v60  ;;  %v18118_v2 = vld [vmem:[%s23985_s1 + $0x220] sm:$0xff]  }
 0x1bb   : > { %16298 = vmatpush3.bf16.msra.mxu1 %v18081_v48  ;;  %16277 = vmatprep.subr.bf16.mxu0 %v18082_v45  ;;  %v16024_v37 = vpop.f32.mrf.mxu0  ;;  %v18105_v48 = vld [vmem:[%s23985_s1 + $0x100] sm:$0xff]   ;;  %v4560_v45 = vunpack.c.l.bf16 %v20666_v56 }
 0x1bc   : > { %16299 = vmatprep.subr.bf16.mxu1 %v18083_v49  ;;  %v4561_v49 = vunpack.c.h.bf16 %v20666_v56  ;;  %v2659_v13 = vadd.f32 %v16003_v44, %v2618_v43  ;;  %v18129_v44 = vld [vmem:[%s23985_s1 + $0x180] sm:$0xff]  }
 0x1bd   : > { %v4600_v63 = vrot.slane %v4560_v45, 1  ;;  %v4607_v39 = vrot.slane %v4560_v45, 2  ;;  %v18130_v47 = vld [vmem:[%s23985_s1 + $0x200] sm:$0xff]   ;;  %v20784_v45 = vld [vmem:[%s19166_s7 + $0x50] sm:$0x1] }
 0x1be   : > { %16278 = vmatpush3.bf16.msra.mxu0 %v18084_v59  ;;  %v4562_v59 = vunpack.c.l.bf16 %v20669_v57  ;;  %v4601_v0 = vrot.slane %v4561_v49, 1  ;;  %v4608_v41 = vrot.slane %v4561_v49, 2  ;;  %v5422_v60 = vunpack.c.l.bf16 %v20784_v45 }
 0x1bf   : > { %16300 = vmatpush3.bf16.msra.mxu1 %v18085_v40  ;;  %16279 = vmatprep.subr.bf16.mxu0 %v18086_v61  ;;  %v16025_v40 = vadd.f32 %v16024_v37, %v16023_v7  ;;  %v16046_v61 = vpop.f32.mrf.mxu1  ;;  %v18127_v37 = vld [vmem:[%s23985_s1 + $0x208] sm:$0xff]  }
 0x1c0   : > { %16301 = vmatprep.subr.bf16.mxu1 %v18087_v8  ;;  %v4603_v8 = vrot.slane %v4562_v59, 1  ;;  %v4602_v53 = vsel %vm194_vm0, %v4600_v63, %v4601_v0  ;;  %v4610_v43 = vrot.slane %v4562_v59, 2  ;;  %v4609_v52 = vsel %vm202_vm1, %v4607_v39, %v4608_v41  ;;  %v20797_v63 = vld [vmem:[%s19166_s7 + $0x54] sm:$0xff]   ;;  %v18162_v39 = vld [vmem:[%s23985_s1] sm:$0xff]  }
 0x1c2   : > { %16280 = vmatpush3.bf16.msra.mxu0 %v18088_v15  ;;  %v16044_v15 = vadd.f32 %v16043_v17, %v16042_v24  ;;  %v4604_v16 = vsel %vm194_vm0, %v4601_v0, %v4603_v8  ;;  %v18113_v24 = vld [vmem:[%s23985_s1 + $0x1e8] sm:$0xff]   ;;  %v4611_v57 = vsel %vm202_vm1, %v4608_v41, %v4610_v43  ;;  %v18135_v0 = vld [vmem:[%s23985_s1 + $0xb8] sm:$0xff]   ;;  %v18136_v8 = vld [vmem:[%s23985_s1 + $0x70] sm:$0xff]   ;;  %v5426_v41 = vunpack.c.l.bf16 %v20797_v63 }
 0x1c3   : > { %16302 = vmatpush3.bf16.msra.mxu1 %v18089_v9  ;;  %16281 = vmatprep.subr.bf16.mxu0 %v18090_v12  ;;  %v18109_v9 = vld [vmem:[%s23985_s1 + $0x238] sm:$0xff]   ;;  %v18110_v12 = vld [vmem:[%s23985_s1 + $0x1f0] sm:$0xff]   ;;  %v4621_v19 = vpack.c.bf16 %v4604_v16, %v4602_v53  ;;  %v18140_v53 = vld [vmem:[%s23985_s1 + $0x68] sm:$0xff]  }
 0x1c4   : > { %16303 = vmatprep.subr.bf16.mxu1 %v18091_v50  ;;  %v2700_v50 = vadd.f32 %v16025_v40, %v2659_v13  ;;  %v2738_v55 = vadd.f32 %v16044_v15, %v2697_v14  ;;  %v4622_v40 = vpack.c.bf16 %v4611_v57, %v4609_v52  ;;  %v5442_v13 = vrot.slane %v5422_v60, 1  ;;  %v18137_v14 = vld [vmem:[%s23985_s1 + $0xf0] sm:$0xff]   ;;  %v18166_v52 = vld [vmem:[%s23985_s1 + $0x178] sm:$0xff]  }
 0x1c5   : > { %v18138_v15 = vld [vmem:[%s23985_s1 + $0x30] sm:$0xff]   ;;  %v18167_v57 = vld [vmem:[%s23985_s1 + $0x1f8] sm:$0xff]  }
 0x1c6   : > { %16282 = vmatpush3.bf16.msra.mxu0 %v18092_v54  ;;  %v16047_v54 = vadd.f32 %v16046_v61, %v16045_v36  ;;  %v18126_v36 = vld [vmem:[%s23985_s1 + $0x188] sm:$0xff]   ;;  %v18134_v61 = vld [vmem:[%s23985_s1 + $0x38] sm:$0xff]  }
 0x1c7   : > { %16304 = vmatpush3.bf16.msra.mxu1 %v18093_v21  ;;  %16283 = vmatprep.subr.bf16.mxu0 %v18094_v51  ;;  %v18111_v51 = vld [vmem:[%s23985_s1 + $0x1b0] sm:$0xff]  }
 0x1c8   : > { %16305 = vmatprep.subr.bf16.mxu1 %v18095_v22  ;;  %v18112_v22 = vld [vmem:[%s23985_s1 + $0x230] sm:$0xff]  }
 0x1ca   : > { %16284 = vmatpush3.bf16.msra.mxu0 %v18096_v23 }
 0x1cb   : > { %16306 = vmatpush3.bf16.msra.mxu1 %v18097_v26  ;;  %16285 = vmatprep.subr.bf16.mxu0 %v18098_v27  ;;  %v2741_v26 = vadd.f32 %v16047_v54, %v2700_v50  ;;  %v18141_v50 = vld [vmem:[%s23985_s1 + $0xe8] sm:$0xff]  }
 0x1cc   : > { %16307 = vmatprep.subr.bf16.mxu1 %v18099_v28  ;;  %v18114_v28 = vld [vmem:[%s23985_s1 + $0x1a8] sm:$0xff]  }
 0x1cd   : > { %v18143_v54 = vld [vmem:[%s23985_s1 + $0xa8] sm:$0xff]  }
 0x1ce   : > { %16286 = vmatpush3.bf16.msra.mxu0 %v18100_v31 }
 0x1cf   : > { %16308 = vmatpush3.bf16.msra.mxu1 %v18101_v18  ;;  %16287 = vmatprep.subr.bf16.mxu0 %v18102_v1  ;;  %v18117_v18 = vld [vmem:[%s23985_s1 + $0x1a0] sm:$0xff]   ;;  %v18121_v1 = vld [vmem:[%s23985_s1 + $0x218] sm:$0xff]  }
 0x1d0   : > { %16309 = vmatprep.subr.bf16.mxu1 %v18103_v35  ;;  %v18125_v35 = vld [vmem:[%s23985_s1 + $0x1c8] sm:$0xff]  }
 0x1d2   : > { %16288 = vmatpush3.bf16.msra.mxu0 %v18104_v38  ;;  %v18128_v38 = vld [vmem:[%s23985_s1 + $0x1c0] sm:$0xff]  }
 0x1d3   : > { %16310 = vmatpush3.bf16.msra.mxu1 %v18105_v48  ;;  %16317 = vmatprep.subr.bf16.mxu0 %v18107_v58  ;;  %v18132_v48 = vld [vmem:[%s23985_s1 + $0x78] sm:$0xff]   ;;  %v20777_v58 = vld [vmem:[%s19166_s7 + $0x48] sm:$0xff]  }
 0x1d4   : > { %17418 = vmatprep.subr.bf16.mxu1 %v18998_v42  ;;  %v5420_v49 = vunpack.c.l.bf16 %v20777_v58  ;;  %v5421_v59 = vunpack.c.h.bf16 %v20777_v58 }
 0x1d5   : > { %v2778_v21 = vpop.f32.mrf.mxu0  ;;  %5273 = vmatmul.mubr.bf16.vlgmr.msra.gmra.mxu0 %v4616_v62 }
 0x1d6   : > { %5314 = vmatmul.mubr.bf16.vlgmr.msra.gmra.mxu1 %v4618_v10  ;;  %16318 = vmatpush3.bf16.msra.mxu0 %v18108_v6  ;;  %v2779_v25 = vadd.f32 %v2778_v21, %v2738_v55  ;;  %v5439_v62 = vrot.slane %v5420_v49, 1  ;;  %v5440_v6 = vrot.slane %v5421_v59, 1  ;;  %v18144_v21 = vld [vmem:[%s23985_s1 + $0x60] sm:$0xff]  }
 0x1d7   : > { %17419 = vmatpush3.bf16.msra.mxu1 %v18109_v9  ;;  %v17376_v23 = vpop.f32.mrf.mxu0  ;;  %16319 = vmatprep.subr.bf16.mxu0 %v18110_v12  ;;  %v18139_v9 = vld [vmem:[%s23985_s1 + $0xb0] sm:$0xff]   ;;  %v18146_v55 = vld [vmem:[%s23985_s1 + $0x20] sm:$0xff]  }
 0x1d8   : > { %17420 = vmatprep.subr.bf16.mxu1 %v18998_v42  ;;  %5354 = vmatprep.mubr.bf16.mxu0 %v4621_v19  ;;  %v2785_v17 = vmax.f32 %v2779_v25, 0.0  ;;  %v5441_v10 = vsel %vm194_vm0, %v5439_v62, %v5440_v6  ;;  %v5443_v12 = vsel %vm194_vm0, %v5440_v6, %v5442_v13  ;;  %v16073_v19 = vpop.f32.mrf.mxu1  ;;  %v18149_v25 = vld [vmem:[%s23985_s1 + $0xd8] sm:$0xff]  }
 0x1d9   : > { %v2781_v27 = vpop.f32.mrf.mxu0  ;;  %17434 = vmatprep.mubr.msk.bf16.mxu1 %vm18999_vm2, %v18998_v42  ;;  %v5488_v16 = vpack.c.bf16 %v5443_v12, %v5441_v10  ;;  %v18169_v6 = vld [vmem:[%s23985_s1 + $0x1b8] sm:$0xff]   ;;  %v20929_v12 = vld [vmem:[%s19166_s7 + $0x68] sm:$0x1] }
 0x1da   : > { %v2782_v29 = vadd.f32 %v2781_v27, %v2741_v26  ;;  %16320 = vmatpush3.bf16.msra.mxu0 %v18111_v51  ;;  %v18145_v51 = vld [vmem:[%s23985_s1 + $0xe0] sm:$0xff]   ;;  %v16074_v23 = vpop.f32.mrf.mxu1  ;;  %v18150_v26 = vld [vmem:[%s23985_s1 + $0x18] sm:$0xff]  }
 0x1db   : > { %17421 = vmatpush3.bf16.msra.mxu1 %v18112_v22  ;;  %v17377_v31 = vpop.f32.mrf.mxu0  ;;  %16321 = vmatprep.subr.bf16.mxu0 %v18113_v24  ;;  %v18147_v22 = vld [vmem:[%s23985_s1 + $0xa0] sm:$0xff]   ;;  %v18148_v24 = vld [vmem:[%s23985_s1 + $0x58] sm:$0xff]  }
 0x1dc   : > { %v2786_v7 = vmax.f32 %v2782_v29, 0.0  ;;  %17422 = vmatprep.subr.bf16.mxu1 %v18998_v42  ;;  %v18151_v27 = vld [vmem:[%s23985_s1 + $0x98] sm:$0xff]   ;;  %v18152_v29 = vld [vmem:[%s23985_s1 + $0x50] sm:$0xff]  }
 0x1dd   : > { %v18154_v31 = vld [vmem:[%s23985_s1 + $0x10] sm:$0xff]   ;;  %v20923_v10 = vld [vmem:[%s19166_s7 + $0x5c] sm:$0x1] }
 0x1de   : > { %v15684_v11 = vpack.c.bf16 %v2786_v7, %v2785_v17  ;;  %16322 = vmatpush3.bf16.msra.mxu0 %v18114_v28  ;;  %v16076_v28 = vpop.f32.mrf.mxu1  ;;  %v18155_v17 = vld [vmem:[%s23985_s1 + $0x90] sm:$0xff]  }
 0x1df   : > { %17423 = vmatpush3.bf16.msra.mxu1 %v18115_v30  ;;  %16323 = vmatprep.subr.bf16.mxu0 %v18116_v32  ;;  %v18153_v30 = vld [vmem:[%s23985_s1 + $0xd0] sm:$0xff]  }
 0x1e0   : > { %15752 = vst [vmem:[%s20125_s20 + $0x10] sm:$0xff] %v15684_v11   ;;  %17424 = vmatprep.subr.bf16.mxu1 %v18998_v42  ;;  %v16077_v7 = vpop.f32.mrf.mxu1  ;;  %v18157_v11 = vld [vmem:[%s23985_s1 + $0xc8] sm:$0xff]  }
 0x1e2   : > { %16324 = vmatpush3.bf16.msra.mxu0 %v18117_v18  ;;  %v18156_v18 = vld [vmem:[%s23985_s1 + $0x48] sm:$0xff]  }
 0x1e3   : > { %17425 = vmatpush3.bf16.msra.mxu1 %v18118_v2  ;;  %16325 = vmatprep.subr.bf16.mxu0 %v18119_v20  ;;  %v18158_v20 = vld [vmem:[%s23985_s1 + $0x8] sm:$0xff]  }
 0x1e4   : > { %17426 = vmatprep.subr.bf16.mxu1 %v18998_v42 }
 0x1e6   : > { %16326 = vmatpush3.bf16.msra.mxu0 %v18120_v33 }
 0x1e7   : > { %17427 = vmatpush3.bf16.msra.mxu1 %v18121_v1  ;;  %16327 = vmatprep.subr.bf16.mxu0 %v18122_v4  ;;  %v18159_v1 = vld [vmem:[%s23985_s1 + $0x88] sm:$0xff]   ;;  %v18160_v4 = vld [vmem:[%s23985_s1 + $0x40] sm:$0xff]  }
 0x1e8   : > { %17428 = vmatprep.subr.bf16.mxu1 %v18998_v42 }
 0x1ea   : > { %16328 = vmatpush3.bf16.msra.mxu0 %v18123_v5  ;;  %v18161_v5 = vld [vmem:[%s23985_s1 + $0xc0] sm:$0xff]  }
 0x1eb   : > { %17429 = vmatpush3.bf16.msra.mxu1 %v18124_v34  ;;  %16329 = vmatprep.subr.bf16.mxu0 %v18125_v35  ;;  %v5446_v34 = vrot.slane %v5420_v49, 2  ;;  %v5447_v35 = vrot.slane %v5421_v59, 2 }
 0x1ec   : > { %17430 = vmatprep.subr.bf16.mxu1 %v18998_v42 }
 0x1ee   : > { %16330 = vmatpush3.bf16.msra.mxu0 %v18126_v36  ;;  %v5449_v36 = vrot.slane %v5422_v60, 2  ;;  %v5463_v60 = vrot.slane %v5426_v41, 2 }
 0x1ef   : > { %17431 = vmatpush3.bf16.msra.mxu1 %v18127_v37  ;;  %16331 = vmatprep.subr.bf16.mxu0 %v18128_v38  ;;  %v16075_v37 = vadd.f32 %v16074_v23, %v16073_v19 }
 0x1f0   : > { %17432 = vmatprep.subr.bf16.mxu1 %v18998_v42  ;;  %v5450_v45 = vsel %vm202_vm1, %v5447_v35, %v5449_v36 }
 0x1f1   : > { %v3488_v49 = vadd.f32 %v20648_v3, %v16075_v37  ;;  %v18178_v37 = vld [vmem:[%s23985_s1 + $0x160] sm:$0xff]  }
 0x1f2   : > { %16332 = vmatpush3.bf16.msra.mxu0 %v18129_v44  ;;  %v18163_v44 = vld [vmem:[%s23985_s1 + $0x80] sm:$0xff]  }
 0x1f3   : > { %17433 = vmatpush3.bf16.msra.mxu1 %v18130_v47  ;;  %16348 = vmatprep.subr.bf16.mxu0 %v18132_v48  ;;  %v5427_v47 = vunpack.c.h.bf16 %v20797_v63 }
 0x1f4   : > { %16370 = vmatprep.subr.bf16.mxu1 %v18133_v46  ;;  %v5448_v46 = vsel %vm202_vm1, %v5446_v34, %v5447_v35 }
 0x1f5   : > { %5355 = vmatmul.mubr.bf16.vlgmr.msra.gmra.mxu0 %v20666_v56  ;;  %v18142_v56 = vld [vmem:[%s23985_s1 + $0x28] sm:$0xff]   ;;  %v16095_v32 = vpop.f32.mrf.mxu0  ;;  %v5464_v62 = vrot.slane %v5427_v47, 2 }
 0x1f6   : > { %17435 = vmatmul.mubr.bf16.vlgmr.msra.gmra.mxu1 %v4622_v40  ;;  %16349 = vmatpush3.bf16.msra.mxu0 %v18134_v61  ;;  %v16117_v2 = vpop.f32.mrf.mxu1  ;;  %v18168_v40 = vld [vmem:[%s23985_s1 + $0x138] sm:$0xff]  }
 0x1f7   : > { %16371 = vmatpush3.bf16.msra.mxu1 %v18135_v0  ;;  %16350 = vmatprep.subr.bf16.mxu0 %v18136_v8  ;;  %v16096_v33 = vpop.f32.mrf.mxu0  ;;  %v18170_v0 = vld [vmem:[%s23985_s1 + $0x170] sm:$0xff]   ;;  %v16078_v8 = vadd.f32 %v16077_v7, %v16076_v28  ;;  %v5465_v23 = vsel %vm202_vm1, %v5463_v60, %v5464_v62 }
 0x1f8   : > { %16372 = vmatprep.subr.bf16.mxu1 %v18137_v14  ;;  %6104 = vmatprep.mubr.bf16.mxu0 %v5488_v16  ;;  %v16118_v38 = vpop.f32.mrf.mxu1  ;;  %v16097_v48 = vadd.f32 %v16096_v33, %v16095_v32  ;;  %v5428_v16 = vunpack.c.l.bf16 %v20923_v10  ;;  %v18196_v10 = vld [vmem:[%s23985_s1 + $0x100] sm:$0xff]  }
 0x1f9   : > { %6145 = vmatprep.mubr.bf16.mxu1 %v20797_v63  ;;  %v16098_v43 = vpop.f32.mrf.mxu0  ;;  %v16119_v14 = vadd.f32 %v16118_v38, %v16117_v2  ;;  %v21032_v63 = vld [vmem:[%s19166_s7 + $0x54] sm:$0xff]  }
 0x1fa   : > { %16351 = vmatpush3.bf16.msra.mxu0 %v18138_v15  ;;  %v16120_v59 = vpop.f32.mrf.mxu1  ;;  %v3529_v13 = vadd.f32 %v16097_v48, %v3488_v49  ;;  %v5489_v15 = vpack.c.bf16 %v5450_v45, %v5448_v46  ;;  %v18182_v49 = vld [vmem:[%s23985_s1 + $0x158] sm:$0xff]  }
 0x1fb   : > { %16373 = vmatpush3.bf16.msra.mxu1 %v18139_v9  ;;  %16352 = vmatprep.subr.bf16.mxu0 %v18140_v53  ;;  %v16099_v61 = vpop.f32.mrf.mxu0  ;;  %v20926_v9 = vld [vmem:[%s19166_s7 + $0x60] sm:$0xff]   ;;  %v18171_v53 = vld [vmem:[%s23985_s1 + $0x1f0] sm:$0xff]  }
 0x1fc   : > { %16374 = vmatprep.subr.bf16.mxu1 %v18141_v50  ;;  %v5433_v50 = vunpack.c.l.bf16 %v20926_v9  ;;  %v16100_v19 = vadd.f32 %v16099_v61, %v16098_v43  ;;  %v3570_v28 = vadd.f32 %v16119_v14, %v3529_v13  ;;  %v18185_v61 = vld [vmem:[%s23985_s1 + $0x198] sm:$0xff]   ;;  %v18188_v14 = vld [vmem:[%s23985_s1 + $0x110] sm:$0xff]  }
 0x1fe   : > { %16353 = vmatpush3.bf16.msra.mxu0 %v18142_v56  ;;  %v5434_v56 = vunpack.c.h.bf16 %v20926_v9 }
 0x1ff   : > { %16375 = vmatpush3.bf16.msra.mxu1 %v18143_v54  ;;  %16354 = vmatprep.subr.bf16.mxu0 %v18144_v21  ;;  %v5435_v54 = vunpack.c.l.bf16 %v20929_v12  ;;  %v16121_v21 = vpop.f32.mrf.mxu1 }
 0x200   : > { %16376 = vmatprep.subr.bf16.mxu1 %v18145_v51  ;;  %v18172_v51 = vld [vmem:[%s23985_s1 + $0x130] sm:$0xff]  }
 0x202   : > { %16355 = vmatpush3.bf16.msra.mxu0 %v18146_v55 }
 0x203   : > { %16377 = vmatpush3.bf16.msra.mxu1 %v18147_v22  ;;  %16356 = vmatprep.subr.bf16.mxu0 %v18148_v24  ;;  %v18173_v22 = vld [vmem:[%s23985_s1 + $0x1b0] sm:$0xff]   ;;  %v5466_v24 = vrot.slane %v5428_v16, 2 }
 0x204   : > { %16378 = vmatprep.subr.bf16.mxu1 %v18149_v25  ;;  %v5473_v25 = vrot.slane %v5433_v50, 1 }
 0x206   : > { %16357 = vmatpush3.bf16.msra.mxu0 %v18150_v26  ;;  %v5474_v26 = vrot.slane %v5434_v56, 1 }
 0x207   : > { %16379 = vmatpush3.bf16.msra.mxu1 %v18151_v27  ;;  %16358 = vmatprep.subr.bf16.mxu0 %v18152_v29  ;;  %v3491_v27 = vadd.f32 %v20648_v3, %v16078_v8  ;;  %v5467_v3 = vsel %vm202_vm1, %v5464_v62, %v5466_v24  ;;  %v18186_v62 = vld [vmem:[%s23985_s1 + $0x150] sm:$0xff]   ;;  %v18195_v24 = vld [vmem:[%s23985_s1 + $0x1c0] sm:$0xff]  }
 0x208   : > { %16380 = vmatprep.subr.bf16.mxu1 %v18153_v30  ;;  %v5476_v30 = vrot.slane %v5435_v54, 1  ;;  %v5475_v7 = vsel %vm194_vm0, %v5473_v25, %v5474_v26  ;;  %v5492_v33 = vpack.c.bf16 %v5467_v3, %v5465_v23  ;;  %v18187_v8 = vld [vmem:[%s23985_s1 + $0x1d0] sm:$0xff]   ;;  %v18194_v23 = vld [vmem:[%s23985_s1 + $0x140] sm:$0xff]   ;;  %v6293_v25 = vunpack.c.l.bf16 %v21032_v63  ;;  %v18200_v3 = vld [vmem:[%s23985_s1 + $0x238] sm:$0xff]  }
 0x20a   : > { %16359 = vmatpush3.bf16.msra.mxu0 %v18154_v31  ;;  %v16122_v31 = vadd.f32 %v16121_v21, %v16120_v59  ;;  %v18183_v59 = vld [vmem:[%s23985_s1 + $0x1d8] sm:$0xff]   ;;  %v5456_v21 = vrot.slane %v5426_v41, 1  ;;  %v5459_v41 = vrot.slane %v5428_v16, 1  ;;  %v18197_v16 = vld [vmem:[%s23985_s1 + $0x180] sm:$0xff]  }
 0x20b   : > { %16381 = vmatpush3.bf16.msra.mxu1 %v18155_v17  ;;  %16360 = vmatprep.subr.bf16.mxu0 %v18156_v18  ;;  %v18175_v17 = vld [vmem:[%s23985_s1 + $0x1e8] sm:$0xff]   ;;  %v3532_v18 = vadd.f32 %v16100_v19, %v3491_v27 }
 0x20c   : > { %16382 = vmatprep.subr.bf16.mxu1 %v18157_v11  ;;  %v18191_v19 = vld [vmem:[%s23985_s1 + $0x1c8] sm:$0xff]  }
 0x20d   : > { %v3573_v43 = vadd.f32 %v16122_v31, %v3532_v18  ;;  %v18198_v31 = vld [vmem:[%s23985_s1 + $0x78] sm:$0xff]  }
 0x20e   : > { %16361 = vmatpush3.bf16.msra.mxu0 %v18158_v20  ;;  %v18176_v20 = vld [vmem:[%s23985_s1 + $0x128] sm:$0xff]  }
 0x20f   : > { %16383 = vmatpush3.bf16.msra.mxu1 %v18159_v1  ;;  %16362 = vmatprep.subr.bf16.mxu0 %v18160_v4  ;;  %v5477_v1 = vsel %vm194_vm0, %v5474_v26, %v5476_v30  ;;  %v6294_v26 = vunpack.c.h.bf16 %v21032_v63 }
 0x210   : > { %16384 = vmatprep.subr.bf16.mxu1 %v18161_v5  ;;  %v18177_v5 = vld [vmem:[%s23985_s1 + $0x1a8] sm:$0xff]   ;;  %v5494_v34 = vpack.c.bf16 %v5477_v1, %v5475_v7  ;;  %v18204_v1 = vld [vmem:[%s23985_s1 + $0x30] sm:$0xff]  }
 0x211   : > { %v6313_v30 = vrot.slane %v6294_v26, 1 }
 0x212   : > { %16363 = vmatpush3.bf16.msra.mxu0 %v18162_v39  ;;  %v18179_v39 = vld [vmem:[%s23985_s1 + $0x1e0] sm:$0xff]  }
 0x213   : > { %16385 = vmatpush3.bf16.msra.mxu1 %v18163_v44  ;;  %16392 = vmatprep.subr.bf16.mxu0 %v18166_v52  ;;  %v18180_v52 = vld [vmem:[%s23985_s1 + $0x120] sm:$0xff]  }
 0x214   : > { %16414 = vmatprep.subr.bf16.mxu1 %v18167_v57  ;;  %v18181_v57 = vld [vmem:[%s23985_s1 + $0x1a0] sm:$0xff]  }
 0x215   : > { %v16139_v55 = vpop.f32.mrf.mxu0  ;;  %6105 = vmatmul.mubr.bf16.vlgmr.msra.gmra.mxu0 %v20777_v58  ;;  %v18174_v58 = vld [vmem:[%s23985_s1 + $0x168] sm:$0xff]  }
 0x216   : > { %v3651_v29 = vpop.f32.mrf.mxu1  ;;  %6146 = vmatmul.mubr.bf16.vlgmr.msra.gmra.mxu1 %v5489_v15  ;;  %16393 = vmatpush3.bf16.msra.mxu0 %v18168_v40  ;;  %v18184_v40 = vld [vmem:[%s23985_s1 + $0x118] sm:$0xff]   ;;  %v18189_v15 = vld [vmem:[%s23985_s1 + $0x190] sm:$0xff]  }
 0x217   : > { %16415 = vmatpush3.bf16.msra.mxu1 %v18169_v6  ;;  %v16140_v32 = vpop.f32.mrf.mxu0  ;;  %16394 = vmatprep.subr.bf16.mxu0 %v18170_v0 }
 0x218   : > { %v16141_v11 = vadd.f32 %v16140_v32, %v16139_v55  ;;  %v17396_v2 = vpop.f32.mrf.mxu1  ;;  %16416 = vmatprep.subr.bf16.mxu1 %v18171_v53  ;;  %6186 = vmatprep.mubr.bf16.mxu0 %v5492_v33  ;;  %v18190_v53 = vld [vmem:[%s23985_s1 + $0x148] sm:$0xff]   ;;  %v5457_v55 = vrot.slane %v5427_v47, 1  ;;  %v21035_v47 = vld [vmem:[%s19166_s7 + $0x5c] sm:$0x1]  ;;  %v18203_v33 = vld [vmem:[%s23985_s1 + $0x230] sm:$0xff]  }
 0x219   : > { %v16142_v4 = vpop.f32.mrf.mxu0  ;;  %6227 = vmatprep.mubr.bf16.mxu1 %v5494_v34  ;;  %v6295_v27 = vunpack.c.l.bf16 %v21035_v47  ;;  %v18202_v2 = vld [vmem:[%s23985_s1 + $0x70] sm:$0xff]   ;;  %v18207_v34 = vld [vmem:[%s23985_s1 + $0x28] sm:$0xff]  }
 0x21a   : > { %v3611_v35 = vadd.f32 %v16141_v11, %v3570_v28  ;;  %v3654_v36 = vpop.f32.mrf.mxu1  ;;  %16395 = vmatpush3.bf16.msra.mxu0 %v18172_v51  ;;  %v18192_v51 = vld [vmem:[%s23985_s1 + $0x108] sm:$0xff]   ;;  %v5458_v28 = vsel %vm194_vm0, %v5456_v21, %v5457_v55  ;;  %v18201_v11 = vld [vmem:[%s23985_s1 + $0x38] sm:$0xff]  }
 0x21b   : > { %16417 = vmatpush3.bf16.msra.mxu1 %v18173_v22  ;;  %v16143_v38 = vpop.f32.mrf.mxu0  ;;  %16396 = vmatprep.subr.bf16.mxu0 %v18174_v58  ;;  %v18193_v22 = vld [vmem:[%s23985_s1 + $0x188] sm:$0xff]   ;;  %v6312_v58 = vrot.slane %v6293_v25, 1  ;;  %v6315_v32 = vrot.slane %v6295_v27, 1 }
 0x21c   : > { %v16144_v44 = vadd.f32 %v16143_v38, %v16142_v4  ;;  %v17397_v48 = vpop.f32.mrf.mxu1  ;;  %16418 = vmatprep.subr.bf16.mxu1 %v18175_v17  ;;  %v3652_v46 = vadd.f32 %v3651_v29, %v3611_v35  ;;  %v5460_v29 = vsel %vm194_vm0, %v5457_v55, %v5459_v41  ;;  %v18205_v4 = vld [vmem:[%s23985_s1 + $0x68] sm:$0xff]   ;;  %v18208_v35 = vld [vmem:[%s23985_s1 + $0x60] sm:$0xff]   ;;  %v18211_v38 = vld [vmem:[%s23985_s1 + $0x58] sm:$0xff]  }
 0x21d   : > { %v5491_v17 = vpack.c.bf16 %v5460_v29, %v5458_v28  ;;  %v6314_v7 = vsel %vm194_vm0, %v6312_v58, %v6313_v30  ;;  %v6316_v18 = vsel %vm194_vm0, %v6313_v30, %v6315_v32  ;;  %v18215_v48 = vld [vmem:[%s23985_s1 + $0x210] sm:$0xff]   ;;  %v18232_v29 = vld [vmem:[%s23985_s1 + $0xe8] sm:$0xff]  }
 0x21e   : > { %v3614_v45 = vadd.f32 %v16144_v44, %v3573_v43  ;;  %16397 = vmatpush3.bf16.msra.mxu0 %v18176_v20  ;;  %v3658_v6 = vmax.f32 %v3652_v46, 0.0  ;;  %v6361_v20 = vpack.c.bf16 %v6316_v18, %v6314_v7  ;;  %v18213_v43 = vld [vmem:[%s23985_s1 + $0x18] sm:$0xff]   ;;  %v18214_v44 = vld [vmem:[%s23985_s1 + $0x50] sm:$0xff]   ;;  %v5480_v46 = vrot.slane %v5433_v50, 2  ;;  %v21139_v50 = vld [vmem:[%s19166_s7 + $0x60] sm:$0xff]  }
 0x21f   : > { %16419 = vmatpush3.bf16.msra.mxu1 %v18177_v5  ;;  %16398 = vmatprep.subr.bf16.mxu0 %v18178_v37  ;;  %v18206_v5 = vld [vmem:[%s23985_s1 + $0x228] sm:$0xff]   ;;  %v18210_v37 = vld [vmem:[%s23985_s1 + $0x20] sm:$0xff]   ;;  %v6300_v12 = vunpack.c.h.bf16 %v21139_v50  ;;  %v18228_v55 = vld [vmem:[%s23985_s1 + $0xf0] sm:$0xff]  }
 0x220   : > { %v3655_v60 = vadd.f32 %v3654_v36, %v3614_v45  ;;  %16420 = vmatprep.subr.bf16.mxu1 %v18179_v39  ;;  %v18209_v36 = vld [vmem:[%s23985_s1 + $0x220] sm:$0xff]   ;;  %v18212_v39 = vld [vmem:[%s23985_s1 + $0x218] sm:$0xff]   ;;  %v5481_v45 = vrot.slane %v5434_v56, 2  ;;  %v21142_v56 = vld [vmem:[%s19166_s7 + $0x68] sm:$0x1] }
 0x221   : > { %v18234_v32 = vld [vmem:[%s23985_s1 + $0xa8] sm:$0xff]  }
 0x222   : > { %v3659_v0 = vmax.f32 %v3655_v60, 0.0  ;;  %16399 = vmatpush3.bf16.msra.mxu0 %v18180_v52  ;;  %v18216_v52 = vld [vmem:[%s23985_s1 + $0x10] sm:$0xff]   ;;  %v18219_v60 = vld [vmem:[%s23985_s1 + $0x8] sm:$0xff]  }
 0x223   : > { %16421 = vmatpush3.bf16.msra.mxu1 %v18181_v57  ;;  %16400 = vmatprep.subr.bf16.mxu0 %v18182_v49  ;;  %v18217_v57 = vld [vmem:[%s23985_s1 + $0x48] sm:$0xff]  }
 0x224   : > { %v15689_v13 = vpack.c.bf16 %v3659_v0, %v3658_v6  ;;  %16422 = vmatprep.subr.bf16.mxu1 %v18183_v59  ;;  %v18218_v49 = vld [vmem:[%s23985_s1 + $0x208] sm:$0xff]   ;;  %v5483_v59 = vrot.slane %v5435_v54, 2  ;;  %v6301_v54 = vunpack.c.l.bf16 %v21142_v56  ;;  %v18222_v0 = vld [vmem:[%s23985_s1] sm:$0xff]  }
 0x226   : > { %15753 = vst [vmem:[%s20125_s20 + $0x18] sm:$0xff] %v15689_v13   ;;  %16401 = vmatpush3.bf16.msra.mxu0 %v18184_v40  ;;  %v6299_v40 = vunpack.c.l.bf16 %v21139_v50  ;;  %v5484_v6 = vsel %vm202_vm1, %v5481_v45, %v5483_v59  ;;  %v18249_v59 = vld [vmem:[%s23985_s1 + $0x148] sm:$0xff]   ;;  %v6332_v47 = vrot.slane %v6301_v54, 1 }
 0x227   : > { %16423 = vmatpush3.bf16.msra.mxu1 %v18185_v61  ;;  %16402 = vmatprep.subr.bf16.mxu0 %v18186_v62  ;;  %v18221_v61 = vld [vmem:[%s23985_s1 + $0x200] sm:$0xff]   ;;  %v5482_v62 = vsel %vm202_vm1, %v5480_v46, %v5481_v45  ;;  %v21246_v46 = vld [vmem:[%s19166_s7 + $0x74] sm:$0x1]  ;;  %v18248_v45 = vld [vmem:[%s23985_s1 + $0xc8] sm:$0xff]  }
 0x228   : > { %16424 = vmatprep.subr.bf16.mxu1 %v18187_v8  ;;  %v18223_v8 = vld [vmem:[%s23985_s1 + $0xf8] sm:$0xff]   ;;  %v6336_v13 = vrot.slane %v6299_v40, 2  ;;  %v5495_v21 = vpack.c.bf16 %v5484_v6, %v5482_v62 }
 0x22a   : > { %16403 = vmatpush3.bf16.msra.mxu0 %v18188_v14  ;;  %v6337_v14 = vrot.slane %v6300_v12, 2 }
 0x22b   : > { %16425 = vmatpush3.bf16.msra.mxu1 %v18189_v15  ;;  %16404 = vmatprep.subr.bf16.mxu0 %v18190_v53  ;;  %v18224_v15 = vld [vmem:[%s23985_s1 + $0x178] sm:$0xff]  }
 0x22c   : > { %16426 = vmatprep.subr.bf16.mxu1 %v18191_v19  ;;  %v18226_v53 = vld [vmem:[%s23985_s1 + $0xb8] sm:$0xff]   ;;  %v6339_v19 = vrot.slane %v6301_v54, 2 }
 0x22e   : > { %16405 = vmatpush3.bf16.msra.mxu0 %v18192_v51  ;;  %v18227_v51 = vld [vmem:[%s23985_s1 + $0x138] sm:$0xff]  }
 0x22f   : > { %16427 = vmatpush3.bf16.msra.mxu1 %v18193_v22  ;;  %16406 = vmatprep.subr.bf16.mxu0 %v18194_v23  ;;  %v6338_v22 = vsel %vm202_vm1, %v6336_v13, %v6337_v14  ;;  %v6340_v23 = vsel %vm202_vm1, %v6337_v14, %v6339_v19  ;;  %v18252_v13 = vld [vmem:[%s23985_s1 + $0xc0] sm:$0xff]   ;;  %v6322_v14 = vrot.slane %v6295_v27, 2  ;;  %v6330_v19 = vrot.slane %v6300_v12, 1 }
 0x230   : > { %16428 = vmatprep.subr.bf16.mxu1 %v18195_v24  ;;  %v18229_v24 = vld [vmem:[%s23985_s1 + $0x170] sm:$0xff]   ;;  %v6365_v28 = vpack.c.bf16 %v6340_v23, %v6338_v22  ;;  %v21284_v27 = vld [vmem:[%s23986_s2] ss:$0 sm:$0xff] }
 0x232   : > { %16407 = vmatpush3.bf16.msra.mxu0 %v18196_v10  ;;  %v18230_v10 = vld [vmem:[%s23985_s1 + $0xb0] sm:$0xff]  }
 0x233   : > { %16429 = vmatpush3.bf16.msra.mxu1 %v18197_v16  ;;  %17438 = vmatprep.subr.bf16.mxu0 %v18998_v42  ;;  %v18231_v16 = vld [vmem:[%s23985_s1 + $0x130] sm:$0xff]  }
 0x234   : > { %16445 = vmatprep.subr.bf16.mxu1 %v18198_v31  ;;  %v18233_v31 = vld [vmem:[%s23985_s1 + $0x168] sm:$0xff]  }
 0x235   : > { %6187 = vmatmul.mubr.bf16.vlgmr.msra.gmra.mxu0 %v5491_v17  ;;  %v16170_v41 = vpop.f32.mrf.mxu0  ;;  %v18235_v17 = vld [vmem:[%s23985_s1 + $0x128] sm:$0xff]  }
 0x236   : > { %6228 = vmatmul.mubr.bf16.vlgmr.msra.gmra.mxu1 %v20926_v9  ;;  %17439 = vmatpush3.bf16.msra.mxu0 %v18200_v3  ;;  %v18220_v9 = vld [vmem:[%s23985_s1 + $0x40] sm:$0xff]   ;;  %v21192_v58 = vpop.f32.mrf.mxu1 }
 0x237   : > { %16446 = vmatpush3.bf16.msra.mxu1 %v18201_v11  ;;  %17440 = vmatprep.subr.bf16.mxu0 %v18998_v42  ;;  %v16171_v30 = vpop.f32.mrf.mxu0  ;;  %v18236_v3 = vld [vmem:[%s23985_s1 + $0xe0] sm:$0xff]  }
 0x238   : > { %16447 = vmatprep.subr.bf16.mxu1 %v18202_v2  ;;  %17454 = vmatprep.mubr.msk.bf16.mxu0 %vm18999_vm2, %v18998_v42  ;;  %v16193_v7 = vpop.f32.mrf.mxu1  ;;  %v18237_v11 = vld [vmem:[%s23985_s1 + $0x160] sm:$0xff]  }
 0x239   : > { %6977 = vmatprep.mubr.bf16.mxu1 %v6361_v20  ;;  %v16173_v18 = vpop.f32.mrf.mxu0  ;;  %v18238_v2 = vld [vmem:[%s23985_s1 + $0xa0] sm:$0xff]  }
 0x23a   : > { %17441 = vmatpush3.bf16.msra.mxu0 %v18203_v33  ;;  %v18239_v20 = vld [vmem:[%s23985_s1 + $0x120] sm:$0xff]   ;;  %v18240_v33 = vld [vmem:[%s23985_s1 + $0xd8] sm:$0xff]  }
 0x23b   : > { %16448 = vmatpush3.bf16.msra.mxu1 %v18204_v1  ;;  %17442 = vmatprep.subr.bf16.mxu0 %v18998_v42  ;;  %v16195_v1 = vpop.f32.mrf.mxu1 }
 0x23c   : > { %16449 = vmatprep.subr.bf16.mxu1 %v18205_v4  ;;  %v16174_v4 = vpop.f32.mrf.mxu0 }
 0x23e   : > { %17443 = vmatpush3.bf16.msra.mxu0 %v18206_v5  ;;  %v18241_v5 = vld [vmem:[%s23985_s1 + $0x158] sm:$0xff]  }
 0x23f   : > { %16450 = vmatpush3.bf16.msra.mxu1 %v18207_v34  ;;  %17444 = vmatprep.subr.bf16.mxu0 %v18998_v42  ;;  %v18242_v34 = vld [vmem:[%s23985_s1 + $0x98] sm:$0xff]  }
 0x240   : > { %16451 = vmatprep.subr.bf16.mxu1 %v18208_v35 }
 0x242   : > { %17445 = vmatpush3.bf16.msra.mxu0 %v18209_v36  ;;  %v18243_v36 = vld [vmem:[%s23985_s1 + $0x118] sm:$0xff]  }
 0x243   : > { %16452 = vmatpush3.bf16.msra.mxu1 %v18210_v37  ;;  %17446 = vmatprep.subr.bf16.mxu0 %v18998_v42  ;;  %v18244_v37 = vld [vmem:[%s23985_s1 + $0xd0] sm:$0xff]  }
 0x244   : > { %16453 = vmatprep.subr.bf16.mxu1 %v18211_v38  ;;  %v16196_v38 = vpop.f32.mrf.mxu1 }
 0x246   : > { %17447 = vmatpush3.bf16.msra.mxu0 %v18212_v39  ;;  %v18245_v39 = vld [vmem:[%s23985_s1 + $0x150] sm:$0xff]  }
 0x247   : > { %16454 = vmatpush3.bf16.msra.mxu1 %v18213_v43  ;;  %17448 = vmatprep.subr.bf16.mxu0 %v18998_v42  ;;  %v18246_v43 = vld [vmem:[%s23985_s1 + $0x90] sm:$0xff]  }
 0x248   : > { %16455 = vmatprep.subr.bf16.mxu1 %v18214_v44 }
 0x24a   : > { %17449 = vmatpush3.bf16.msra.mxu0 %v18215_v48 }
 0x24b   : > { %16456 = vmatpush3.bf16.msra.mxu1 %v18216_v52  ;;  %17450 = vmatprep.subr.bf16.mxu0 %v18998_v42  ;;  %v18247_v52 = vld [vmem:[%s23985_s1 + $0x110] sm:$0xff]  }
 0x24c   : > { %16457 = vmatprep.subr.bf16.mxu1 %v18217_v57  ;;  %v21243_v57 = vld [vmem:[%s19166_s7 + $0x6c] sm:$0xff]  }
 0x24d   : > { %v6306_v62 = vunpack.c.l.bf16 %v21243_v57 }
 0x24e   : > { %17451 = vmatpush3.bf16.msra.mxu0 %v18218_v49  ;;  %v16172_v49 = vadd.f32 %v16171_v30, %v16170_v41  ;;  %v16197_v41 = vadd.f32 %v16196_v38, %v16195_v1  ;;  %v18259_v1 = vld [vmem:[%s23985_s1 + $0x238] sm:$0xff]  }
 0x24f   : > { %16458 = vmatpush3.bf16.msra.mxu1 %v18219_v60  ;;  %17452 = vmatprep.subr.bf16.mxu0 %v18998_v42  ;;  %v18250_v60 = vld [vmem:[%s23985_s1 + $0x88] sm:$0xff]  }
 0x250   : > { %16459 = vmatprep.subr.bf16.mxu1 %v18220_v9  ;;  %v6319_v9 = vrot.slane %v6293_v25, 2  ;;  %v6307_v25 = vunpack.c.h.bf16 %v21243_v57 }
 0x252   : > { %17453 = vmatpush3.bf16.msra.mxu0 %v18221_v61  ;;  %v6320_v61 = vrot.slane %v6294_v26, 2  ;;  %v16175_v26 = vadd.f32 %v16174_v4, %v16173_v18  ;;  %v18260_v4 = vld [vmem:[%s23985_s1 + $0x1f0] sm:$0xff]  }
 0x253   : > { %16460 = vmatpush3.bf16.msra.mxu1 %v18222_v0  ;;  %16467 = vmatprep.subr.bf16.mxu0 %v18223_v8  ;;  %v18251_v8 = vld [vmem:[%s23985_s1 + $0x108] sm:$0xff]  }
 0x254   : > { %16489 = vmatprep.subr.bf16.mxu1 %v18224_v15  ;;  %v18253_v15 = vld [vmem:[%s23985_s1 + $0x140] sm:$0xff]   ;;  %v6321_v54 = vsel %vm202_vm1, %v6319_v9, %v6320_v61  ;;  %v4364_v23 = vadd.f32 %v21284_v27, %v16175_v26  ;;  %v18269_v26 = vld [vmem:[%s23985_s1 + $0x1d8] sm:$0xff]  }
 0x255   : > { %17455 = vmatmul.mubr.bf16.vlgmr.msra.gmra.mxu0 %v5495_v21  ;;  %v16214_v35 = vpop.f32.mrf.mxu0  ;;  %v4361_v21 = vadd.f32 %v21284_v27, %v16172_v49  ;;  %v18264_v49 = vld [vmem:[%s23985_s1 + $0x1a8] sm:$0xff]  }
 0x256   : > { %6978 = vmatmul.mubr.bf16.vlgmr.msra.gmra.mxu1 %v21032_v63  ;;  %16468 = vmatpush3.bf16.msra.mxu0 %v18226_v53  ;;  %v21237_v44 = vpop.f32.mrf.mxu1  ;;  %v6308_v63 = vunpack.c.l.bf16 %v21246_v46  ;;  %v6329_v53 = vrot.slane %v6299_v40, 1  ;;  %v18254_v40 = vld [vmem:[%s23985_s1 + $0x80] sm:$0xff]  }
 0x257   : > { %16490 = vmatpush3.bf16.msra.mxu1 %v18227_v51  ;;  %16469 = vmatprep.subr.bf16.mxu0 %v18228_v55  ;;  %v16215_v48 = vpop.f32.mrf.mxu0  ;;  %v16194_v51 = vadd.f32 %v16193_v7, %v21192_v58  ;;  %v6347_v55 = vrot.slane %v6307_v25, 1  ;;  %v6333_v58 = vsel %vm194_vm0, %v6330_v19, %v6332_v47  ;;  %v18273_v47 = vld [vmem:[%s23985_s1 + $0x190] sm:$0xff]   ;;  %v18280_v46 = vld [vmem:[%s23985_s1 + $0x200] sm:$0xff]  }
 0x258   : > { %16491 = vmatprep.subr.bf16.mxu1 %v18229_v24  ;;  %7018 = vmatprep.mubr.bf16.mxu0 %v21139_v50  ;;  %v16237_v6 = vpop.f32.mrf.mxu1  ;;  %v6346_v50 = vrot.slane %v6306_v62, 1  ;;  %v6349_v22 = vrot.slane %v6308_v63, 1  ;;  %v16216_v24 = vadd.f32 %v16215_v48, %v16214_v35 }
 0x259   : > { %7059 = vmatprep.mubr.bf16.mxu1 %v6365_v28  ;;  %v16217_v0 = vpop.f32.mrf.mxu0  ;;  %v18257_v28 = vld [vmem:[%s23985_s1 + $0x1f8] sm:$0xff]   ;;  %v4402_v30 = vadd.f32 %v16194_v51, %v4361_v21  ;;  %v18274_v21 = vld [vmem:[%s23985_s1 + $0x210] sm:$0xff]   ;;  %v18275_v51 = vld [vmem:[%s23985_s1 + $0x1c8] sm:$0xff]  }
 0x25a   : > { %16470 = vmatpush3.bf16.msra.mxu0 %v18230_v10  ;;  %v16239_v12 = vpop.f32.mrf.mxu1  ;;  %v18255_v10 = vld [vmem:[%s23985_s1 + $0x100] sm:$0xff]   ;;  %v6348_v7 = vsel %vm194_vm0, %v6346_v50, %v6347_v55  ;;  %v6350_v18 = vsel %vm194_vm0, %v6347_v55, %v6349_v22  ;;  %v21377_v50 = vld [vmem:[%s19166_s7 + $0x68] sm:$0x1] }
 0x25b   : > { %16492 = vmatpush3.bf16.msra.mxu1 %v18231_v16  ;;  %16471 = vmatprep.subr.bf16.mxu0 %v18232_v29  ;;  %v16218_v56 = vpop.f32.mrf.mxu0  ;;  %v6323_v16 = vsel %vm202_vm1, %v6320_v61, %v6322_v14  ;;  %v6331_v29 = vsel %vm194_vm0, %v6329_v53, %v6330_v19  ;;  %v6367_v35 = vpack.c.bf16 %v6350_v18, %v6348_v7  ;;  %v18266_v61 = vld [vmem:[%s23985_s1 + $0x1e0] sm:$0xff]   ;;  %v18271_v53 = vld [vmem:[%s23985_s1 + $0x218] sm:$0xff]   ;;  %v18272_v19 = vld [vmem:[%s23985_s1 + $0x1d0] sm:$0xff]  }
 0x25c   : > { %16493 = vmatprep.subr.bf16.mxu1 %v18233_v31  ;;  %v16219_v31 = vadd.f32 %v16218_v56, %v16217_v0  ;;  %v18268_v14 = vld [vmem:[%s23985_s1 + $0x220] sm:$0xff]   ;;  %v18276_v55 = vld [vmem:[%s23985_s1 + $0x188] sm:$0xff]  }
 0x25d   : > { %v18277_v22 = vld [vmem:[%s23985_s1 + $0x208] sm:$0xff]  }
 0x25e   : > { %16472 = vmatpush3.bf16.msra.mxu0 %v18234_v32  ;;  %v16240_v32 = vpop.f32.mrf.mxu1 }
 0x25f   : > { %16494 = vmatpush3.bf16.msra.mxu1 %v18235_v17  ;;  %16473 = vmatprep.subr.bf16.mxu0 %v18236_v3  ;;  %v6362_v17 = vpack.c.bf16 %v6323_v16, %v6321_v54  ;;  %v18258_v3 = vld [vmem:[%s23985_s1 + $0x1b8] sm:$0xff]   ;;  %v7168_v54 = vunpack.c.l.bf16 %v21377_v50  ;;  %v18279_v16 = vld [vmem:[%s23985_s1 + $0x180] sm:$0xff]  }
 0x260   : > { %16495 = vmatprep.subr.bf16.mxu1 %v18237_v11  ;;  %v4405_v11 = vadd.f32 %v16197_v41, %v4364_v23  ;;  %v18278_v23 = vld [vmem:[%s23985_s1 + $0x1c0] sm:$0xff]   ;;  %v6353_v41 = vrot.slane %v6306_v62, 2 }
 0x261   : > { %v7188_v62 = vrot.slane %v7168_v54, 1 }
 0x262   : > { %16474 = vmatpush3.bf16.msra.mxu0 %v18238_v2  ;;  %v4443_v2 = vadd.f32 %v16216_v24, %v4402_v30  ;;  %v6354_v24 = vrot.slane %v6307_v25, 2  ;;  %v18282_v25 = vld [vmem:[%s23985_s1 + $0x78] sm:$0xff]  }
 0x263   : > { %16496 = vmatpush3.bf16.msra.mxu1 %v18239_v20  ;;  %16475 = vmatprep.subr.bf16.mxu0 %v18240_v33  ;;  %v16238_v20 = vadd.f32 %v16237_v6, %v21237_v44  ;;  %v6364_v33 = vpack.c.bf16 %v6333_v58, %v6331_v29  ;;  %v18263_v44 = vld [vmem:[%s23985_s1 + $0x1e8] sm:$0xff]  }
 0x264   : > { %16497 = vmatprep.subr.bf16.mxu1 %v18241_v5  ;;  %v4446_v5 = vadd.f32 %v16219_v31, %v4405_v11  ;;  %v6355_v58 = vsel %vm202_vm1, %v6353_v41, %v6354_v24  ;;  %v18284_v31 = vld [vmem:[%s23985_s1 + $0x38] sm:$0xff]   ;;  %v21432_v11 = vld [vmem:[%s19166_s7 + $0x6c] sm:$0xff]   ;;  %v21524_v41 = vld [vmem:[%s19166_s7 + $0x80] sm:$0x1] }
 0x265   : > { %v4484_v38 = vadd.f32 %v16238_v20, %v4443_v2  ;;  %v18287_v2 = vld [vmem:[%s23985_s1 + $0xf0] sm:$0xff]  }
 0x266   : > { %16476 = vmatpush3.bf16.msra.mxu0 %v18242_v34  ;;  %v16241_v34 = vadd.f32 %v16240_v32, %v16239_v12  ;;  %v18285_v32 = vld [vmem:[%s23985_s1 + $0xb8] sm:$0xff]   ;;  %v18288_v20 = vld [vmem:[%s23985_s1 + $0x30] sm:$0xff]  }
 0x267   : > { %16498 = vmatpush3.bf16.msra.mxu1 %v18243_v36  ;;  %16477 = vmatprep.subr.bf16.mxu0 %v18244_v37  ;;  %v18261_v37 = vld [vmem:[%s23985_s1 + $0x1b0] sm:$0xff]  }
 0x268   : > { %16499 = vmatprep.subr.bf16.mxu1 %v18245_v39  ;;  %v18262_v39 = vld [vmem:[%s23985_s1 + $0x230] sm:$0xff]  }
 0x26a   : > { %16478 = vmatpush3.bf16.msra.mxu0 %v18246_v43 }
 0x26b   : > { %16500 = vmatpush3.bf16.msra.mxu1 %v18247_v52  ;;  %16479 = vmatprep.subr.bf16.mxu0 %v18248_v45  ;;  %v4487_v52 = vadd.f32 %v16241_v34, %v4446_v5  ;;  %v18291_v5 = vld [vmem:[%s23985_s1 + $0xe8] sm:$0xff]  }
 0x26c   : > { %16501 = vmatprep.subr.bf16.mxu1 %v18249_v59  ;;  %v18293_v34 = vld [vmem:[%s23985_s1 + $0xa8] sm:$0xff]  }
 0x26e   : > { %16480 = vmatpush3.bf16.msra.mxu0 %v18250_v60  ;;  %v18265_v60 = vld [vmem:[%s23985_s1 + $0x228] sm:$0xff]  }
 0x26f   : > { %16502 = vmatpush3.bf16.msra.mxu1 %v18251_v8  ;;  %16481 = vmatprep.subr.bf16.mxu0 %v18252_v13  ;;  %v18267_v8 = vld [vmem:[%s23985_s1 + $0x1a0] sm:$0xff]  }
 0x270   : > { %16503 = vmatprep.subr.bf16.mxu1 %v18253_v15  ;;  %v18270_v15 = vld [vmem:[%s23985_s1 + $0x198] sm:$0xff]  }
 0x272   : > { %16482 = vmatpush3.bf16.msra.mxu0 %v18254_v40  ;;  %v21374_v40 = vld [vmem:[%s19166_s7 + $0x60] sm:$0xff]  }
 0x273   : > { %16504 = vmatpush3.bf16.msra.mxu1 %v18255_v10  ;;  %16511 = vmatprep.subr.bf16.mxu0 %v18257_v28  ;;  %v7166_v12 = vunpack.c.l.bf16 %v21374_v40  ;;  %v7167_v56 = vunpack.c.h.bf16 %v21374_v40  ;;  %v6356_v10 = vrot.slane %v6308_v63, 2  ;;  %v18283_v63 = vld [vmem:[%s23985_s1 + $0xf8] sm:$0xff]  }
 0x274   : > { %17458 = vmatprep.subr.bf16.mxu1 %v18998_v42 }
 0x275   : > { %v4524_v36 = vpop.f32.mrf.mxu0  ;;  %7019 = vmatmul.mubr.bf16.vlgmr.msra.gmra.mxu0 %v6362_v17  ;;  %v7185_v28 = vrot.slane %v7166_v12, 1  ;;  %v7186_v29 = vrot.slane %v7167_v56, 1  ;;  %v6357_v30 = vsel %vm202_vm1, %v6354_v24, %v6356_v10  ;;  %v18286_v17 = vld [vmem:[%s23985_s1 + $0x70] sm:$0xff]  }
 0x276   : > { %7060 = vmatmul.mubr.bf16.vlgmr.msra.gmra.mxu1 %v6364_v33  ;;  %16512 = vmatpush3.bf16.msra.mxu0 %v18258_v3  ;;  %v4525_v48 = vadd.f32 %v4524_v36, %v4484_v38  ;;  %v6368_v18 = vpack.c.bf16 %v6357_v30, %v6355_v58  ;;  %v18294_v36 = vld [vmem:[%s23985_s1 + $0x60] sm:$0xff]  }
 0x277   : > { %17459 = vmatpush3.bf16.msra.mxu1 %v18259_v1  ;;  %v17416_v43 = vpop.f32.mrf.mxu0  ;;  %16513 = vmatprep.subr.bf16.mxu0 %v18260_v4  ;;  %v7187_v3 = vsel %vm194_vm0, %v7185_v28, %v7186_v29  ;;  %v7189_v7 = vsel %vm194_vm0, %v7186_v29, %v7188_v62  ;;  %v18289_v1 = vld [vmem:[%s23985_s1 + $0xb0] sm:$0xff]   ;;  %v18290_v4 = vld [vmem:[%s23985_s1 + $0x68] sm:$0xff]   ;;  %v18296_v38 = vld [vmem:[%s23985_s1 + $0x20] sm:$0xff]   ;;  %v7181_v28 = vunpack.c.l.bf16 %v21524_v41 }
 0x278   : > { %17460 = vmatprep.subr.bf16.mxu1 %v18998_v42  ;;  %7100 = vmatprep.mubr.bf16.mxu0 %v6367_v35  ;;  %v4531_v6 = vmax.f32 %v4525_v48, 0.0  ;;  %v7234_v33 = vpack.c.bf16 %v7189_v7, %v7187_v3  ;;  %v21457_v35 = vpop.f32.mrf.mxu1  ;;  %v18299_v48 = vld [vmem:[%s23985_s1 + $0xd8] sm:$0xff]   ;;  %v18311_v62 = vld [vmem:[%s23985_s1 + $0xc0] sm:$0xff]  }
 0x279   : > { %v4527_v45 = vpop.f32.mrf.mxu0  ;;  %17474 = vmatprep.mubr.msk.bf16.mxu1 %vm18999_vm2, %v18998_v42  ;;  %v18313_v30 = vld [vmem:[%s23985_s1 + $0x80] sm:$0xff]   ;;  %v18316_v3 = vld [vmem:[%s23985_s1 + $0x178] sm:$0xff]  }
 0x27a   : > { %v4528_v59 = vadd.f32 %v4527_v45, %v4487_v52  ;;  %16514 = vmatpush3.bf16.msra.mxu0 %v18261_v37  ;;  %v18295_v37 = vld [vmem:[%s23985_s1 + $0xe0] sm:$0xff]   ;;  %v16268_v43 = vpop.f32.mrf.mxu1  ;;  %v18300_v52 = vld [vmem:[%s23985_s1 + $0x18] sm:$0xff]  }
 0x27b   : > { %17461 = vmatpush3.bf16.msra.mxu1 %v18262_v39  ;;  %v17417_v9 = vpop.f32.mrf.mxu0  ;;  %16515 = vmatprep.subr.bf16.mxu0 %v18263_v44  ;;  %v18297_v39 = vld [vmem:[%s23985_s1 + $0xa0] sm:$0xff]   ;;  %v18298_v44 = vld [vmem:[%s23985_s1 + $0x58] sm:$0xff]  }
 0x27c   : > { %v4532_v0 = vmax.f32 %v4528_v59, 0.0  ;;  %17462 = vmatprep.subr.bf16.mxu1 %v18998_v42  ;;  %v18301_v45 = vld [vmem:[%s23985_s1 + $0x98] sm:$0xff]   ;;  %v18302_v59 = vld [vmem:[%s23985_s1 + $0x50] sm:$0xff]   ;;  %v18372_v41 = vld [vmem:[%s23985_s1] sm:$0xff]  }
 0x27d   : > { %v18304_v9 = vld [vmem:[%s23985_s1 + $0x10] sm:$0xff]  }
 0x27e   : > { %v15694_v13 = vpack.c.bf16 %v4532_v0, %v4531_v6  ;;  %16516 = vmatpush3.bf16.msra.mxu0 %v18264_v49  ;;  %v21483_v49 = vpop.f32.mrf.mxu1  ;;  %v18305_v6 = vld [vmem:[%s23985_s1 + $0x90] sm:$0xff]  }
 0x27f   : > { %17463 = vmatpush3.bf16.msra.mxu1 %v18265_v60  ;;  %16517 = vmatprep.subr.bf16.mxu0 %v18266_v61  ;;  %v18303_v60 = vld [vmem:[%s23985_s1 + $0xd0] sm:$0xff]  }
 0x280   : > { %15754 = vst [vmem:[%s20125_s20 + $0x20] sm:$0xff] %v15694_v13   ;;  %17464 = vmatprep.subr.bf16.mxu1 %v18998_v42  ;;  %v16271_v0 = vpop.f32.mrf.mxu1  ;;  %v18307_v13 = vld [vmem:[%s23985_s1 + $0xc8] sm:$0xff]  }
 0x282   : > { %16518 = vmatpush3.bf16.msra.mxu0 %v18267_v8  ;;  %v18306_v8 = vld [vmem:[%s23985_s1 + $0x48] sm:$0xff]  }
 0x283   : > { %17465 = vmatpush3.bf16.msra.mxu1 %v18268_v14  ;;  %16519 = vmatprep.subr.bf16.mxu0 %v18269_v26  ;;  %v18308_v26 = vld [vmem:[%s23985_s1 + $0x8] sm:$0xff]  }
 0x284   : > { %17466 = vmatprep.subr.bf16.mxu1 %v18998_v42 }
 0x286   : > { %16520 = vmatpush3.bf16.msra.mxu0 %v18270_v15  ;;  %v7172_v15 = vunpack.c.l.bf16 %v21432_v11 }
 0x287   : > { %17467 = vmatpush3.bf16.msra.mxu1 %v18271_v53  ;;  %16521 = vmatprep.subr.bf16.mxu0 %v18272_v19  ;;  %v7173_v53 = vunpack.c.h.bf16 %v21432_v11 }
 0x288   : > { %17468 = vmatprep.subr.bf16.mxu1 %v18998_v42 }
 0x28a   : > { %16522 = vmatpush3.bf16.msra.mxu0 %v18273_v47  ;;  %v18309_v47 = vld [vmem:[%s23985_s1 + $0x88] sm:$0xff]  }
 0x28b   : > { %17469 = vmatpush3.bf16.msra.mxu1 %v18274_v21  ;;  %16523 = vmatprep.subr.bf16.mxu0 %v18275_v51  ;;  %v18310_v21 = vld [vmem:[%s23985_s1 + $0x40] sm:$0xff]   ;;  %v7192_v51 = vrot.slane %v7166_v12, 2  ;;  %v7195_v12 = vrot.slane %v7168_v54, 2 }
 0x28c   : > { %17470 = vmatprep.subr.bf16.mxu1 %v18998_v42 }
 0x28e   : > { %16524 = vmatpush3.bf16.msra.mxu0 %v18276_v55  ;;  %v21517_v55 = vld [vmem:[%s19166_s7 + $0x74] sm:$0x1] }
 0x28f   : > { %17471 = vmatpush3.bf16.msra.mxu1 %v18277_v22  ;;  %16525 = vmatprep.subr.bf16.mxu0 %v18278_v23  ;;  %v21520_v22 = vld [vmem:[%s19166_s7 + $0x78] sm:$0xff]   ;;  %v7174_v23 = vunpack.c.l.bf16 %v21517_v55  ;;  %v18346_v55 = vld [vmem:[%s23985_s1 + $0x100] sm:$0xff]  }
 0x290   : > { %17472 = vmatprep.subr.bf16.mxu1 %v18998_v42  ;;  %v7179_v24 = vunpack.c.l.bf16 %v21520_v22  ;;  %v7180_v10 = vunpack.c.h.bf16 %v21520_v22 }
 0x291   : > { %v7212_v50 = vrot.slane %v7174_v23, 2 }
 0x292   : > { %16526 = vmatpush3.bf16.msra.mxu0 %v18279_v16  ;;  %v7193_v16 = vrot.slane %v7167_v56, 2  ;;  %v7210_v56 = vrot.slane %v7173_v53, 2  ;;  %v7219_v54 = vrot.slane %v7179_v24, 1 }
 0x293   : > { %17473 = vmatpush3.bf16.msra.mxu1 %v18280_v46  ;;  %16542 = vmatprep.subr.bf16.mxu0 %v18282_v25  ;;  %v18312_v46 = vld [vmem:[%s23985_s1] sm:$0xff]   ;;  %v7209_v25 = vrot.slane %v7172_v15, 2 }
 0x294   : > { %16564 = vmatprep.subr.bf16.mxu1 %v18283_v63  ;;  %v16269_v63 = vadd.f32 %v16268_v43, %v21457_v35  ;;  %v7194_v7 = vsel %vm202_vm1, %v7192_v51, %v7193_v16  ;;  %v18326_v51 = vld [vmem:[%s23985_s1 + $0x128] sm:$0xff]  }
 0x295   : > { %7101 = vmatmul.mubr.bf16.vlgmr.msra.gmra.mxu0 %v21243_v57  ;;  %v18292_v57 = vld [vmem:[%s23985_s1 + $0x28] sm:$0xff]   ;;  %v16289_v61 = vpop.f32.mrf.mxu0 }
 0x296   : > { %17475 = vmatmul.mubr.bf16.vlgmr.msra.gmra.mxu1 %v6368_v18  ;;  %16543 = vmatpush3.bf16.msra.mxu0 %v18284_v31  ;;  %v16311_v14 = vpop.f32.mrf.mxu1  ;;  %v7220_v31 = vrot.slane %v7180_v10, 1  ;;  %v7196_v18 = vsel %vm202_vm1, %v7193_v16, %v7195_v12 }
 0x297   : > { %16565 = vmatpush3.bf16.msra.mxu1 %v18285_v32  ;;  %16544 = vmatprep.subr.bf16.mxu0 %v18286_v17  ;;  %v16290_v19 = vpop.f32.mrf.mxu0  ;;  %v7222_v32 = vrot.slane %v7181_v28, 1  ;;  %v7235_v35 = vpack.c.bf16 %v7196_v18, %v7194_v7  ;;  %v18334_v7 = vld [vmem:[%s23985_s1 + $0x118] sm:$0xff]  }
 0x298   : > { %16566 = vmatprep.subr.bf16.mxu1 %v18287_v2  ;;  %7850 = vmatprep.mubr.bf16.mxu0 %v7234_v33  ;;  %v16312_v29 = vpop.f32.mrf.mxu1  ;;  %v16291_v17 = vadd.f32 %v16290_v19, %v16289_v61  ;;  %v5234_v33 = vadd.f32 %v21284_v27, %v16269_v63  ;;  %v18330_v63 = vld [vmem:[%s23985_s1 + $0x120] sm:$0xff]  }
 0x299   : > { %7891 = vmatprep.mubr.bf16.mxu1 %v21432_v11  ;;  %v16292_v58 = vpop.f32.mrf.mxu0  ;;  %v16313_v43 = vadd.f32 %v16312_v29, %v16311_v14  ;;  %v18327_v29 = vld [vmem:[%s23985_s1 + $0x1a8] sm:$0xff]   ;;  %v18344_v11 = vld [vmem:[%s23985_s1 + $0x140] sm:$0xff]  }
 0x29a   : > { %16545 = vmatpush3.bf16.msra.mxu0 %v18288_v20  ;;  %v16314_v2 = vpop.f32.mrf.mxu1  ;;  %v18317_v20 = vld [vmem:[%s23985_s1 + $0x1f8] sm:$0xff]  }
 0x29b   : > { %16567 = vmatpush3.bf16.msra.mxu1 %v18289_v1  ;;  %16546 = vmatprep.subr.bf16.mxu0 %v18290_v4  ;;  %v16293_v1 = vpop.f32.mrf.mxu0  ;;  %v18318_v4 = vld [vmem:[%s23985_s1 + $0x138] sm:$0xff]  }
 0x29c   : > { %16568 = vmatprep.subr.bf16.mxu1 %v18291_v5  ;;  %v7211_v5 = vsel %vm202_vm1, %v7209_v25, %v7210_v56 }
 0x29e   : > { %16547 = vmatpush3.bf16.msra.mxu0 %v18292_v57  ;;  %v7213_v57 = vsel %vm202_vm1, %v7210_v56, %v7212_v50 }
 0x29f   : > { %16569 = vmatpush3.bf16.msra.mxu1 %v18293_v34  ;;  %16548 = vmatprep.subr.bf16.mxu0 %v18294_v36  ;;  %v16272_v34 = vadd.f32 %v16271_v0, %v21483_v49  ;;  %v18319_v36 = vld [vmem:[%s23985_s1 + $0x1b8] sm:$0xff]   ;;  %v7238_v49 = vpack.c.bf16 %v7213_v57, %v7211_v5  ;;  %v18323_v0 = vld [vmem:[%s23985_s1 + $0x1b0] sm:$0xff]  }
 0x2a0   : > { %16570 = vmatprep.subr.bf16.mxu1 %v18295_v37  ;;  %v7221_v37 = vsel %vm194_vm0, %v7219_v54, %v7220_v31  ;;  %v18329_v54 = vld [vmem:[%s23985_s1 + $0x1e0] sm:$0xff]   ;;  %v18338_v5 = vld [vmem:[%s23985_s1 + $0x110] sm:$0xff]  }
 0x2a1   : > { %v5237_v61 = vadd.f32 %v21284_v27, %v16272_v34  ;;  %v18325_v27 = vld [vmem:[%s23985_s1 + $0x1e8] sm:$0xff]   ;;  %v18339_v57 = vld [vmem:[%s23985_s1 + $0x190] sm:$0xff]  }
 0x2a2   : > { %16549 = vmatpush3.bf16.msra.mxu0 %v18296_v38  ;;  %v7223_v38 = vsel %vm194_vm0, %v7220_v31, %v7222_v32  ;;  %v18331_v31 = vld [vmem:[%s23985_s1 + $0x1a0] sm:$0xff]   ;;  %v18332_v32 = vld [vmem:[%s23985_s1 + $0x158] sm:$0xff]   ;;  %v18340_v34 = vld [vmem:[%s23985_s1 + $0x148] sm:$0xff]  }
 0x2a3   : > { %16571 = vmatpush3.bf16.msra.mxu1 %v18297_v39  ;;  %16550 = vmatprep.subr.bf16.mxu0 %v18298_v44  ;;  %v5275_v39 = vadd.f32 %v16291_v17, %v5234_v33  ;;  %v18320_v44 = vld [vmem:[%s23985_s1 + $0x170] sm:$0xff]  }
 0x2a4   : > { %16572 = vmatprep.subr.bf16.mxu1 %v18299_v48  ;;  %v16294_v48 = vadd.f32 %v16293_v1, %v16292_v58  ;;  %v18336_v33 = vld [vmem:[%s23985_s1 + $0x150] sm:$0xff]  }
 0x2a5   : > { %v18337_v1 = vld [vmem:[%s23985_s1 + $0x1d0] sm:$0xff]  }
 0x2a6   : > { %16551 = vmatpush3.bf16.msra.mxu0 %v18300_v52  ;;  %v16315_v52 = vpop.f32.mrf.mxu1  ;;  %v5278_v14 = vadd.f32 %v16294_v48, %v5237_v61  ;;  %v18343_v48 = vld [vmem:[%s23985_s1 + $0x188] sm:$0xff]   ;;  %v18347_v61 = vld [vmem:[%s23985_s1 + $0x180] sm:$0xff]  }
 0x2a7   : > { %16573 = vmatpush3.bf16.msra.mxu1 %v18301_v45  ;;  %16552 = vmatprep.subr.bf16.mxu0 %v18302_v59  ;;  %v18321_v45 = vld [vmem:[%s23985_s1 + $0x1f0] sm:$0xff]  }
 0x2a8   : > { %16574 = vmatprep.subr.bf16.mxu1 %v18303_v60  ;;  %v18322_v60 = vld [vmem:[%s23985_s1 + $0x130] sm:$0xff]  }
 0x2aa   : > { %16553 = vmatpush3.bf16.msra.mxu0 %v18304_v9  ;;  %v7240_v9 = vpack.c.bf16 %v7223_v38, %v7221_v37  ;;  %v7202_v37 = vrot.slane %v7172_v15, 1  ;;  %v18341_v38 = vld [vmem:[%s23985_s1 + $0x1c8] sm:$0xff]   ;;  %v7205_v15 = vrot.slane %v7174_v23, 1 }
 0x2ab   : > { %16575 = vmatpush3.bf16.msra.mxu1 %v18305_v6  ;;  %16554 = vmatprep.subr.bf16.mxu0 %v18306_v8  ;;  %v5316_v8 = vadd.f32 %v16313_v43, %v5275_v39  ;;  %v7203_v39 = vrot.slane %v7173_v53, 1  ;;  %v18342_v43 = vld [vmem:[%s23985_s1 + $0x108] sm:$0xff]   ;;  %v18345_v53 = vld [vmem:[%s23985_s1 + $0x1c0] sm:$0xff]  }
 0x2ac   : > { %16576 = vmatprep.subr.bf16.mxu1 %v18307_v13 }
 0x2ae   : > { %16555 = vmatpush3.bf16.msra.mxu0 %v18308_v26  ;;  %v16316_v26 = vadd.f32 %v16315_v52, %v16314_v2 }
 0x2af   : > { %16577 = vmatpush3.bf16.msra.mxu1 %v18309_v47  ;;  %16556 = vmatprep.subr.bf16.mxu0 %v18310_v21 }
 0x2b0   : > { %16578 = vmatprep.subr.bf16.mxu1 %v18311_v62  ;;  %v5319_v25 = vadd.f32 %v16316_v26, %v5278_v14  ;;  %v18351_v14 = vld [vmem:[%s23985_s1 + $0x38] sm:$0xff]   ;;  %v18352_v26 = vld [vmem:[%s23985_s1 + $0x70] sm:$0xff]  }
 0x2b2   : > { %16557 = vmatpush3.bf16.msra.mxu0 %v18312_v46  ;;  %v18328_v46 = vld [vmem:[%s23985_s1 + $0x160] sm:$0xff]  }
 0x2b3   : > { %16579 = vmatpush3.bf16.msra.mxu1 %v18313_v30  ;;  %16586 = vmatprep.subr.bf16.mxu0 %v18316_v3  ;;  %v18333_v3 = vld [vmem:[%s23985_s1 + $0x1d8] sm:$0xff]  }
 0x2b4   : > { %16608 = vmatprep.subr.bf16.mxu1 %v18317_v20  ;;  %v18335_v20 = vld [vmem:[%s23985_s1 + $0x198] sm:$0xff]  }
 0x2b5   : > { %v16333_v59 = vpop.f32.mrf.mxu0  ;;  %7851 = vmatmul.mubr.bf16.vlgmr.msra.gmra.mxu0 %v21374_v40  ;;  %v18324_v40 = vld [vmem:[%s23985_s1 + $0x168] sm:$0xff]  }
 0x2b6   : > { %v5397_v6 = vpop.f32.mrf.mxu1  ;;  %7892 = vmatmul.mubr.bf16.vlgmr.msra.gmra.mxu1 %v7235_v35  ;;  %16587 = vmatpush3.bf16.msra.mxu0 %v18318_v4  ;;  %v21641_v35 = vld [vmem:[%s19166_s7 + $0x6c] sm:$0xff]  }
 0x2b7   : > { %16609 = vmatpush3.bf16.msra.mxu1 %v18319_v36  ;;  %v16334_v13 = vpop.f32.mrf.mxu0  ;;  %16588 = vmatprep.subr.bf16.mxu0 %v18320_v44  ;;  %v21645_v36 = vld [vmem:[%s19166_s7 + $0x74] sm:$0x1]  ;;  %v8039_v44 = vunpack.c.l.bf16 %v21641_v35  ;;  %v8040_v52 = vunpack.c.h.bf16 %v21641_v35 }
 0x2b8   : > { %v16335_v19 = vadd.f32 %v16334_v13, %v16333_v59  ;;  %v17436_v47 = vpop.f32.mrf.mxu1  ;;  %16610 = vmatprep.subr.bf16.mxu1 %v18321_v45  ;;  %7932 = vmatprep.mubr.bf16.mxu0 %v7238_v49  ;;  %v8041_v45 = vunpack.c.l.bf16 %v21645_v36  ;;  %v7204_v49 = vsel %vm194_vm0, %v7202_v37, %v7203_v39  ;;  %v7206_v59 = vsel %vm194_vm0, %v7203_v39, %v7205_v15  ;;  %v18377_v39 = vld [vmem:[%s23985_s1 + $0x138] sm:$0xff]  }
 0x2b9   : > { %v16336_v21 = vpop.f32.mrf.mxu0  ;;  %7973 = vmatprep.mubr.bf16.mxu1 %v7240_v9  ;;  %v8058_v23 = vrot.slane %v8039_v44, 1  ;;  %v18353_v47 = vld [vmem:[%s23985_s1 + $0x230] sm:$0xff]  }
 0x2ba   : > { %v5357_v16 = vadd.f32 %v16335_v19, %v5316_v8  ;;  %v5400_v12 = vpop.f32.mrf.mxu1  ;;  %16589 = vmatpush3.bf16.msra.mxu0 %v18322_v60  ;;  %v8059_v60 = vrot.slane %v8040_v52, 1  ;;  %v8061_v9 = vrot.slane %v8041_v45, 1  ;;  %v18350_v8 = vld [vmem:[%s23985_s1 + $0x238] sm:$0xff]  }
 0x2bb   : > { %16611 = vmatpush3.bf16.msra.mxu1 %v18323_v0  ;;  %v16337_v62 = vpop.f32.mrf.mxu0  ;;  %16590 = vmatprep.subr.bf16.mxu0 %v18324_v40  ;;  %v7237_v0 = vpack.c.bf16 %v7206_v59, %v7204_v49  ;;  %v18381_v49 = vld [vmem:[%s23985_s1 + $0x130] sm:$0xff]  }
 0x2bc   : > { %v16338_v56 = vadd.f32 %v16337_v62, %v16336_v21  ;;  %v17437_v50 = vpop.f32.mrf.mxu1  ;;  %16612 = vmatprep.subr.bf16.mxu1 %v18325_v27  ;;  %v5398_v58 = vadd.f32 %v5397_v6, %v5357_v16  ;;  %v18348_v6 = vld [vmem:[%s23985_s1 + $0x78] sm:$0xff]   ;;  %v8060_v13 = vsel %vm194_vm0, %v8058_v23, %v8059_v60  ;;  %v8062_v40 = vsel %vm194_vm0, %v8059_v60, %v8061_v9  ;;  %v18354_v27 = vld [vmem:[%s23985_s1 + $0x30] sm:$0xff]   ;;  %v18355_v21 = vld [vmem:[%s23985_s1 + $0x68] sm:$0xff]  }
 0x2bd   : > { %v8107_v19 = vpack.c.bf16 %v8062_v40, %v8060_v13  ;;  %v18357_v16 = vld [vmem:[%s23985_s1 + $0x28] sm:$0xff]   ;;  %v18360_v62 = vld [vmem:[%s23985_s1 + $0x20] sm:$0xff]   ;;  %v18364_v50 = vld [vmem:[%s23985_s1 + $0x50] sm:$0xff]  }
 0x2be   : > { %v5360_v30 = vadd.f32 %v16338_v56, %v5319_v25  ;;  %16591 = vmatpush3.bf16.msra.mxu0 %v18326_v51  ;;  %v5404_v18 = vmax.f32 %v5398_v58, 0.0  ;;  %v18356_v51 = vld [vmem:[%s23985_s1 + $0x228] sm:$0xff]   ;;  %v18362_v25 = vld [vmem:[%s23985_s1 + $0x218] sm:$0xff]   ;;  %v18386_v40 = vld [vmem:[%s23985_s1 + $0xe0] sm:$0xff]  }
 0x2bf   : > { %16613 = vmatpush3.bf16.msra.mxu1 %v18327_v29  ;;  %16592 = vmatprep.subr.bf16.mxu0 %v18328_v46  ;;  %v18359_v29 = vld [vmem:[%s23985_s1 + $0x220] sm:$0xff]   ;;  %v18361_v46 = vld [vmem:[%s23985_s1 + $0x58] sm:$0xff]   ;;  %v18382_v9 = vld [vmem:[%s23985_s1 + $0xe8] sm:$0xff]  }
 0x2c0   : > { %v5401_v17 = vadd.f32 %v5400_v12, %v5360_v30  ;;  %16614 = vmatprep.subr.bf16.mxu1 %v18329_v54  ;;  %v18358_v12 = vld [vmem:[%s23985_s1 + $0x60] sm:$0xff]   ;;  %v18363_v56 = vld [vmem:[%s23985_s1 + $0x18] sm:$0xff]   ;;  %v18365_v54 = vld [vmem:[%s23985_s1 + $0x210] sm:$0xff]  }
 0x2c1   : > { %v21750_v58 = vld [vmem:[%s19166_s7 + $0x78] sm:$0xff]   ;;  %v18367_v30 = vld [vmem:[%s23985_s1 + $0x48] sm:$0xff]  }
 0x2c2   : > { %v5405_v2 = vmax.f32 %v5401_v17, 0.0  ;;  %16593 = vmatpush3.bf16.msra.mxu0 %v18330_v63  ;;  %v18366_v63 = vld [vmem:[%s23985_s1 + $0x10] sm:$0xff]   ;;  %v18368_v17 = vld [vmem:[%s23985_s1 + $0x208] sm:$0xff]  }
 0x2c3   : > { %16615 = vmatpush3.bf16.msra.mxu1 %v18331_v31  ;;  %16594 = vmatprep.subr.bf16.mxu0 %v18332_v32  ;;  %v7226_v31 = vrot.slane %v7179_v24, 2  ;;  %v21759_v32 = vld [vmem:[%s19166_s7 + $0x80] sm:$0x1]  ;;  %v7229_v24 = vrot.slane %v7181_v28, 2 }
 0x2c4   : > { %v15699_v4 = vpack.c.bf16 %v5405_v2, %v5404_v18  ;;  %16616 = vmatprep.subr.bf16.mxu1 %v18333_v3  ;;  %v7227_v3 = vrot.slane %v7180_v10, 2  ;;  %v18369_v18 = vld [vmem:[%s23985_s1 + $0x8] sm:$0xff]   ;;  %v8046_v2 = vunpack.c.h.bf16 %v21750_v58  ;;  %v18371_v10 = vld [vmem:[%s23985_s1 + $0x200] sm:$0xff]  }
 0x2c6   : > { %15755 = vst [vmem:[%s20125_s20 + $0x28] sm:$0xff] %v15699_v4   ;;  %16595 = vmatpush3.bf16.msra.mxu0 %v18334_v7  ;;  %v8045_v7 = vunpack.c.l.bf16 %v21750_v58  ;;  %v8083_v4 = vrot.slane %v8046_v2, 2 }
 0x2c7   : > { %16617 = vmatpush3.bf16.msra.mxu1 %v18335_v20  ;;  %16596 = vmatprep.subr.bf16.mxu0 %v18336_v33  ;;  %v8047_v20 = vunpack.c.l.bf16 %v21759_v32  ;;  %v7228_v33 = vsel %vm202_vm1, %v7226_v31, %v7227_v3  ;;  %v21879_v31 = vld [vmem:[%s19166_s7 + $0x84] sm:$0xff]  }
 0x2c8   : > { %16618 = vmatprep.subr.bf16.mxu1 %v18337_v1  ;;  %v8082_v28 = vrot.slane %v8045_v7, 2  ;;  %v7230_v1 = vsel %vm202_vm1, %v7227_v3, %v7229_v24  ;;  %v18399_v3 = vld [vmem:[%s23985_s1 + $0x148] sm:$0xff]  }
 0x2c9   : > { %v7241_v37 = vpack.c.bf16 %v7230_v1, %v7228_v33  ;;  %v18401_v1 = vld [vmem:[%s23985_s1 + $0x108] sm:$0xff]   ;;  %v8078_v36 = vrot.slane %v8047_v20, 1 }
 0x2ca   : > { %16597 = vmatpush3.bf16.msra.mxu0 %v18338_v5  ;;  %v8085_v5 = vrot.slane %v8047_v20, 2 }
 0x2cb   : > { %16619 = vmatpush3.bf16.msra.mxu1 %v18339_v57  ;;  %16598 = vmatprep.subr.bf16.mxu0 %v18340_v34  ;;  %v18373_v57 = vld [vmem:[%s23985_s1 + $0xf8] sm:$0xff]  }
 0x2cc   : > { %16620 = vmatprep.subr.bf16.mxu1 %v18341_v38  ;;  %v18374_v34 = vld [vmem:[%s23985_s1 + $0x178] sm:$0xff]  }
 0x2cd   : > { %v18376_v38 = vld [vmem:[%s23985_s1 + $0xb8] sm:$0xff]  }
 0x2ce   : > { %16599 = vmatpush3.bf16.msra.mxu0 %v18342_v43  ;;  %v8084_v43 = vsel %vm202_vm1, %v8082_v28, %v8083_v4 }
 0x2cf   : > { %16621 = vmatpush3.bf16.msra.mxu1 %v18343_v48  ;;  %16600 = vmatprep.subr.bf16.mxu0 %v18344_v11  ;;  %v8086_v48 = vsel %vm202_vm1, %v8083_v4, %v8085_v5  ;;  %v18378_v11 = vld [vmem:[%s23985_s1 + $0xf0] sm:$0xff]   ;;  %v8068_v4 = vrot.slane %v8041_v45, 2  ;;  %v8053_v5 = vunpack.c.h.bf16 %v21879_v31  ;;  %v21918_v45 = vld [vmem:[%s23986_s2] ss:$0 sm:$0xff] }
 0x2d0   : > { %16622 = vmatprep.subr.bf16.mxu1 %v18345_v53  ;;  %v18379_v53 = vld [vmem:[%s23985_s1 + $0x170] sm:$0xff]   ;;  %v8111_v23 = vpack.c.bf16 %v8086_v48, %v8084_v43 }
 0x2d1   : > { %v8093_v43 = vrot.slane %v8053_v5, 1 }
 0x2d2   : > { %16601 = vmatpush3.bf16.msra.mxu0 %v18346_v55  ;;  %v18380_v55 = vld [vmem:[%s23985_s1 + $0xb0] sm:$0xff]  }
 0x2d3   : > { %16623 = vmatpush3.bf16.msra.mxu1 %v18347_v61  ;;  %17478 = vmatprep.subr.bf16.mxu0 %v18998_v42  ;;  %v18383_v61 = vld [vmem:[%s23985_s1 + $0x168] sm:$0xff]  }
 0x2d4   : > { %16639 = vmatprep.subr.bf16.mxu1 %v18348_v6  ;;  %v18384_v6 = vld [vmem:[%s23985_s1 + $0xa8] sm:$0xff]  }
 0x2d5   : > { %7933 = vmatmul.mubr.bf16.vlgmr.msra.gmra.mxu0 %v7237_v0  ;;  %v21807_v15 = vpop.f32.mrf.mxu0  ;;  %v18385_v0 = vld [vmem:[%s23985_s1 + $0x128] sm:$0xff]  }
 0x2d6   : > { %7974 = vmatmul.mubr.bf16.vlgmr.msra.gmra.mxu1 %v21520_v22  ;;  %17479 = vmatpush3.bf16.msra.mxu0 %v18350_v8  ;;  %v18370_v22 = vld [vmem:[%s23985_s1 + $0x40] sm:$0xff]   ;;  %v21822_v59 = vpop.f32.mrf.mxu1 }
 0x2d7   : > { %16640 = vmatpush3.bf16.msra.mxu1 %v18351_v14  ;;  %17480 = vmatprep.subr.bf16.mxu0 %v18998_v42  ;;  %v16365_v60 = vpop.f32.mrf.mxu0  ;;  %v18387_v14 = vld [vmem:[%s23985_s1 + $0x160] sm:$0xff]  }
 0x2d8   : > { %16641 = vmatprep.subr.bf16.mxu1 %v18352_v26  ;;  %17494 = vmatprep.mubr.msk.bf16.mxu0 %vm18999_vm2, %v18998_v42  ;;  %v16387_v8 = vpop.f32.mrf.mxu1  ;;  %v18388_v26 = vld [vmem:[%s23985_s1 + $0xa0] sm:$0xff]   ;;  %v16366_v24 = vadd.f32 %v16365_v60, %v21807_v15 }
 0x2d9   : > { %8723 = vmatprep.mubr.bf16.mxu1 %v8107_v19  ;;  %v16367_v13 = vpop.f32.mrf.mxu0 }
 0x2da   : > { %17481 = vmatpush3.bf16.msra.mxu0 %v18353_v47  ;;  %v16389_v19 = vpop.f32.mrf.mxu1 }
 0x2db   : > { %16642 = vmatpush3.bf16.msra.mxu1 %v18354_v27  ;;  %17482 = vmatprep.subr.bf16.mxu0 %v18998_v42  ;;  %v16368_v47 = vpop.f32.mrf.mxu0  ;;  %v18389_v27 = vld [vmem:[%s23985_s1 + $0x120] sm:$0xff]  }
 0x2dc   : > { %16643 = vmatprep.subr.bf16.mxu1 %v18355_v21  ;;  %v18390_v21 = vld [vmem:[%s23985_s1 + $0xd8] sm:$0xff]  }
 0x2de   : > { %17483 = vmatpush3.bf16.msra.mxu0 %v18356_v51  ;;  %v18391_v51 = vld [vmem:[%s23985_s1 + $0x158] sm:$0xff]  }
 0x2df   : > { %16644 = vmatpush3.bf16.msra.mxu1 %v18357_v16  ;;  %17484 = vmatprep.subr.bf16.mxu0 %v18998_v42  ;;  %v18392_v16 = vld [vmem:[%s23985_s1 + $0x98] sm:$0xff]  }
 0x2e0   : > { %16645 = vmatprep.subr.bf16.mxu1 %v18358_v12 }
 0x2e2   : > { %17485 = vmatpush3.bf16.msra.mxu0 %v18359_v29  ;;  %v18393_v29 = vld [vmem:[%s23985_s1 + $0x118] sm:$0xff]  }
 0x2e3   : > { %16646 = vmatpush3.bf16.msra.mxu1 %v18360_v62  ;;  %17486 = vmatprep.subr.bf16.mxu0 %v18998_v42  ;;  %v18394_v62 = vld [vmem:[%s23985_s1 + $0xd0] sm:$0xff]  }
 0x2e4   : > { %16647 = vmatprep.subr.bf16.mxu1 %v18361_v46  ;;  %v16390_v46 = vpop.f32.mrf.mxu1 }
 0x2e6   : > { %17487 = vmatpush3.bf16.msra.mxu0 %v18362_v25  ;;  %v18395_v25 = vld [vmem:[%s23985_s1 + $0x150] sm:$0xff]  }
 0x2e7   : > { %16648 = vmatpush3.bf16.msra.mxu1 %v18363_v56  ;;  %17488 = vmatprep.subr.bf16.mxu0 %v18998_v42  ;;  %v18396_v56 = vld [vmem:[%s23985_s1 + $0x90] sm:$0xff]  }
 0x2e8   : > { %16649 = vmatprep.subr.bf16.mxu1 %v18364_v50 }
 0x2ea   : > { %17489 = vmatpush3.bf16.msra.mxu0 %v18365_v54 }
 0x2eb   : > { %16650 = vmatpush3.bf16.msra.mxu1 %v18366_v63  ;;  %17490 = vmatprep.subr.bf16.mxu0 %v18998_v42  ;;  %v18397_v63 = vld [vmem:[%s23985_s1 + $0x110] sm:$0xff]  }
 0x2ec   : > { %16651 = vmatprep.subr.bf16.mxu1 %v18367_v30  ;;  %v18398_v30 = vld [vmem:[%s23985_s1 + $0xc8] sm:$0xff]  }
 0x2ee   : > { %17491 = vmatpush3.bf16.msra.mxu0 %v18368_v17  ;;  %v21882_v17 = vld [vmem:[%s19166_s7 + $0x8c] sm:$0x1] }
 0x2ef   : > { %16652 = vmatpush3.bf16.msra.mxu1 %v18369_v18  ;;  %17492 = vmatprep.subr.bf16.mxu0 %v18998_v42  ;;  %v8065_v18 = vrot.slane %v8039_v44, 2  ;;  %v18402_v44 = vld [vmem:[%s23985_s1 + $0xc0] sm:$0xff]  }
 0x2f0   : > { %16653 = vmatprep.subr.bf16.mxu1 %v18370_v22  ;;  %v18400_v22 = vld [vmem:[%s23985_s1 + $0x88] sm:$0xff]  }
 0x2f2   : > { %17493 = vmatpush3.bf16.msra.mxu0 %v18371_v10  ;;  %v8066_v10 = vrot.slane %v8040_v52, 2  ;;  %v16369_v52 = vadd.f32 %v16368_v47, %v16367_v13 }
 0x2f3   : > { %16654 = vmatpush3.bf16.msra.mxu1 %v18372_v41  ;;  %16661 = vmatprep.subr.bf16.mxu0 %v18373_v57  ;;  %v8052_v41 = vunpack.c.l.bf16 %v21879_v31  ;;  %v18403_v57 = vld [vmem:[%s23985_s1 + $0x140] sm:$0xff]  }
 0x2f4   : > { %16683 = vmatprep.subr.bf16.mxu1 %v18374_v34  ;;  %v8075_v34 = vrot.slane %v8045_v7, 1  ;;  %v18404_v7 = vld [vmem:[%s23985_s1 + $0x80] sm:$0xff]   ;;  %v8067_v20 = vsel %vm202_vm1, %v8065_v18, %v8066_v10  ;;  %v6110_v15 = vadd.f32 %v21918_v45, %v16369_v52  ;;  %v18419_v52 = vld [vmem:[%s23985_s1 + $0x1d8] sm:$0xff]  }
 0x2f5   : > { %17495 = vmatmul.mubr.bf16.vlgmr.msra.gmra.mxu0 %v7241_v37  ;;  %v16408_v12 = vpop.f32.mrf.mxu0  ;;  %v8076_v37 = vrot.slane %v8046_v2, 1 }
 0x2f6   : > { %8724 = vmatmul.mubr.bf16.vlgmr.msra.gmra.mxu1 %v21641_v35  ;;  %16662 = vmatpush3.bf16.msra.mxu0 %v18376_v38  ;;  %v21870_v50 = vpop.f32.mrf.mxu1  ;;  %v8054_v35 = vunpack.c.l.bf16 %v21882_v17  ;;  %v6107_v38 = vadd.f32 %v21918_v45, %v16366_v24  ;;  %v18415_v24 = vld [vmem:[%s23985_s1 + $0x228] sm:$0xff]  }
 0x2f7   : > { %16684 = vmatpush3.bf16.msra.mxu1 %v18377_v39  ;;  %16663 = vmatprep.subr.bf16.mxu0 %v18378_v11  ;;  %v16409_v54 = vpop.f32.mrf.mxu0  ;;  %v16388_v39 = vadd.f32 %v16387_v8, %v21822_v59  ;;  %v16391_v11 = vadd.f32 %v16390_v46, %v16389_v19  ;;  %v8077_v59 = vsel %vm194_vm0, %v8075_v34, %v8076_v37  ;;  %v18408_v8 = vld [vmem:[%s23985_s1 + $0x1b8] sm:$0xff]  }
 0x2f8   : > { %16685 = vmatprep.subr.bf16.mxu1 %v18379_v53  ;;  %8764 = vmatprep.mubr.bf16.mxu0 %v21750_v58  ;;  %v16431_v28 = vpop.f32.mrf.mxu1  ;;  %v8092_v58 = vrot.slane %v8052_v41, 1  ;;  %v8095_v48 = vrot.slane %v8054_v35, 1  ;;  %v16410_v53 = vadd.f32 %v16409_v54, %v16408_v12  ;;  %v8079_v60 = vsel %vm194_vm0, %v8076_v37, %v8078_v36  ;;  %v18421_v34 = vld [vmem:[%s23985_s1 + $0x218] sm:$0xff]   ;;  %v18422_v37 = vld [vmem:[%s23985_s1 + $0x1d0] sm:$0xff]  }
 0x2f9   : > { %8805 = vmatprep.mubr.bf16.mxu1 %v8111_v23  ;;  %v16411_v33 = vpop.f32.mrf.mxu0  ;;  %v8069_v23 = vsel %vm202_vm1, %v8066_v10, %v8068_v4  ;;  %v16432_v19 = vadd.f32 %v16431_v28, %v21870_v50  ;;  %v8110_v47 = vpack.c.bf16 %v8079_v60, %v8077_v59  ;;  %v18413_v50 = vld [vmem:[%s23985_s1 + $0x1e8] sm:$0xff]   ;;  %v18416_v10 = vld [vmem:[%s23985_s1 + $0x1e0] sm:$0xff]   ;;  %v18423_v36 = vld [vmem:[%s23985_s1 + $0x190] sm:$0xff]  }
 0x2fa   : > { %16664 = vmatpush3.bf16.msra.mxu0 %v18380_v55  ;;  %v16433_v2 = vpop.f32.mrf.mxu1  ;;  %v18405_v55 = vld [vmem:[%s23985_s1 + $0x100] sm:$0xff]   ;;  %v8094_v13 = vsel %vm194_vm0, %v8092_v58, %v8093_v43  ;;  %v18425_v58 = vld [vmem:[%s23985_s1 + $0x1c8] sm:$0xff]  }
 0x2fb   : > { %16686 = vmatpush3.bf16.msra.mxu1 %v18381_v49  ;;  %16665 = vmatprep.subr.bf16.mxu0 %v18382_v9  ;;  %v16412_v32 = vpop.f32.mrf.mxu0  ;;  %v18407_v49 = vld [vmem:[%s23985_s1 + $0x1f8] sm:$0xff]   ;;  %v6148_v9 = vadd.f32 %v16388_v39, %v6107_v38  ;;  %v18418_v4 = vld [vmem:[%s23985_s1 + $0x220] sm:$0xff]   ;;  %v18424_v38 = vld [vmem:[%s23985_s1 + $0x210] sm:$0xff]  }
 0x2fc   : > { %16687 = vmatprep.subr.bf16.mxu1 %v18383_v61  ;;  %v16413_v61 = vadd.f32 %v16412_v32, %v16411_v33  ;;  %v22005_v39 = vld [vmem:[%s19166_s7 + $0x78] sm:$0xff]  }
 0x2fd   : > { %v8912_v32 = vunpack.c.l.bf16 %v22005_v39 }
 0x2fe   : > { %16666 = vmatpush3.bf16.msra.mxu0 %v18384_v6  ;;  %v16434_v6 = vpop.f32.mrf.mxu1 }
 0x2ff   : > { %16688 = vmatpush3.bf16.msra.mxu1 %v18385_v0  ;;  %16667 = vmatprep.subr.bf16.mxu0 %v18386_v40  ;;  %v8108_v0 = vpack.c.bf16 %v8069_v23, %v8067_v20  ;;  %v8096_v40 = vsel %vm194_vm0, %v8093_v43, %v8095_v48  ;;  %v18427_v20 = vld [vmem:[%s23985_s1 + $0x208] sm:$0xff]   ;;  %v8913_v43 = vunpack.c.h.bf16 %v22005_v39  ;;  %v18429_v23 = vld [vmem:[%s23985_s1 + $0x180] sm:$0xff]  }
 0x300   : > { %16689 = vmatprep.subr.bf16.mxu1 %v18387_v14  ;;  %v6151_v14 = vadd.f32 %v16391_v11, %v6110_v15  ;;  %v8113_v12 = vpack.c.bf16 %v8096_v40, %v8094_v13  ;;  %v18428_v15 = vld [vmem:[%s23985_s1 + $0x1c0] sm:$0xff]   ;;  %v8099_v11 = vrot.slane %v8052_v41, 2 }
 0x301   : > { %v18430_v41 = vld [vmem:[%s23985_s1 + $0x200] sm:$0xff]   ;;  %v8932_v59 = vrot.slane %v8913_v43, 1 }
 0x302   : > { %16668 = vmatpush3.bf16.msra.mxu0 %v18388_v26  ;;  %v6189_v26 = vadd.f32 %v16410_v53, %v6148_v9  ;;  %v8100_v53 = vrot.slane %v8053_v5, 2  ;;  %v18432_v5 = vld [vmem:[%s23985_s1 + $0x78] sm:$0xff]   ;;  %v22063_v40 = vld [vmem:[%s19166_s7 + $0x84] sm:$0xff]  }
 0x303   : > { %16690 = vmatpush3.bf16.msra.mxu1 %v18389_v27  ;;  %16669 = vmatprep.subr.bf16.mxu0 %v18390_v21  ;;  %v18409_v27 = vld [vmem:[%s23985_s1 + $0x238] sm:$0xff]   ;;  %v18410_v21 = vld [vmem:[%s23985_s1 + $0x1f0] sm:$0xff]  }
 0x304   : > { %16691 = vmatprep.subr.bf16.mxu1 %v18391_v51  ;;  %v6192_v51 = vadd.f32 %v16413_v61, %v6151_v14  ;;  %v6230_v46 = vadd.f32 %v16432_v19, %v6189_v26  ;;  %v8101_v60 = vsel %vm202_vm1, %v8099_v11, %v8100_v53  ;;  %v18434_v61 = vld [vmem:[%s23985_s1 + $0x38] sm:$0xff]   ;;  %v18436_v14 = vld [vmem:[%s23985_s1 + $0x70] sm:$0xff]  }
 0x305   : > { %v18437_v26 = vld [vmem:[%s23985_s1 + $0xf0] sm:$0xff]  }
 0x306   : > { %16670 = vmatpush3.bf16.msra.mxu0 %v18392_v16  ;;  %v16435_v16 = vadd.f32 %v16434_v6, %v16433_v2  ;;  %v18426_v2 = vld [vmem:[%s23985_s1 + $0x188] sm:$0xff]   ;;  %v18435_v6 = vld [vmem:[%s23985_s1 + $0xb8] sm:$0xff]  }
 0x307   : > { %16692 = vmatpush3.bf16.msra.mxu1 %v18393_v29  ;;  %16671 = vmatprep.subr.bf16.mxu0 %v18394_v62  ;;  %v18411_v62 = vld [vmem:[%s23985_s1 + $0x1b0] sm:$0xff]  }
 0x308   : > { %16693 = vmatprep.subr.bf16.mxu1 %v18395_v25  ;;  %v18412_v25 = vld [vmem:[%s23985_s1 + $0x230] sm:$0xff]  }
 0x30a   : > { %16672 = vmatpush3.bf16.msra.mxu0 %v18396_v56 }
 0x30b   : > { %16694 = vmatpush3.bf16.msra.mxu1 %v18397_v63  ;;  %16673 = vmatprep.subr.bf16.mxu0 %v18398_v30  ;;  %v6233_v63 = vadd.f32 %v16435_v16, %v6192_v51  ;;  %v18442_v51 = vld [vmem:[%s23985_s1 + $0x28] sm:$0xff]  }
 0x30c   : > { %16695 = vmatprep.subr.bf16.mxu1 %v18399_v3  ;;  %v18414_v3 = vld [vmem:[%s23985_s1 + $0x1a8] sm:$0xff]  }
 0x30e   : > { %16674 = vmatpush3.bf16.msra.mxu0 %v18400_v22 }
 0x30f   : > { %16696 = vmatpush3.bf16.msra.mxu1 %v18401_v1  ;;  %16675 = vmatprep.subr.bf16.mxu0 %v18402_v44  ;;  %v18417_v44 = vld [vmem:[%s23985_s1 + $0x1a0] sm:$0xff]  }
 0x310   : > { %16697 = vmatprep.subr.bf16.mxu1 %v18403_v57  ;;  %v18420_v57 = vld [vmem:[%s23985_s1 + $0x198] sm:$0xff]  }
 0x312   : > { %16676 = vmatpush3.bf16.msra.mxu0 %v18404_v7  ;;  %v22008_v7 = vld [vmem:[%s19166_s7 + $0x80] sm:$0x1] }
 0x313   : > { %16698 = vmatpush3.bf16.msra.mxu1 %v18405_v55  ;;  %16705 = vmatprep.subr.bf16.mxu0 %v18407_v49  ;;  %v8914_v48 = vunpack.c.l.bf16 %v22008_v7  ;;  %v8102_v55 = vrot.slane %v8054_v35, 2  ;;  %v8931_v49 = vrot.slane %v8912_v32, 1  ;;  %v18433_v35 = vld [vmem:[%s23985_s1 + $0xf8] sm:$0xff]  }
 0x314   : > { %17498 = vmatprep.subr.bf16.mxu1 %v18998_v42 }
 0x315   : > { %v6270_v29 = vpop.f32.mrf.mxu0  ;;  %8765 = vmatmul.mubr.bf16.vlgmr.msra.gmra.mxu0 %v8108_v0  ;;  %v8934_v17 = vrot.slane %v8914_v48, 1  ;;  %v8103_v9 = vsel %vm202_vm1, %v8100_v53, %v8102_v55  ;;  %v8933_v0 = vsel %vm194_vm0, %v8931_v49, %v8932_v59  ;;  %v18461_v53 = vld [vmem:[%s23985_s1 + $0xc0] sm:$0xff]   ;;  %v8938_v55 = vrot.slane %v8912_v32, 2 }
 0x316   : > { %8806 = vmatmul.mubr.bf16.vlgmr.msra.gmra.mxu1 %v8110_v47  ;;  %16706 = vmatpush3.bf16.msra.mxu0 %v18408_v8  ;;  %v6271_v54 = vadd.f32 %v6270_v29, %v6230_v46  ;;  %v8114_v13 = vpack.c.bf16 %v8103_v9, %v8101_v60  ;;  %v18438_v47 = vld [vmem:[%s23985_s1 + $0x30] sm:$0xff]   ;;  %v16461_v16 = vpop.f32.mrf.mxu1  ;;  %v18444_v29 = vld [vmem:[%s23985_s1 + $0x60] sm:$0xff]  }
 0x317   : > { %17499 = vmatpush3.bf16.msra.mxu1 %v18409_v27  ;;  %v17456_v56 = vpop.f32.mrf.mxu0  ;;  %16707 = vmatprep.subr.bf16.mxu0 %v18410_v21  ;;  %v8935_v8 = vsel %vm194_vm0, %v8932_v59, %v8934_v17  ;;  %v18439_v27 = vld [vmem:[%s23985_s1 + $0xb0] sm:$0xff]   ;;  %v18440_v21 = vld [vmem:[%s23985_s1 + $0x68] sm:$0xff]   ;;  %v18446_v46 = vld [vmem:[%s23985_s1 + $0x20] sm:$0xff]   ;;  %v8941_v59 = vrot.slane %v8914_v48, 2 }
 0x318   : > { %17500 = vmatprep.subr.bf16.mxu1 %v18998_v42  ;;  %8846 = vmatprep.mubr.bf16.mxu0 %v8113_v12  ;;  %v6277_v28 = vmax.f32 %v6271_v54, 0.0  ;;  %v8980_v19 = vpack.c.bf16 %v8935_v8, %v8933_v0  ;;  %v18443_v12 = vld [vmem:[%s23985_s1 + $0xa8] sm:$0xff]   ;;  %v18447_v56 = vld [vmem:[%s23985_s1 + $0xa0] sm:$0xff]   ;;  %v18449_v54 = vld [vmem:[%s23985_s1 + $0xd8] sm:$0xff]  }
 0x319   : > { %v6273_v30 = vpop.f32.mrf.mxu0  ;;  %17514 = vmatprep.mubr.msk.bf16.mxu1 %vm18999_vm2, %v18998_v42  ;;  %v18466_v8 = vld [vmem:[%s23985_s1 + $0x178] sm:$0xff]  }
 0x31a   : > { %v6274_v18 = vadd.f32 %v6273_v30, %v6233_v63  ;;  %16708 = vmatpush3.bf16.msra.mxu0 %v18411_v62  ;;  %v18445_v62 = vld [vmem:[%s23985_s1 + $0xe0] sm:$0xff]   ;;  %v18450_v30 = vld [vmem:[%s23985_s1 + $0x18] sm:$0xff]  }
 0x31b   : > { %17501 = vmatpush3.bf16.msra.mxu1 %v18412_v25  ;;  %v17457_v22 = vpop.f32.mrf.mxu0  ;;  %16709 = vmatprep.subr.bf16.mxu0 %v18413_v50  ;;  %v16462_v25 = vpop.f32.mrf.mxu1  ;;  %v18448_v50 = vld [vmem:[%s23985_s1 + $0x58] sm:$0xff]  }
 0x31c   : > { %v6278_v33 = vmax.f32 %v6274_v18, 0.0  ;;  %17502 = vmatprep.subr.bf16.mxu1 %v18998_v42  ;;  %v18452_v18 = vld [vmem:[%s23985_s1 + $0x50] sm:$0xff]   ;;  %v16463_v60 = vadd.f32 %v16462_v25, %v16461_v16 }
 0x31d   : > { %v22109_v63 = vpop.f32.mrf.mxu1  ;;  %v18454_v22 = vld [vmem:[%s23985_s1 + $0x10] sm:$0xff]  }
 0x31e   : > { %v15704_v1 = vpack.c.bf16 %v6278_v33, %v6277_v28  ;;  %16710 = vmatpush3.bf16.msra.mxu0 %v18414_v3  ;;  %v18451_v3 = vld [vmem:[%s23985_s1 + $0x98] sm:$0xff]   ;;  %v18455_v33 = vld [vmem:[%s23985_s1 + $0x90] sm:$0xff]  }
 0x31f   : > { %17503 = vmatpush3.bf16.msra.mxu1 %v18415_v24  ;;  %16711 = vmatprep.subr.bf16.mxu0 %v18416_v10  ;;  %v18453_v24 = vld [vmem:[%s23985_s1 + $0xd0] sm:$0xff]   ;;  %v22127_v10 = vld [vmem:[%s19166_s7 + $0x8c] sm:$0x1] }
 0x320   : > { %15756 = vst [vmem:[%s20125_s20 + $0x30] sm:$0xff] %v15704_v1   ;;  %17504 = vmatprep.subr.bf16.mxu1 %v18998_v42  ;;  %v18456_v1 = vld [vmem:[%s23985_s1 + $0x48] sm:$0xff]  }
 0x322   : > { %16712 = vmatpush3.bf16.msra.mxu0 %v18417_v44  ;;  %v16465_v44 = vpop.f32.mrf.mxu1 }
 0x323   : > { %17505 = vmatpush3.bf16.msra.mxu1 %v18418_v4  ;;  %16713 = vmatprep.subr.bf16.mxu0 %v18419_v52  ;;  %v18457_v4 = vld [vmem:[%s23985_s1 + $0xc8] sm:$0xff]   ;;  %v22139_v52 = vld [vmem:[%s19166_s7 + $0x90] sm:$0xff]   ;;  %v16466_v16 = vadd.f32 %v16465_v44, %v22109_v63 }
 0x324   : > { %17506 = vmatprep.subr.bf16.mxu1 %v18998_v42  ;;  %v8925_v11 = vunpack.c.l.bf16 %v22139_v52 }
 0x326   : > { %16714 = vmatpush3.bf16.msra.mxu0 %v18420_v57  ;;  %v22142_v57 = vld [vmem:[%s19166_s7 + $0x98] sm:$0x1]  ;;  %v8965_v48 = vrot.slane %v8925_v11, 1 }
 0x327   : > { %17507 = vmatpush3.bf16.msra.mxu1 %v18421_v34  ;;  %16715 = vmatprep.subr.bf16.mxu0 %v18422_v37  ;;  %v18458_v37 = vld [vmem:[%s23985_s1 + $0x8] sm:$0xff]   ;;  %v8927_v49 = vunpack.c.l.bf16 %v22142_v57  ;;  %v18522_v57 = vld [vmem:[%s23985_s1] sm:$0xff]  }
 0x328   : > { %17508 = vmatprep.subr.bf16.mxu1 %v18998_v42 }
 0x32a   : > { %16716 = vmatpush3.bf16.msra.mxu0 %v18423_v36  ;;  %v8918_v36 = vunpack.c.l.bf16 %v22063_v40 }
 0x32b   : > { %17509 = vmatpush3.bf16.msra.mxu1 %v18424_v38  ;;  %16717 = vmatprep.subr.bf16.mxu0 %v18425_v58  ;;  %v8919_v38 = vunpack.c.h.bf16 %v22063_v40 }
 0x32c   : > { %17510 = vmatprep.subr.bf16.mxu1 %v18998_v42  ;;  %v8955_v32 = vrot.slane %v8918_v36, 2 }
 0x32e   : > { %16718 = vmatpush3.bf16.msra.mxu0 %v18426_v2  ;;  %v18459_v2 = vld [vmem:[%s23985_s1 + $0x88] sm:$0xff]  }
 0x32f   : > { %17511 = vmatpush3.bf16.msra.mxu1 %v18427_v20  ;;  %16719 = vmatprep.subr.bf16.mxu0 %v18428_v15  ;;  %v18460_v20 = vld [vmem:[%s23985_s1 + $0x40] sm:$0xff]   ;;  %v8920_v15 = vunpack.c.l.bf16 %v22127_v10 }
 0x330   : > { %17512 = vmatprep.subr.bf16.mxu1 %v18998_v42  ;;  %v18496_v10 = vld [vmem:[%s23985_s1 + $0x100] sm:$0xff]  }
 0x331   : > { %v8958_v7 = vrot.slane %v8920_v15, 2 }
 0x332   : > { %16720 = vmatpush3.bf16.msra.mxu0 %v18429_v23  ;;  %v8926_v23 = vunpack.c.h.bf16 %v22139_v52 }
 0x333   : > { %17513 = vmatpush3.bf16.msra.mxu1 %v18430_v41  ;;  %16736 = vmatprep.subr.bf16.mxu0 %v18432_v5  ;;  %v8939_v41 = vrot.slane %v8913_v43, 2  ;;  %v18462_v5 = vld [vmem:[%s23985_s1] sm:$0xff]  }
 0x334   : > { %16758 = vmatprep.subr.bf16.mxu1 %v18433_v35  ;;  %v8956_v35 = vrot.slane %v8919_v38, 2  ;;  %v18463_v43 = vld [vmem:[%s23985_s1 + $0x80] sm:$0xff]  }
 0x335   : > { %8847 = vmatmul.mubr.bf16.vlgmr.msra.gmra.mxu0 %v21879_v31  ;;  %v18441_v31 = vld [vmem:[%s23985_s1 + $0xe8] sm:$0xff]   ;;  %v16483_v28 = vpop.f32.mrf.mxu0 }
 0x336   : > { %17515 = vmatmul.mubr.bf16.vlgmr.msra.gmra.mxu1 %v8114_v13  ;;  %16737 = vmatpush3.bf16.msra.mxu0 %v18434_v61  ;;  %v16505_v34 = vpop.f32.mrf.mxu1  ;;  %v8966_v61 = vrot.slane %v8926_v23, 1  ;;  %v8940_v13 = vsel %vm202_vm1, %v8938_v55, %v8939_v41 }
 0x337   : > { %16759 = vmatpush3.bf16.msra.mxu1 %v18435_v6  ;;  %16738 = vmatprep.subr.bf16.mxu0 %v18436_v14  ;;  %v16484_v58 = vpop.f32.mrf.mxu0  ;;  %v8968_v6 = vrot.slane %v8927_v49, 1  ;;  %v8942_v14 = vsel %vm202_vm1, %v8939_v41, %v8941_v59  ;;  %v18477_v59 = vld [vmem:[%s23985_s1 + $0x1a8] sm:$0xff]  }
 0x338   : > { %16760 = vmatprep.subr.bf16.mxu1 %v18437_v26  ;;  %9596 = vmatprep.mubr.bf16.mxu0 %v8980_v19  ;;  %v16506_v17 = vpop.f32.mrf.mxu1  ;;  %v16485_v0 = vadd.f32 %v16484_v58, %v16483_v28  ;;  %v18467_v19 = vld [vmem:[%s23985_s1 + $0x1f8] sm:$0xff]   ;;  %v6983_v28 = vadd.f32 %v21918_v45, %v16466_v16  ;;  %v18490_v16 = vld [vmem:[%s23985_s1 + $0x148] sm:$0xff]  }
 0x339   : > { %9637 = vmatprep.mubr.bf16.mxu1 %v22063_v40  ;;  %v16486_v9 = vpop.f32.mrf.mxu0  ;;  %v18494_v40 = vld [vmem:[%s23985_s1 + $0x140] sm:$0xff]  }
 0x33a   : > { %16739 = vmatpush3.bf16.msra.mxu0 %v18438_v47  ;;  %v16508_v26 = vpop.f32.mrf.mxu1  ;;  %v6980_v47 = vadd.f32 %v21918_v45, %v16463_v60  ;;  %v18475_v45 = vld [vmem:[%s23985_s1 + $0x1e8] sm:$0xff]  }
 0x33b   : > { %16761 = vmatpush3.bf16.msra.mxu1 %v18439_v27  ;;  %16740 = vmatprep.subr.bf16.mxu0 %v18440_v21  ;;  %v16487_v27 = vpop.f32.mrf.mxu0  ;;  %v18468_v21 = vld [vmem:[%s23985_s1 + $0x138] sm:$0xff]  }
 0x33c   : > { %16762 = vmatprep.subr.bf16.mxu1 %v18441_v31  ;;  %v8957_v31 = vsel %vm202_vm1, %v8955_v32, %v8956_v35  ;;  %v7021_v25 = vadd.f32 %v16485_v0, %v6980_v47  ;;  %v16509_v63 = vpop.f32.mrf.mxu1  ;;  %v18483_v0 = vld [vmem:[%s23985_s1 + $0x1d8] sm:$0xff]  }
 0x33e   : > { %16741 = vmatpush3.bf16.msra.mxu0 %v18442_v51  ;;  %v8959_v51 = vsel %vm202_vm1, %v8956_v35, %v8958_v7  ;;  %v18481_v7 = vld [vmem:[%s23985_s1 + $0x1a0] sm:$0xff]  }
 0x33f   : > { %16763 = vmatpush3.bf16.msra.mxu1 %v18443_v12  ;;  %16742 = vmatprep.subr.bf16.mxu0 %v18444_v29  ;;  %v8981_v12 = vpack.c.bf16 %v8942_v14, %v8940_v13  ;;  %v18469_v29 = vld [vmem:[%s23985_s1 + $0x1b8] sm:$0xff]  }
 0x340   : > { %16764 = vmatprep.subr.bf16.mxu1 %v18445_v62  ;;  %v8967_v62 = vsel %vm194_vm0, %v8965_v48, %v8966_v61  ;;  %v18484_v13 = vld [vmem:[%s23985_s1 + $0x118] sm:$0xff]  }
 0x341   : > { %v18485_v14 = vld [vmem:[%s23985_s1 + $0x198] sm:$0xff]  }
 0x342   : > { %16743 = vmatpush3.bf16.msra.mxu0 %v18446_v46  ;;  %v8969_v46 = vsel %vm194_vm0, %v8966_v61, %v8968_v6  ;;  %v18482_v6 = vld [vmem:[%s23985_s1 + $0x158] sm:$0xff]  }
 0x343   : > { %16765 = vmatpush3.bf16.msra.mxu1 %v18447_v56  ;;  %16744 = vmatprep.subr.bf16.mxu0 %v18448_v50  ;;  %v16507_v56 = vadd.f32 %v16506_v17, %v16505_v34  ;;  %v18470_v50 = vld [vmem:[%s23985_s1 + $0x170] sm:$0xff]  }
 0x344   : > { %16766 = vmatprep.subr.bf16.mxu1 %v18449_v54  ;;  %v16488_v54 = vadd.f32 %v16487_v27, %v16486_v9  ;;  %v18479_v9 = vld [vmem:[%s23985_s1 + $0x1e0] sm:$0xff]   ;;  %v18487_v27 = vld [vmem:[%s23985_s1 + $0x1d0] sm:$0xff]  }
 0x345   : > { %v7062_v44 = vadd.f32 %v16507_v56, %v7021_v25  ;;  %v8949_v25 = vrot.slane %v8919_v38, 1  ;;  %v18492_v56 = vld [vmem:[%s23985_s1 + $0x108] sm:$0xff]   ;;  %v18495_v38 = vld [vmem:[%s23985_s1 + $0x1c0] sm:$0xff]  }
 0x346   : > { %16745 = vmatpush3.bf16.msra.mxu0 %v18450_v30  ;;  %v18471_v30 = vld [vmem:[%s23985_s1 + $0x1f0] sm:$0xff]   ;;  %v7024_v34 = vadd.f32 %v16488_v54, %v6983_v28  ;;  %v18493_v54 = vld [vmem:[%s23985_s1 + $0x188] sm:$0xff]   ;;  %v18497_v28 = vld [vmem:[%s23985_s1 + $0x180] sm:$0xff]  }
 0x347   : > { %16767 = vmatpush3.bf16.msra.mxu1 %v18451_v3  ;;  %16746 = vmatprep.subr.bf16.mxu0 %v18452_v18  ;;  %v8984_v3 = vpack.c.bf16 %v8959_v51, %v8957_v31  ;;  %v18488_v31 = vld [vmem:[%s23985_s1 + $0x110] sm:$0xff]  }
 0x348   : > { %16768 = vmatprep.subr.bf16.mxu1 %v18453_v24  ;;  %v18472_v24 = vld [vmem:[%s23985_s1 + $0x130] sm:$0xff]  }
 0x349   : > { %v18489_v51 = vld [vmem:[%s23985_s1 + $0x190] sm:$0xff]  }
 0x34a   : > { %16747 = vmatpush3.bf16.msra.mxu0 %v18454_v22  ;;  %v8986_v22 = vpack.c.bf16 %v8969_v46, %v8967_v62  ;;  %v8948_v62 = vrot.slane %v8918_v36, 1  ;;  %v18491_v46 = vld [vmem:[%s23985_s1 + $0x1c8] sm:$0xff]   ;;  %v8951_v36 = vrot.slane %v8920_v15, 1 }
 0x34b   : > { %16769 = vmatpush3.bf16.msra.mxu1 %v18455_v33  ;;  %16748 = vmatprep.subr.bf16.mxu0 %v18456_v1  ;;  %v18473_v1 = vld [vmem:[%s23985_s1 + $0x1b0] sm:$0xff]  }
 0x34c   : > { %16770 = vmatprep.subr.bf16.mxu1 %v18457_v4 }
 0x34e   : > { %16749 = vmatpush3.bf16.msra.mxu0 %v18458_v37  ;;  %v16510_v37 = vadd.f32 %v16509_v63, %v16508_v26  ;;  %v18486_v26 = vld [vmem:[%s23985_s1 + $0x150] sm:$0xff]  }
 0x34f   : > { %16771 = vmatpush3.bf16.msra.mxu1 %v18459_v2  ;;  %16750 = vmatprep.subr.bf16.mxu0 %v18460_v20 }
 0x350   : > { %16772 = vmatprep.subr.bf16.mxu1 %v18461_v53  ;;  %v18476_v53 = vld [vmem:[%s23985_s1 + $0x128] sm:$0xff]   ;;  %v7065_v32 = vadd.f32 %v16510_v37, %v7024_v34  ;;  %v18501_v34 = vld [vmem:[%s23985_s1 + $0x38] sm:$0xff]   ;;  %v18502_v37 = vld [vmem:[%s23985_s1 + $0x70] sm:$0xff]  }
 0x352   : > { %16751 = vmatpush3.bf16.msra.mxu0 %v18462_v5  ;;  %v18478_v5 = vld [vmem:[%s23985_s1 + $0x160] sm:$0xff]  }
 0x353   : > { %16773 = vmatpush3.bf16.msra.mxu1 %v18463_v43  ;;  %16780 = vmatprep.subr.bf16.mxu0 %v18466_v8  ;;  %v18480_v43 = vld [vmem:[%s23985_s1 + $0x120] sm:$0xff]  }
 0x354   : > { %16802 = vmatprep.subr.bf16.mxu1 %v18467_v19 }
 0x355   : > { %v16527_v18 = vpop.f32.mrf.mxu0  ;;  %9597 = vmatmul.mubr.bf16.vlgmr.msra.gmra.mxu0 %v22005_v39  ;;  %v18474_v39 = vld [vmem:[%s23985_s1 + $0x168] sm:$0xff]  }
 0x356   : > { %v7143_v33 = vpop.f32.mrf.mxu1  ;;  %9638 = vmatmul.mubr.bf16.vlgmr.msra.gmra.mxu1 %v8981_v12  ;;  %16781 = vmatpush3.bf16.msra.mxu0 %v18468_v21  ;;  %v22273_v12 = vld [vmem:[%s19166_s7 + $0x84] sm:$0xff]  }
 0x357   : > { %16803 = vmatpush3.bf16.msra.mxu1 %v18469_v29  ;;  %v16528_v4 = vpop.f32.mrf.mxu0  ;;  %16782 = vmatprep.subr.bf16.mxu0 %v18470_v50  ;;  %v22276_v29 = vld [vmem:[%s19166_s7 + $0x8c] sm:$0x1]  ;;  %v9785_v50 = vunpack.c.l.bf16 %v22273_v12  ;;  %v9786_v63 = vunpack.c.h.bf16 %v22273_v12 }
 0x358   : > { %v16529_v58 = vadd.f32 %v16528_v4, %v16527_v18  ;;  %v17476_v2 = vpop.f32.mrf.mxu1  ;;  %16804 = vmatprep.subr.bf16.mxu1 %v18471_v30  ;;  %9678 = vmatprep.mubr.bf16.mxu0 %v8984_v3  ;;  %v9787_v30 = vunpack.c.l.bf16 %v22276_v29  ;;  %v8950_v3 = vsel %vm194_vm0, %v8948_v62, %v8949_v25  ;;  %v8952_v18 = vsel %vm194_vm0, %v8949_v25, %v8951_v36  ;;  %v18527_v25 = vld [vmem:[%s23985_s1 + $0x138] sm:$0xff]   ;;  %v18553_v29 = vld [vmem:[%s23985_s1 + $0x140] sm:$0xff]  }
 0x359   : > { %v16530_v20 = vpop.f32.mrf.mxu0  ;;  %9719 = vmatprep.mubr.bf16.mxu1 %v8986_v22  ;;  %v9804_v15 = vrot.slane %v9785_v50, 1  ;;  %v18503_v2 = vld [vmem:[%s23985_s1 + $0x230] sm:$0xff]  }
 0x35a   : > { %v7103_v55 = vadd.f32 %v16529_v58, %v7062_v44  ;;  %v7146_v41 = vpop.f32.mrf.mxu1  ;;  %16783 = vmatpush3.bf16.msra.mxu0 %v18472_v24  ;;  %v9805_v24 = vrot.slane %v9786_v63, 1  ;;  %v9807_v22 = vrot.slane %v9787_v30, 1  ;;  %v18500_v44 = vld [vmem:[%s23985_s1 + $0x238] sm:$0xff]  }
 0x35b   : > { %16805 = vmatpush3.bf16.msra.mxu1 %v18473_v1  ;;  %v16531_v17 = vpop.f32.mrf.mxu0  ;;  %16784 = vmatprep.subr.bf16.mxu0 %v18474_v39  ;;  %v8983_v1 = vpack.c.bf16 %v8952_v18, %v8950_v3 }
 0x35c   : > { %v16532_v35 = vadd.f32 %v16531_v17, %v16530_v20  ;;  %v17477_v60 = vpop.f32.mrf.mxu1  ;;  %16806 = vmatprep.subr.bf16.mxu1 %v18475_v45  ;;  %v7144_v48 = vadd.f32 %v7143_v33, %v7103_v55  ;;  %v18498_v33 = vld [vmem:[%s23985_s1 + $0x78] sm:$0xff]   ;;  %v9806_v4 = vsel %vm194_vm0, %v9804_v15, %v9805_v24  ;;  %v9808_v39 = vsel %vm194_vm0, %v9805_v24, %v9807_v22  ;;  %v18504_v45 = vld [vmem:[%s23985_s1 + $0x30] sm:$0xff]   ;;  %v18505_v20 = vld [vmem:[%s23985_s1 + $0x68] sm:$0xff]  }
 0x35d   : > { %v9853_v58 = vpack.c.bf16 %v9808_v39, %v9806_v4  ;;  %v18507_v55 = vld [vmem:[%s23985_s1 + $0x28] sm:$0xff]   ;;  %v18510_v17 = vld [vmem:[%s23985_s1 + $0x20] sm:$0xff]   ;;  %v18514_v60 = vld [vmem:[%s23985_s1 + $0x50] sm:$0xff]  }
 0x35e   : > { %v7106_v61 = vadd.f32 %v16532_v35, %v7065_v32  ;;  %16785 = vmatpush3.bf16.msra.mxu0 %v18476_v53  ;;  %v7150_v19 = vmax.f32 %v7144_v48, 0.0  ;;  %v18506_v53 = vld [vmem:[%s23985_s1 + $0x228] sm:$0xff]   ;;  %v18512_v32 = vld [vmem:[%s23985_s1 + $0x218] sm:$0xff]   ;;  %v18530_v15 = vld [vmem:[%s23985_s1 + $0xb0] sm:$0xff]  }
 0x35f   : > { %16807 = vmatpush3.bf16.msra.mxu1 %v18477_v59  ;;  %16786 = vmatprep.subr.bf16.mxu0 %v18478_v5  ;;  %v18509_v59 = vld [vmem:[%s23985_s1 + $0x220] sm:$0xff]   ;;  %v18511_v5 = vld [vmem:[%s23985_s1 + $0x58] sm:$0xff]   ;;  %v18531_v24 = vld [vmem:[%s23985_s1 + $0x130] sm:$0xff]  }
 0x360   : > { %v7147_v8 = vadd.f32 %v7146_v41, %v7106_v61  ;;  %16808 = vmatprep.subr.bf16.mxu1 %v18479_v9  ;;  %v18508_v41 = vld [vmem:[%s23985_s1 + $0x60] sm:$0xff]   ;;  %v18513_v35 = vld [vmem:[%s23985_s1 + $0x18] sm:$0xff]   ;;  %v18515_v9 = vld [vmem:[%s23985_s1 + $0x210] sm:$0xff]  }
 0x361   : > { %v22385_v48 = vld [vmem:[%s19166_s7 + $0x98] sm:$0x1]  ;;  %v18517_v61 = vld [vmem:[%s23985_s1 + $0x48] sm:$0xff]  }
 0x362   : > { %v7151_v47 = vmax.f32 %v7147_v8, 0.0  ;;  %16787 = vmatpush3.bf16.msra.mxu0 %v18480_v43  ;;  %v18516_v43 = vld [vmem:[%s23985_s1 + $0x10] sm:$0xff]   ;;  %v8973_v8 = vrot.slane %v8926_v23, 2  ;;  %v18521_v23 = vld [vmem:[%s23985_s1 + $0x200] sm:$0xff]   ;;  %v18532_v22 = vld [vmem:[%s23985_s1 + $0xe8] sm:$0xff]  }
 0x363   : > { %16809 = vmatpush3.bf16.msra.mxu1 %v18481_v7  ;;  %16788 = vmatprep.subr.bf16.mxu0 %v18482_v6  ;;  %v22381_v7 = vld [vmem:[%s19166_s7 + $0x90] sm:$0xff]   ;;  %v8972_v6 = vrot.slane %v8925_v11, 2  ;;  %v9793_v11 = vunpack.c.l.bf16 %v22385_v48 }
 0x364   : > { %v15709_v21 = vpack.c.bf16 %v7151_v47, %v7150_v19  ;;  %16810 = vmatprep.subr.bf16.mxu1 %v18483_v0  ;;  %v18518_v0 = vld [vmem:[%s23985_s1 + $0x208] sm:$0xff]   ;;  %v9792_v19 = vunpack.c.h.bf16 %v22381_v7 }
 0x365   : > { %v8974_v47 = vsel %vm202_vm1, %v8972_v6, %v8973_v8  ;;  %v22510_v6 = vld [vmem:[%s19166_s7 + $0x9c] sm:$0xff]  }
 0x366   : > { %15757 = vst [vmem:[%s20125_s20 + $0x38] sm:$0xff] %v15709_v21   ;;  %16789 = vmatpush3.bf16.msra.mxu0 %v18484_v13  ;;  %v9791_v13 = vunpack.c.l.bf16 %v22381_v7  ;;  %v9829_v21 = vrot.slane %v9792_v19, 2 }
 0x367   : > { %16811 = vmatpush3.bf16.msra.mxu1 %v18485_v14  ;;  %16790 = vmatprep.subr.bf16.mxu0 %v18486_v26  ;;  %v18519_v14 = vld [vmem:[%s23985_s1 + $0x8] sm:$0xff]   ;;  %v8975_v26 = vrot.slane %v8927_v49, 2 }
 0x368   : > { %16812 = vmatprep.subr.bf16.mxu1 %v18487_v27  ;;  %v9828_v49 = vrot.slane %v9791_v13, 2 }
 0x369   : > { %v8976_v27 = vsel %vm202_vm1, %v8973_v8, %v8975_v26  ;;  %v9811_v8 = vrot.slane %v9785_v50, 2  ;;  %v9814_v50 = vrot.slane %v9787_v30, 2  ;;  %v9821_v30 = vrot.slane %v9791_v13, 1  ;;  %v18554_v13 = vld [vmem:[%s23985_s1 + $0x80] sm:$0xff]  }
 0x36a   : > { %16791 = vmatpush3.bf16.msra.mxu0 %v18488_v31  ;;  %v9831_v31 = vrot.slane %v9793_v11, 2  ;;  %v8987_v62 = vpack.c.bf16 %v8976_v27, %v8974_v47  ;;  %v18551_v27 = vld [vmem:[%s23985_s1 + $0x108] sm:$0xff]  }
 0x36b   : > { %16813 = vmatpush3.bf16.msra.mxu1 %v18489_v51  ;;  %16792 = vmatprep.subr.bf16.mxu0 %v18490_v16  ;;  %v18523_v51 = vld [vmem:[%s23985_s1 + $0xf8] sm:$0xff]  }
 0x36c   : > { %16814 = vmatprep.subr.bf16.mxu1 %v18491_v46  ;;  %v18524_v16 = vld [vmem:[%s23985_s1 + $0x178] sm:$0xff]  }
 0x36d   : > { %v18526_v46 = vld [vmem:[%s23985_s1 + $0xb8] sm:$0xff]  }
 0x36e   : > { %16793 = vmatpush3.bf16.msra.mxu0 %v18492_v56  ;;  %v9830_v56 = vsel %vm202_vm1, %v9828_v49, %v9829_v21 }
 0x36f   : > { %16815 = vmatpush3.bf16.msra.mxu1 %v18493_v54  ;;  %16794 = vmatprep.subr.bf16.mxu0 %v18494_v40  ;;  %v9832_v54 = vsel %vm202_vm1, %v9829_v21, %v9831_v31  ;;  %v18528_v40 = vld [vmem:[%s23985_s1 + $0xf0] sm:$0xff]  }
 0x370   : > { %16816 = vmatprep.subr.bf16.mxu1 %v18495_v38  ;;  %v18529_v38 = vld [vmem:[%s23985_s1 + $0x170] sm:$0xff]  }
 0x372   : > { %16795 = vmatpush3.bf16.msra.mxu0 %v18496_v10  ;;  %v9857_v10 = vpack.c.bf16 %v9832_v54, %v9830_v56 }
 0x373   : > { %16817 = vmatpush3.bf16.msra.mxu1 %v18497_v28  ;;  %17518 = vmatprep.subr.bf16.mxu0 %v18998_v42  ;;  %v18533_v28 = vld [vmem:[%s23985_s1 + $0x168] sm:$0xff]  }
 0x374   : > { %16833 = vmatprep.subr.bf16.mxu1 %v18498_v33  ;;  %v18534_v33 = vld [vmem:[%s23985_s1 + $0xa8] sm:$0xff]  }
 0x375   : > { %9679 = vmatmul.mubr.bf16.vlgmr.msra.gmra.mxu0 %v8983_v1  ;;  %v22438_v36 = vpop.f32.mrf.mxu0  ;;  %v18535_v1 = vld [vmem:[%s23985_s1 + $0x128] sm:$0xff]  }
 0x376   : > { %9720 = vmatmul.mubr.bf16.vlgmr.msra.gmra.mxu1 %v22139_v52  ;;  %17519 = vmatpush3.bf16.msra.mxu0 %v18500_v44  ;;  %v18520_v52 = vld [vmem:[%s23985_s1 + $0x40] sm:$0xff]   ;;  %v22450_v3 = vpop.f32.mrf.mxu1 }
 0x377   : > { %16834 = vmatpush3.bf16.msra.mxu1 %v18501_v34  ;;  %17520 = vmatprep.subr.bf16.mxu0 %v18998_v42  ;;  %v16559_v18 = vpop.f32.mrf.mxu0  ;;  %v18536_v44 = vld [vmem:[%s23985_s1 + $0xe0] sm:$0xff]  }
 0x378   : > { %16835 = vmatprep.subr.bf16.mxu1 %v18502_v37  ;;  %17534 = vmatprep.mubr.msk.bf16.mxu0 %vm18999_vm2, %v18998_v42  ;;  %v16581_v4 = vpop.f32.mrf.mxu1  ;;  %v18537_v34 = vld [vmem:[%s23985_s1 + $0x160] sm:$0xff]   ;;  %v16560_v26 = vadd.f32 %v16559_v18, %v22438_v36  ;;  %v18557_v18 = vld [vmem:[%s23985_s1 + $0x1f8] sm:$0xff]  }
 0x379   : > { %10469 = vmatprep.mubr.bf16.mxu1 %v9853_v58  ;;  %v16561_v39 = vpop.f32.mrf.mxu0  ;;  %v18538_v37 = vld [vmem:[%s23985_s1 + $0xa0] sm:$0xff]  }
 0x37a   : > { %17521 = vmatpush3.bf16.msra.mxu0 %v18503_v2  ;;  %v18539_v58 = vld [vmem:[%s23985_s1 + $0x120] sm:$0xff]   ;;  %v18540_v2 = vld [vmem:[%s23985_s1 + $0xd8] sm:$0xff]  }
 0x37b   : > { %16836 = vmatpush3.bf16.msra.mxu1 %v18504_v45  ;;  %17522 = vmatprep.subr.bf16.mxu0 %v18998_v42  ;;  %v16583_v45 = vpop.f32.mrf.mxu1 }
 0x37c   : > { %16837 = vmatprep.subr.bf16.mxu1 %v18505_v20  ;;  %v16562_v20 = vpop.f32.mrf.mxu0 }
 0x37d   : > { %v16563_v31 = vadd.f32 %v16562_v20, %v16561_v39  ;;  %v18560_v20 = vld [vmem:[%s23985_s1 + $0x1f0] sm:$0xff]  }
 0x37e   : > { %17523 = vmatpush3.bf16.msra.mxu0 %v18506_v53  ;;  %v18541_v53 = vld [vmem:[%s23985_s1 + $0x158] sm:$0xff]  }
 0x37f   : > { %16838 = vmatpush3.bf16.msra.mxu1 %v18507_v55  ;;  %17524 = vmatprep.subr.bf16.mxu0 %v18998_v42  ;;  %v18542_v55 = vld [vmem:[%s23985_s1 + $0x98] sm:$0xff]  }
 0x380   : > { %16839 = vmatprep.subr.bf16.mxu1 %v18508_v41 }
 0x382   : > { %17525 = vmatpush3.bf16.msra.mxu0 %v18509_v59  ;;  %v18543_v59 = vld [vmem:[%s23985_s1 + $0x118] sm:$0xff]  }
 0x383   : > { %16840 = vmatpush3.bf16.msra.mxu1 %v18510_v17  ;;  %17526 = vmatprep.subr.bf16.mxu0 %v18998_v42  ;;  %v18544_v17 = vld [vmem:[%s23985_s1 + $0xd0] sm:$0xff]  }
 0x384   : > { %16841 = vmatprep.subr.bf16.mxu1 %v18511_v5  ;;  %v16584_v5 = vpop.f32.mrf.mxu1 }
 0x386   : > { %17527 = vmatpush3.bf16.msra.mxu0 %v18512_v32  ;;  %v18545_v32 = vld [vmem:[%s23985_s1 + $0x150] sm:$0xff]  }
 0x387   : > { %16842 = vmatpush3.bf16.msra.mxu1 %v18513_v35  ;;  %17528 = vmatprep.subr.bf16.mxu0 %v18998_v42  ;;  %v18546_v35 = vld [vmem:[%s23985_s1 + $0x90] sm:$0xff]  }
 0x388   : > { %16843 = vmatprep.subr.bf16.mxu1 %v18514_v60 }
 0x38a   : > { %17529 = vmatpush3.bf16.msra.mxu0 %v18515_v9 }
 0x38b   : > { %16844 = vmatpush3.bf16.msra.mxu1 %v18516_v43  ;;  %17530 = vmatprep.subr.bf16.mxu0 %v18998_v42  ;;  %v18547_v43 = vld [vmem:[%s23985_s1 + $0x110] sm:$0xff]  }
 0x38c   : > { %16845 = vmatprep.subr.bf16.mxu1 %v18517_v61  ;;  %v18548_v61 = vld [vmem:[%s23985_s1 + $0xc8] sm:$0xff]  }
 0x38e   : > { %17531 = vmatpush3.bf16.msra.mxu0 %v18518_v0  ;;  %v22513_v0 = vld [vmem:[%s19166_s7 + $0xa4] sm:$0x1] }
 0x38f   : > { %16846 = vmatpush3.bf16.msra.mxu1 %v18519_v14  ;;  %17532 = vmatprep.subr.bf16.mxu0 %v18998_v42  ;;  %v18549_v14 = vld [vmem:[%s23985_s1 + $0x148] sm:$0xff]   ;;  %v9800_v21 = vunpack.c.l.bf16 %v22513_v0 }
 0x390   : > { %16847 = vmatprep.subr.bf16.mxu1 %v18520_v52  ;;  %v9812_v52 = vrot.slane %v9786_v63, 2  ;;  %v9799_v63 = vunpack.c.h.bf16 %v22510_v6 }
 0x391   : > { %v9841_v54 = vrot.slane %v9800_v21, 1 }
 0x392   : > { %17533 = vmatpush3.bf16.msra.mxu0 %v18521_v23  ;;  %v18550_v23 = vld [vmem:[%s23985_s1 + $0x88] sm:$0xff]   ;;  %v9839_v56 = vrot.slane %v9799_v63, 1 }
 0x393   : > { %16848 = vmatpush3.bf16.msra.mxu1 %v18522_v57  ;;  %16855 = vmatprep.subr.bf16.mxu0 %v18523_v51  ;;  %v9798_v57 = vunpack.c.l.bf16 %v22510_v6  ;;  %v9822_v51 = vrot.slane %v9792_v19, 1 }
 0x394   : > { %16877 = vmatprep.subr.bf16.mxu1 %v18524_v16  ;;  %v9824_v16 = vrot.slane %v9793_v11, 1  ;;  %v9813_v11 = vsel %vm202_vm1, %v9811_v8, %v9812_v52  ;;  %v9842_v39 = vsel %vm194_vm0, %v9839_v56, %v9841_v54 }
 0x395   : > { %17535 = vmatmul.mubr.bf16.vlgmr.msra.gmra.mxu0 %v8987_v62  ;;  %v16602_v41 = vpop.f32.mrf.mxu0  ;;  %v22549_v62 = vld [vmem:[%s23986_s2] ss:$0 sm:$0xff] }
 0x396   : > { %10470 = vmatmul.mubr.bf16.vlgmr.msra.gmra.mxu1 %v22273_v12  ;;  %16856 = vmatpush3.bf16.msra.mxu0 %v18526_v46  ;;  %v22501_v60 = vpop.f32.mrf.mxu1  ;;  %v18552_v12 = vld [vmem:[%s23985_s1 + $0xc0] sm:$0xff]   ;;  %v7853_v46 = vadd.f32 %v22549_v62, %v16560_v26  ;;  %v7856_v36 = vadd.f32 %v22549_v62, %v16563_v31  ;;  %v18565_v26 = vld [vmem:[%s23985_s1 + $0x228] sm:$0xff]   ;;  %v18569_v31 = vld [vmem:[%s23985_s1 + $0x1d8] sm:$0xff]  }
 0x397   : > { %16878 = vmatpush3.bf16.msra.mxu1 %v18527_v25  ;;  %16857 = vmatprep.subr.bf16.mxu0 %v18528_v40  ;;  %v16603_v9 = vpop.f32.mrf.mxu0  ;;  %v16582_v25 = vadd.f32 %v16581_v4, %v22450_v3  ;;  %v16585_v40 = vadd.f32 %v16584_v5, %v16583_v45  ;;  %v9823_v3 = vsel %vm194_vm0, %v9821_v30, %v9822_v51  ;;  %v18559_v45 = vld [vmem:[%s23985_s1 + $0x238] sm:$0xff]   ;;  %v18561_v5 = vld [vmem:[%s23985_s1 + $0x1b0] sm:$0xff]  }
 0x398   : > { %16879 = vmatprep.subr.bf16.mxu1 %v18529_v38  ;;  %10510 = vmatprep.mubr.bf16.mxu0 %v22381_v7  ;;  %v16625_v49 = vpop.f32.mrf.mxu1  ;;  %v9838_v7 = vrot.slane %v9798_v57, 1  ;;  %v16604_v38 = vadd.f32 %v16603_v9, %v16602_v41  ;;  %v18571_v30 = vld [vmem:[%s23985_s1 + $0x218] sm:$0xff]  }
 0x399   : > { %10551 = vmatprep.mubr.bf16.mxu1 %v9857_v10  ;;  %v16605_v47 = vpop.f32.mrf.mxu0  ;;  %v18555_v10 = vld [vmem:[%s23985_s1 + $0x100] sm:$0xff]  }
 0x39a   : > { %16858 = vmatpush3.bf16.msra.mxu0 %v18530_v15  ;;  %v16627_v19 = vpop.f32.mrf.mxu1  ;;  %v9815_v15 = vsel %vm202_vm1, %v9812_v52, %v9814_v50  ;;  %v9840_v4 = vsel %vm194_vm0, %v9838_v7, %v9839_v56  ;;  %v18575_v7 = vld [vmem:[%s23985_s1 + $0x1c8] sm:$0xff]  }
 0x39b   : > { %16880 = vmatpush3.bf16.msra.mxu1 %v18531_v24  ;;  %16859 = vmatprep.subr.bf16.mxu0 %v18532_v22  ;;  %v16606_v48 = vpop.f32.mrf.mxu0  ;;  %v9825_v24 = vsel %vm194_vm0, %v9822_v51, %v9824_v16  ;;  %v7894_v22 = vadd.f32 %v16582_v25, %v7853_v46  ;;  %v9859_v41 = vpack.c.bf16 %v9842_v39, %v9840_v4  ;;  %v18572_v51 = vld [vmem:[%s23985_s1 + $0x1d0] sm:$0xff]   ;;  %v22694_v39 = vld [vmem:[%s19166_s7 + $0x9c] sm:$0xff]  }
 0x39c   : > { %16881 = vmatprep.subr.bf16.mxu1 %v18533_v28  ;;  %v16607_v28 = vadd.f32 %v16606_v48, %v16605_v47  ;;  %v18567_v47 = vld [vmem:[%s23985_s1 + $0x1a0] sm:$0xff]   ;;  %v18573_v16 = vld [vmem:[%s23985_s1 + $0x190] sm:$0xff]  }
 0x39d   : > { %v18574_v46 = vld [vmem:[%s23985_s1 + $0x210] sm:$0xff]  }
 0x39e   : > { %16860 = vmatpush3.bf16.msra.mxu0 %v18534_v33  ;;  %v16628_v33 = vpop.f32.mrf.mxu1  ;;  %v22636_v25 = vld [vmem:[%s19166_s7 + $0x90] sm:$0xff]  }
 0x39f   : > { %16882 = vmatpush3.bf16.msra.mxu1 %v18535_v1  ;;  %16861 = vmatprep.subr.bf16.mxu0 %v18536_v44  ;;  %v9854_v1 = vpack.c.bf16 %v9815_v15, %v9813_v11  ;;  %v18558_v44 = vld [vmem:[%s23985_s1 + $0x1b8] sm:$0xff]   ;;  %v10658_v48 = vunpack.c.l.bf16 %v22636_v25  ;;  %v18577_v11 = vld [vmem:[%s23985_s1 + $0x208] sm:$0xff]   ;;  %v10659_v56 = vunpack.c.h.bf16 %v22636_v25  ;;  %v18579_v15 = vld [vmem:[%s23985_s1 + $0x180] sm:$0xff]  }
 0x3a0   : > { %16883 = vmatprep.subr.bf16.mxu1 %v18537_v34  ;;  %v7897_v34 = vadd.f32 %v16585_v40, %v7856_v36  ;;  %v18578_v36 = vld [vmem:[%s23985_s1 + $0x1c0] sm:$0xff]   ;;  %v9845_v40 = vrot.slane %v9798_v57, 2 }
 0x3a1   : > { %v18580_v57 = vld [vmem:[%s23985_s1 + $0x200] sm:$0xff]  }
 0x3a2   : > { %16862 = vmatpush3.bf16.msra.mxu0 %v18538_v37  ;;  %v7935_v37 = vadd.f32 %v16604_v38, %v7894_v22  ;;  %v9846_v38 = vrot.slane %v9799_v63, 2  ;;  %v18582_v63 = vld [vmem:[%s23985_s1 + $0x78] sm:$0xff]  }
 0x3a3   : > { %16884 = vmatpush3.bf16.msra.mxu1 %v18539_v58  ;;  %16863 = vmatprep.subr.bf16.mxu0 %v18540_v2  ;;  %v16626_v58 = vadd.f32 %v16625_v49, %v22501_v60  ;;  %v9856_v2 = vpack.c.bf16 %v9825_v24, %v9823_v3  ;;  %v18563_v60 = vld [vmem:[%s23985_s1 + $0x1e8] sm:$0xff]   ;;  %v10677_v3 = vrot.slane %v10658_v48, 1 }
 0x3a4   : > { %16885 = vmatprep.subr.bf16.mxu1 %v18541_v53  ;;  %v7938_v53 = vadd.f32 %v16607_v28, %v7897_v34  ;;  %v9847_v24 = vsel %vm202_vm1, %v9845_v40, %v9846_v38  ;;  %v18584_v28 = vld [vmem:[%s23985_s1 + $0x38] sm:$0xff]   ;;  %v18586_v34 = vld [vmem:[%s23985_s1 + $0x70] sm:$0xff]  }
 0x3a6   : > { %16864 = vmatpush3.bf16.msra.mxu0 %v18542_v55  ;;  %v16629_v55 = vadd.f32 %v16628_v33, %v16627_v19  ;;  %v18576_v19 = vld [vmem:[%s23985_s1 + $0x188] sm:$0xff]   ;;  %v18585_v33 = vld [vmem:[%s23985_s1 + $0xb8] sm:$0xff]  }
 0x3a7   : > { %16886 = vmatpush3.bf16.msra.mxu1 %v18543_v59  ;;  %16865 = vmatprep.subr.bf16.mxu0 %v18544_v17  ;;  %v7976_v17 = vadd.f32 %v16626_v58, %v7935_v37  ;;  %v18587_v37 = vld [vmem:[%s23985_s1 + $0xf0] sm:$0xff]  }
 0x3a8   : > { %16887 = vmatprep.subr.bf16.mxu1 %v18545_v32  ;;  %v18562_v32 = vld [vmem:[%s23985_s1 + $0x230] sm:$0xff]  }
 0x3aa   : > { %16866 = vmatpush3.bf16.msra.mxu0 %v18546_v35 }
 0x3ab   : > { %16888 = vmatpush3.bf16.msra.mxu1 %v18547_v43  ;;  %16867 = vmatprep.subr.bf16.mxu0 %v18548_v61  ;;  %v7979_v43 = vadd.f32 %v16629_v55, %v7938_v53  ;;  %v18592_v55 = vld [vmem:[%s23985_s1 + $0x28] sm:$0xff]  }
 0x3ac   : > { %16889 = vmatprep.subr.bf16.mxu1 %v18549_v14  ;;  %v18564_v14 = vld [vmem:[%s23985_s1 + $0x1a8] sm:$0xff]  }
 0x3ae   : > { %16868 = vmatpush3.bf16.msra.mxu0 %v18550_v23  ;;  %v18566_v23 = vld [vmem:[%s23985_s1 + $0x1e0] sm:$0xff]  }
 0x3af   : > { %16890 = vmatpush3.bf16.msra.mxu1 %v18551_v27  ;;  %16869 = vmatprep.subr.bf16.mxu0 %v18552_v12  ;;  %v18568_v12 = vld [vmem:[%s23985_s1 + $0x220] sm:$0xff]  }
 0x3b0   : > { %16891 = vmatprep.subr.bf16.mxu1 %v18553_v29  ;;  %v18570_v29 = vld [vmem:[%s23985_s1 + $0x198] sm:$0xff]  }
 0x3b2   : > { %16870 = vmatpush3.bf16.msra.mxu0 %v18554_v13  ;;  %v22639_v13 = vld [vmem:[%s19166_s7 + $0x98] sm:$0x1] }
 0x3b3   : > { %16892 = vmatpush3.bf16.msra.mxu1 %v18555_v10  ;;  %16899 = vmatprep.subr.bf16.mxu0 %v18557_v18  ;;  %v10660_v54 = vunpack.c.l.bf16 %v22639_v13  ;;  %v9848_v10 = vrot.slane %v9800_v21, 2  ;;  %v10678_v18 = vrot.slane %v10659_v56, 1  ;;  %v18583_v21 = vld [vmem:[%s23985_s1 + $0xf8] sm:$0xff]   ;;  %v18613_v13 = vld [vmem:[%s23985_s1 + $0x80] sm:$0xff]  }
 0x3b4   : > { %17538 = vmatprep.subr.bf16.mxu1 %v18998_v42 }
 0x3b5   : > { %v8016_v59 = vpop.f32.mrf.mxu0  ;;  %10511 = vmatmul.mubr.bf16.vlgmr.msra.gmra.mxu0 %v9854_v1  ;;  %v10680_v0 = vrot.slane %v10660_v54, 1  ;;  %v9849_v22 = vsel %vm202_vm1, %v9846_v38, %v9848_v10  ;;  %v10679_v1 = vsel %vm194_vm0, %v10677_v3, %v10678_v18  ;;  %v18611_v38 = vld [vmem:[%s23985_s1 + $0xc0] sm:$0xff]   ;;  %v10684_v10 = vrot.slane %v10658_v48, 2 }
 0x3b6   : > { %10552 = vmatmul.mubr.bf16.vlgmr.msra.gmra.mxu1 %v9856_v2  ;;  %16900 = vmatpush3.bf16.msra.mxu0 %v18558_v44  ;;  %v8017_v9 = vadd.f32 %v8016_v59, %v7976_v17  ;;  %v9860_v4 = vpack.c.bf16 %v9849_v22, %v9847_v24  ;;  %v18588_v2 = vld [vmem:[%s23985_s1 + $0x30] sm:$0xff]   ;;  %v22716_v53 = vpop.f32.mrf.mxu1  ;;  %v18594_v59 = vld [vmem:[%s23985_s1 + $0x60] sm:$0xff]  }
 0x3b7   : > { %17539 = vmatpush3.bf16.msra.mxu1 %v18559_v45  ;;  %v17496_v35 = vpop.f32.mrf.mxu0  ;;  %16901 = vmatprep.subr.bf16.mxu0 %v18560_v20  ;;  %v10681_v44 = vsel %vm194_vm0, %v10678_v18, %v10680_v0  ;;  %v18589_v45 = vld [vmem:[%s23985_s1 + $0xb0] sm:$0xff]   ;;  %v18590_v20 = vld [vmem:[%s23985_s1 + $0x68] sm:$0xff]   ;;  %v18595_v17 = vld [vmem:[%s23985_s1 + $0xe0] sm:$0xff]   ;;  %v10687_v18 = vrot.slane %v10660_v54, 2 }
 0x3b8   : > { %17540 = vmatprep.subr.bf16.mxu1 %v18998_v42  ;;  %10592 = vmatprep.mubr.bf16.mxu0 %v9859_v41  ;;  %v8023_v50 = vmax.f32 %v8017_v9, 0.0  ;;  %v10726_v58 = vpack.c.bf16 %v10681_v44, %v10679_v1  ;;  %v18593_v41 = vld [vmem:[%s23985_s1 + $0xa8] sm:$0xff]   ;;  %v18597_v35 = vld [vmem:[%s23985_s1 + $0xa0] sm:$0xff]   ;;  %v18599_v9 = vld [vmem:[%s23985_s1 + $0xd8] sm:$0xff]  }
 0x3b9   : > { %v8019_v61 = vpop.f32.mrf.mxu0  ;;  %17554 = vmatprep.mubr.msk.bf16.mxu1 %vm18999_vm2, %v18998_v42  ;;  %v18616_v44 = vld [vmem:[%s23985_s1 + $0x178] sm:$0xff]  }
 0x3ba   : > { %v8020_v8 = vadd.f32 %v8019_v61, %v7979_v43  ;;  %16902 = vmatpush3.bf16.msra.mxu0 %v18561_v5  ;;  %v18596_v5 = vld [vmem:[%s23985_s1 + $0x20] sm:$0xff]   ;;  %v18600_v43 = vld [vmem:[%s23985_s1 + $0x18] sm:$0xff]  }
 0x3bb   : > { %17541 = vmatpush3.bf16.msra.mxu1 %v18562_v32  ;;  %v17497_v52 = vpop.f32.mrf.mxu0  ;;  %16903 = vmatprep.subr.bf16.mxu0 %v18563_v60  ;;  %v16656_v32 = vpop.f32.mrf.mxu1  ;;  %v18598_v60 = vld [vmem:[%s23985_s1 + $0x58] sm:$0xff]  }
 0x3bc   : > { %v8024_v49 = vmax.f32 %v8020_v8, 0.0  ;;  %17542 = vmatprep.subr.bf16.mxu1 %v18998_v42  ;;  %v18601_v61 = vld [vmem:[%s23985_s1 + $0x98] sm:$0xff]   ;;  %v18604_v52 = vld [vmem:[%s23985_s1 + $0x10] sm:$0xff]   ;;  %v16657_v24 = vadd.f32 %v16656_v32, %v22716_v53 }
 0x3bd   : > { %v22748_v8 = vpop.f32.mrf.mxu1 }
 0x3be   : > { %v15714_v27 = vpack.c.bf16 %v8024_v49, %v8023_v50  ;;  %16904 = vmatpush3.bf16.msra.mxu0 %v18564_v14  ;;  %v18602_v14 = vld [vmem:[%s23985_s1 + $0x50] sm:$0xff]   ;;  %v18606_v49 = vld [vmem:[%s23985_s1 + $0x48] sm:$0xff]  }
 0x3bf   : > { %17543 = vmatpush3.bf16.msra.mxu1 %v18565_v26  ;;  %16905 = vmatprep.subr.bf16.mxu0 %v18566_v23  ;;  %v18603_v26 = vld [vmem:[%s23985_s1 + $0xd0] sm:$0xff]  }
 0x3c0   : > { %15758 = vst [vmem:[%s20125_s20 + $0x40] sm:$0xff] %v15714_v27   ;;  %17544 = vmatprep.subr.bf16.mxu1 %v18998_v42  ;;  %v18605_v50 = vld [vmem:[%s23985_s1 + $0x90] sm:$0xff]   ;;  %v16659_v27 = vpop.f32.mrf.mxu1 }
 0x3c2   : > { %16906 = vmatpush3.bf16.msra.mxu0 %v18567_v47  ;;  %v22766_v47 = vld [vmem:[%s19166_s7 + $0xa4] sm:$0x1] }
 0x3c3   : > { %17545 = vmatpush3.bf16.msra.mxu1 %v18568_v12  ;;  %16907 = vmatprep.subr.bf16.mxu0 %v18569_v31  ;;  %v18607_v12 = vld [vmem:[%s23985_s1 + $0xc8] sm:$0xff]  }
 0x3c4   : > { %17546 = vmatprep.subr.bf16.mxu1 %v18998_v42  ;;  %v22772_v31 = vld [vmem:[%s19166_s7 + $0xa8] sm:$0xff]  }
 0x3c5   : > { %v10671_v40 = vunpack.c.l.bf16 %v22772_v31 }
 0x3c6   : > { %16908 = vmatpush3.bf16.msra.mxu0 %v18570_v29  ;;  %v22775_v29 = vld [vmem:[%s19166_s7 + $0xb0] sm:$0x1] }
 0x3c7   : > { %17547 = vmatpush3.bf16.msra.mxu1 %v18571_v30  ;;  %16909 = vmatprep.subr.bf16.mxu0 %v18572_v51  ;;  %v18608_v51 = vld [vmem:[%s23985_s1 + $0x8] sm:$0xff]   ;;  %v10673_v3 = vunpack.c.l.bf16 %v22775_v29  ;;  %v10711_v54 = vrot.slane %v10671_v40, 1  ;;  %v18670_v29 = vld [vmem:[%s23985_s1 + $0x40] sm:$0xff]  }
 0x3c8   : > { %17548 = vmatprep.subr.bf16.mxu1 %v18998_v42 }
 0x3ca   : > { %16910 = vmatpush3.bf16.msra.mxu0 %v18573_v16  ;;  %v10664_v16 = vunpack.c.l.bf16 %v22694_v39 }
 0x3cb   : > { %17549 = vmatpush3.bf16.msra.mxu1 %v18574_v46  ;;  %16911 = vmatprep.subr.bf16.mxu0 %v18575_v7  ;;  %v10665_v46 = vunpack.c.h.bf16 %v22694_v39 }
 0x3cc   : > { %17550 = vmatprep.subr.bf16.mxu1 %v18998_v42  ;;  %v10701_v48 = vrot.slane %v10664_v16, 2 }
 0x3ce   : > { %16912 = vmatpush3.bf16.msra.mxu0 %v18576_v19  ;;  %v18609_v19 = vld [vmem:[%s23985_s1 + $0x88] sm:$0xff]  }
 0x3cf   : > { %17551 = vmatpush3.bf16.msra.mxu1 %v18577_v11  ;;  %16913 = vmatprep.subr.bf16.mxu0 %v18578_v36  ;;  %v18610_v11 = vld [vmem:[%s23985_s1 + $0x40] sm:$0xff]   ;;  %v10666_v36 = vunpack.c.l.bf16 %v22766_v47 }
 0x3d0   : > { %17552 = vmatprep.subr.bf16.mxu1 %v18998_v42  ;;  %v18646_v47 = vld [vmem:[%s23985_s1 + $0x100] sm:$0xff]  }
 0x3d2   : > { %16914 = vmatpush3.bf16.msra.mxu0 %v18579_v15  ;;  %v10672_v15 = vunpack.c.h.bf16 %v22772_v31 }
 0x3d3   : > { %17553 = vmatpush3.bf16.msra.mxu1 %v18580_v57  ;;  %16930 = vmatprep.subr.bf16.mxu0 %v18582_v63  ;;  %v10685_v57 = vrot.slane %v10659_v56, 2  ;;  %v18612_v63 = vld [vmem:[%s23985_s1] sm:$0xff]   ;;  %v10704_v56 = vrot.slane %v10666_v36, 2 }
 0x3d4   : > { %16952 = vmatprep.subr.bf16.mxu1 %v18583_v21  ;;  %v10702_v21 = vrot.slane %v10665_v46, 2 }
 0x3d5   : > { %10593 = vmatmul.mubr.bf16.vlgmr.msra.gmra.mxu0 %v22510_v6  ;;  %v18591_v6 = vld [vmem:[%s23985_s1 + $0xe8] sm:$0xff]   ;;  %v16677_v23 = vpop.f32.mrf.mxu0 }
 0x3d6   : > { %17555 = vmatmul.mubr.bf16.vlgmr.msra.gmra.mxu1 %v9860_v4  ;;  %16931 = vmatpush3.bf16.msra.mxu0 %v18584_v28  ;;  %v16699_v30 = vpop.f32.mrf.mxu1  ;;  %v10712_v28 = vrot.slane %v10672_v15, 1  ;;  %v10686_v4 = vsel %vm202_vm1, %v10684_v10, %v10685_v57  ;;  %v10705_v53 = vsel %vm202_vm1, %v10702_v21, %v10704_v56  ;;  %v18627_v10 = vld [vmem:[%s23985_s1 + $0x1a8] sm:$0xff]   ;;  %v18631_v56 = vld [vmem:[%s23985_s1 + $0x1a0] sm:$0xff]  }
 0x3d7   : > { %16953 = vmatpush3.bf16.msra.mxu1 %v18585_v33  ;;  %16932 = vmatprep.subr.bf16.mxu0 %v18586_v34  ;;  %v16678_v7 = vpop.f32.mrf.mxu0  ;;  %v10714_v33 = vrot.slane %v10673_v3, 1  ;;  %v10688_v34 = vsel %vm202_vm1, %v10685_v57, %v10687_v18 }
 0x3d8   : > { %16954 = vmatprep.subr.bf16.mxu1 %v18587_v37  ;;  %11342 = vmatprep.mubr.bf16.mxu0 %v10726_v58  ;;  %v16700_v0 = vpop.f32.mrf.mxu1  ;;  %v16679_v1 = vadd.f32 %v16678_v7, %v16677_v23  ;;  %v18617_v58 = vld [vmem:[%s23985_s1 + $0x1f8] sm:$0xff]  }
 0x3d9   : > { %11383 = vmatprep.mubr.bf16.mxu1 %v22694_v39  ;;  %v16680_v22 = vpop.f32.mrf.mxu0  ;;  %v18644_v39 = vld [vmem:[%s23985_s1 + $0x140] sm:$0xff]  }
 0x3da   : > { %16933 = vmatpush3.bf16.msra.mxu0 %v18588_v2  ;;  %v16702_v37 = vpop.f32.mrf.mxu1  ;;  %v8726_v2 = vadd.f32 %v22549_v62, %v16657_v24 }
 0x3db   : > { %16955 = vmatpush3.bf16.msra.mxu1 %v18589_v45  ;;  %16934 = vmatprep.subr.bf16.mxu0 %v18590_v20  ;;  %v16681_v45 = vpop.f32.mrf.mxu0  ;;  %v18618_v20 = vld [vmem:[%s23985_s1 + $0x138] sm:$0xff]  }
 0x3dc   : > { %16956 = vmatprep.subr.bf16.mxu1 %v18591_v6  ;;  %v10703_v6 = vsel %vm202_vm1, %v10701_v48, %v10702_v21  ;;  %v8767_v32 = vadd.f32 %v16679_v1, %v8726_v2  ;;  %v18629_v48 = vld [vmem:[%s23985_s1 + $0x1e0] sm:$0xff]   ;;  %v18633_v1 = vld [vmem:[%s23985_s1 + $0x1d8] sm:$0xff]  }
 0x3de   : > { %16935 = vmatpush3.bf16.msra.mxu0 %v18592_v55  ;;  %v16660_v55 = vadd.f32 %v16659_v27, %v22748_v8  ;;  %v18622_v8 = vld [vmem:[%s23985_s1 + $0x130] sm:$0xff]   ;;  %v18624_v27 = vld [vmem:[%s23985_s1 + $0x168] sm:$0xff]  }
 0x3df   : > { %16957 = vmatpush3.bf16.msra.mxu1 %v18593_v41  ;;  %16936 = vmatprep.subr.bf16.mxu0 %v18594_v59  ;;  %v10727_v41 = vpack.c.bf16 %v10688_v34, %v10686_v4  ;;  %v18619_v59 = vld [vmem:[%s23985_s1 + $0x1b8] sm:$0xff]  }
 0x3e0   : > { %16958 = vmatprep.subr.bf16.mxu1 %v18595_v17  ;;  %v10713_v17 = vsel %vm194_vm0, %v10711_v54, %v10712_v28  ;;  %v18634_v4 = vld [vmem:[%s23985_s1 + $0x118] sm:$0xff]  }
 0x3e1   : > { %v18635_v34 = vld [vmem:[%s23985_s1 + $0x198] sm:$0xff]  }
 0x3e2   : > { %16937 = vmatpush3.bf16.msra.mxu0 %v18596_v5  ;;  %v10715_v5 = vsel %vm194_vm0, %v10712_v28, %v10714_v33  ;;  %v18632_v33 = vld [vmem:[%s23985_s1 + $0x158] sm:$0xff]  }
 0x3e3   : > { %16959 = vmatpush3.bf16.msra.mxu1 %v18597_v35  ;;  %16938 = vmatprep.subr.bf16.mxu0 %v18598_v60  ;;  %v16701_v35 = vadd.f32 %v16700_v0, %v16699_v30  ;;  %v18620_v60 = vld [vmem:[%s23985_s1 + $0x170] sm:$0xff]   ;;  %v10732_v23 = vpack.c.bf16 %v10715_v5, %v10713_v17  ;;  %v18628_v0 = vld [vmem:[%s23985_s1 + $0x160] sm:$0xff]   ;;  %v10694_v17 = vrot.slane %v10664_v16, 1  ;;  %v18641_v5 = vld [vmem:[%s23985_s1 + $0x1c8] sm:$0xff]   ;;  %v10697_v16 = vrot.slane %v10666_v36, 1 }
 0x3e4   : > { %16960 = vmatprep.subr.bf16.mxu1 %v18599_v9  ;;  %v16682_v9 = vadd.f32 %v16681_v45, %v16680_v22  ;;  %v18637_v45 = vld [vmem:[%s23985_s1 + $0x1d0] sm:$0xff]  }
 0x3e6   : > { %16939 = vmatpush3.bf16.msra.mxu0 %v18600_v43  ;;  %v16703_v43 = vpop.f32.mrf.mxu1 }
 0x3e7   : > { %16961 = vmatpush3.bf16.msra.mxu1 %v18601_v61  ;;  %16940 = vmatprep.subr.bf16.mxu0 %v18602_v14  ;;  %v18621_v61 = vld [vmem:[%s23985_s1 + $0x1f0] sm:$0xff]   ;;  %v10730_v14 = vpack.c.bf16 %v10705_v53, %v10703_v6  ;;  %v16704_v7 = vadd.f32 %v16703_v43, %v16702_v37 }
 0x3e8   : > { %16962 = vmatprep.subr.bf16.mxu1 %v18603_v26  ;;  %v18636_v37 = vld [vmem:[%s23985_s1 + $0x150] sm:$0xff]  }
 0x3e9   : > { %v18638_v6 = vld [vmem:[%s23985_s1 + $0x110] sm:$0xff]  }
 0x3ea   : > { %16941 = vmatpush3.bf16.msra.mxu0 %v18604_v52  ;;  %v18623_v52 = vld [vmem:[%s23985_s1 + $0x1b0] sm:$0xff]  }
 0x3eb   : > { %16963 = vmatpush3.bf16.msra.mxu1 %v18605_v50  ;;  %16942 = vmatprep.subr.bf16.mxu0 %v18606_v49  ;;  %v8729_v50 = vadd.f32 %v22549_v62, %v16660_v55  ;;  %v18626_v62 = vld [vmem:[%s23985_s1 + $0x128] sm:$0xff]   ;;  %v18639_v53 = vld [vmem:[%s23985_s1 + $0x190] sm:$0xff]  }
 0x3ec   : > { %16964 = vmatprep.subr.bf16.mxu1 %v18607_v12  ;;  %v8808_v12 = vadd.f32 %v16701_v35, %v8767_v32  ;;  %v18640_v55 = vld [vmem:[%s23985_s1 + $0x148] sm:$0xff]   ;;  %v10695_v32 = vrot.slane %v10665_v46, 1  ;;  %v18645_v46 = vld [vmem:[%s23985_s1 + $0x1c0] sm:$0xff]  }
 0x3ed   : > { %v18642_v35 = vld [vmem:[%s23985_s1 + $0x108] sm:$0xff]  }
 0x3ee   : > { %16943 = vmatpush3.bf16.msra.mxu0 %v18608_v51  ;;  %v8770_v51 = vadd.f32 %v16682_v9, %v8729_v50  ;;  %v18643_v9 = vld [vmem:[%s23985_s1 + $0x188] sm:$0xff]   ;;  %v18648_v50 = vld [vmem:[%s23985_s1 + $0x78] sm:$0xff]  }
 0x3ef   : > { %16965 = vmatpush3.bf16.msra.mxu1 %v18609_v19  ;;  %16944 = vmatprep.subr.bf16.mxu0 %v18610_v11 }
 0x3f0   : > { %16966 = vmatprep.subr.bf16.mxu1 %v18611_v38  ;;  %v8811_v21 = vadd.f32 %v16704_v7, %v8770_v51  ;;  %v18652_v51 = vld [vmem:[%s23985_s1 + $0x70] sm:$0xff]  }
 0x3f2   : > { %16945 = vmatpush3.bf16.msra.mxu0 %v18612_v63 }
 0x3f3   : > { %16967 = vmatpush3.bf16.msra.mxu1 %v18613_v13  ;;  %16974 = vmatprep.subr.bf16.mxu0 %v18616_v44  ;;  %v18630_v13 = vld [vmem:[%s23985_s1 + $0x120] sm:$0xff]  }
 0x3f4   : > { %16996 = vmatprep.subr.bf16.mxu1 %v18617_v58 }
 0x3f5   : > { %v16721_v26 = vpop.f32.mrf.mxu0  ;;  %11343 = vmatmul.mubr.bf16.vlgmr.msra.gmra.mxu0 %v22636_v25  ;;  %v18625_v25 = vld [vmem:[%s23985_s1 + $0x1e8] sm:$0xff]  }
 0x3f6   : > { %v8889_v49 = vpop.f32.mrf.mxu1  ;;  %11384 = vmatmul.mubr.bf16.vlgmr.msra.gmra.mxu1 %v10727_v41  ;;  %16975 = vmatpush3.bf16.msra.mxu0 %v18618_v20  ;;  %v22907_v41 = vld [vmem:[%s19166_s7 + $0x9c] sm:$0xff]  }
 0x3f7   : > { %16997 = vmatpush3.bf16.msra.mxu1 %v18619_v59  ;;  %v16722_v30 = vpop.f32.mrf.mxu0  ;;  %16976 = vmatprep.subr.bf16.mxu0 %v18620_v60  ;;  %v22910_v59 = vld [vmem:[%s19166_s7 + $0xa4] sm:$0x1]  ;;  %v11531_v60 = vunpack.c.l.bf16 %v22907_v41  ;;  %v11532_v43 = vunpack.c.h.bf16 %v22907_v41 }
 0x3f8   : > { %v16723_v19 = vadd.f32 %v16722_v30, %v16721_v26  ;;  %v17516_v11 = vpop.f32.mrf.mxu1  ;;  %16998 = vmatprep.subr.bf16.mxu1 %v18621_v61  ;;  %11424 = vmatprep.mubr.bf16.mxu0 %v10730_v14  ;;  %v11533_v61 = vunpack.c.l.bf16 %v22910_v59  ;;  %v10698_v14 = vsel %vm194_vm0, %v10695_v32, %v10697_v16 }
 0x3f9   : > { %v16724_v38 = vpop.f32.mrf.mxu0  ;;  %11465 = vmatprep.mubr.bf16.mxu1 %v10732_v23  ;;  %v11550_v36 = vrot.slane %v11531_v60, 1  ;;  %v11551_v26 = vrot.slane %v11532_v43, 1  ;;  %v18647_v23 = vld [vmem:[%s23985_s1 + $0x180] sm:$0xff]   ;;  %v18654_v11 = vld [vmem:[%s23985_s1 + $0x30] sm:$0xff]  }
 0x3fa   : > { %v8849_v57 = vadd.f32 %v16723_v19, %v8808_v12  ;;  %v8892_v18 = vpop.f32.mrf.mxu1  ;;  %16977 = vmatpush3.bf16.msra.mxu0 %v18622_v8  ;;  %v10696_v8 = vsel %vm194_vm0, %v10694_v17, %v10695_v32  ;;  %v18653_v19 = vld [vmem:[%s23985_s1 + $0x230] sm:$0xff]   ;;  %v18676_v17 = vld [vmem:[%s23985_s1 + $0xb8] sm:$0xff]  }
 0x3fb   : > { %16999 = vmatpush3.bf16.msra.mxu1 %v18623_v52  ;;  %v16725_v63 = vpop.f32.mrf.mxu0  ;;  %16978 = vmatprep.subr.bf16.mxu0 %v18624_v27  ;;  %v11553_v52 = vrot.slane %v11533_v61, 1  ;;  %v18650_v27 = vld [vmem:[%s23985_s1 + $0x238] sm:$0xff]   ;;  %v11552_v12 = vsel %vm194_vm0, %v11550_v36, %v11551_v26  ;;  %v18681_v36 = vld [vmem:[%s23985_s1 + $0x130] sm:$0xff]  }
 0x3fc   : > { %v16726_v24 = vadd.f32 %v16725_v63, %v16724_v38  ;;  %v17517_v22 = vpop.f32.mrf.mxu1  ;;  %17000 = vmatprep.subr.bf16.mxu1 %v18625_v25  ;;  %v8890_v54 = vadd.f32 %v8889_v49, %v8849_v57  ;;  %v10729_v49 = vpack.c.bf16 %v10698_v14, %v10696_v8  ;;  %v18651_v25 = vld [vmem:[%s23985_s1 + $0x38] sm:$0xff]   ;;  %v18656_v38 = vld [vmem:[%s23985_s1 + $0x228] sm:$0xff]   ;;  %v18658_v57 = vld [vmem:[%s23985_s1 + $0x60] sm:$0xff]  }
 0x3fd   : > { %v11554_v30 = vsel %vm194_vm0, %v11551_v26, %v11553_v52  ;;  %v18661_v63 = vld [vmem:[%s23985_s1 + $0x58] sm:$0xff]   ;;  %v18665_v22 = vld [vmem:[%s23985_s1 + $0x210] sm:$0xff]   ;;  %v18682_v14 = vld [vmem:[%s23985_s1 + $0xe8] sm:$0xff]  }
 0x3fe   : > { %v8852_v28 = vadd.f32 %v16726_v24, %v8811_v21  ;;  %16979 = vmatpush3.bf16.msra.mxu0 %v18626_v62  ;;  %v8896_v58 = vmax.f32 %v8890_v54, 0.0  ;;  %v11599_v7 = vpack.c.bf16 %v11554_v30, %v11552_v12  ;;  %v18655_v62 = vld [vmem:[%s23985_s1 + $0x68] sm:$0xff]   ;;  %v18663_v21 = vld [vmem:[%s23985_s1 + $0x18] sm:$0xff]   ;;  %v18664_v24 = vld [vmem:[%s23985_s1 + $0x50] sm:$0xff]  }
 0x3ff   : > { %17001 = vmatpush3.bf16.msra.mxu1 %v18627_v10  ;;  %16980 = vmatprep.subr.bf16.mxu0 %v18628_v0  ;;  %v18657_v10 = vld [vmem:[%s23985_s1 + $0x28] sm:$0xff]   ;;  %v18660_v0 = vld [vmem:[%s23985_s1 + $0x20] sm:$0xff]   ;;  %v23019_v54 = vld [vmem:[%s19166_s7 + $0xb0] sm:$0x1] }
 0x400   : > { %v8893_v44 = vadd.f32 %v8892_v18, %v8852_v28  ;;  %17002 = vmatprep.subr.bf16.mxu1 %v18629_v48  ;;  %v18659_v18 = vld [vmem:[%s23985_s1 + $0x220] sm:$0xff]   ;;  %v18662_v48 = vld [vmem:[%s23985_s1 + $0x218] sm:$0xff]   ;;  %v18667_v28 = vld [vmem:[%s23985_s1 + $0x48] sm:$0xff]  }
 0x401   : > { %v18677_v32 = vld [vmem:[%s23985_s1 + $0x138] sm:$0xff]  }
 0x402   : > { %v8897_v2 = vmax.f32 %v8893_v44, 0.0  ;;  %16981 = vmatpush3.bf16.msra.mxu0 %v18630_v13  ;;  %v18666_v13 = vld [vmem:[%s23985_s1 + $0x10] sm:$0xff]  }
 0x403   : > { %17003 = vmatpush3.bf16.msra.mxu1 %v18631_v56  ;;  %16982 = vmatprep.subr.bf16.mxu0 %v18632_v33  ;;  %v23015_v56 = vld [vmem:[%s19166_s7 + $0xa8] sm:$0xff]   ;;  %v10718_v33 = vrot.slane %v10671_v40, 2  ;;  %v18671_v40 = vld [vmem:[%s23985_s1 + $0x200] sm:$0xff]  }
 0x404   : > { %v15719_v20 = vpack.c.bf16 %v8897_v2, %v8896_v58  ;;  %17004 = vmatprep.subr.bf16.mxu1 %v18633_v1  ;;  %v10719_v1 = vrot.slane %v10672_v15, 2  ;;  %v11537_v44 = vunpack.c.l.bf16 %v23015_v56  ;;  %v11539_v58 = vunpack.c.l.bf16 %v23019_v54 }
 0x406   : > { %15759 = vst [vmem:[%s20125_s20 + $0x48] sm:$0xff] %v15719_v20   ;;  %16983 = vmatpush3.bf16.msra.mxu0 %v18634_v4  ;;  %v10721_v4 = vrot.slane %v10673_v3, 2  ;;  %v11574_v15 = vrot.slane %v11537_v44, 2  ;;  %v10720_v3 = vsel %vm202_vm1, %v10718_v33, %v10719_v1  ;;  %v11577_v20 = vrot.slane %v11539_v58, 2  ;;  %v23142_v33 = vld [vmem:[%s19166_s7 + $0xb4] sm:$0xff]  }
 0x407   : > { %17005 = vmatpush3.bf16.msra.mxu1 %v18635_v34  ;;  %16984 = vmatprep.subr.bf16.mxu0 %v18636_v37  ;;  %v18668_v34 = vld [vmem:[%s23985_s1 + $0x208] sm:$0xff]   ;;  %v11538_v37 = vunpack.c.h.bf16 %v23015_v56  ;;  %v11567_v59 = vrot.slane %v11537_v44, 1  ;;  %v18703_v44 = vld [vmem:[%s23985_s1 + $0x140] sm:$0xff]  }
 0x408   : > { %17006 = vmatprep.subr.bf16.mxu1 %v18637_v45  ;;  %v10722_v2 = vsel %vm202_vm1, %v10719_v1, %v10721_v4  ;;  %v23145_v1 = vld [vmem:[%s19166_s7 + $0xbc] sm:$0x1]  ;;  %v11557_v4 = vrot.slane %v11531_v60, 2 }
 0x409   : > { %v11575_v45 = vrot.slane %v11538_v37, 2 }
 0x40a   : > { %16985 = vmatpush3.bf16.msra.mxu0 %v18638_v6  ;;  %v18672_v6 = vld [vmem:[%s23985_s1] sm:$0xff]  }
 0x40b   : > { %17007 = vmatpush3.bf16.msra.mxu1 %v18639_v53  ;;  %16986 = vmatprep.subr.bf16.mxu0 %v18640_v55  ;;  %v18673_v53 = vld [vmem:[%s23985_s1 + $0xf8] sm:$0xff]   ;;  %v11578_v16 = vsel %vm202_vm1, %v11575_v45, %v11577_v20  ;;  %v11545_v20 = vunpack.c.h.bf16 %v23142_v33 }
 0x40c   : > { %17008 = vmatprep.subr.bf16.mxu1 %v18641_v5  ;;  %v18674_v55 = vld [vmem:[%s23985_s1 + $0x178] sm:$0xff]   ;;  %v10733_v5 = vpack.c.bf16 %v10722_v2, %v10720_v3  ;;  %v18701_v2 = vld [vmem:[%s23985_s1 + $0x108] sm:$0xff]  }
 0x40e   : > { %16987 = vmatpush3.bf16.msra.mxu0 %v18642_v35  ;;  %v18678_v35 = vld [vmem:[%s23985_s1 + $0xf0] sm:$0xff]  }
 0x40f   : > { %17009 = vmatpush3.bf16.msra.mxu1 %v18643_v9  ;;  %16988 = vmatprep.subr.bf16.mxu0 %v18644_v39  ;;  %v11576_v9 = vsel %vm202_vm1, %v11574_v15, %v11575_v45  ;;  %v11560_v15 = vrot.slane %v11533_v61, 2  ;;  %v11544_v45 = vunpack.c.l.bf16 %v23142_v33  ;;  %v11568_v61 = vrot.slane %v11538_v37, 1 }
 0x410   : > { %17010 = vmatprep.subr.bf16.mxu1 %v18645_v46  ;;  %v18679_v46 = vld [vmem:[%s23985_s1 + $0x170] sm:$0xff]   ;;  %v11603_v8 = vpack.c.bf16 %v11578_v16, %v11576_v9 }
 0x411   : > { %v11584_v54 = vrot.slane %v11544_v45, 1 }
 0x412   : > { %16989 = vmatpush3.bf16.msra.mxu0 %v18646_v47  ;;  %v18680_v47 = vld [vmem:[%s23985_s1 + $0xb0] sm:$0xff]  }
 0x413   : > { %17011 = vmatpush3.bf16.msra.mxu1 %v18647_v23  ;;  %17558 = vmatprep.subr.bf16.mxu0 %v18998_v42  ;;  %v18683_v23 = vld [vmem:[%s23985_s1 + $0x168] sm:$0xff]  }
 0x414   : > { %17027 = vmatprep.subr.bf16.mxu1 %v18648_v50  ;;  %v18684_v50 = vld [vmem:[%s23985_s1 + $0xa8] sm:$0xff]  }
 0x415   : > { %11425 = vmatmul.mubr.bf16.vlgmr.msra.gmra.mxu0 %v10729_v49  ;;  %v16752_v39 = vpop.f32.mrf.mxu0  ;;  %v18685_v49 = vld [vmem:[%s23985_s1 + $0x128] sm:$0xff]  }
 0x416   : > { %11466 = vmatmul.mubr.bf16.vlgmr.msra.gmra.mxu1 %v22772_v31  ;;  %17559 = vmatpush3.bf16.msra.mxu0 %v18650_v27  ;;  %v18669_v31 = vld [vmem:[%s23985_s1 + $0x8] sm:$0xff]   ;;  %v23088_v26 = vpop.f32.mrf.mxu1  ;;  %v18686_v27 = vld [vmem:[%s23985_s1 + $0xe0] sm:$0xff]  }
 0x417   : > { %17028 = vmatpush3.bf16.msra.mxu1 %v18651_v25  ;;  %17560 = vmatprep.subr.bf16.mxu0 %v18998_v42  ;;  %v16753_v52 = vpop.f32.mrf.mxu0  ;;  %v18687_v25 = vld [vmem:[%s23985_s1 + $0x160] sm:$0xff]  }
 0x418   : > { %17029 = vmatprep.subr.bf16.mxu1 %v18652_v51  ;;  %17574 = vmatprep.mubr.msk.bf16.mxu0 %vm18999_vm2, %v18998_v42  ;;  %v16775_v12 = vpop.f32.mrf.mxu1  ;;  %v18688_v51 = vld [vmem:[%s23985_s1 + $0xa0] sm:$0xff]  }
 0x419   : > { %12215 = vmatprep.mubr.bf16.mxu1 %v11599_v7  ;;  %v16755_v30 = vpop.f32.mrf.mxu0  ;;  %v18689_v7 = vld [vmem:[%s23985_s1 + $0x120] sm:$0xff]  }
 0x41a   : > { %17561 = vmatpush3.bf16.msra.mxu0 %v18653_v19  ;;  %v18690_v19 = vld [vmem:[%s23985_s1 + $0xd8] sm:$0xff]  }
 0x41b   : > { %17030 = vmatpush3.bf16.msra.mxu1 %v18654_v11  ;;  %17562 = vmatprep.subr.bf16.mxu0 %v18998_v42  ;;  %v16777_v11 = vpop.f32.mrf.mxu1 }
 0x41c   : > { %17031 = vmatprep.subr.bf16.mxu1 %v18655_v62  ;;  %v16756_v62 = vpop.f32.mrf.mxu0 }
 0x41e   : > { %17563 = vmatpush3.bf16.msra.mxu0 %v18656_v38  ;;  %v18691_v38 = vld [vmem:[%s23985_s1 + $0x158] sm:$0xff]  }
 0x41f   : > { %17032 = vmatpush3.bf16.msra.mxu1 %v18657_v10  ;;  %17564 = vmatprep.subr.bf16.mxu0 %v18998_v42  ;;  %v18692_v10 = vld [vmem:[%s23985_s1 + $0x98] sm:$0xff]  }
 0x420   : > { %17033 = vmatprep.subr.bf16.mxu1 %v18658_v57 }
 0x422   : > { %17565 = vmatpush3.bf16.msra.mxu0 %v18659_v18  ;;  %v18693_v18 = vld [vmem:[%s23985_s1 + $0x118] sm:$0xff]  }
 0x423   : > { %17034 = vmatpush3.bf16.msra.mxu1 %v18660_v0  ;;  %17566 = vmatprep.subr.bf16.mxu0 %v18998_v42  ;;  %v18694_v0 = vld [vmem:[%s23985_s1 + $0xd0] sm:$0xff]  }
 0x424   : > { %17035 = vmatprep.subr.bf16.mxu1 %v18661_v63  ;;  %v16778_v63 = vpop.f32.mrf.mxu1 }
 0x425   : > { %v16779_v16 = vadd.f32 %v16778_v63, %v16777_v11  ;;  %v18709_v11 = vld [vmem:[%s23985_s1 + $0x238] sm:$0xff]  }
 0x426   : > { %17567 = vmatpush3.bf16.msra.mxu0 %v18662_v48  ;;  %v18695_v48 = vld [vmem:[%s23985_s1 + $0x150] sm:$0xff]  }
 0x427   : > { %17036 = vmatpush3.bf16.msra.mxu1 %v18663_v21  ;;  %17568 = vmatprep.subr.bf16.mxu0 %v18998_v42  ;;  %v18696_v21 = vld [vmem:[%s23985_s1 + $0x90] sm:$0xff]  }
 0x428   : > { %17037 = vmatprep.subr.bf16.mxu1 %v18664_v24 }
 0x42a   : > { %17569 = vmatpush3.bf16.msra.mxu0 %v18665_v22 }
 0x42b   : > { %17038 = vmatpush3.bf16.msra.mxu1 %v18666_v13  ;;  %17570 = vmatprep.subr.bf16.mxu0 %v18998_v42  ;;  %v18697_v13 = vld [vmem:[%s23985_s1 + $0x110] sm:$0xff]  }
 0x42c   : > { %17039 = vmatprep.subr.bf16.mxu1 %v18667_v28  ;;  %v18698_v28 = vld [vmem:[%s23985_s1 + $0xc8] sm:$0xff]  }
 0x42e   : > { %17571 = vmatpush3.bf16.msra.mxu0 %v18668_v34  ;;  %v18699_v34 = vld [vmem:[%s23985_s1 + $0x148] sm:$0xff]  }
 0x42f   : > { %17040 = vmatpush3.bf16.msra.mxu1 %v18669_v31  ;;  %17572 = vmatprep.subr.bf16.mxu0 %v18998_v42  ;;  %v16754_v31 = vadd.f32 %v16753_v52, %v16752_v39 }
 0x430   : > { %17041 = vmatprep.subr.bf16.mxu1 %v18670_v29  ;;  %v11558_v29 = vrot.slane %v11532_v43, 2  ;;  %v16757_v43 = vadd.f32 %v16756_v62, %v16755_v30  ;;  %v18710_v62 = vld [vmem:[%s23985_s1 + $0x1f0] sm:$0xff]  }
 0x432   : > { %17573 = vmatpush3.bf16.msra.mxu0 %v18671_v40  ;;  %v18700_v40 = vld [vmem:[%s23985_s1 + $0x88] sm:$0xff]   ;;  %v11559_v37 = vsel %vm202_vm1, %v11557_v4, %v11558_v29 }
 0x433   : > { %17042 = vmatpush3.bf16.msra.mxu1 %v18672_v6  ;;  %17049 = vmatprep.subr.bf16.mxu0 %v18673_v53  ;;  %v18702_v6 = vld [vmem:[%s23985_s1 + $0xc0] sm:$0xff]   ;;  %v11570_v53 = vrot.slane %v11539_v58, 1  ;;  %v11585_v58 = vrot.slane %v11545_v20, 1  ;;  %v18714_v4 = vld [vmem:[%s23985_s1 + $0x1a8] sm:$0xff]  }
 0x434   : > { %17071 = vmatprep.subr.bf16.mxu1 %v18674_v55  ;;  %v23177_v55 = vld [vmem:[%s23986_s2] ss:$0 sm:$0xff] }
 0x435   : > { %17575 = vmatmul.mubr.bf16.vlgmr.msra.gmra.mxu0 %v10733_v5  ;;  %v16796_v57 = vpop.f32.mrf.mxu0  ;;  %v16776_v5 = vadd.f32 %v16775_v12, %v23088_v26  ;;  %v9602_v9 = vadd.f32 %v23177_v55, %v16757_v43  ;;  %v11571_v26 = vsel %vm194_vm0, %v11568_v61, %v11570_v53  ;;  %v11586_v12 = vsel %vm194_vm0, %v11584_v54, %v11585_v58  ;;  %v18718_v43 = vld [vmem:[%s23985_s1 + $0x220] sm:$0xff]   ;;  %v18722_v53 = vld [vmem:[%s23985_s1 + $0x1d0] sm:$0xff]  }
 0x436   : > { %12216 = vmatmul.mubr.bf16.vlgmr.msra.gmra.mxu1 %v22907_v41  ;;  %17050 = vmatpush3.bf16.msra.mxu0 %v18676_v17  ;;  %v23133_v24 = vpop.f32.mrf.mxu1  ;;  %v11546_v41 = vunpack.c.l.bf16 %v23145_v1  ;;  %v9599_v17 = vadd.f32 %v23177_v55, %v16754_v31  ;;  %v18715_v31 = vld [vmem:[%s23985_s1 + $0x228] sm:$0xff]   ;;  %v18730_v1 = vld [vmem:[%s23985_s1 + $0x200] sm:$0xff]  }
 0x437   : > { %17072 = vmatpush3.bf16.msra.mxu1 %v18677_v32  ;;  %17051 = vmatprep.subr.bf16.mxu0 %v18678_v35  ;;  %v16797_v22 = vpop.f32.mrf.mxu0 }
 0x438   : > { %17073 = vmatprep.subr.bf16.mxu1 %v18679_v46  ;;  %12256 = vmatprep.mubr.bf16.mxu0 %v23015_v56  ;;  %v16819_v3 = vpop.f32.mrf.mxu1  ;;  %v11587_v35 = vrot.slane %v11546_v41, 1  ;;  %v16798_v39 = vadd.f32 %v16797_v22, %v16796_v57  ;;  %v18704_v46 = vld [vmem:[%s23985_s1 + $0x80] sm:$0xff]   ;;  %v9640_v52 = vadd.f32 %v16776_v5, %v9599_v17  ;;  %v18723_v17 = vld [vmem:[%s23985_s1 + $0x190] sm:$0xff]  }
 0x439   : > { %12297 = vmatprep.mubr.bf16.mxu1 %v11603_v8  ;;  %v16799_v60 = vpop.f32.mrf.mxu0  ;;  %v11569_v8 = vsel %vm194_vm0, %v11567_v59, %v11568_v61  ;;  %v18720_v59 = vld [vmem:[%s23985_s1 + $0x198] sm:$0xff]   ;;  %v18724_v5 = vld [vmem:[%s23985_s1 + $0x210] sm:$0xff]  }
 0x43a   : > { %17052 = vmatpush3.bf16.msra.mxu0 %v18680_v47  ;;  %v16821_v32 = vpop.f32.mrf.mxu1  ;;  %v18705_v47 = vld [vmem:[%s23985_s1 + $0x100] sm:$0xff]   ;;  %v11588_v30 = vsel %vm194_vm0, %v11585_v58, %v11587_v35  ;;  %v18721_v61 = vld [vmem:[%s23985_s1 + $0x218] sm:$0xff]   ;;  %v18727_v58 = vld [vmem:[%s23985_s1 + $0x208] sm:$0xff]  }
 0x43b   : > { %17074 = vmatpush3.bf16.msra.mxu1 %v18681_v36  ;;  %17053 = vmatprep.subr.bf16.mxu0 %v18682_v14  ;;  %v16800_v56 = vpop.f32.mrf.mxu0  ;;  %v11561_v36 = vsel %vm202_vm1, %v11558_v29, %v11560_v15  ;;  %v18707_v14 = vld [vmem:[%s23985_s1 + $0x1f8] sm:$0xff]   ;;  %v11605_v57 = vpack.c.bf16 %v11588_v30, %v11586_v12 }
 0x43c   : > { %17075 = vmatprep.subr.bf16.mxu1 %v18683_v23  ;;  %v16801_v23 = vadd.f32 %v16800_v56, %v16799_v60  ;;  %v18717_v60 = vld [vmem:[%s23985_s1 + $0x1a0] sm:$0xff]   ;;  %v18725_v56 = vld [vmem:[%s23985_s1 + $0x1c8] sm:$0xff]   ;;  %v23322_v12 = vld [vmem:[%s19166_s7 + $0xb4] sm:$0xff]  }
 0x43d   : > { %v18735_v30 = vld [vmem:[%s23985_s1 + $0xb8] sm:$0xff]  }
 0x43e   : > { %17054 = vmatpush3.bf16.msra.mxu0 %v18684_v50  ;;  %v16822_v50 = vpop.f32.mrf.mxu1 }
 0x43f   : > { %17076 = vmatpush3.bf16.msra.mxu1 %v18685_v49  ;;  %17055 = vmatprep.subr.bf16.mxu0 %v18686_v27  ;;  %v11600_v49 = vpack.c.bf16 %v11561_v36, %v11559_v37  ;;  %v18708_v27 = vld [vmem:[%s23985_s1 + $0x1b8] sm:$0xff]   ;;  %v18726_v37 = vld [vmem:[%s23985_s1 + $0x188] sm:$0xff]   ;;  %v18729_v36 = vld [vmem:[%s23985_s1 + $0x180] sm:$0xff]  }
 0x440   : > { %17077 = vmatprep.subr.bf16.mxu1 %v18687_v25  ;;  %v9643_v25 = vadd.f32 %v16779_v16, %v9602_v9  ;;  %v18728_v16 = vld [vmem:[%s23985_s1 + $0x1c0] sm:$0xff]  }
 0x442   : > { %17056 = vmatpush3.bf16.msra.mxu0 %v18688_v51  ;;  %v9681_v51 = vadd.f32 %v16798_v39, %v9640_v52  ;;  %v11591_v39 = vrot.slane %v11544_v45, 2  ;;  %v18733_v52 = vld [vmem:[%s23985_s1 + $0xf8] sm:$0xff]  }
 0x443   : > { %17078 = vmatpush3.bf16.msra.mxu1 %v18689_v7  ;;  %17057 = vmatprep.subr.bf16.mxu0 %v18690_v19  ;;  %v16820_v7 = vadd.f32 %v16819_v3, %v23133_v24  ;;  %v11602_v19 = vpack.c.bf16 %v11571_v26, %v11569_v8  ;;  %v18713_v24 = vld [vmem:[%s23985_s1 + $0x1e8] sm:$0xff]  }
 0x444   : > { %17079 = vmatprep.subr.bf16.mxu1 %v18691_v38  ;;  %v9684_v38 = vadd.f32 %v16801_v23, %v9643_v25  ;;  %v18734_v23 = vld [vmem:[%s23985_s1 + $0x38] sm:$0xff]   ;;  %v18736_v25 = vld [vmem:[%s23985_s1 + $0x70] sm:$0xff]  }
 0x445   : > { %v9722_v63 = vadd.f32 %v16820_v7, %v9681_v51  ;;  %v18737_v51 = vld [vmem:[%s23985_s1 + $0xf0] sm:$0xff]  }
 0x446   : > { %17058 = vmatpush3.bf16.msra.mxu0 %v18692_v10  ;;  %v16823_v10 = vadd.f32 %v16822_v50, %v16821_v32  ;;  %v23270_v32 = vld [vmem:[%s19166_s7 + $0xb0] sm:$0x1] }
 0x447   : > { %17080 = vmatpush3.bf16.msra.mxu1 %v18693_v18  ;;  %17059 = vmatprep.subr.bf16.mxu0 %v18694_v0  ;;  %v18711_v0 = vld [vmem:[%s23985_s1 + $0x1b0] sm:$0xff]   ;;  %v12406_v9 = vunpack.c.l.bf16 %v23270_v32  ;;  %v18766_v32 = vld [vmem:[%s23985_s1 + $0x178] sm:$0xff]  }
 0x448   : > { %17081 = vmatprep.subr.bf16.mxu1 %v18695_v48  ;;  %v18712_v48 = vld [vmem:[%s23985_s1 + $0x230] sm:$0xff]  }
 0x449   : > { %v18738_v7 = vld [vmem:[%s23985_s1 + $0x30] sm:$0xff]  }
 0x44a   : > { %17060 = vmatpush3.bf16.msra.mxu0 %v18696_v21 }
 0x44b   : > { %17082 = vmatpush3.bf16.msra.mxu1 %v18697_v13  ;;  %17061 = vmatprep.subr.bf16.mxu0 %v18698_v28  ;;  %v9725_v13 = vadd.f32 %v16823_v10, %v9684_v38  ;;  %v18741_v38 = vld [vmem:[%s23985_s1 + $0xe8] sm:$0xff]  }
 0x44c   : > { %17083 = vmatprep.subr.bf16.mxu1 %v18699_v34  ;;  %v18743_v10 = vld [vmem:[%s23985_s1 + $0xa8] sm:$0xff]  }
 0x44e   : > { %17062 = vmatpush3.bf16.msra.mxu0 %v18700_v40  ;;  %v18716_v40 = vld [vmem:[%s23985_s1 + $0x1e0] sm:$0xff]  }
 0x44f   : > { %17084 = vmatpush3.bf16.msra.mxu1 %v18701_v2  ;;  %17063 = vmatprep.subr.bf16.mxu0 %v18702_v6  ;;  %v18719_v6 = vld [vmem:[%s23985_s1 + $0x1d8] sm:$0xff]  }
 0x450   : > { %17085 = vmatprep.subr.bf16.mxu1 %v18703_v44  ;;  %v23267_v44 = vld [vmem:[%s19166_s7 + $0xa8] sm:$0xff]  }
 0x451   : > { %v12404_v54 = vunpack.c.l.bf16 %v23267_v44  ;;  %v12405_v35 = vunpack.c.h.bf16 %v23267_v44 }
 0x452   : > { %17064 = vmatpush3.bf16.msra.mxu0 %v18704_v46  ;;  %v11592_v46 = vrot.slane %v11545_v20, 2  ;;  %v18732_v20 = vld [vmem:[%s23985_s1 + $0x78] sm:$0xff]  }
 0x453   : > { %17086 = vmatpush3.bf16.msra.mxu1 %v18705_v47  ;;  %17093 = vmatprep.subr.bf16.mxu0 %v18707_v14  ;;  %v11594_v47 = vrot.slane %v11546_v41, 2  ;;  %v12423_v8 = vrot.slane %v12404_v54, 1  ;;  %v12424_v45 = vrot.slane %v12405_v35, 1  ;;  %v12426_v14 = vrot.slane %v12406_v9, 1 }
 0x454   : > { %17578 = vmatprep.subr.bf16.mxu1 %v18998_v42  ;;  %v11593_v41 = vsel %vm202_vm1, %v11591_v39, %v11592_v46  ;;  %v18761_v39 = vld [vmem:[%s23985_s1 + $0xc0] sm:$0xff]  }
 0x455   : > { %v9762_v18 = vpop.f32.mrf.mxu0  ;;  %12257 = vmatmul.mubr.bf16.vlgmr.msra.gmra.mxu0 %v11600_v49  ;;  %v11595_v26 = vsel %vm202_vm1, %v11592_v46, %v11594_v47  ;;  %v12425_v50 = vsel %vm194_vm0, %v12423_v8, %v12424_v45  ;;  %v12427_v49 = vsel %vm194_vm0, %v12424_v45, %v12426_v14  ;;  %v12430_v46 = vrot.slane %v12404_v54, 2  ;;  %v18762_v54 = vld [vmem:[%s23985_s1] sm:$0xff]  }
 0x456   : > { %12298 = vmatmul.mubr.bf16.vlgmr.msra.gmra.mxu1 %v11602_v19  ;;  %17094 = vmatpush3.bf16.msra.mxu0 %v18708_v27  ;;  %v9763_v22 = vadd.f32 %v9762_v18, %v9722_v63  ;;  %v11606_v27 = vpack.c.bf16 %v11595_v26, %v11593_v41  ;;  %v12472_v19 = vpack.c.bf16 %v12427_v49, %v12425_v50  ;;  %v18744_v18 = vld [vmem:[%s23985_s1 + $0x60] sm:$0xff]   ;;  %v12431_v45 = vrot.slane %v12405_v35, 2 }
 0x457   : > { %17579 = vmatpush3.bf16.msra.mxu1 %v18709_v11  ;;  %v17536_v21 = vpop.f32.mrf.mxu0  ;;  %17095 = vmatprep.subr.bf16.mxu0 %v18710_v62  ;;  %v18739_v11 = vld [vmem:[%s23985_s1 + $0xb0] sm:$0xff]   ;;  %v18740_v62 = vld [vmem:[%s23985_s1 + $0x68] sm:$0xff]   ;;  %v18746_v63 = vld [vmem:[%s23985_s1 + $0x20] sm:$0xff]   ;;  %v12433_v14 = vrot.slane %v12406_v9, 2 }
 0x458   : > { %17580 = vmatprep.subr.bf16.mxu1 %v18998_v42  ;;  %12338 = vmatprep.mubr.bf16.mxu0 %v11605_v57  ;;  %v9769_v15 = vmax.f32 %v9763_v22, 0.0  ;;  %v16849_v57 = vpop.f32.mrf.mxu1  ;;  %v18749_v22 = vld [vmem:[%s23985_s1 + $0xd8] sm:$0xff]   ;;  %v18763_v26 = vld [vmem:[%s23985_s1 + $0x80] sm:$0xff]  }
 0x459   : > { %v9765_v28 = vpop.f32.mrf.mxu0  ;;  %17594 = vmatprep.mubr.msk.bf16.mxu1 %vm18999_vm2, %v18998_v42 }
 0x45a   : > { %v9766_v34 = vadd.f32 %v9765_v28, %v9725_v13  ;;  %17096 = vmatpush3.bf16.msra.mxu0 %v18711_v0  ;;  %v18745_v0 = vld [vmem:[%s23985_s1 + $0xe0] sm:$0xff]   ;;  %v16850_v21 = vpop.f32.mrf.mxu1  ;;  %v18750_v13 = vld [vmem:[%s23985_s1 + $0x18] sm:$0xff]  }
 0x45b   : > { %17581 = vmatpush3.bf16.msra.mxu1 %v18712_v48  ;;  %v17537_v29 = vpop.f32.mrf.mxu0  ;;  %17097 = vmatprep.subr.bf16.mxu0 %v18713_v24  ;;  %v18747_v48 = vld [vmem:[%s23985_s1 + $0xa0] sm:$0xff]   ;;  %v18748_v24 = vld [vmem:[%s23985_s1 + $0x58] sm:$0xff]  }
 0x45c   : > { %v9770_v3 = vmax.f32 %v9766_v34, 0.0  ;;  %17582 = vmatprep.subr.bf16.mxu1 %v18998_v42  ;;  %v18751_v28 = vld [vmem:[%s23985_s1 + $0x98] sm:$0xff]   ;;  %v18752_v34 = vld [vmem:[%s23985_s1 + $0x50] sm:$0xff]  }
 0x45d   : > { %v18754_v29 = vld [vmem:[%s23985_s1 + $0x10] sm:$0xff]  }
 0x45e   : > { %v15724_v2 = vpack.c.bf16 %v9770_v3, %v9769_v15  ;;  %17098 = vmatpush3.bf16.msra.mxu0 %v18714_v4  ;;  %v23377_v4 = vpop.f32.mrf.mxu1  ;;  %v18755_v15 = vld [vmem:[%s23985_s1 + $0x90] sm:$0xff]   ;;  %v18756_v3 = vld [vmem:[%s23985_s1 + $0x48] sm:$0xff]  }
 0x45f   : > { %17583 = vmatpush3.bf16.msra.mxu1 %v18715_v31  ;;  %17099 = vmatprep.subr.bf16.mxu0 %v18716_v40  ;;  %v18753_v31 = vld [vmem:[%s23985_s1 + $0xd0] sm:$0xff]  }
 0x460   : > { %15760 = vst [vmem:[%s20125_s20 + $0x50] sm:$0xff] %v15724_v2   ;;  %17584 = vmatprep.subr.bf16.mxu1 %v18998_v42  ;;  %v16853_v2 = vpop.f32.mrf.mxu1 }
 0x462   : > { %17100 = vmatpush3.bf16.msra.mxu0 %v18717_v60  ;;  %v23395_v60 = vld [vmem:[%s19166_s7 + $0xbc] sm:$0x1] }
 0x463   : > { %17585 = vmatpush3.bf16.msra.mxu1 %v18718_v43  ;;  %17101 = vmatprep.subr.bf16.mxu0 %v18719_v6  ;;  %v23398_v43 = vld [vmem:[%s19166_s7 + $0xc0] sm:$0xff]   ;;  %v23401_v6 = vld [vmem:[%s19166_s7 + $0xc8] sm:$0x1] }
 0x464   : > { %17586 = vmatprep.subr.bf16.mxu1 %v18998_v42  ;;  %v12417_v47 = vunpack.c.l.bf16 %v23398_v43  ;;  %v12419_v8 = vunpack.c.l.bf16 %v23401_v6  ;;  %v18820_v6 = vld [vmem:[%s23985_s1 + $0x40] sm:$0xff]  }
 0x466   : > { %17102 = vmatpush3.bf16.msra.mxu0 %v18720_v59  ;;  %v12457_v50 = vrot.slane %v12417_v47, 1 }
 0x467   : > { %17587 = vmatpush3.bf16.msra.mxu1 %v18721_v61  ;;  %17103 = vmatprep.subr.bf16.mxu0 %v18722_v53  ;;  %v18757_v61 = vld [vmem:[%s23985_s1 + $0xc8] sm:$0xff]  }
 0x468   : > { %17588 = vmatprep.subr.bf16.mxu1 %v18998_v42 }
 0x46a   : > { %17104 = vmatpush3.bf16.msra.mxu0 %v18723_v17  ;;  %v18758_v17 = vld [vmem:[%s23985_s1 + $0x8] sm:$0xff]  }
 0x46b   : > { %17589 = vmatpush3.bf16.msra.mxu1 %v18724_v5  ;;  %17105 = vmatprep.subr.bf16.mxu0 %v18725_v56  ;;  %v12410_v5 = vunpack.c.l.bf16 %v23322_v12  ;;  %v12411_v56 = vunpack.c.h.bf16 %v23322_v12 }
 0x46c   : > { %17590 = vmatprep.subr.bf16.mxu1 %v18998_v42 }
 0x46d   : > { %v12448_v35 = vrot.slane %v12411_v56, 2 }
 0x46e   : > { %17106 = vmatpush3.bf16.msra.mxu0 %v18726_v37  ;;  %v12412_v37 = vunpack.c.l.bf16 %v23395_v60  ;;  %v18795_v60 = vld [vmem:[%s23985_s1 + $0x1c0] sm:$0xff]  }
 0x46f   : > { %17591 = vmatpush3.bf16.msra.mxu1 %v18727_v58  ;;  %17107 = vmatprep.subr.bf16.mxu0 %v18728_v16  ;;  %v18759_v58 = vld [vmem:[%s23985_s1 + $0x88] sm:$0xff]   ;;  %v18760_v16 = vld [vmem:[%s23985_s1 + $0x40] sm:$0xff]  }
 0x470   : > { %17592 = vmatprep.subr.bf16.mxu1 %v18998_v42  ;;  %v12450_v9 = vrot.slane %v12412_v37, 2 }
 0x472   : > { %17108 = vmatpush3.bf16.msra.mxu0 %v18729_v36  ;;  %v12418_v36 = vunpack.c.h.bf16 %v23398_v43 }
 0x473   : > { %17593 = vmatpush3.bf16.msra.mxu1 %v18730_v1  ;;  %17124 = vmatprep.subr.bf16.mxu0 %v18732_v20  ;;  %v16851_v20 = vadd.f32 %v16850_v21, %v16849_v57  ;;  %v16854_v57 = vadd.f32 %v16853_v2, %v23377_v4  ;;  %v18772_v4 = vld [vmem:[%s23985_s1 + $0x130] sm:$0xff]   ;;  %v18774_v2 = vld [vmem:[%s23985_s1 + $0x168] sm:$0xff]  }
 0x474   : > { %17146 = vmatprep.subr.bf16.mxu1 %v18733_v52  ;;  %v12447_v52 = vrot.slane %v12410_v5, 2  ;;  %v12458_v49 = vrot.slane %v12418_v36, 1 }
 0x475   : > { %12339 = vmatmul.mubr.bf16.vlgmr.msra.gmra.mxu0 %v23142_v33  ;;  %v18742_v33 = vld [vmem:[%s23985_s1 + $0x28] sm:$0xff]   ;;  %v16871_v40 = vpop.f32.mrf.mxu0 }
 0x476   : > { %17595 = vmatmul.mubr.bf16.vlgmr.msra.gmra.mxu1 %v11606_v27  ;;  %17125 = vmatpush3.bf16.msra.mxu0 %v18734_v23  ;;  %v16893_v59 = vpop.f32.mrf.mxu1  ;;  %v18767_v23 = vld [vmem:[%s23985_s1 + $0x1f8] sm:$0xff]   ;;  %v12460_v27 = vrot.slane %v12419_v8, 1 }
 0x477   : > { %17147 = vmatpush3.bf16.msra.mxu1 %v18735_v30  ;;  %17126 = vmatprep.subr.bf16.mxu0 %v18736_v25  ;;  %v16872_v53 = vpop.f32.mrf.mxu0  ;;  %v12432_v25 = vsel %vm202_vm1, %v12430_v46, %v12431_v45  ;;  %v18777_v46 = vld [vmem:[%s23985_s1 + $0x1a8] sm:$0xff]  }
 0x478   : > { %17148 = vmatprep.subr.bf16.mxu1 %v18737_v51  ;;  %13088 = vmatprep.mubr.bf16.mxu0 %v12472_v19  ;;  %v16894_v1 = vpop.f32.mrf.mxu1  ;;  %v16873_v30 = vadd.f32 %v16872_v53, %v16871_v40  ;;  %v12434_v51 = vsel %vm202_vm1, %v12431_v45, %v12433_v14  ;;  %v18768_v19 = vld [vmem:[%s23985_s1 + $0x138] sm:$0xff]  }
 0x479   : > { %13129 = vmatprep.mubr.bf16.mxu1 %v23322_v12  ;;  %v16874_v41 = vpop.f32.mrf.mxu0  ;;  %v18793_v12 = vld [vmem:[%s23985_s1 + $0x188] sm:$0xff]  }
 0x47a   : > { %17127 = vmatpush3.bf16.msra.mxu0 %v18738_v7  ;;  %v16896_v7 = vpop.f32.mrf.mxu1 }
 0x47b   : > { %17149 = vmatpush3.bf16.msra.mxu1 %v18739_v11  ;;  %17128 = vmatprep.subr.bf16.mxu0 %v18740_v62  ;;  %v10472_v11 = vadd.f32 %v23177_v55, %v16851_v20  ;;  %v16875_v62 = vpop.f32.mrf.mxu0  ;;  %v18779_v20 = vld [vmem:[%s23985_s1 + $0x1e0] sm:$0xff]  }
 0x47c   : > { %17150 = vmatprep.subr.bf16.mxu1 %v18741_v38  ;;  %v18769_v38 = vld [vmem:[%s23985_s1 + $0x1b8] sm:$0xff]  }
 0x47d   : > { %v10513_v21 = vadd.f32 %v16873_v30, %v10472_v11  ;;  %v18784_v30 = vld [vmem:[%s23985_s1 + $0x118] sm:$0xff]   ;;  %v18787_v11 = vld [vmem:[%s23985_s1 + $0x1d0] sm:$0xff]  }
 0x47e   : > { %17129 = vmatpush3.bf16.msra.mxu0 %v18742_v33  ;;  %v12449_v33 = vsel %vm202_vm1, %v12447_v52, %v12448_v35 }
 0x47f   : > { %17151 = vmatpush3.bf16.msra.mxu1 %v18743_v10  ;;  %17130 = vmatprep.subr.bf16.mxu0 %v18744_v18  ;;  %v12451_v10 = vsel %vm202_vm1, %v12448_v35, %v12450_v9  ;;  %v12473_v18 = vpack.c.bf16 %v12434_v51, %v12432_v25  ;;  %v18780_v35 = vld [vmem:[%s23985_s1 + $0x120] sm:$0xff]   ;;  %v18785_v25 = vld [vmem:[%s23985_s1 + $0x198] sm:$0xff]   ;;  %v18786_v51 = vld [vmem:[%s23985_s1 + $0x150] sm:$0xff]  }
 0x480   : > { %17152 = vmatprep.subr.bf16.mxu1 %v18745_v0  ;;  %v18770_v0 = vld [vmem:[%s23985_s1 + $0x170] sm:$0xff]  }
 0x482   : > { %17131 = vmatpush3.bf16.msra.mxu0 %v18746_v63  ;;  %v12459_v63 = vsel %vm194_vm0, %v12457_v50, %v12458_v49  ;;  %v18782_v50 = vld [vmem:[%s23985_s1 + $0x158] sm:$0xff]  }
 0x483   : > { %17153 = vmatpush3.bf16.msra.mxu1 %v18747_v48  ;;  %17132 = vmatprep.subr.bf16.mxu0 %v18748_v24  ;;  %v12461_v48 = vsel %vm194_vm0, %v12458_v49, %v12460_v27  ;;  %v16895_v24 = vadd.f32 %v16894_v1, %v16893_v59  ;;  %v18778_v1 = vld [vmem:[%s23985_s1 + $0x160] sm:$0xff]   ;;  %v18783_v49 = vld [vmem:[%s23985_s1 + $0x1d8] sm:$0xff]  }
 0x484   : > { %17154 = vmatprep.subr.bf16.mxu1 %v18749_v22  ;;  %v18771_v22 = vld [vmem:[%s23985_s1 + $0x1f0] sm:$0xff]   ;;  %v12478_v40 = vpack.c.bf16 %v12461_v48, %v12459_v63  ;;  %v12440_v63 = vrot.slane %v12410_v5, 1  ;;  %v12441_v48 = vrot.slane %v12411_v56, 1  ;;  %v18794_v5 = vld [vmem:[%s23985_s1 + $0x140] sm:$0xff]  }
 0x485   : > { %v10554_v59 = vadd.f32 %v16895_v24, %v10513_v21  ;;  %v18792_v21 = vld [vmem:[%s23985_s1 + $0x108] sm:$0xff]   ;;  %v12443_v24 = vrot.slane %v12412_v37, 1  ;;  %v18796_v37 = vld [vmem:[%s23985_s1 + $0x100] sm:$0xff]  }
 0x486   : > { %17133 = vmatpush3.bf16.msra.mxu0 %v18750_v13  ;;  %v16876_v13 = vadd.f32 %v16875_v62, %v16874_v41  ;;  %v12442_v56 = vsel %vm194_vm0, %v12440_v63, %v12441_v48  ;;  %v18826_v63 = vld [vmem:[%s23985_s1 + $0xb8] sm:$0xff]  }
 0x487   : > { %17155 = vmatpush3.bf16.msra.mxu1 %v18751_v28  ;;  %17134 = vmatprep.subr.bf16.mxu0 %v18752_v34  ;;  %v16897_v28 = vpop.f32.mrf.mxu1  ;;  %v12476_v34 = vpack.c.bf16 %v12451_v10, %v12449_v33  ;;  %v18789_v33 = vld [vmem:[%s23985_s1 + $0x190] sm:$0xff]   ;;  %v18790_v10 = vld [vmem:[%s23985_s1 + $0x148] sm:$0xff]  }
 0x488   : > { %17156 = vmatprep.subr.bf16.mxu1 %v18753_v31 }
 0x48a   : > { %17135 = vmatpush3.bf16.msra.mxu0 %v18754_v29  ;;  %v18773_v29 = vld [vmem:[%s23985_s1 + $0x1b0] sm:$0xff]  }
 0x48b   : > { %17157 = vmatpush3.bf16.msra.mxu1 %v18755_v15  ;;  %17136 = vmatprep.subr.bf16.mxu0 %v18756_v3  ;;  %v10475_v15 = vadd.f32 %v23177_v55, %v16854_v57  ;;  %v18776_v55 = vld [vmem:[%s23985_s1 + $0x128] sm:$0xff]   ;;  %v23535_v57 = vld [vmem:[%s19166_s7 + $0xb4] sm:$0xff]  }
 0x48c   : > { %17158 = vmatprep.subr.bf16.mxu1 %v18757_v61 }
 0x48d   : > { %v10516_v53 = vadd.f32 %v16876_v13, %v10475_v15  ;;  %v13278_v13 = vunpack.c.h.bf16 %v23535_v57  ;;  %v18798_v15 = vld [vmem:[%s23985_s1 + $0x78] sm:$0xff]  }
 0x48e   : > { %17137 = vmatpush3.bf16.msra.mxu0 %v18758_v17  ;;  %v16898_v17 = vadd.f32 %v16897_v28, %v16896_v7 }
 0x48f   : > { %17159 = vmatpush3.bf16.msra.mxu1 %v18759_v58  ;;  %17138 = vmatprep.subr.bf16.mxu0 %v18760_v16 }
 0x490   : > { %17160 = vmatprep.subr.bf16.mxu1 %v18761_v39  ;;  %v10557_v41 = vadd.f32 %v16898_v17, %v10516_v53  ;;  %v18802_v53 = vld [vmem:[%s23985_s1 + $0x70] sm:$0xff]  }
 0x492   : > { %17139 = vmatpush3.bf16.msra.mxu0 %v18762_v54 }
 0x493   : > { %17161 = vmatpush3.bf16.msra.mxu1 %v18763_v26  ;;  %17168 = vmatprep.subr.bf16.mxu0 %v18766_v32  ;;  %v18781_v32 = vld [vmem:[%s23985_s1 + $0x1a0] sm:$0xff]  }
 0x494   : > { %17190 = vmatprep.subr.bf16.mxu1 %v18767_v23 }
 0x495   : > { %v16915_v31 = vpop.f32.mrf.mxu0  ;;  %13089 = vmatmul.mubr.bf16.vlgmr.msra.gmra.mxu0 %v23267_v44  ;;  %v18775_v44 = vld [vmem:[%s23985_s1 + $0x1e8] sm:$0xff]  }
 0x496   : > { %v10635_v3 = vpop.f32.mrf.mxu1  ;;  %13130 = vmatmul.mubr.bf16.vlgmr.msra.gmra.mxu1 %v12473_v18  ;;  %17169 = vmatpush3.bf16.msra.mxu0 %v18768_v19  ;;  %v23538_v18 = vld [vmem:[%s19166_s7 + $0xbc] sm:$0x1] }
 0x497   : > { %17191 = vmatpush3.bf16.msra.mxu1 %v18769_v38  ;;  %v16916_v61 = vpop.f32.mrf.mxu0  ;;  %17170 = vmatprep.subr.bf16.mxu0 %v18770_v0  ;;  %v18788_v38 = vld [vmem:[%s23985_s1 + $0x110] sm:$0xff]   ;;  %v18791_v0 = vld [vmem:[%s23985_s1 + $0x1c8] sm:$0xff]   ;;  %v13279_v28 = vunpack.c.l.bf16 %v23538_v18 }
 0x498   : > { %v16917_v58 = vadd.f32 %v16916_v61, %v16915_v31  ;;  %v17556_v16 = vpop.f32.mrf.mxu1  ;;  %17192 = vmatprep.subr.bf16.mxu1 %v18771_v22  ;;  %13170 = vmatprep.mubr.bf16.mxu0 %v12476_v34  ;;  %v13277_v22 = vunpack.c.l.bf16 %v23535_v57  ;;  %v13297_v31 = vrot.slane %v13278_v13, 1 }
 0x499   : > { %v16918_v39 = vpop.f32.mrf.mxu0  ;;  %13211 = vmatprep.mubr.bf16.mxu1 %v12478_v40  ;;  %v18797_v40 = vld [vmem:[%s23985_s1 + $0x180] sm:$0xff]   ;;  %v18804_v16 = vld [vmem:[%s23985_s1 + $0x30] sm:$0xff]  }
 0x49a   : > { %v10595_v45 = vadd.f32 %v16917_v58, %v10554_v59  ;;  %v10638_v14 = vpop.f32.mrf.mxu1  ;;  %17171 = vmatpush3.bf16.msra.mxu0 %v18772_v4  ;;  %v12444_v4 = vsel %vm194_vm0, %v12441_v48, %v12443_v24  ;;  %v13296_v34 = vrot.slane %v13277_v22, 1  ;;  %v18803_v58 = vld [vmem:[%s23985_s1 + $0x230] sm:$0xff]  }
 0x49b   : > { %17193 = vmatpush3.bf16.msra.mxu1 %v18773_v29  ;;  %v16919_v54 = vpop.f32.mrf.mxu0  ;;  %17172 = vmatprep.subr.bf16.mxu0 %v18774_v2  ;;  %v13299_v29 = vrot.slane %v13279_v28, 1  ;;  %v18800_v2 = vld [vmem:[%s23985_s1 + $0x238] sm:$0xff]  }
 0x49c   : > { %v16920_v26 = vadd.f32 %v16919_v54, %v16918_v39  ;;  %v17557_v52 = vpop.f32.mrf.mxu1  ;;  %17194 = vmatprep.subr.bf16.mxu1 %v18775_v44  ;;  %v10636_v9 = vadd.f32 %v10635_v3, %v10595_v45  ;;  %v12475_v3 = vpack.c.bf16 %v12444_v4, %v12442_v56  ;;  %v13298_v59 = vsel %vm194_vm0, %v13296_v34, %v13297_v31  ;;  %v18801_v44 = vld [vmem:[%s23985_s1 + $0x38] sm:$0xff]   ;;  %v18806_v39 = vld [vmem:[%s23985_s1 + $0x228] sm:$0xff]   ;;  %v18808_v45 = vld [vmem:[%s23985_s1 + $0x60] sm:$0xff]  }
 0x49d   : > { %v13300_v61 = vsel %vm194_vm0, %v13297_v31, %v13299_v29  ;;  %v18811_v54 = vld [vmem:[%s23985_s1 + $0x58] sm:$0xff]   ;;  %v18815_v52 = vld [vmem:[%s23985_s1 + $0x210] sm:$0xff]   ;;  %v18832_v29 = vld [vmem:[%s23985_s1 + $0xe8] sm:$0xff]  }
 0x49e   : > { %v10598_v23 = vadd.f32 %v16920_v26, %v10557_v41  ;;  %17173 = vmatpush3.bf16.msra.mxu0 %v18776_v55  ;;  %v10642_v7 = vmax.f32 %v10636_v9, 0.0  ;;  %v13345_v17 = vpack.c.bf16 %v13300_v61, %v13298_v59  ;;  %v18805_v55 = vld [vmem:[%s23985_s1 + $0x68] sm:$0xff]   ;;  %v18813_v41 = vld [vmem:[%s23985_s1 + $0x18] sm:$0xff]   ;;  %v18814_v26 = vld [vmem:[%s23985_s1 + $0x50] sm:$0xff]  }
 0x49f   : > { %17195 = vmatpush3.bf16.msra.mxu1 %v18777_v46  ;;  %17174 = vmatprep.subr.bf16.mxu0 %v18778_v1  ;;  %v18807_v46 = vld [vmem:[%s23985_s1 + $0x28] sm:$0xff]   ;;  %v18810_v1 = vld [vmem:[%s23985_s1 + $0x20] sm:$0xff]   ;;  %v18831_v31 = vld [vmem:[%s23985_s1 + $0x130] sm:$0xff]  }
 0x4a0   : > { %v10639_v27 = vadd.f32 %v10638_v14, %v10598_v23  ;;  %17196 = vmatprep.subr.bf16.mxu1 %v18779_v20  ;;  %v18809_v14 = vld [vmem:[%s23985_s1 + $0x220] sm:$0xff]   ;;  %v18812_v20 = vld [vmem:[%s23985_s1 + $0x218] sm:$0xff]   ;;  %v23647_v9 = vld [vmem:[%s19166_s7 + $0xc8] sm:$0x1] }
 0x4a1   : > { %v18817_v23 = vld [vmem:[%s23985_s1 + $0x48] sm:$0xff]   ;;  %v18836_v61 = vld [vmem:[%s23985_s1 + $0xe0] sm:$0xff]  }
 0x4a2   : > { %v10643_v19 = vmax.f32 %v10639_v27, 0.0  ;;  %17175 = vmatpush3.bf16.msra.mxu0 %v18780_v35  ;;  %v18816_v35 = vld [vmem:[%s23985_s1 + $0x10] sm:$0xff]   ;;  %v12467_v27 = vrot.slane %v12419_v8, 2  ;;  %v18835_v59 = vld [vmem:[%s23985_s1 + $0x128] sm:$0xff]  }
 0x4a3   : > { %17197 = vmatpush3.bf16.msra.mxu1 %v18781_v32  ;;  %17176 = vmatprep.subr.bf16.mxu0 %v18782_v50  ;;  %v23644_v32 = vld [vmem:[%s19166_s7 + $0xc0] sm:$0xff]   ;;  %v12464_v50 = vrot.slane %v12417_v47, 2 }
 0x4a4   : > { %v15729_v62 = vpack.c.bf16 %v10643_v19, %v10642_v7  ;;  %17198 = vmatprep.subr.bf16.mxu1 %v18783_v49  ;;  %v12465_v49 = vrot.slane %v12418_v36, 2  ;;  %v13285_v7 = vunpack.c.l.bf16 %v23647_v9  ;;  %v18821_v36 = vld [vmem:[%s23985_s1 + $0x200] sm:$0xff]  }
 0x4a6   : > { %15761 = vst [vmem:[%s20125_s20 + $0x58] sm:$0xff] %v15729_v62   ;;  %17177 = vmatpush3.bf16.msra.mxu0 %v18784_v30  ;;  %v18818_v30 = vld [vmem:[%s23985_s1 + $0x208] sm:$0xff]   ;;  %v12466_v47 = vsel %vm202_vm1, %v12464_v50, %v12465_v49  ;;  %v12468_v8 = vsel %vm202_vm1, %v12465_v49, %v12467_v27  ;;  %v13323_v62 = vrot.slane %v13285_v7, 2  ;;  %v18847_v50 = vld [vmem:[%s23985_s1 + $0x110] sm:$0xff]  }
 0x4a7   : > { %17199 = vmatpush3.bf16.msra.mxu1 %v18785_v25  ;;  %17178 = vmatprep.subr.bf16.mxu0 %v18786_v51  ;;  %v13283_v25 = vunpack.c.l.bf16 %v23644_v32  ;;  %v13284_v51 = vunpack.c.h.bf16 %v23644_v32  ;;  %v18848_v49 = vld [vmem:[%s23985_s1 + $0xc8] sm:$0xff]  }
 0x4a8   : > { %17200 = vmatprep.subr.bf16.mxu1 %v18787_v11 }
 0x4a9   : > { %v13320_v19 = vrot.slane %v13283_v25, 2  ;;  %v13321_v11 = vrot.slane %v13284_v51, 2  ;;  %v13314_v18 = vrot.slane %v13284_v51, 1 }
 0x4aa   : > { %17179 = vmatpush3.bf16.msra.mxu0 %v18788_v38  ;;  %v18822_v38 = vld [vmem:[%s23985_s1] sm:$0xff]  }
 0x4ab   : > { %17201 = vmatpush3.bf16.msra.mxu1 %v18789_v33  ;;  %17180 = vmatprep.subr.bf16.mxu0 %v18790_v10  ;;  %v18823_v33 = vld [vmem:[%s23985_s1 + $0xf8] sm:$0xff]   ;;  %v13322_v48 = vsel %vm202_vm1, %v13320_v19, %v13321_v11 }
 0x4ac   : > { %17202 = vmatprep.subr.bf16.mxu1 %v18791_v0  ;;  %v18824_v10 = vld [vmem:[%s23985_s1 + $0x178] sm:$0xff]   ;;  %v12479_v0 = vpack.c.bf16 %v12468_v8, %v12466_v47 }
 0x4ae   : > { %17181 = vmatpush3.bf16.msra.mxu0 %v18792_v21  ;;  %v13324_v21 = vsel %vm202_vm1, %v13321_v11, %v13323_v62 }
 0x4af   : > { %17203 = vmatpush3.bf16.msra.mxu1 %v18793_v12  ;;  %17182 = vmatprep.subr.bf16.mxu0 %v18794_v5  ;;  %v18827_v12 = vld [vmem:[%s23985_s1 + $0x138] sm:$0xff]   ;;  %v18828_v5 = vld [vmem:[%s23985_s1 + $0xf0] sm:$0xff]   ;;  %v13349_v56 = vpack.c.bf16 %v13324_v21, %v13322_v48 }
 0x4b0   : > { %17204 = vmatprep.subr.bf16.mxu1 %v18795_v60  ;;  %v18829_v60 = vld [vmem:[%s23985_s1 + $0x170] sm:$0xff]  }
 0x4b2   : > { %17183 = vmatpush3.bf16.msra.mxu0 %v18796_v37  ;;  %v18830_v37 = vld [vmem:[%s23985_s1 + $0xb0] sm:$0xff]  }
 0x4b3   : > { %17205 = vmatpush3.bf16.msra.mxu1 %v18797_v40  ;;  %17598 = vmatprep.subr.bf16.mxu0 %v18998_v42  ;;  %v18833_v40 = vld [vmem:[%s23985_s1 + $0x168] sm:$0xff]  }
 0x4b4   : > { %17221 = vmatprep.subr.bf16.mxu1 %v18798_v15  ;;  %v18834_v15 = vld [vmem:[%s23985_s1 + $0xa8] sm:$0xff]  }
 0x4b5   : > { %13171 = vmatmul.mubr.bf16.vlgmr.msra.gmra.mxu0 %v12475_v3  ;;  %v16946_v24 = vpop.f32.mrf.mxu0 }
 0x4b6   : > { %13212 = vmatmul.mubr.bf16.vlgmr.msra.gmra.mxu1 %v23398_v43  ;;  %17599 = vmatpush3.bf16.msra.mxu0 %v18800_v2  ;;  %v18819_v43 = vld [vmem:[%s23985_s1 + $0x8] sm:$0xff]   ;;  %v23710_v4 = vpop.f32.mrf.mxu1 }
 0x4b7   : > { %17222 = vmatpush3.bf16.msra.mxu1 %v18801_v44  ;;  %17600 = vmatprep.subr.bf16.mxu0 %v18998_v42  ;;  %v16947_v34 = vpop.f32.mrf.mxu0  ;;  %v18837_v44 = vld [vmem:[%s23985_s1 + $0x160] sm:$0xff]  }
 0x4b8   : > { %17223 = vmatprep.subr.bf16.mxu1 %v18802_v53  ;;  %17614 = vmatprep.mubr.msk.bf16.mxu0 %vm18999_vm2, %v18998_v42  ;;  %v16969_v3 = vpop.f32.mrf.mxu1  ;;  %v18838_v53 = vld [vmem:[%s23985_s1 + $0xa0] sm:$0xff]   ;;  %v16948_v27 = vadd.f32 %v16947_v34, %v16946_v24  ;;  %v18857_v34 = vld [vmem:[%s23985_s1 + $0x1f8] sm:$0xff]  }
 0x4b9   : > { %13961 = vmatprep.mubr.bf16.mxu1 %v13345_v17  ;;  %v16949_v2 = vpop.f32.mrf.mxu0 }
 0x4ba   : > { %17601 = vmatpush3.bf16.msra.mxu0 %v18803_v58  ;;  %v16971_v17 = vpop.f32.mrf.mxu1 }
 0x4bb   : > { %17224 = vmatpush3.bf16.msra.mxu1 %v18804_v16  ;;  %17602 = vmatprep.subr.bf16.mxu0 %v18998_v42  ;;  %v16950_v58 = vpop.f32.mrf.mxu0  ;;  %v18839_v16 = vld [vmem:[%s23985_s1 + $0x120] sm:$0xff]  }
 0x4bc   : > { %17225 = vmatprep.subr.bf16.mxu1 %v18805_v55  ;;  %v18840_v55 = vld [vmem:[%s23985_s1 + $0xd8] sm:$0xff]   ;;  %v16951_v62 = vadd.f32 %v16950_v58, %v16949_v2 }
 0x4bd   : > { %v18858_v58 = vld [vmem:[%s23985_s1 + $0x1b8] sm:$0xff]  }
 0x4be   : > { %17603 = vmatpush3.bf16.msra.mxu0 %v18806_v39  ;;  %v18841_v39 = vld [vmem:[%s23985_s1 + $0x158] sm:$0xff]  }
 0x4bf   : > { %17226 = vmatpush3.bf16.msra.mxu1 %v18807_v46  ;;  %17604 = vmatprep.subr.bf16.mxu0 %v18998_v42 }
 0x4c0   : > { %17227 = vmatprep.subr.bf16.mxu1 %v18808_v45  ;;  %v18842_v45 = vld [vmem:[%s23985_s1 + $0x98] sm:$0xff]  }
 0x4c2   : > { %17605 = vmatpush3.bf16.msra.mxu0 %v18809_v14  ;;  %v16972_v14 = vpop.f32.mrf.mxu1 }
 0x4c3   : > { %17228 = vmatpush3.bf16.msra.mxu1 %v18810_v1  ;;  %17606 = vmatprep.subr.bf16.mxu0 %v18998_v42  ;;  %v18843_v1 = vld [vmem:[%s23985_s1 + $0x118] sm:$0xff]  }
 0x4c4   : > { %17229 = vmatprep.subr.bf16.mxu1 %v18811_v54  ;;  %v18844_v54 = vld [vmem:[%s23985_s1 + $0xd0] sm:$0xff]  }
 0x4c6   : > { %17607 = vmatpush3.bf16.msra.mxu0 %v18812_v20  ;;  %v18845_v20 = vld [vmem:[%s23985_s1 + $0x150] sm:$0xff]  }
 0x4c7   : > { %17230 = vmatpush3.bf16.msra.mxu1 %v18813_v41  ;;  %17608 = vmatprep.subr.bf16.mxu0 %v18998_v42 }
 0x4c8   : > { %17231 = vmatprep.subr.bf16.mxu1 %v18814_v26 }
 0x4ca   : > { %17609 = vmatpush3.bf16.msra.mxu0 %v18815_v52  ;;  %v18846_v52 = vld [vmem:[%s23985_s1 + $0x90] sm:$0xff]  }
 0x4cb   : > { %17232 = vmatpush3.bf16.msra.mxu1 %v18816_v35  ;;  %17610 = vmatprep.subr.bf16.mxu0 %v18998_v42  ;;  %v23764_v35 = vld [vmem:[%s19166_s7 + $0xcc] sm:$0xff]  }
 0x4cc   : > { %17233 = vmatprep.subr.bf16.mxu1 %v18817_v23  ;;  %v23767_v23 = vld [vmem:[%s19166_s7 + $0xd4] sm:$0x1]  ;;  %v13290_v8 = vunpack.c.l.bf16 %v23764_v35  ;;  %v13291_v19 = vunpack.c.h.bf16 %v23764_v35 }
 0x4cd   : > { %v13292_v11 = vunpack.c.l.bf16 %v23767_v23 }
 0x4ce   : > { %17611 = vmatpush3.bf16.msra.mxu0 %v18818_v30  ;;  %v13303_v30 = vrot.slane %v13277_v22, 2  ;;  %v13306_v22 = vrot.slane %v13279_v28, 2  ;;  %v13316_v28 = vrot.slane %v13285_v7, 1  ;;  %v13330_v9 = vrot.slane %v13290_v8, 1 }
 0x4cf   : > { %17234 = vmatpush3.bf16.msra.mxu1 %v18819_v43  ;;  %17612 = vmatprep.subr.bf16.mxu0 %v18998_v42  ;;  %v18849_v43 = vld [vmem:[%s23985_s1 + $0x148] sm:$0xff]   ;;  %v13331_v7 = vrot.slane %v13291_v19, 1  ;;  %v13333_v21 = vrot.slane %v13292_v11, 1 }
 0x4d0   : > { %17235 = vmatprep.subr.bf16.mxu1 %v18820_v6  ;;  %v13304_v6 = vrot.slane %v13278_v13, 2  ;;  %v18852_v13 = vld [vmem:[%s23985_s1 + $0xc0] sm:$0xff]  }
 0x4d1   : > { %v13332_v2 = vsel %vm194_vm0, %v13330_v9, %v13331_v7  ;;  %v13337_v9 = vrot.slane %v13290_v8, 2 }
 0x4d2   : > { %17613 = vmatpush3.bf16.msra.mxu0 %v18821_v36  ;;  %v13305_v51 = vsel %vm202_vm1, %v13303_v30, %v13304_v6  ;;  %v18864_v30 = vld [vmem:[%s23985_s1 + $0x1a8] sm:$0xff]  }
 0x4d3   : > { %17236 = vmatpush3.bf16.msra.mxu1 %v18822_v38  ;;  %17243 = vmatprep.subr.bf16.mxu0 %v18823_v33  ;;  %v18850_v38 = vld [vmem:[%s23985_s1 + $0x88] sm:$0xff]   ;;  %v13313_v33 = vrot.slane %v13283_v25, 1  ;;  %v18853_v25 = vld [vmem:[%s23985_s1 + $0x140] sm:$0xff]  }
 0x4d4   : > { %17265 = vmatprep.subr.bf16.mxu1 %v18824_v10  ;;  %v23805_v10 = vld [vmem:[%s23986_s2] ss:$0 sm:$0xff] }
 0x4d5   : > { %17615 = vmatmul.mubr.bf16.vlgmr.msra.gmra.mxu0 %v12479_v0  ;;  %v16990_v46 = vpop.f32.mrf.mxu0  ;;  %v11345_v0 = vadd.f32 %v23805_v10, %v16948_v27  ;;  %v11348_v24 = vadd.f32 %v23805_v10, %v16951_v62 }
 0x4d6   : > { %13962 = vmatmul.mubr.bf16.vlgmr.msra.gmra.mxu1 %v23535_v57  ;;  %17244 = vmatpush3.bf16.msra.mxu0 %v18826_v63  ;;  %v23758_v41 = vpop.f32.mrf.mxu1  ;;  %v18851_v57 = vld [vmem:[%s23985_s1 + $0x108] sm:$0xff]   ;;  %v16970_v63 = vadd.f32 %v16969_v3, %v23710_v4  ;;  %v13315_v4 = vsel %vm194_vm0, %v13313_v33, %v13314_v18  ;;  %v18870_v33 = vld [vmem:[%s23985_s1 + $0x198] sm:$0xff]  }
 0x4d7   : > { %17266 = vmatpush3.bf16.msra.mxu1 %v18827_v12  ;;  %17245 = vmatprep.subr.bf16.mxu0 %v18828_v5  ;;  %v16991_v26 = vpop.f32.mrf.mxu0  ;;  %v16973_v12 = vadd.f32 %v16972_v14, %v16971_v17 }
 0x4d8   : > { %17267 = vmatprep.subr.bf16.mxu1 %v18829_v60  ;;  %14002 = vmatprep.mubr.bf16.mxu0 %v23644_v32  ;;  %v17013_v47 = vpop.f32.mrf.mxu1  ;;  %v16992_v5 = vadd.f32 %v16991_v26, %v16990_v46  ;;  %v18854_v60 = vld [vmem:[%s23985_s1 + $0x80] sm:$0xff]   ;;  %v18863_v26 = vld [vmem:[%s23985_s1 + $0x1e8] sm:$0xff]  }
 0x4d9   : > { %14043 = vmatprep.mubr.bf16.mxu1 %v13349_v56  ;;  %v16993_v36 = vpop.f32.mrf.mxu0  ;;  %v13307_v56 = vsel %vm202_vm1, %v13304_v6, %v13306_v22  ;;  %v18865_v6 = vld [vmem:[%s23985_s1 + $0x228] sm:$0xff]  }
 0x4da   : > { %17246 = vmatpush3.bf16.msra.mxu0 %v18830_v37  ;;  %v17015_v48 = vpop.f32.mrf.mxu1  ;;  %v18855_v37 = vld [vmem:[%s23985_s1 + $0x100] sm:$0xff]   ;;  %v13346_v3 = vpack.c.bf16 %v13307_v56, %v13305_v51 }
 0x4db   : > { %17268 = vmatpush3.bf16.msra.mxu1 %v18831_v31  ;;  %17247 = vmatprep.subr.bf16.mxu0 %v18832_v29  ;;  %v16994_v32 = vpop.f32.mrf.mxu0  ;;  %v13317_v31 = vsel %vm194_vm0, %v13314_v18, %v13316_v28  ;;  %v11386_v29 = vadd.f32 %v16970_v63, %v11345_v0  ;;  %v18871_v18 = vld [vmem:[%s23985_s1 + $0x218] sm:$0xff]   ;;  %v18872_v28 = vld [vmem:[%s23985_s1 + $0x1d0] sm:$0xff]   ;;  %v18878_v51 = vld [vmem:[%s23985_s1 + $0x1c0] sm:$0xff]  }
 0x4dc   : > { %17269 = vmatprep.subr.bf16.mxu1 %v18833_v40  ;;  %v16995_v40 = vadd.f32 %v16994_v32, %v16993_v36  ;;  %v13348_v17 = vpack.c.bf16 %v13317_v31, %v13315_v4  ;;  %v18873_v0 = vld [vmem:[%s23985_s1 + $0x190] sm:$0xff]   ;;  %v18877_v32 = vld [vmem:[%s23985_s1 + $0x208] sm:$0xff]  }
 0x4dd   : > { %v18874_v63 = vld [vmem:[%s23985_s1 + $0x210] sm:$0xff]  }
 0x4de   : > { %17248 = vmatpush3.bf16.msra.mxu0 %v18834_v15  ;;  %v17016_v15 = vpop.f32.mrf.mxu1 }
 0x4df   : > { %17270 = vmatpush3.bf16.msra.mxu1 %v18835_v59  ;;  %17249 = vmatprep.subr.bf16.mxu0 %v18836_v61  ;;  %v13334_v59 = vsel %vm194_vm0, %v13331_v7, %v13333_v21  ;;  %v11389_v61 = vadd.f32 %v16973_v12, %v11348_v24  ;;  %v17017_v46 = vadd.f32 %v17016_v15, %v17015_v48  ;;  %v18876_v48 = vld [vmem:[%s23985_s1 + $0x188] sm:$0xff]   ;;  %v13338_v7 = vrot.slane %v13291_v19, 2  ;;  %v18879_v24 = vld [vmem:[%s23985_s1 + $0x180] sm:$0xff]  }
 0x4e0   : > { %17271 = vmatprep.subr.bf16.mxu1 %v18837_v44  ;;  %v11427_v44 = vadd.f32 %v16992_v5, %v11386_v29  ;;  %v13340_v21 = vrot.slane %v13292_v11, 2  ;;  %v18880_v12 = vld [vmem:[%s23985_s1 + $0x200] sm:$0xff]  }
 0x4e1   : > { %v13339_v8 = vsel %vm202_vm1, %v13337_v9, %v13338_v7 }
 0x4e2   : > { %17250 = vmatpush3.bf16.msra.mxu0 %v18838_v53  ;;  %v17014_v53 = vadd.f32 %v17013_v47, %v23758_v41  ;;  %v18862_v41 = vld [vmem:[%s23985_s1 + $0x230] sm:$0xff]   ;;  %v18866_v47 = vld [vmem:[%s23985_s1 + $0x1e0] sm:$0xff]   ;;  %v13341_v19 = vsel %vm202_vm1, %v13338_v7, %v13340_v21 }
 0x4e3   : > { %17272 = vmatpush3.bf16.msra.mxu1 %v18839_v16  ;;  %17251 = vmatprep.subr.bf16.mxu0 %v18840_v55  ;;  %v18859_v16 = vld [vmem:[%s23985_s1 + $0x238] sm:$0xff]   ;;  %v18860_v55 = vld [vmem:[%s23985_s1 + $0x1f0] sm:$0xff]   ;;  %v13352_v23 = vpack.c.bf16 %v13341_v19, %v13339_v8 }
 0x4e4   : > { %17273 = vmatprep.subr.bf16.mxu1 %v18841_v39  ;;  %v11430_v39 = vadd.f32 %v16995_v40, %v11389_v61 }
 0x4e6   : > { %17252 = vmatpush3.bf16.msra.mxu0 %v18842_v45  ;;  %v13351_v45 = vpack.c.bf16 %v13334_v59, %v13332_v2 }
 0x4e7   : > { %17274 = vmatpush3.bf16.msra.mxu1 %v18843_v1  ;;  %17253 = vmatprep.subr.bf16.mxu0 %v18844_v54  ;;  %v11468_v1 = vadd.f32 %v17014_v53, %v11427_v44  ;;  %v18861_v54 = vld [vmem:[%s23985_s1 + $0x1b0] sm:$0xff]  }
 0x4e8   : > { %17275 = vmatprep.subr.bf16.mxu1 %v18845_v20 }
 0x4ea   : > { %17254 = vmatpush3.bf16.msra.mxu0 %v18846_v52 }
 0x4eb   : > { %17276 = vmatpush3.bf16.msra.mxu1 %v18847_v50  ;;  %17255 = vmatprep.subr.bf16.mxu0 %v18848_v49  ;;  %v11471_v50 = vadd.f32 %v17017_v46, %v11430_v39 }
 0x4ec   : > { %17277 = vmatprep.subr.bf16.mxu1 %v18849_v43 }
 0x4ee   : > { %17256 = vmatpush3.bf16.msra.mxu0 %v18850_v38  ;;  %v18867_v38 = vld [vmem:[%s23985_s1 + $0x1a0] sm:$0xff]  }
 0x4ef   : > { %17278 = vmatpush3.bf16.msra.mxu1 %v18851_v57  ;;  %17257 = vmatprep.subr.bf16.mxu0 %v18852_v13  ;;  %v18868_v57 = vld [vmem:[%s23985_s1 + $0x220] sm:$0xff]   ;;  %v18869_v13 = vld [vmem:[%s23985_s1 + $0x1d8] sm:$0xff]  }
 0x4f0   : > { %17279 = vmatprep.subr.bf16.mxu1 %v18853_v25  ;;  %v18875_v25 = vld [vmem:[%s23985_s1 + $0x1c8] sm:$0xff]  }
 0x4f2   : > { %17258 = vmatpush3.bf16.msra.mxu0 %v18854_v60 }
 0x4f3   : > { %17280 = vmatpush3.bf16.msra.mxu1 %v18855_v37  ;;  %17287 = vmatprep.subr.bf16.mxu0 %v18857_v34 }
 0x4f4   : > { %17618 = vmatprep.subr.bf16.mxu1 %v18998_v42 }
 0x4f5   : > { %v11508_v14 = vpop.f32.mrf.mxu0  ;;  %14003 = vmatmul.mubr.bf16.vlgmr.msra.gmra.mxu0 %v13346_v3 }
 0x4f6   : > { %14044 = vmatmul.mubr.bf16.vlgmr.msra.gmra.mxu1 %v13348_v17  ;;  %17288 = vmatpush3.bf16.msra.mxu0 %v18858_v58  ;;  %v11509_v52 = vadd.f32 %v11508_v14, %v11468_v1  ;;  %v17043_v11 = vpop.f32.mrf.mxu1 }
 0x4f7   : > { %17619 = vmatpush3.bf16.msra.mxu1 %v18859_v16  ;;  %v17576_v20 = vpop.f32.mrf.mxu0  ;;  %17289 = vmatprep.subr.bf16.mxu0 %v18860_v55 }
 0x4f8   : > { %17620 = vmatprep.subr.bf16.mxu1 %v18998_v42  ;;  %14084 = vmatprep.mubr.bf16.mxu0 %v13351_v45  ;;  %v11515_v36 = vmax.f32 %v11509_v52, 0.0  ;;  %v17044_v5 = vpop.f32.mrf.mxu1 }
 0x4f9   : > { %v11511_v49 = vpop.f32.mrf.mxu0  ;;  %17634 = vmatprep.mubr.msk.bf16.mxu1 %vm18999_vm2, %v18998_v42  ;;  %v17045_v40 = vadd.f32 %v17044_v5, %v17043_v11 }
 0x4fa   : > { %v11512_v27 = vadd.f32 %v11511_v49, %v11471_v50  ;;  %17290 = vmatpush3.bf16.msra.mxu0 %v18861_v54  ;;  %v17046_v60 = vpop.f32.mrf.mxu1 }
 0x4fb   : > { %17621 = vmatpush3.bf16.msra.mxu1 %v18862_v41  ;;  %v17577_v43 = vpop.f32.mrf.mxu0  ;;  %17291 = vmatprep.subr.bf16.mxu0 %v18863_v26 }
 0x4fc   : > { %v11516_v62 = vmax.f32 %v11512_v27, 0.0  ;;  %17622 = vmatprep.subr.bf16.mxu1 %v18998_v42  ;;  %v17047_v37 = vpop.f32.mrf.mxu1 }
 0x4fd   : > { %v17048_v59 = vadd.f32 %v17047_v37, %v17046_v60 }
 0x4fe   : > { %v15734_v22 = vpack.c.bf16 %v11516_v62, %v11515_v36  ;;  %17292 = vmatpush3.bf16.msra.mxu0 %v18864_v30 }
 0x4ff   : > { %17623 = vmatpush3.bf16.msra.mxu1 %v18865_v6  ;;  %17293 = vmatprep.subr.bf16.mxu0 %v18866_v47  ;;  %v12221_v58 = vadd.f32 %v23805_v10, %v17048_v59 }
 0x500   : > { %15762 = vst [vmem:[%s20125_s20 + $0x60] sm:$0xff] %v15734_v22   ;;  %17624 = vmatprep.subr.bf16.mxu1 %v18998_v42 }
 0x502   : > { %17294 = vmatpush3.bf16.msra.mxu0 %v18867_v38 }
 0x503   : > { %17625 = vmatpush3.bf16.msra.mxu1 %v18868_v57  ;;  %17295 = vmatprep.subr.bf16.mxu0 %v18869_v13 }
 0x504   : > { %17626 = vmatprep.subr.bf16.mxu1 %v18998_v42 }
 0x506   : > { %17296 = vmatpush3.bf16.msra.mxu0 %v18870_v33 }
 0x507   : > { %17627 = vmatpush3.bf16.msra.mxu1 %v18871_v18  ;;  %17297 = vmatprep.subr.bf16.mxu0 %v18872_v28 }
 0x508   : > { %17628 = vmatprep.subr.bf16.mxu1 %v18998_v42 }
 0x50a   : > { %17298 = vmatpush3.bf16.msra.mxu0 %v18873_v0 }
 0x50b   : > { %17629 = vmatpush3.bf16.msra.mxu1 %v18874_v63  ;;  %17299 = vmatprep.subr.bf16.mxu0 %v18875_v25 }
 0x50c   : > { %17630 = vmatprep.subr.bf16.mxu1 %v18998_v42 }
 0x50e   : > { %17300 = vmatpush3.bf16.msra.mxu0 %v18876_v48 }
 0x50f   : > { %17631 = vmatpush3.bf16.msra.mxu1 %v18877_v32  ;;  %17301 = vmatprep.subr.bf16.mxu0 %v18878_v51 }
 0x510   : > { %17632 = vmatprep.subr.bf16.mxu1 %v18998_v42  ;;  %v12218_v42 = vadd.f32 %v23805_v10, %v17045_v40 }
 0x512   : > { %17302 = vmatpush3.bf16.msra.mxu0 %v18879_v24 }
 0x513   : > { %17633 = vmatpush3.bf16.msra.mxu1 %v18880_v12 }
 0x515   : > { %14085 = vmatmul.mubr.bf16.vlgmr.msra.gmra.mxu0 %v23764_v35  ;;  %v17065_v56 = vpop.f32.mrf.mxu0 }
 0x516   : > { %17635 = vmatmul.mubr.bf16.vlgmr.msra.gmra.mxu1 %v13352_v23  ;;  %v17087_v4 = vpop.f32.mrf.mxu1 }
 0x517   : > { %v17066_v34 = vpop.f32.mrf.mxu0 }
 0x518   : > { %v17088_v31 = vpop.f32.mrf.mxu1  ;;  %v17067_v15 = vadd.f32 %v17066_v34, %v17065_v56 }
 0x519   : > { %v17068_v29 = vpop.f32.mrf.mxu0  ;;  %v17089_v44 = vadd.f32 %v17088_v31, %v17087_v4 }
 0x51a   : > { %v17090_v3 = vpop.f32.mrf.mxu1  ;;  %v12259_v61 = vadd.f32 %v17067_v15, %v12218_v42 }
 0x51b   : > { %v17069_v2 = vpop.f32.mrf.mxu0 }
 0x51c   : > { %v17070_v35 = vadd.f32 %v17069_v2, %v17068_v29  ;;  %v17091_v53 = vpop.f32.mrf.mxu1  ;;  %v12300_v39 = vadd.f32 %v17089_v44, %v12259_v61 }
 0x51d   : > { %v17092_v45 = vadd.f32 %v17091_v53, %v17090_v3 }
 0x51e   : > { %v12262_v46 = vadd.f32 %v17070_v35, %v12221_v58 }
 0x520   : > { %v12303_v52 = vadd.f32 %v17092_v45, %v12262_v46 }
 0x535   : > { %v17109_v17 = vpop.f32.mrf.mxu0 }
 0x536   : > { %v12381_v16 = vpop.f32.mrf.mxu1 }
 0x537   : > { %v17110_v55 = vpop.f32.mrf.mxu0 }
 0x538   : > { %v17111_v14 = vadd.f32 %v17110_v55, %v17109_v17  ;;  %v17596_v1 = vpop.f32.mrf.mxu1 }
 0x539   : > { %v17112_v54 = vpop.f32.mrf.mxu0 }
 0x53a   : > { %v12341_v20 = vadd.f32 %v17111_v14, %v12300_v39  ;;  %v12384_v41 = vpop.f32.mrf.mxu1 }
 0x53b   : > { %v17113_v26 = vpop.f32.mrf.mxu0 }
 0x53c   : > { %v17114_v50 = vadd.f32 %v17113_v26, %v17112_v54  ;;  %v17597_v49 = vpop.f32.mrf.mxu1  ;;  %v12382_v27 = vadd.f32 %v12381_v16, %v12341_v20 }
 0x53e   : > { %v12344_v30 = vadd.f32 %v17114_v50, %v12303_v52  ;;  %v12388_v6 = vmax.f32 %v12382_v27, 0.0 }
 0x540   : > { %v12385_v43 = vadd.f32 %v12384_v41, %v12344_v30 }
 0x542   : > { %v12389_v47 = vmax.f32 %v12385_v43, 0.0 }
 0x544   : > { %v15739_v36 = vpack.c.bf16 %v12389_v47, %v12388_v6 }
 0x546   : > { %15763 = vst [vmem:[%s20125_s20 + $0x68] sm:$0xff] %v15739_v36  }
 0x555   : > { %v17140_v62 = vpop.f32.mrf.mxu0 }
 0x556   : > { %v17162_v22 = vpop.f32.mrf.mxu1 }
 0x557   : > { %v17141_v38 = vpop.f32.mrf.mxu0 }
 0x558   : > { %v17163_v57 = vpop.f32.mrf.mxu1  ;;  %v17142_v48 = vadd.f32 %v17141_v38, %v17140_v62 }
 0x559   : > { %v17143_v13 = vpop.f32.mrf.mxu0  ;;  %v17164_v21 = vadd.f32 %v17163_v57, %v17162_v22 }
 0x55a   : > { %v17165_v33 = vpop.f32.mrf.mxu1  ;;  %v13091_v7 = vadd.f32 %v23805_v10, %v17142_v48 }
 0x55b   : > { %v17144_v18 = vpop.f32.mrf.mxu0 }
 0x55c   : > { %v17166_v0 = vpop.f32.mrf.mxu1  ;;  %v17145_v9 = vadd.f32 %v17144_v18, %v17143_v13  ;;  %v13132_v11 = vadd.f32 %v17164_v21, %v13091_v7 }
 0x55d   : > { %v17167_v19 = vadd.f32 %v17166_v0, %v17165_v33 }
 0x55e   : > { %v13094_v8 = vadd.f32 %v23805_v10, %v17145_v9 }
 0x560   : > { %v13135_v56 = vadd.f32 %v17167_v19, %v13094_v8 }
 0x575   : > { %v17184_v28 = vpop.f32.mrf.mxu0 }
 0x576   : > { %v17206_v63 = vpop.f32.mrf.mxu1 }
 0x577   : > { %v17185_v25 = vpop.f32.mrf.mxu0 }
 0x578   : > { %v17207_v32 = vpop.f32.mrf.mxu1  ;;  %v17186_v23 = vadd.f32 %v17185_v25, %v17184_v28 }
 0x579   : > { %v17187_v51 = vpop.f32.mrf.mxu0  ;;  %v17208_v4 = vadd.f32 %v17207_v32, %v17206_v63 }
 0x57a   : > { %v17209_v24 = vpop.f32.mrf.mxu1  ;;  %v13173_v37 = vadd.f32 %v17186_v23, %v13132_v11 }
 0x57b   : > { %v17188_v12 = vpop.f32.mrf.mxu0 }
 0x57c   : > { %v17189_v5 = vadd.f32 %v17188_v12, %v17187_v51  ;;  %v17210_v60 = vpop.f32.mrf.mxu1  ;;  %v13214_v40 = vadd.f32 %v17208_v4, %v13173_v37 }
 0x57d   : > { %v17211_v31 = vadd.f32 %v17210_v60, %v17209_v24 }
 0x57e   : > { %v13176_v34 = vadd.f32 %v17189_v5, %v13135_v56 }
 0x580   : > { %v13217_v2 = vadd.f32 %v17211_v31, %v13176_v34 }
 0x595   : > { %v13254_v29 = vpop.f32.mrf.mxu0 }
 0x596   : > { %v13255_v3 = vadd.f32 %v13254_v29, %v13214_v40  ;;  %v17237_v17 = vpop.f32.mrf.mxu1 }
 0x597   : > { %v17616_v15 = vpop.f32.mrf.mxu0 }
 0x598   : > { %v13261_v44 = vmax.f32 %v13255_v3, 0.0  ;;  %v17238_v58 = vpop.f32.mrf.mxu1 }
 0x599   : > { %v13257_v42 = vpop.f32.mrf.mxu0  ;;  %v17239_v54 = vadd.f32 %v17238_v58, %v17237_v17 }
 0x59a   : > { %v13258_v59 = vadd.f32 %v13257_v42, %v13217_v2  ;;  %v17240_v16 = vpop.f32.mrf.mxu1 }
 0x59b   : > { %v17617_v61 = vpop.f32.mrf.mxu0  ;;  %v13964_v52 = vadd.f32 %v23805_v10, %v17239_v54 }
 0x59c   : > { %v13262_v35 = vmax.f32 %v13258_v59, 0.0  ;;  %v17241_v39 = vpop.f32.mrf.mxu1 }
 0x59d   : > { %v17242_v50 = vadd.f32 %v17241_v39, %v17240_v16 }
 0x59e   : > { %v15744_v53 = vpack.c.bf16 %v13262_v35, %v13261_v44 }
 0x59f   : > { %v13967_v47 = vadd.f32 %v23805_v10, %v17242_v50 }
 0x5a0   : > { %15764 = vst [vmem:[%s20125_s20 + $0x70] sm:$0xff] %v15744_v53  }
 0x5b5   : > { %v17259_v55 = vpop.f32.mrf.mxu0 }
 0x5b6   : > { %v17281_v46 = vpop.f32.mrf.mxu1 }
 0x5b7   : > { %v17260_v45 = vpop.f32.mrf.mxu0 }
 0x5b8   : > { %v17282_v14 = vpop.f32.mrf.mxu1  ;;  %v17261_v20 = vadd.f32 %v17260_v45, %v17259_v55 }
 0x5b9   : > { %v17262_v1 = vpop.f32.mrf.mxu0  ;;  %v17283_v27 = vadd.f32 %v17282_v14, %v17281_v46 }
 0x5ba   : > { %v17284_v41 = vpop.f32.mrf.mxu1  ;;  %v14005_v49 = vadd.f32 %v17261_v20, %v13964_v52 }
 0x5bb   : > { %v17263_v26 = vpop.f32.mrf.mxu0 }
 0x5bc   : > { %v17264_v30 = vadd.f32 %v17263_v26, %v17262_v1  ;;  %v17285_v43 = vpop.f32.mrf.mxu1  ;;  %v14046_v22 = vadd.f32 %v17283_v27, %v14005_v49 }
 0x5bd   : > { %v17286_v57 = vadd.f32 %v17285_v43, %v17284_v41 }
 0x5be   : > { %v14008_v38 = vadd.f32 %v17264_v30, %v13967_v47 }
 0x5c0   : > { %v14049_v25 = vadd.f32 %v17286_v57, %v14008_v38 }
 0x5d5   : > { %v17303_v6 = vpop.f32.mrf.mxu0 }
 0x5d6   : > { %v14127_v36 = vpop.f32.mrf.mxu1 }
 0x5d7   : > { %v17304_v62 = vpop.f32.mrf.mxu0 }
 0x5d8   : > { %v17305_v13 = vadd.f32 %v17304_v62, %v17303_v6  ;;  %v17636_v33 = vpop.f32.mrf.mxu1 }
 0x5d9   : > { %v17306_v18 = vpop.f32.mrf.mxu0 }
 0x5da   : > { %v14087_v28 = vadd.f32 %v17305_v13, %v14046_v22  ;;  %v14130_v0 = vpop.f32.mrf.mxu1 }
 0x5db   : > { %v17307_v63 = vpop.f32.mrf.mxu0 }
 0x5dc   : > { %v17308_v48 = vadd.f32 %v17307_v63, %v17306_v18  ;;  %v17637_v32 = vpop.f32.mrf.mxu1  ;;  %v14128_v10 = vadd.f32 %v14127_v36, %v14087_v28 }
 0x5de   : > { %v14090_v51 = vadd.f32 %v17308_v48, %v14049_v25  ;;  %v14134_v7 = vmax.f32 %v14128_v10, 0.0 }
 0x5e0   : > { %v14131_v9 = vadd.f32 %v14130_v0, %v14090_v51 }
 0x5e2   : > { %v14135_v21 = vmax.f32 %v14131_v9, 0.0 }
 0x5e4   : > { %v15749_v24 = vpack.c.bf16 %v14135_v21, %v14134_v7 }
 0x5e6   : > { %15765 = vst [vmem:[%s20125_s20 + $0x78] sm:$0xff] %v15749_v24  }
 0x5e7   : > { %18949 = shalt.err (!%p18946_p3)
}
 0x5e8   : > { %s18950_s10 = scalar_lea.hbm %s23937_s26, 2048  ;;  %s18954_s11 = scalar_lea.hbm %s23987_s3, 4096 }
 0x5e9   : > { %p18951_p4 = scmp.ne.s32.totalorder %s23937_s26, %s18950_s10  ;;  %p18955_p9 = scmp.lt.s32.totalorder %s23937_s26, %s23987_s3 }
 0x5ea   : > { %p18956_p10 = scmp.lt.s32.totalorder %s18954_s11, %s18950_s10 }
 0x5eb   : > { %p18952_p7 = pnand %p18951_p4, %p19061_p5 }
 0x5ec   : > { %p18957_p11 = por %p18956_p10, %p18955_p9 }
 0x5ed   : > { %p18953_p8 = pneg %p18952_p7 }
 0x5ef   : > { %p18958_p12 = pnand %p18957_p11, %p18953_p8 }
 0x5f1   : > { %18961 = shalt.err (!%p18958_p12)
}
 0x5f2   : > { %s19001_s24 = smov 64   ;;  %s19002_s25 = smov 4  }
 0x5f3   : > { %17639 = dma.vmem_to_hbm [thread:$0]  (%p19061_p5), %s23939_s29, 2048, %s23937_s26, %s23944_s4, %s19001_s24, %s19001_s24, %s19002_s25  }
 0x5f4 PF: > { %p17645_p13 = scmp.ge.s32.totalorder %s18996_s15, 2  ;;  %s14176_s27 = sand.u32 1, %s18984_s12  }
 0x5f5   : > { %s14177_s28 = scalar_lea.sflag [#allocation3], %s14176_s27 }
 0x5f6   : > { %p17642_p0 = pnand %p17645_p13, %p19065_p6 }
 0x5f8   : > { %p17643_p1 = pneg %p17642_p0 }
 0x5fa   : > { %18979 = dma.done.wait (%p17643_p1), %s14177_s28, 2048  }
 0x5fb   : > { %18981 = vsyncadd (%p17643_p1), %s14177_s28, 4294965248  ;;  %p13_p2 = scmp.ge.s32.totalorder %s19048_s18, 4   ;;  %s23990_s12 = smov %s18988_s13 }
 0x5fc   : > { %s23991_s13 = smov %s18992_s14  ;;  %s23992_s14 = smov %s19059_s21 }
 0x5fd   : > { %s23993_s15 = smov %s19048_s18  ;;  %15 = sbr.rel (!%p13_p2) target bundleno = 3 (0x3), region = 99 }
 0x602   :  { %14182 = vsyncpa [#allocation3], 1 }
 0x603   :  { %14184 = vsyncpa [#allocation3 + $0x1], 1 }

</bundles_post_ra>
